<compile_context>
chip_gen: v5e
topology: v5e:2x2
jax: 0.10.0
libtpu: 0.0.40
codegen_flags: <defaults>
</compile_context>

<pallas_src>
import functools

import jax
import jax.numpy as jnp
from jax import lax
from jax.experimental import pallas as pl
from jax.experimental.pallas import tpu as pltpu


# ----------------------------- Pallas kernel ------------------------------- #

def _basic_block_kernel(x_ref, w1_ref, b1_ref, w2_ref, b2_ref, o_ref,
                        xpad, ypad, acc, *, H, W, C, Co):
    """Fully fused residual block for one image (NHWC flattened to (H*W, C)).

    x_ref:  (H*W, C)        f32 input tile
    w1_ref: (9*C, Co)       bf16 conv1 weights (BN1 scale folded in)
    b1_ref: (1, Co)         f32 folded BN1 shift
    w2_ref: (9*Co, Co)      bf16 conv2 weights (BN2 scale folded in)
    b2_ref: (1, Co)         f32 folded BN2 shift
    o_ref:  (H*W, Co)       f32 output

    scratch:
    xpad:   (H*W + 4*W, C)  bf16 row-padded input (zero halo rows)
    ypad:   (H*W + 4*W, Co) bf16 row-padded intermediate activation
    acc:    (H*W, Co)       f32 accumulator
    """
    f32, bf16 = jnp.float32, jnp.bfloat16
    HW = H * W
    PAD = 2 * W                       # zero halo rows above / below the image
    TOT = HW + 2 * PAD
    CH = min(HW, 64)                  # flat rows per store-through chunk
    while HW % CH:
        CH -= 1

    # Image-column index of every flattened pixel; edge masks for the
    # kw=0 / kw=2 taps (row out-of-bounds is handled by the zero halo rows).
    wcol = lax.broadcasted_iota(jnp.int32, (HW, 1), 0) % W
    left_edge = wcol == 0
    right_edge = wcol == (W - 1)

    # ---- zero only the halo (interior is fully overwritten every step) ----
    xpad[0:PAD, :] = jnp.zeros((PAD, C), bf16)
    xpad[PAD + HW:TOT, :] = jnp.zeros((PAD, C), bf16)
    ypad[0:PAD, :] = jnp.zeros((PAD, Co), bf16)
    ypad[PAD + HW:TOT, :] = jnp.zeros((PAD, Co), bf16)

    # ---- stage the input once, cast to bf16, chunked store-through ----
    for r0 in range(0, HW, CH):
        xpad[PAD + r0:PAD + r0 + CH, :] = x_ref[r0:r0 + CH, :].astype(bf16)

    def conv3x3(src_pad, w_ref, ci):
        """3x3 'same' conv as 9 accumulating per-tap MXU matmuls into acc."""
        for kh in range(3):
            for kw in range(3):
                off = PAD + (kh - 1) * W + (kw - 1)   # flat sublane offset
                win = src_pad[off:off + HW, :]        # (HW, ci) bf16, aligned lanes
                if kw == 0:      # w-1 taps at w==0 wrapped from the previous row
                    win = jnp.where(left_edge, jnp.zeros_like(win), win)
                elif kw == 2:    # w+1 taps at w==W-1 wrapped into the next row
                    win = jnp.where(right_edge, jnp.zeros_like(win), win)
                t = kh * 3 + kw
                part = jnp.dot(win, w_ref[t * ci:(t + 1) * ci, :],
                               preferred_element_type=f32)
                if t == 0:
                    acc[...] = part                   # no full-acc zero fill
                else:
                    acc[...] += part

    # ---- conv1 (+ folded BN1) ----
    conv3x3(xpad, w1_ref, C)

    # ---- bias + ReLU in f32, bf16 store-through into padded intermediate ----
    for r0 in range(0, HW, CH):
        y = jnp.maximum(acc[r0:r0 + CH, :] + b1_ref[...], 0.0)
        ypad[PAD + r0:PAD + r0 + CH, :] = y.astype(bf16)

    # ---- conv2 (+ folded BN2) ----
    conv3x3(ypad, w2_ref, Co)

    # ---- bias + residual (f32, from the resident input tile) + ReLU ----
    for r0 in range(0, HW, CH):
        o_ref[r0:r0 + CH, :] = jnp.maximum(
            acc[r0:r0 + CH, :] + b2_ref[...] + x_ref[r0:r0 + CH, :],
            0.0).astype(o_ref.dtype)


# ------------------------------ JAX wrappers -------------------------------- #

def fold_params(params):
    """One-time (outside the per-call path) BN folding + weight flattening."""
    C, Co = params["w1"].shape[2], params["w1"].shape[3]
    w1f = (params["w1"] * params["scale1"][None, None, None, :]
           ).reshape(9 * C, Co).astype(jnp.bfloat16)
    w2f = (params["w2"] * params["scale2"][None, None, None, :]
           ).reshape(9 * Co, Co).astype(jnp.bfloat16)
    b1 = params["bias1"].reshape(1, Co).astype(jnp.float32)
    b2 = params["bias2"].reshape(1, Co).astype(jnp.float32)
    return {"w1f": w1f, "b1": b1, "w2f": w2f, "b2": b2}


def basic_block_forward_nhwc(x_nhwc, folded):
    """Residual block forward, NHWC in -> NHWC out (no layout transposes)."""
    N, H, W, C = x_nhwc.shape
    Co = folded["w1f"].shape[-1]
    assert C == Co, "identity-residual path requires Cin == Cout, stride 1"

    x_flat = x_nhwc.astype(jnp.float32).reshape(N, H * W, C)   # free reshape
    kernel = functools.partial(_basic_block_kernel, H=H, W=W, C=C, Co=Co)

    out_flat = pl.pallas_call(
        kernel,
        out_shape=jax.ShapeDtypeStruct((N, H * W, Co), jnp.float32),
        grid_spec=pltpu.PrefetchScalarGridSpec(
            num_scalar_prefetch=0,
            grid=(N,),
            in_specs=[
                pl.BlockSpec((pl.Squeezed(), H * W, C), lambda n: (n, 0, 0)),
                pl.BlockSpec((9 * C, Co), lambda n: (0, 0)),
                pl.BlockSpec((1, Co), lambda n: (0, 0)),
                pl.BlockSpec((9 * Co, Co), lambda n: (0, 0)),
                pl.BlockSpec((1, Co), lambda n: (0, 0)),
            ],
            out_specs=pl.BlockSpec((pl.Squeezed(), H * W, Co),
                                   lambda n: (n, 0, 0)),
            scratch_shapes=[
                pltpu.VMEM(((H + 4) * W, C), jnp.bfloat16),   # row-padded input
                pltpu.VMEM(((H + 4) * W, Co), jnp.bfloat16),  # row-padded interm.
                pltpu.VMEM((H * W, Co), jnp.float32),         # f32 accumulator
            ],
        ),
        compiler_params=pltpu.CompilerParams(
            dimension_semantics=("parallel",),
            vmem_limit_bytes=32 * 1024 * 1024),
    )(x_flat, folded["w1f"], folded["b1"], folded["w2f"], folded["b2"])

    return out_flat.reshape(N, H, W, Co)


# ----------------------------- reference (JAX) ----------------------------- #

def basic_block_reference_nhwc(x_nhwc, params):
    """Pure-JAX reference matching the kernel's bf16 quantization points."""
    x = x_nhwc.astype(jnp.float32)

    def q(v):  # same bf16 rounding the kernel applies to matmul operands
        return v.astype(jnp.bfloat16).astype(jnp.float32)

    def conv(v, w):
        return lax.conv_general_dilated(
            q(v), q(w), window_strides=(1, 1), padding="SAME",
            dimension_numbers=("NHWC", "HWIO", "NHWC"),
            precision=lax.Precision.HIGHEST)

    w1f = params["w1"] * params["scale1"][None, None, None, :]
    w2f = params["w2"] * params["scale2"][None, None, None, :]

    o = jnp.maximum(conv(x, w1f) + params["bias1"], 0.0)
    o = jnp.maximum(conv(o, w2f) + params["bias2"] + x, 0.0)
    return o


# ------------------------------- parameters -------------------------------- #

def make_params(key, planes):
    ks = jax.random.split(key, 10)
    eps = 1e-5

    def fold_bn(gamma, beta, mean, var):
        scale = gamma / jnp.sqrt(var + eps)
        return scale, beta - mean * scale

    w1 = 0.05 * jax.random.normal(ks[0], (3, 3, planes, planes), jnp.float32)
    w2 = 0.05 * jax.random.normal(ks[1], (3, 3, planes, planes), jnp.float32)

    g1 = jax.random.uniform(ks[2], (planes,), jnp.float32, 0.5, 1.5)
    b1 = 0.1 * jax.random.normal(ks[3], (planes,), jnp.float32)
    m1 = 0.1 * jax.random.normal(ks[4], (planes,), jnp.float32)
    v1 = jax.random.uniform(ks[5], (planes,), jnp.float32, 0.5, 1.5)

    g2 = jax.random.uniform(ks[6], (planes,), jnp.float32, 0.5, 1.5)
    b2 = 0.1 * jax.random.normal(ks[7], (planes,), jnp.float32)
    m2 = 0.1 * jax.random.normal(ks[8], (planes,), jnp.float32)
    v2 = jax.random.uniform(ks[9], (planes,), jnp.float32, 0.5, 1.5)

    s1, sh1 = fold_bn(g1, b1, m1, v1)
    s2, sh2 = fold_bn(g2, b2, m2, v2)
    return {"w1": w1, "w2": w2, "scale1": s1, "bias1": sh1,
            "scale2": s2, "bias2": sh2}


# ---------------------------------- main ------------------------------------ #

if __name__ == "__main__":
    # inplanes == planes == 128, stride=1, no downsample
    N, C, H, W = 2, 128, 16, 16
    key = jax.random.PRNGKey(0)
    kx, kp = jax.random.split(key)

    x_nchw = jax.random.normal(kx, (N, C, H, W), jnp.float32)  # PyTorch layout
    params = make_params(kp, C)
    folded = fold_params(params)                 # BN fold / flatten: once

    # NCHW -> NHWC once at the network edge; the feature path stays NHWC
    # end-to-end (no per-block transposes).
    x_nhwc = jnp.transpose(x_nchw, (0, 2, 3, 1))

    out = jax.block_until_ready(basic_block_forward_nhwc(x_nhwc, folded))
    ref = jax.block_until_ready(basic_block_reference_nhwc(x_nhwc, params))

    assert out.shape == (N, H, W, C), out.shape
    max_diff = float(jnp.max(jnp.abs(out - ref)))
    assert jnp.allclose(out, ref, atol=1e-2, rtol=1e-2), \
        f"max abs diff = {max_diff}"

    print("KERNEL_OK")
</pallas_src>

<mosaic_0001>
module attributes {stable_mosaic.version = 11 : i64} {
  func.func @_basic_block_kernel(%arg0: i32, %arg1: memref<1x256x128xf32, #tpu.memory_space<vmem>>, %arg2: memref<1152x128xbf16, #tpu.memory_space<vmem>>, %arg3: memref<1x128xf32, #tpu.memory_space<vmem>>, %arg4: memref<1152x128xbf16, #tpu.memory_space<vmem>>, %arg5: memref<1x128xf32, #tpu.memory_space<vmem>>, %arg6: memref<1x256x128xf32, #tpu.memory_space<vmem>>, %arg7: memref<320x128xbf16, #tpu.memory_space<vmem>>, %arg8: memref<320x128xbf16, #tpu.memory_space<vmem>>, %arg9: memref<256x128xf32, #tpu.memory_space<vmem>>) attributes {dimension_semantics = [#tpu.dimension_semantics<parallel>], iteration_bounds = array<i64: 2>, scalar_prefetch = 0 : i64, scratch_operands = 3 : i64, tpu.core_type = #tpu.core_type<tc>, window_params = [{transform_indices = @transform_0, window_bounds = array<i64: 1, 256, 128>}, {pipeline_mode = #tpu.pipeline_mode<synchronous>, transform_indices = @transform_1, window_bounds = array<i64: 1152, 128>}, {pipeline_mode = #tpu.pipeline_mode<synchronous>, transform_indices = @transform_2, window_bounds = array<i64: 1, 128>}, {pipeline_mode = #tpu.pipeline_mode<synchronous>, transform_indices = @transform_3, window_bounds = array<i64: 1152, 128>}, {pipeline_mode = #tpu.pipeline_mode<synchronous>, transform_indices = @transform_4, window_bounds = array<i64: 1, 128>}, {transform_indices = @transform_5, window_bounds = array<i64: 1, 256, 128>}]} {
    %0 = tpu.iota {dimensions = array<i32: 0>} : vector<256x1xi32>
    %c16_i32 = arith.constant 16 : i32
    %c0_i32 = arith.constant 0 : i32
    %1 = arith.cmpi eq, %c16_i32, %c0_i32 : i32
    %c1_i32 = arith.constant 1 : i32
    %2 = arith.select %1, %c1_i32, %c16_i32 : i32
    %3 = vector.broadcast %2 : i32 to vector<256x1xi32>
    %4 = arith.remsi %0, %3 : vector<256x1xi32>
    %c0_i32_0 = arith.constant 0 : i32
    %5 = vector.broadcast %c0_i32_0 : i32 to vector<256x1xi32>
    %6 = arith.cmpi ne, %4, %5 : vector<256x1xi32>
    %c0_i32_1 = arith.constant 0 : i32
    %7 = vector.broadcast %c0_i32_1 : i32 to vector<256x1xi32>
    %8 = arith.cmpi slt, %4, %7 : vector<256x1xi32>
    %c0_i32_2 = arith.constant 0 : i32
    %9 = arith.cmpi slt, %2, %c0_i32_2 : i32
    %10 = vector.broadcast %9 : i1 to vector<256x1xi1>
    %11 = vector.broadcast %10 : vector<256x1xi1> to vector<256x1xi1>
    %12 = arith.xori %8, %11 : vector<256x1xi1>
    %13 = arith.andi %12, %6 : vector<256x1xi1>
    %14 = vector.broadcast %2 : i32 to vector<256x1xi32>
    %15 = arith.addi %4, %14 : vector<256x1xi32>
    %16 = arith.select %13, %15, %4 : vector<256x1xi1>, vector<256x1xi32>
    %c0_i32_3 = arith.constant 0 : i32
    %17 = vector.broadcast %c0_i32_3 : i32 to vector<256x1xi32>
    %18 = arith.cmpi eq, %16, %17 : vector<256x1xi32>
    %c15_i32 = arith.constant 15 : i32
    %19 = vector.broadcast %c15_i32 : i32 to vector<256x1xi32>
    %20 = arith.cmpi eq, %16, %19 : vector<256x1xi32>
    %cst = arith.constant 0.000000e+00 : bf16
    %21 = vector.broadcast %cst : bf16 to vector<32x128xbf16>
    %c0 = arith.constant 0 : index
    %c0_4 = arith.constant 0 : index
    %22 = vector.load %arg7[%c0, %c0_4] : memref<320x128xbf16, #tpu.memory_space<vmem>>, vector<32x128xbf16>
    tpu.vector_store %arg7[%c0, %c0_4], %21 {strides = array<i32>} : memref<320x128xbf16, #tpu.memory_space<vmem>>, vector<32x128xbf16>,
    %cst_5 = arith.constant 0.000000e+00 : bf16
    %23 = vector.broadcast %cst_5 : bf16 to vector<32x128xbf16>
    %c288 = arith.constant 288 : index
    %c0_6 = arith.constant 0 : index
    %24 = vector.load %arg7[%c288, %c0_6] : memref<320x128xbf16, #tpu.memory_space<vmem>>, vector<32x128xbf16>
    tpu.vector_store %arg7[%c288, %c0_6], %23 {strides = array<i32>} : memref<320x128xbf16, #tpu.memory_space<vmem>>, vector<32x128xbf16>,
    %cst_7 = arith.constant 0.000000e+00 : bf16
    %25 = vector.broadcast %cst_7 : bf16 to vector<32x128xbf16>
    %c0_8 = arith.constant 0 : index
    %c0_9 = arith.constant 0 : index
    %26 = vector.load %arg8[%c0_8, %c0_9] : memref<320x128xbf16, #tpu.memory_space<vmem>>, vector<32x128xbf16>
    tpu.vector_store %arg8[%c0_8, %c0_9], %25 {strides = array<i32>} : memref<320x128xbf16, #tpu.memory_space<vmem>>, vector<32x128xbf16>,
    %cst_10 = arith.constant 0.000000e+00 : bf16
    %27 = vector.broadcast %cst_10 : bf16 to vector<32x128xbf16>
    %c288_11 = arith.constant 288 : index
    %c0_12 = arith.constant 0 : index
    %28 = vector.load %arg8[%c288_11, %c0_12] : memref<320x128xbf16, #tpu.memory_space<vmem>>, vector<32x128xbf16>
    tpu.vector_store %arg8[%c288_11, %c0_12], %27 {strides = array<i32>} : memref<320x128xbf16, #tpu.memory_space<vmem>>, vector<32x128xbf16>,
    %c0_13 = arith.constant 0 : index
    %c0_14 = arith.constant 0 : index
    %c0_15 = arith.constant 0 : index
    %29 = vector.load %arg1[%c0_13, %c0_14, %c0_15] : memref<1x256x128xf32, #tpu.memory_space<vmem>>, vector<1x64x128xf32>
    %30 = vector.shape_cast %29 : vector<1x64x128xf32> to vector<64x128xf32>
    %31 = arith.truncf %30 : vector<64x128xf32> to vector<64x128xbf16>
    %c32 = arith.constant 32 : index
    %c0_16 = arith.constant 0 : index
    %32 = vector.load %arg7[%c32, %c0_16] : memref<320x128xbf16, #tpu.memory_space<vmem>>, vector<64x128xbf16>
    tpu.vector_store %arg7[%c32, %c0_16], %31 {strides = array<i32>} : memref<320x128xbf16, #tpu.memory_space<vmem>>, vector<64x128xbf16>,
    %c0_17 = arith.constant 0 : index
    %c64 = arith.constant 64 : index
    %c0_18 = arith.constant 0 : index
    %33 = vector.load %arg1[%c0_17, %c64, %c0_18] : memref<1x256x128xf32, #tpu.memory_space<vmem>>, vector<1x64x128xf32>
    %34 = vector.shape_cast %33 : vector<1x64x128xf32> to vector<64x128xf32>
    %35 = arith.truncf %34 : vector<64x128xf32> to vector<64x128xbf16>
    %c96 = arith.constant 96 : index
    %c0_19 = arith.constant 0 : index
    %36 = vector.load %arg7[%c96, %c0_19] : memref<320x128xbf16, #tpu.memory_space<vmem>>, vector<64x128xbf16>
    tpu.vector_store %arg7[%c96, %c0_19], %35 {strides = array<i32>} : memref<320x128xbf16, #tpu.memory_space<vmem>>, vector<64x128xbf16>,
    %c0_20 = arith.constant 0 : index
    %c128 = arith.constant 128 : index
    %c0_21 = arith.constant 0 : index
    %37 = vector.load %arg1[%c0_20, %c128, %c0_21] : memref<1x256x128xf32, #tpu.memory_space<vmem>>, vector<1x64x128xf32>
    %38 = vector.shape_cast %37 : vector<1x64x128xf32> to vector<64x128xf32>
    %39 = arith.truncf %38 : vector<64x128xf32> to vector<64x128xbf16>
    %c160 = arith.constant 160 : index
    %c0_22 = arith.constant 0 : index
    %40 = vector.load %arg7[%c160, %c0_22] : memref<320x128xbf16, #tpu.memory_space<vmem>>, vector<64x128xbf16>
    tpu.vector_store %arg7[%c160, %c0_22], %39 {strides = array<i32>} : memref<320x128xbf16, #tpu.memory_space<vmem>>, vector<64x128xbf16>,
    %c0_23 = arith.constant 0 : index
    %c192 = arith.constant 192 : index
    %c0_24 = arith.constant 0 : index
    %41 = vector.load %arg1[%c0_23, %c192, %c0_24] : memref<1x256x128xf32, #tpu.memory_space<vmem>>, vector<1x64x128xf32>
    %42 = vector.shape_cast %41 : vector<1x64x128xf32> to vector<64x128xf32>
    %43 = arith.truncf %42 : vector<64x128xf32> to vector<64x128xbf16>
    %c224 = arith.constant 224 : index
    %c0_25 = arith.constant 0 : index
    %44 = vector.load %arg7[%c224, %c0_25] : memref<320x128xbf16, #tpu.memory_space<vmem>>, vector<64x128xbf16>
    tpu.vector_store %arg7[%c224, %c0_25], %43 {strides = array<i32>} : memref<320x128xbf16, #tpu.memory_space<vmem>>, vector<64x128xbf16>,
    %c15 = arith.constant 15 : index
    %c0_26 = arith.constant 0 : index
    %45 = vector.load %arg7[%c15, %c0_26] : memref<320x128xbf16, #tpu.memory_space<vmem>>, vector<256x128xbf16>
    %cst_27 = arith.constant 0.000000e+00 : bf16
    %46 = vector.broadcast %cst_27 : bf16 to vector<256x128xbf16>
    %47 = vector.shape_cast %18 : vector<256x1xi1> to vector<256x1xi1>
    %48 = vector.broadcast %47 : vector<256x1xi1> to vector<256x128xi1>
    %49 = arith.select %48, %46, %45 : vector<256x128xi1>, vector<256x128xbf16>
    %c0_28 = arith.constant 0 : index
    %c0_29 = arith.constant 0 : index
    %50 = vector.load %arg2[%c0_28, %c0_29] : memref<1152x128xbf16, #tpu.memory_space<vmem>>, vector<128x128xbf16>
    %cst_30 = arith.constant dense<0.000000e+00> : vector<256x128xf32>
    %51 = tpu.matmul %49, %50, %cst_30 {dimension_numbers = #tpu.dot_dimension_numbers<[1], [0], [0], [1], [0, 0, 1, 1], [], []>} : vector<256x128xbf16>, vector<128x128xbf16>, vector<256x128xf32> -> vector<256x128xf32>
    %c0_31 = arith.constant 0 : index
    %c0_32 = arith.constant 0 : index
    %52 = vector.load %arg9[%c0_31, %c0_32] : memref<256x128xf32, #tpu.memory_space<vmem>>, vector<256x128xf32>
    tpu.vector_store %arg9[%c0_31, %c0_32], %51 {strides = array<i32>} : memref<256x128xf32, #tpu.memory_space<vmem>>, vector<256x128xf32>,
    %c16 = arith.constant 16 : index
    %c0_33 = arith.constant 0 : index
    %53 = vector.load %arg7[%c16, %c0_33] : memref<320x128xbf16, #tpu.memory_space<vmem>>, vector<256x128xbf16>
    %c128_34 = arith.constant 128 : index
    %c0_35 = arith.constant 0 : index
    %54 = vector.load %arg2[%c128_34, %c0_35] : memref<1152x128xbf16, #tpu.memory_space<vmem>>, vector<128x128xbf16>
    %cst_36 = arith.constant dense<0.000000e+00> : vector<256x128xf32>
    %55 = tpu.matmul %53, %54, %cst_36 {dimension_numbers = #tpu.dot_dimension_numbers<[1], [0], [0], [1], [0, 0, 1, 1], [], []>} : vector<256x128xbf16>, vector<128x128xbf16>, vector<256x128xf32> -> vector<256x128xf32>
    %c0_37 = arith.constant 0 : index
    %c0_38 = arith.constant 0 : index
    %56 = vector.load %arg9[%c0_37, %c0_38] : memref<256x128xf32, #tpu.memory_space<vmem>>, vector<256x128xf32>
    %57 = arith.addf %56, %55 : vector<256x128xf32>
    %c0_39 = arith.constant 0 : index
    %c0_40 = arith.constant 0 : index
    %58 = vector.load %arg9[%c0_39, %c0_40] : memref<256x128xf32, #tpu.memory_space<vmem>>, vector<256x128xf32>
    tpu.vector_store %arg9[%c0_39, %c0_40], %57 {strides = array<i32>} : memref<256x128xf32, #tpu.memory_space<vmem>>, vector<256x128xf32>,
    %c17 = arith.constant 17 : index
    %c0_41 = arith.constant 0 : index
    %59 = vector.load %arg7[%c17, %c0_41] : memref<320x128xbf16, #tpu.memory_space<vmem>>, vector<256x128xbf16>
    %cst_42 = arith.constant 0.000000e+00 : bf16
    %60 = vector.broadcast %cst_42 : bf16 to vector<256x128xbf16>
    %61 = vector.shape_cast %20 : vector<256x1xi1> to vector<256x1xi1>
    %62 = vector.broadcast %61 : vector<256x1xi1> to vector<256x128xi1>
    %63 = arith.select %62, %60, %59 : vector<256x128xi1>, vector<256x128xbf16>
    %c256 = arith.constant 256 : index
    %c0_43 = arith.constant 0 : index
    %64 = vector.load %arg2[%c256, %c0_43] : memref<1152x128xbf16, #tpu.memory_space<vmem>>, vector<128x128xbf16>
    %cst_44 = arith.constant dense<0.000000e+00> : vector<256x128xf32>
    %65 = tpu.matmul %63, %64, %cst_44 {dimension_numbers = #tpu.dot_dimension_numbers<[1], [0], [0], [1], [0, 0, 1, 1], [], []>} : vector<256x128xbf16>, vector<128x128xbf16>, vector<256x128xf32> -> vector<256x128xf32>
    %c0_45 = arith.constant 0 : index
    %c0_46 = arith.constant 0 : index
    %66 = vector.load %arg9[%c0_45, %c0_46] : memref<256x128xf32, #tpu.memory_space<vmem>>, vector<256x128xf32>
    %67 = arith.addf %66, %65 : vector<256x128xf32>
    %c0_47 = arith.constant 0 : index
    %c0_48 = arith.constant 0 : index
    %68 = vector.load %arg9[%c0_47, %c0_48] : memref<256x128xf32, #tpu.memory_space<vmem>>, vector<256x128xf32>
    tpu.vector_store %arg9[%c0_47, %c0_48], %67 {strides = array<i32>} : memref<256x128xf32, #tpu.memory_space<vmem>>, vector<256x128xf32>,
    %c31 = arith.constant 31 : index
    %c0_49 = arith.constant 0 : index
    %69 = vector.load %arg7[%c31, %c0_49] : memref<320x128xbf16, #tpu.memory_space<vmem>>, vector<256x128xbf16>
    %cst_50 = arith.constant 0.000000e+00 : bf16
    %70 = vector.broadcast %cst_50 : bf16 to vector<256x128xbf16>
    %71 = vector.shape_cast %18 : vector<256x1xi1> to vector<256x1xi1>
    %72 = vector.broadcast %71 : vector<256x1xi1> to vector<256x128xi1>
    %73 = arith.select %72, %70, %69 : vector<256x128xi1>, vector<256x128xbf16>
    %c384 = arith.constant 384 : index
    %c0_51 = arith.constant 0 : index
    %74 = vector.load %arg2[%c384, %c0_51] : memref<1152x128xbf16, #tpu.memory_space<vmem>>, vector<128x128xbf16>
    %cst_52 = arith.constant dense<0.000000e+00> : vector<256x128xf32>
    %75 = tpu.matmul %73, %74, %cst_52 {dimension_numbers = #tpu.dot_dimension_numbers<[1], [0], [0], [1], [0, 0, 1, 1], [], []>} : vector<256x128xbf16>, vector<128x128xbf16>, vector<256x128xf32> -> vector<256x128xf32>
    %c0_53 = arith.constant 0 : index
    %c0_54 = arith.constant 0 : index
    %76 = vector.load %arg9[%c0_53, %c0_54] : memref<256x128xf32, #tpu.memory_space<vmem>>, vector<256x128xf32>
    %77 = arith.addf %76, %75 : vector<256x128xf32>
    %c0_55 = arith.constant 0 : index
    %c0_56 = arith.constant 0 : index
    %78 = vector.load %arg9[%c0_55, %c0_56] : memref<256x128xf32, #tpu.memory_space<vmem>>, vector<256x128xf32>
    tpu.vector_store %arg9[%c0_55, %c0_56], %77 {strides = array<i32>} : memref<256x128xf32, #tpu.memory_space<vmem>>, vector<256x128xf32>,
    %c32_57 = arith.constant 32 : index
    %c0_58 = arith.constant 0 : index
    %79 = vector.load %arg7[%c32_57, %c0_58] : memref<320x128xbf16, #tpu.memory_space<vmem>>, vector<256x128xbf16>
    %c512 = arith.constant 512 : index
    %c0_59 = arith.constant 0 : index
    %80 = vector.load %arg2[%c512, %c0_59] : memref<1152x128xbf16, #tpu.memory_space<vmem>>, vector<128x128xbf16>
    %cst_60 = arith.constant dense<0.000000e+00> : vector<256x128xf32>
    %81 = tpu.matmul %79, %80, %cst_60 {dimension_numbers = #tpu.dot_dimension_numbers<[1], [0], [0], [1], [0, 0, 1, 1], [], []>} : vector<256x128xbf16>, vector<128x128xbf16>, vector<256x128xf32> -> vector<256x128xf32>
    %c0_61 = arith.constant 0 : index
    %c0_62 = arith.constant 0 : index
    %82 = vector.load %arg9[%c0_61, %c0_62] : memref<256x128xf32, #tpu.memory_space<vmem>>, vector<256x128xf32>
    %83 = arith.addf %82, %81 : vector<256x128xf32>
    %c0_63 = arith.constant 0 : index
    %c0_64 = arith.constant 0 : index
    %84 = vector.load %arg9[%c0_63, %c0_64] : memref<256x128xf32, #tpu.memory_space<vmem>>, vector<256x128xf32>
    tpu.vector_store %arg9[%c0_63, %c0_64], %83 {strides = array<i32>} : memref<256x128xf32, #tpu.memory_space<vmem>>, vector<256x128xf32>,
    %c33 = arith.constant 33 : index
    %c0_65 = arith.constant 0 : index
    %85 = vector.load %arg7[%c33, %c0_65] : memref<320x128xbf16, #tpu.memory_space<vmem>>, vector<256x128xbf16>
    %cst_66 = arith.constant 0.000000e+00 : bf16
    %86 = vector.broadcast %cst_66 : bf16 to vector<256x128xbf16>
    %87 = vector.shape_cast %20 : vector<256x1xi1> to vector<256x1xi1>
    %88 = vector.broadcast %87 : vector<256x1xi1> to vector<256x128xi1>
    %89 = arith.select %88, %86, %85 : vector<256x128xi1>, vector<256x128xbf16>
    %c640 = arith.constant 640 : index
    %c0_67 = arith.constant 0 : index
    %90 = vector.load %arg2[%c640, %c0_67] : memref<1152x128xbf16, #tpu.memory_space<vmem>>, vector<128x128xbf16>
    %cst_68 = arith.constant dense<0.000000e+00> : vector<256x128xf32>
    %91 = tpu.matmul %89, %90, %cst_68 {dimension_numbers = #tpu.dot_dimension_numbers<[1], [0], [0], [1], [0, 0, 1, 1], [], []>} : vector<256x128xbf16>, vector<128x128xbf16>, vector<256x128xf32> -> vector<256x128xf32>
    %c0_69 = arith.constant 0 : index
    %c0_70 = arith.constant 0 : index
    %92 = vector.load %arg9[%c0_69, %c0_70] : memref<256x128xf32, #tpu.memory_space<vmem>>, vector<256x128xf32>
    %93 = arith.addf %92, %91 : vector<256x128xf32>
    %c0_71 = arith.constant 0 : index
    %c0_72 = arith.constant 0 : index
    %94 = vector.load %arg9[%c0_71, %c0_72] : memref<256x128xf32, #tpu.memory_space<vmem>>, vector<256x128xf32>
    tpu.vector_store %arg9[%c0_71, %c0_72], %93 {strides = array<i32>} : memref<256x128xf32, #tpu.memory_space<vmem>>, vector<256x128xf32>,
    %c47 = arith.constant 47 : index
    %c0_73 = arith.constant 0 : index
    %95 = vector.load %arg7[%c47, %c0_73] : memref<320x128xbf16, #tpu.memory_space<vmem>>, vector<256x128xbf16>
    %cst_74 = arith.constant 0.000000e+00 : bf16
    %96 = vector.broadcast %cst_74 : bf16 to vector<256x128xbf16>
    %97 = vector.shape_cast %18 : vector<256x1xi1> to vector<256x1xi1>
    %98 = vector.broadcast %97 : vector<256x1xi1> to vector<256x128xi1>
    %99 = arith.select %98, %96, %95 : vector<256x128xi1>, vector<256x128xbf16>
    %c768 = arith.constant 768 : index
    %c0_75 = arith.constant 0 : index
    %100 = vector.load %arg2[%c768, %c0_75] : memref<1152x128xbf16, #tpu.memory_space<vmem>>, vector<128x128xbf16>
    %cst_76 = arith.constant dense<0.000000e+00> : vector<256x128xf32>
    %101 = tpu.matmul %99, %100, %cst_76 {dimension_numbers = #tpu.dot_dimension_numbers<[1], [0], [0], [1], [0, 0, 1, 1], [], []>} : vector<256x128xbf16>, vector<128x128xbf16>, vector<256x128xf32> -> vector<256x128xf32>
    %c0_77 = arith.constant 0 : index
    %c0_78 = arith.constant 0 : index
    %102 = vector.load %arg9[%c0_77, %c0_78] : memref<256x128xf32, #tpu.memory_space<vmem>>, vector<256x128xf32>
    %103 = arith.addf %102, %101 : vector<256x128xf32>
    %c0_79 = arith.constant 0 : index
    %c0_80 = arith.constant 0 : index
    %104 = vector.load %arg9[%c0_79, %c0_80] : memref<256x128xf32, #tpu.memory_space<vmem>>, vector<256x128xf32>
    tpu.vector_store %arg9[%c0_79, %c0_80], %103 {strides = array<i32>} : memref<256x128xf32, #tpu.memory_space<vmem>>, vector<256x128xf32>,
    %c48 = arith.constant 48 : index
    %c0_81 = arith.constant 0 : index
    %105 = vector.load %arg7[%c48, %c0_81] : memref<320x128xbf16, #tpu.memory_space<vmem>>, vector<256x128xbf16>
    %c896 = arith.constant 896 : index
    %c0_82 = arith.constant 0 : index
    %106 = vector.load %arg2[%c896, %c0_82] : memref<1152x128xbf16, #tpu.memory_space<vmem>>, vector<128x128xbf16>
    %cst_83 = arith.constant dense<0.000000e+00> : vector<256x128xf32>
    %107 = tpu.matmul %105, %106, %cst_83 {dimension_numbers = #tpu.dot_dimension_numbers<[1], [0], [0], [1], [0, 0, 1, 1], [], []>} : vector<256x128xbf16>, vector<128x128xbf16>, vector<256x128xf32> -> vector<256x128xf32>
    %c0_84 = arith.constant 0 : index
    %c0_85 = arith.constant 0 : index
    %108 = vector.load %arg9[%c0_84, %c0_85] : memref<256x128xf32, #tpu.memory_space<vmem>>, vector<256x128xf32>
    %109 = arith.addf %108, %107 : vector<256x128xf32>
    %c0_86 = arith.constant 0 : index
    %c0_87 = arith.constant 0 : index
    %110 = vector.load %arg9[%c0_86, %c0_87] : memref<256x128xf32, #tpu.memory_space<vmem>>, vector<256x128xf32>
    tpu.vector_store %arg9[%c0_86, %c0_87], %109 {strides = array<i32>} : memref<256x128xf32, #tpu.memory_space<vmem>>, vector<256x128xf32>,
    %c49 = arith.constant 49 : index
    %c0_88 = arith.constant 0 : index
    %111 = vector.load %arg7[%c49, %c0_88] : memref<320x128xbf16, #tpu.memory_space<vmem>>, vector<256x128xbf16>
    %cst_89 = arith.constant 0.000000e+00 : bf16
    %112 = vector.broadcast %cst_89 : bf16 to vector<256x128xbf16>
    %113 = vector.shape_cast %20 : vector<256x1xi1> to vector<256x1xi1>
    %114 = vector.broadcast %113 : vector<256x1xi1> to vector<256x128xi1>
    %115 = arith.select %114, %112, %111 : vector<256x128xi1>, vector<256x128xbf16>
    %c1024 = arith.constant 1024 : index
    %c0_90 = arith.constant 0 : index
    %116 = vector.load %arg2[%c1024, %c0_90] : memref<1152x128xbf16, #tpu.memory_space<vmem>>, vector<128x128xbf16>
    %cst_91 = arith.constant dense<0.000000e+00> : vector<256x128xf32>
    %117 = tpu.matmul %115, %116, %cst_91 {dimension_numbers = #tpu.dot_dimension_numbers<[1], [0], [0], [1], [0, 0, 1, 1], [], []>} : vector<256x128xbf16>, vector<128x128xbf16>, vector<256x128xf32> -> vector<256x128xf32>
    %c0_92 = arith.constant 0 : index
    %c0_93 = arith.constant 0 : index
    %118 = vector.load %arg9[%c0_92, %c0_93] : memref<256x128xf32, #tpu.memory_space<vmem>>, vector<256x128xf32>
    %119 = arith.addf %118, %117 : vector<256x128xf32>
    %c0_94 = arith.constant 0 : index
    %c0_95 = arith.constant 0 : index
    %120 = vector.load %arg9[%c0_94, %c0_95] : memref<256x128xf32, #tpu.memory_space<vmem>>, vector<256x128xf32>
    tpu.vector_store %arg9[%c0_94, %c0_95], %119 {strides = array<i32>} : memref<256x128xf32, #tpu.memory_space<vmem>>, vector<256x128xf32>,
    %c0_96 = arith.constant 0 : index
    %c0_97 = arith.constant 0 : index
    %121 = vector.load %arg9[%c0_96, %c0_97] : memref<256x128xf32, #tpu.memory_space<vmem>>, vector<64x128xf32>
    %c0_98 = arith.constant 0 : index
    %c0_99 = arith.constant 0 : index
    %122 = vector.load %arg3[%c0_98, %c0_99] : memref<1x128xf32, #tpu.memory_space<vmem>>, vector<1x128xf32>
    %123 = vector.broadcast %122 : vector<1x128xf32> to vector<64x128xf32>
    %124 = arith.addf %121, %123 : vector<64x128xf32>
    %cst_100 = arith.constant 0.000000e+00 : f32
    %125 = vector.broadcast %cst_100 : f32 to vector<64x128xf32>
    %126 = arith.maximumf %124, %125 : vector<64x128xf32>
    %127 = arith.truncf %126 : vector<64x128xf32> to vector<64x128xbf16>
    %c32_101 = arith.constant 32 : index
    %c0_102 = arith.constant 0 : index
    %128 = vector.load %arg8[%c32_101, %c0_102] : memref<320x128xbf16, #tpu.memory_space<vmem>>, vector<64x128xbf16>
    tpu.vector_store %arg8[%c32_101, %c0_102], %127 {strides = array<i32>} : memref<320x128xbf16, #tpu.memory_space<vmem>>, vector<64x128xbf16>,
    %c64_103 = arith.constant 64 : index
    %c0_104 = arith.constant 0 : index
    %129 = vector.load %arg9[%c64_103, %c0_104] : memref<256x128xf32, #tpu.memory_space<vmem>>, vector<64x128xf32>
    %c0_105 = arith.constant 0 : index
    %c0_106 = arith.constant 0 : index
    %130 = vector.load %arg3[%c0_105, %c0_106] : memref<1x128xf32, #tpu.memory_space<vmem>>, vector<1x128xf32>
    %131 = vector.broadcast %130 : vector<1x128xf32> to vector<64x128xf32>
    %132 = arith.addf %129, %131 : vector<64x128xf32>
    %cst_107 = arith.constant 0.000000e+00 : f32
    %133 = vector.broadcast %cst_107 : f32 to vector<64x128xf32>
    %134 = arith.maximumf %132, %133 : vector<64x128xf32>
    %135 = arith.truncf %134 : vector<64x128xf32> to vector<64x128xbf16>
    %c96_108 = arith.constant 96 : index
    %c0_109 = arith.constant 0 : index
    %136 = vector.load %arg8[%c96_108, %c0_109] : memref<320x128xbf16, #tpu.memory_space<vmem>>, vector<64x128xbf16>
    tpu.vector_store %arg8[%c96_108, %c0_109], %135 {strides = array<i32>} : memref<320x128xbf16, #tpu.memory_space<vmem>>, vector<64x128xbf16>,
    %c128_110 = arith.constant 128 : index
    %c0_111 = arith.constant 0 : index
    %137 = vector.load %arg9[%c128_110, %c0_111] : memref<256x128xf32, #tpu.memory_space<vmem>>, vector<64x128xf32>
    %c0_112 = arith.constant 0 : index
    %c0_113 = arith.constant 0 : index
    %138 = vector.load %arg3[%c0_112, %c0_113] : memref<1x128xf32, #tpu.memory_space<vmem>>, vector<1x128xf32>
    %139 = vector.broadcast %138 : vector<1x128xf32> to vector<64x128xf32>
    %140 = arith.addf %137, %139 : vector<64x128xf32>
    %cst_114 = arith.constant 0.000000e+00 : f32
    %141 = vector.broadcast %cst_114 : f32 to vector<64x128xf32>
    %142 = arith.maximumf %140, %141 : vector<64x128xf32>
    %143 = arith.truncf %142 : vector<64x128xf32> to vector<64x128xbf16>
    %c160_115 = arith.constant 160 : index
    %c0_116 = arith.constant 0 : index
    %144 = vector.load %arg8[%c160_115, %c0_116] : memref<320x128xbf16, #tpu.memory_space<vmem>>, vector<64x128xbf16>
    tpu.vector_store %arg8[%c160_115, %c0_116], %143 {strides = array<i32>} : memref<320x128xbf16, #tpu.memory_space<vmem>>, vector<64x128xbf16>,
    %c192_117 = arith.constant 192 : index
    %c0_118 = arith.constant 0 : index
    %145 = vector.load %arg9[%c192_117, %c0_118] : memref<256x128xf32, #tpu.memory_space<vmem>>, vector<64x128xf32>
    %c0_119 = arith.constant 0 : index
    %c0_120 = arith.constant 0 : index
    %146 = vector.load %arg3[%c0_119, %c0_120] : memref<1x128xf32, #tpu.memory_space<vmem>>, vector<1x128xf32>
    %147 = vector.broadcast %146 : vector<1x128xf32> to vector<64x128xf32>
    %148 = arith.addf %145, %147 : vector<64x128xf32>
    %cst_121 = arith.constant 0.000000e+00 : f32
    %149 = vector.broadcast %cst_121 : f32 to vector<64x128xf32>
    %150 = arith.maximumf %148, %149 : vector<64x128xf32>
    %151 = arith.truncf %150 : vector<64x128xf32> to vector<64x128xbf16>
    %c224_122 = arith.constant 224 : index
    %c0_123 = arith.constant 0 : index
    %152 = vector.load %arg8[%c224_122, %c0_123] : memref<320x128xbf16, #tpu.memory_space<vmem>>, vector<64x128xbf16>
    tpu.vector_store %arg8[%c224_122, %c0_123], %151 {strides = array<i32>} : memref<320x128xbf16, #tpu.memory_space<vmem>>, vector<64x128xbf16>,
    %c15_124 = arith.constant 15 : index
    %c0_125 = arith.constant 0 : index
    %153 = vector.load %arg8[%c15_124, %c0_125] : memref<320x128xbf16, #tpu.memory_space<vmem>>, vector<256x128xbf16>
    %cst_126 = arith.constant 0.000000e+00 : bf16
    %154 = vector.broadcast %cst_126 : bf16 to vector<256x128xbf16>
    %155 = vector.shape_cast %18 : vector<256x1xi1> to vector<256x1xi1>
    %156 = vector.broadcast %155 : vector<256x1xi1> to vector<256x128xi1>
    %157 = arith.select %156, %154, %153 : vector<256x128xi1>, vector<256x128xbf16>
    %c0_127 = arith.constant 0 : index
    %c0_128 = arith.constant 0 : index
    %158 = vector.load %arg4[%c0_127, %c0_128] : memref<1152x128xbf16, #tpu.memory_space<vmem>>, vector<128x128xbf16>
    %cst_129 = arith.constant dense<0.000000e+00> : vector<256x128xf32>
    %159 = tpu.matmul %157, %158, %cst_129 {dimension_numbers = #tpu.dot_dimension_numbers<[1], [0], [0], [1], [0, 0, 1, 1], [], []>} : vector<256x128xbf16>, vector<128x128xbf16>, vector<256x128xf32> -> vector<256x128xf32>
    %c0_130 = arith.constant 0 : index
    %c0_131 = arith.constant 0 : index
    %160 = vector.load %arg9[%c0_130, %c0_131] : memref<256x128xf32, #tpu.memory_space<vmem>>, vector<256x128xf32>
    tpu.vector_store %arg9[%c0_130, %c0_131], %159 {strides = array<i32>} : memref<256x128xf32, #tpu.memory_space<vmem>>, vector<256x128xf32>,
    %c16_132 = arith.constant 16 : index
    %c0_133 = arith.constant 0 : index
    %161 = vector.load %arg8[%c16_132, %c0_133] : memref<320x128xbf16, #tpu.memory_space<vmem>>, vector<256x128xbf16>
    %c128_134 = arith.constant 128 : index
    %c0_135 = arith.constant 0 : index
    %162 = vector.load %arg4[%c128_134, %c0_135] : memref<1152x128xbf16, #tpu.memory_space<vmem>>, vector<128x128xbf16>
    %cst_136 = arith.constant dense<0.000000e+00> : vector<256x128xf32>
    %163 = tpu.matmul %161, %162, %cst_136 {dimension_numbers = #tpu.dot_dimension_numbers<[1], [0], [0], [1], [0, 0, 1, 1], [], []>} : vector<256x128xbf16>, vector<128x128xbf16>, vector<256x128xf32> -> vector<256x128xf32>
    %c0_137 = arith.constant 0 : index
    %c0_138 = arith.constant 0 : index
    %164 = vector.load %arg9[%c0_137, %c0_138] : memref<256x128xf32, #tpu.memory_space<vmem>>, vector<256x128xf32>
    %165 = arith.addf %164, %163 : vector<256x128xf32>
    %c0_139 = arith.constant 0 : index
    %c0_140 = arith.constant 0 : index
    %166 = vector.load %arg9[%c0_139, %c0_140] : memref<256x128xf32, #tpu.memory_space<vmem>>, vector<256x128xf32>
    tpu.vector_store %arg9[%c0_139, %c0_140], %165 {strides = array<i32>} : memref<256x128xf32, #tpu.memory_space<vmem>>, vector<256x128xf32>,
    %c17_141 = arith.constant 17 : index
    %c0_142 = arith.constant 0 : index
    %167 = vector.load %arg8[%c17_141, %c0_142] : memref<320x128xbf16, #tpu.memory_space<vmem>>, vector<256x128xbf16>
    %cst_143 = arith.constant 0.000000e+00 : bf16
    %168 = vector.broadcast %cst_143 : bf16 to vector<256x128xbf16>
    %169 = vector.shape_cast %20 : vector<256x1xi1> to vector<256x1xi1>
    %170 = vector.broadcast %169 : vector<256x1xi1> to vector<256x128xi1>
    %171 = arith.select %170, %168, %167 : vector<256x128xi1>, vector<256x128xbf16>
    %c256_144 = arith.constant 256 : index
    %c0_145 = arith.constant 0 : index
    %172 = vector.load %arg4[%c256_144, %c0_145] : memref<1152x128xbf16, #tpu.memory_space<vmem>>, vector<128x128xbf16>
    %cst_146 = arith.constant dense<0.000000e+00> : vector<256x128xf32>
    %173 = tpu.matmul %171, %172, %cst_146 {dimension_numbers = #tpu.dot_dimension_numbers<[1], [0], [0], [1], [0, 0, 1, 1], [], []>} : vector<256x128xbf16>, vector<128x128xbf16>, vector<256x128xf32> -> vector<256x128xf32>
    %c0_147 = arith.constant 0 : index
    %c0_148 = arith.constant 0 : index
    %174 = vector.load %arg9[%c0_147, %c0_148] : memref<256x128xf32, #tpu.memory_space<vmem>>, vector<256x128xf32>
    %175 = arith.addf %174, %173 : vector<256x128xf32>
    %c0_149 = arith.constant 0 : index
    %c0_150 = arith.constant 0 : index
    %176 = vector.load %arg9[%c0_149, %c0_150] : memref<256x128xf32, #tpu.memory_space<vmem>>, vector<256x128xf32>
    tpu.vector_store %arg9[%c0_149, %c0_150], %175 {strides = array<i32>} : memref<256x128xf32, #tpu.memory_space<vmem>>, vector<256x128xf32>,
    %c31_151 = arith.constant 31 : index
    %c0_152 = arith.constant 0 : index
    %177 = vector.load %arg8[%c31_151, %c0_152] : memref<320x128xbf16, #tpu.memory_space<vmem>>, vector<256x128xbf16>
    %cst_153 = arith.constant 0.000000e+00 : bf16
    %178 = vector.broadcast %cst_153 : bf16 to vector<256x128xbf16>
    %179 = vector.shape_cast %18 : vector<256x1xi1> to vector<256x1xi1>
    %180 = vector.broadcast %179 : vector<256x1xi1> to vector<256x128xi1>
    %181 = arith.select %180, %178, %177 : vector<256x128xi1>, vector<256x128xbf16>
    %c384_154 = arith.constant 384 : index
    %c0_155 = arith.constant 0 : index
    %182 = vector.load %arg4[%c384_154, %c0_155] : memref<1152x128xbf16, #tpu.memory_space<vmem>>, vector<128x128xbf16>
    %cst_156 = arith.constant dense<0.000000e+00> : vector<256x128xf32>
    %183 = tpu.matmul %181, %182, %cst_156 {dimension_numbers = #tpu.dot_dimension_numbers<[1], [0], [0], [1], [0, 0, 1, 1], [], []>} : vector<256x128xbf16>, vector<128x128xbf16>, vector<256x128xf32> -> vector<256x128xf32>
    %c0_157 = arith.constant 0 : index
    %c0_158 = arith.constant 0 : index
    %184 = vector.load %arg9[%c0_157, %c0_158] : memref<256x128xf32, #tpu.memory_space<vmem>>, vector<256x128xf32>
    %185 = arith.addf %184, %183 : vector<256x128xf32>
    %c0_159 = arith.constant 0 : index
    %c0_160 = arith.constant 0 : index
    %186 = vector.load %arg9[%c0_159, %c0_160] : memref<256x128xf32, #tpu.memory_space<vmem>>, vector<256x128xf32>
    tpu.vector_store %arg9[%c0_159, %c0_160], %185 {strides = array<i32>} : memref<256x128xf32, #tpu.memory_space<vmem>>, vector<256x128xf32>,
    %c32_161 = arith.constant 32 : index
    %c0_162 = arith.constant 0 : index
    %187 = vector.load %arg8[%c32_161, %c0_162] : memref<320x128xbf16, #tpu.memory_space<vmem>>, vector<256x128xbf16>
    %c512_163 = arith.constant 512 : index
    %c0_164 = arith.constant 0 : index
    %188 = vector.load %arg4[%c512_163, %c0_164] : memref<1152x128xbf16, #tpu.memory_space<vmem>>, vector<128x128xbf16>
    %cst_165 = arith.constant dense<0.000000e+00> : vector<256x128xf32>
    %189 = tpu.matmul %187, %188, %cst_165 {dimension_numbers = #tpu.dot_dimension_numbers<[1], [0], [0], [1], [0, 0, 1, 1], [], []>} : vector<256x128xbf16>, vector<128x128xbf16>, vector<256x128xf32> -> vector<256x128xf32>
    %c0_166 = arith.constant 0 : index
    %c0_167 = arith.constant 0 : index
    %190 = vector.load %arg9[%c0_166, %c0_167] : memref<256x128xf32, #tpu.memory_space<vmem>>, vector<256x128xf32>
    %191 = arith.addf %190, %189 : vector<256x128xf32>
    %c0_168 = arith.constant 0 : index
    %c0_169 = arith.constant 0 : index
    %192 = vector.load %arg9[%c0_168, %c0_169] : memref<256x128xf32, #tpu.memory_space<vmem>>, vector<256x128xf32>
    tpu.vector_store %arg9[%c0_168, %c0_169], %191 {strides = array<i32>} : memref<256x128xf32, #tpu.memory_space<vmem>>, vector<256x128xf32>,
    %c33_170 = arith.constant 33 : index
    %c0_171 = arith.constant 0 : index
    %193 = vector.load %arg8[%c33_170, %c0_171] : memref<320x128xbf16, #tpu.memory_space<vmem>>, vector<256x128xbf16>
    %cst_172 = arith.constant 0.000000e+00 : bf16
    %194 = vector.broadcast %cst_172 : bf16 to vector<256x128xbf16>
    %195 = vector.shape_cast %20 : vector<256x1xi1> to vector<256x1xi1>
    %196 = vector.broadcast %195 : vector<256x1xi1> to vector<256x128xi1>
    %197 = arith.select %196, %194, %193 : vector<256x128xi1>, vector<256x128xbf16>
    %c640_173 = arith.constant 640 : index
    %c0_174 = arith.constant 0 : index
    %198 = vector.load %arg4[%c640_173, %c0_174] : memref<1152x128xbf16, #tpu.memory_space<vmem>>, vector<128x128xbf16>
    %cst_175 = arith.constant dense<0.000000e+00> : vector<256x128xf32>
    %199 = tpu.matmul %197, %198, %cst_175 {dimension_numbers = #tpu.dot_dimension_numbers<[1], [0], [0], [1], [0, 0, 1, 1], [], []>} : vector<256x128xbf16>, vector<128x128xbf16>, vector<256x128xf32> -> vector<256x128xf32>
    %c0_176 = arith.constant 0 : index
    %c0_177 = arith.constant 0 : index
    %200 = vector.load %arg9[%c0_176, %c0_177] : memref<256x128xf32, #tpu.memory_space<vmem>>, vector<256x128xf32>
    %201 = arith.addf %200, %199 : vector<256x128xf32>
    %c0_178 = arith.constant 0 : index
    %c0_179 = arith.constant 0 : index
    %202 = vector.load %arg9[%c0_178, %c0_179] : memref<256x128xf32, #tpu.memory_space<vmem>>, vector<256x128xf32>
    tpu.vector_store %arg9[%c0_178, %c0_179], %201 {strides = array<i32>} : memref<256x128xf32, #tpu.memory_space<vmem>>, vector<256x128xf32>,
    %c47_180 = arith.constant 47 : index
    %c0_181 = arith.constant 0 : index
    %203 = vector.load %arg8[%c47_180, %c0_181] : memref<320x128xbf16, #tpu.memory_space<vmem>>, vector<256x128xbf16>
    %cst_182 = arith.constant 0.000000e+00 : bf16
    %204 = vector.broadcast %cst_182 : bf16 to vector<256x128xbf16>
    %205 = vector.shape_cast %18 : vector<256x1xi1> to vector<256x1xi1>
    %206 = vector.broadcast %205 : vector<256x1xi1> to vector<256x128xi1>
    %207 = arith.select %206, %204, %203 : vector<256x128xi1>, vector<256x128xbf16>
    %c768_183 = arith.constant 768 : index
    %c0_184 = arith.constant 0 : index
    %208 = vector.load %arg4[%c768_183, %c0_184] : memref<1152x128xbf16, #tpu.memory_space<vmem>>, vector<128x128xbf16>
    %cst_185 = arith.constant dense<0.000000e+00> : vector<256x128xf32>
    %209 = tpu.matmul %207, %208, %cst_185 {dimension_numbers = #tpu.dot_dimension_numbers<[1], [0], [0], [1], [0, 0, 1, 1], [], []>} : vector<256x128xbf16>, vector<128x128xbf16>, vector<256x128xf32> -> vector<256x128xf32>
    %c0_186 = arith.constant 0 : index
    %c0_187 = arith.constant 0 : index
    %210 = vector.load %arg9[%c0_186, %c0_187] : memref<256x128xf32, #tpu.memory_space<vmem>>, vector<256x128xf32>
    %211 = arith.addf %210, %209 : vector<256x128xf32>
    %c0_188 = arith.constant 0 : index
    %c0_189 = arith.constant 0 : index
    %212 = vector.load %arg9[%c0_188, %c0_189] : memref<256x128xf32, #tpu.memory_space<vmem>>, vector<256x128xf32>
    tpu.vector_store %arg9[%c0_188, %c0_189], %211 {strides = array<i32>} : memref<256x128xf32, #tpu.memory_space<vmem>>, vector<256x128xf32>,
    %c48_190 = arith.constant 48 : index
    %c0_191 = arith.constant 0 : index
    %213 = vector.load %arg8[%c48_190, %c0_191] : memref<320x128xbf16, #tpu.memory_space<vmem>>, vector<256x128xbf16>
    %c896_192 = arith.constant 896 : index
    %c0_193 = arith.constant 0 : index
    %214 = vector.load %arg4[%c896_192, %c0_193] : memref<1152x128xbf16, #tpu.memory_space<vmem>>, vector<128x128xbf16>
    %cst_194 = arith.constant dense<0.000000e+00> : vector<256x128xf32>
    %215 = tpu.matmul %213, %214, %cst_194 {dimension_numbers = #tpu.dot_dimension_numbers<[1], [0], [0], [1], [0, 0, 1, 1], [], []>} : vector<256x128xbf16>, vector<128x128xbf16>, vector<256x128xf32> -> vector<256x128xf32>
    %c0_195 = arith.constant 0 : index
    %c0_196 = arith.constant 0 : index
    %216 = vector.load %arg9[%c0_195, %c0_196] : memref<256x128xf32, #tpu.memory_space<vmem>>, vector<256x128xf32>
    %217 = arith.addf %216, %215 : vector<256x128xf32>
    %c0_197 = arith.constant 0 : index
    %c0_198 = arith.constant 0 : index
    %218 = vector.load %arg9[%c0_197, %c0_198] : memref<256x128xf32, #tpu.memory_space<vmem>>, vector<256x128xf32>
    tpu.vector_store %arg9[%c0_197, %c0_198], %217 {strides = array<i32>} : memref<256x128xf32, #tpu.memory_space<vmem>>, vector<256x128xf32>,
    %c49_199 = arith.constant 49 : index
    %c0_200 = arith.constant 0 : index
    %219 = vector.load %arg8[%c49_199, %c0_200] : memref<320x128xbf16, #tpu.memory_space<vmem>>, vector<256x128xbf16>
    %cst_201 = arith.constant 0.000000e+00 : bf16
    %220 = vector.broadcast %cst_201 : bf16 to vector<256x128xbf16>
    %221 = vector.shape_cast %20 : vector<256x1xi1> to vector<256x1xi1>
    %222 = vector.broadcast %221 : vector<256x1xi1> to vector<256x128xi1>
    %223 = arith.select %222, %220, %219 : vector<256x128xi1>, vector<256x128xbf16>
    %c1024_202 = arith.constant 1024 : index
    %c0_203 = arith.constant 0 : index
    %224 = vector.load %arg4[%c1024_202, %c0_203] : memref<1152x128xbf16, #tpu.memory_space<vmem>>, vector<128x128xbf16>
    %cst_204 = arith.constant dense<0.000000e+00> : vector<256x128xf32>
    %225 = tpu.matmul %223, %224, %cst_204 {dimension_numbers = #tpu.dot_dimension_numbers<[1], [0], [0], [1], [0, 0, 1, 1], [], []>} : vector<256x128xbf16>, vector<128x128xbf16>, vector<256x128xf32> -> vector<256x128xf32>
    %c0_205 = arith.constant 0 : index
    %c0_206 = arith.constant 0 : index
    %226 = vector.load %arg9[%c0_205, %c0_206] : memref<256x128xf32, #tpu.memory_space<vmem>>, vector<256x128xf32>
    %227 = arith.addf %226, %225 : vector<256x128xf32>
    %c0_207 = arith.constant 0 : index
    %c0_208 = arith.constant 0 : index
    %228 = vector.load %arg9[%c0_207, %c0_208] : memref<256x128xf32, #tpu.memory_space<vmem>>, vector<256x128xf32>
    tpu.vector_store %arg9[%c0_207, %c0_208], %227 {strides = array<i32>} : memref<256x128xf32, #tpu.memory_space<vmem>>, vector<256x128xf32>,
    %c0_209 = arith.constant 0 : index
    %c0_210 = arith.constant 0 : index
    %229 = vector.load %arg9[%c0_209, %c0_210] : memref<256x128xf32, #tpu.memory_space<vmem>>, vector<64x128xf32>
    %c0_211 = arith.constant 0 : index
    %c0_212 = arith.constant 0 : index
    %230 = vector.load %arg5[%c0_211, %c0_212] : memref<1x128xf32, #tpu.memory_space<vmem>>, vector<1x128xf32>
    %231 = vector.broadcast %230 : vector<1x128xf32> to vector<64x128xf32>
    %232 = arith.addf %229, %231 : vector<64x128xf32>
    %c0_213 = arith.constant 0 : index
    %c0_214 = arith.constant 0 : index
    %c0_215 = arith.constant 0 : index
    %233 = vector.load %arg1[%c0_213, %c0_214, %c0_215] : memref<1x256x128xf32, #tpu.memory_space<vmem>>, vector<1x64x128xf32>
    %234 = vector.shape_cast %233 : vector<1x64x128xf32> to vector<64x128xf32>
    %235 = arith.addf %232, %234 : vector<64x128xf32>
    %cst_216 = arith.constant 0.000000e+00 : f32
    %236 = vector.broadcast %cst_216 : f32 to vector<64x128xf32>
    %237 = arith.maximumf %235, %236 : vector<64x128xf32>
    %c0_217 = arith.constant 0 : index
    %c0_218 = arith.constant 0 : index
    %c0_219 = arith.constant 0 : index
    %238 = vector.load %arg6[%c0_217, %c0_218, %c0_219] : memref<1x256x128xf32, #tpu.memory_space<vmem>>, vector<1x64x128xf32>
    %239 = vector.shape_cast %238 : vector<1x64x128xf32> to vector<64x128xf32>
    %240 = vector.shape_cast %237 : vector<64x128xf32> to vector<1x64x128xf32>
    tpu.vector_store %arg6[%c0_217, %c0_218, %c0_219], %240 {strides = array<i32>} : memref<1x256x128xf32, #tpu.memory_space<vmem>>, vector<1x64x128xf32>,
    %c64_220 = arith.constant 64 : index
    %c0_221 = arith.constant 0 : index
    %241 = vector.load %arg9[%c64_220, %c0_221] : memref<256x128xf32, #tpu.memory_space<vmem>>, vector<64x128xf32>
    %c0_222 = arith.constant 0 : index
    %c0_223 = arith.constant 0 : index
    %242 = vector.load %arg5[%c0_222, %c0_223] : memref<1x128xf32, #tpu.memory_space<vmem>>, vector<1x128xf32>
    %243 = vector.broadcast %242 : vector<1x128xf32> to vector<64x128xf32>
    %244 = arith.addf %241, %243 : vector<64x128xf32>
    %c0_224 = arith.constant 0 : index
    %c64_225 = arith.constant 64 : index
    %c0_226 = arith.constant 0 : index
    %245 = vector.load %arg1[%c0_224, %c64_225, %c0_226] : memref<1x256x128xf32, #tpu.memory_space<vmem>>, vector<1x64x128xf32>
    %246 = vector.shape_cast %245 : vector<1x64x128xf32> to vector<64x128xf32>
    %247 = arith.addf %244, %246 : vector<64x128xf32>
    %cst_227 = arith.constant 0.000000e+00 : f32
    %248 = vector.broadcast %cst_227 : f32 to vector<64x128xf32>
    %249 = arith.maximumf %247, %248 : vector<64x128xf32>
    %c0_228 = arith.constant 0 : index
    %c64_229 = arith.constant 64 : index
    %c0_230 = arith.constant 0 : index
    %250 = vector.load %arg6[%c0_228, %c64_229, %c0_230] : memref<1x256x128xf32, #tpu.memory_space<vmem>>, vector<1x64x128xf32>
    %251 = vector.shape_cast %250 : vector<1x64x128xf32> to vector<64x128xf32>
    %252 = vector.shape_cast %249 : vector<64x128xf32> to vector<1x64x128xf32>
    tpu.vector_store %arg6[%c0_228, %c64_229, %c0_230], %252 {strides = array<i32>} : memref<1x256x128xf32, #tpu.memory_space<vmem>>, vector<1x64x128xf32>,
    %c128_231 = arith.constant 128 : index
    %c0_232 = arith.constant 0 : index
    %253 = vector.load %arg9[%c128_231, %c0_232] : memref<256x128xf32, #tpu.memory_space<vmem>>, vector<64x128xf32>
    %c0_233 = arith.constant 0 : index
    %c0_234 = arith.constant 0 : index
    %254 = vector.load %arg5[%c0_233, %c0_234] : memref<1x128xf32, #tpu.memory_space<vmem>>, vector<1x128xf32>
    %255 = vector.broadcast %254 : vector<1x128xf32> to vector<64x128xf32>
    %256 = arith.addf %253, %255 : vector<64x128xf32>
    %c0_235 = arith.constant 0 : index
    %c128_236 = arith.constant 128 : index
    %c0_237 = arith.constant 0 : index
    %257 = vector.load %arg1[%c0_235, %c128_236, %c0_237] : memref<1x256x128xf32, #tpu.memory_space<vmem>>, vector<1x64x128xf32>
    %258 = vector.shape_cast %257 : vector<1x64x128xf32> to vector<64x128xf32>
    %259 = arith.addf %256, %258 : vector<64x128xf32>
    %cst_238 = arith.constant 0.000000e+00 : f32
    %260 = vector.broadcast %cst_238 : f32 to vector<64x128xf32>
    %261 = arith.maximumf %259, %260 : vector<64x128xf32>
    %c0_239 = arith.constant 0 : index
    %c128_240 = arith.constant 128 : index
    %c0_241 = arith.constant 0 : index
    %262 = vector.load %arg6[%c0_239, %c128_240, %c0_241] : memref<1x256x128xf32, #tpu.memory_space<vmem>>, vector<1x64x128xf32>
    %263 = vector.shape_cast %262 : vector<1x64x128xf32> to vector<64x128xf32>
    %264 = vector.shape_cast %261 : vector<64x128xf32> to vector<1x64x128xf32>
    tpu.vector_store %arg6[%c0_239, %c128_240, %c0_241], %264 {strides = array<i32>} : memref<1x256x128xf32, #tpu.memory_space<vmem>>, vector<1x64x128xf32>,
    %c192_242 = arith.constant 192 : index
    %c0_243 = arith.constant 0 : index
    %265 = vector.load %arg9[%c192_242, %c0_243] : memref<256x128xf32, #tpu.memory_space<vmem>>, vector<64x128xf32>
    %c0_244 = arith.constant 0 : index
    %c0_245 = arith.constant 0 : index
    %266 = vector.load %arg5[%c0_244, %c0_245] : memref<1x128xf32, #tpu.memory_space<vmem>>, vector<1x128xf32>
    %267 = vector.broadcast %266 : vector<1x128xf32> to vector<64x128xf32>
    %268 = arith.addf %265, %267 : vector<64x128xf32>
    %c0_246 = arith.constant 0 : index
    %c192_247 = arith.constant 192 : index
    %c0_248 = arith.constant 0 : index
    %269 = vector.load %arg1[%c0_246, %c192_247, %c0_248] : memref<1x256x128xf32, #tpu.memory_space<vmem>>, vector<1x64x128xf32>
    %270 = vector.shape_cast %269 : vector<1x64x128xf32> to vector<64x128xf32>
    %271 = arith.addf %268, %270 : vector<64x128xf32>
    %cst_249 = arith.constant 0.000000e+00 : f32
    %272 = vector.broadcast %cst_249 : f32 to vector<64x128xf32>
    %273 = arith.maximumf %271, %272 : vector<64x128xf32>
    %c0_250 = arith.constant 0 : index
    %c192_251 = arith.constant 192 : index
    %c0_252 = arith.constant 0 : index
    %274 = vector.load %arg6[%c0_250, %c192_251, %c0_252] : memref<1x256x128xf32, #tpu.memory_space<vmem>>, vector<1x64x128xf32>
    %275 = vector.shape_cast %274 : vector<1x64x128xf32> to vector<64x128xf32>
    %276 = vector.shape_cast %273 : vector<64x128xf32> to vector<1x64x128xf32>
    tpu.vector_store %arg6[%c0_250, %c192_251, %c0_252], %276 {strides = array<i32>} : memref<1x256x128xf32, #tpu.memory_space<vmem>>, vector<1x64x128xf32>,
    return
  }
  func.func @transform_0(%arg0: i32) -> (i32, i32, i32) {
    %c0_i32 = arith.constant 0 : i32
    %c0_i32_0 = arith.constant 0 : i32
    %c0_i32_1 = arith.constant 0 : i32
    return %arg0, %c0_i32, %c0_i32_0 : i32, i32, i32
  }
  func.func @transform_1(%arg0: i32) -> (i32, i32) {
    %c0_i32 = arith.constant 0 : i32
    %c0_i32_0 = arith.constant 0 : i32
    %c0_i32_1 = arith.constant 0 : i32
    return %c0_i32, %c0_i32_0 : i32, i32
  }
  func.func @transform_2(%arg0: i32) -> (i32, i32) {
    %c0_i32 = arith.constant 0 : i32
    %c0_i32_0 = arith.constant 0 : i32
    %c0_i32_1 = arith.constant 0 : i32
    return %c0_i32, %c0_i32_0 : i32, i32
  }
  func.func @transform_3(%arg0: i32) -> (i32, i32) {
    %c0_i32 = arith.constant 0 : i32
    %c0_i32_0 = arith.constant 0 : i32
    %c0_i32_1 = arith.constant 0 : i32
    return %c0_i32, %c0_i32_0 : i32, i32
  }
  func.func @transform_4(%arg0: i32) -> (i32, i32) {
    %c0_i32 = arith.constant 0 : i32
    %c0_i32_0 = arith.constant 0 : i32
    %c0_i32_1 = arith.constant 0 : i32
    return %c0_i32, %c0_i32_0 : i32, i32
  }
  func.func @transform_5(%arg0: i32) -> (i32, i32, i32) {
    %c0_i32 = arith.constant 0 : i32
    %c0_i32_0 = arith.constant 0 : i32
    %c0_i32_1 = arith.constant 0 : i32
    return %arg0, %c0_i32, %c0_i32_0 : i32, i32, i32
  }
}

</mosaic_0001>

<bundles_post_ra>
// kernel: tpu_custom_call.1
= control target key start
LH: loop header
LB: loop body
LE: loop exit
PB: predicated region body
PF: predicated region fallthrough
CT: control target
= control target key end

     0   :  { %10 = vsyncpa [#allocation6], 0  ;;  %s17585_s0 = inlined_call_operand.hbm [shape: f32[2,256,128], index: 0, kind: input, shape index: {}]   ;;  %s17586_s1 = inlined_call_operand.hbm [shape: bf16[1152,128], index: 1, kind: input, shape index: {}]   ;;  %s17587_s2 = inlined_call_operand.vmem [shape: f32[1,128], index: 2, kind: input, shape index: {}]   ;;  %s17588_s3 = inlined_call_operand.hbm [shape: bf16[1152,128], index: 3, kind: input, shape index: {}]   ;;  %s17589_s4 = inlined_call_operand.vmem [shape: f32[1,128], index: 4, kind: input, shape index: {}]   ;;  %s17590_s5 = inlined_call_operand.hbm [shape: f32[2,256,128], index: 5, kind: output, shape index: {}]  }
   0x1   :  { %12 = vsyncpa [#allocation6 + $0x1], 0 }
   0x2   :  { %13 = vsyncpa [#allocation9], 0 }
   0x3   :  { %14 = vsyncpa [#allocation7], 0 }
   0x4   :  { %16 = vsyncpa [#allocation7 + $0x1], 0  ;;  %s13217_s18 = smov 0   ;;  %s13219_s19 = smov 0  }
   0x5   :  { %s13221_s20 = smov 0   ;;  %s13223_s21 = smov 0  }
   0x6 LB: > { %s13238_s22 = sadd.s32 4294967295, %s13175_s21   ;;  %s11504_s23 = sadd.s32 4294967294, %s13175_s21   ;;  %s13175_s21 = sphi %s13223_s21, %s18936_s21   ;;  %s13171_s20 = sphi %s13221_s20, %s18935_s20   ;;  %s13167_s19 = sphi %s13219_s19, %s18934_s19   ;;  %s13163_s18 = sphi %s13217_s18, %s18933_s18  }
   0x7   : > { %p42_p0 = scmp.ne.s32.totalorder %s13167_s19, %s13163_s18  ;;  %p43_p1 = scmp.eq.s32.totalorder %s13238_s22, 0 }
   0x8   : > { %p150_p2 = scmp.eq.s32.totalorder %s13238_s22, 1  ;;  %p156_p3 = scmp.eq.s32.totalorder %s11504_s23, 1 }
   0x9   : > { %p13247_p4 = por %p43_p1, %p42_p0  ;;  %p11505_p5 = scmp.ge.s32.totalorder %s13175_s21, 1 }
   0xa   : > { %p13252_p6 = por %p156_p3, %p42_p0  ;;  %p163_p7 = scmp.lt.s32.totalorder %s13175_s21, 3 }
   0xb   : > { %s174_s28 = sshll.u32 %s17586_s1, 4  ;;  %s13177_s30 = smov [#allocation8]   ;;  %s175_s28 = int_to_ptr.hbm [resolvable:$true] %s174_s28 }
   0xc   : > { %p13260_p8 = pnand %p11505_p5, %p163_p7  ;;  %s176_s6 = sshll.u32 %s13177_s30, 4  ;;  %s177_s6 = int_to_ptr.vmem [resolvable:$true] %s176_s6 }
   0xd   : > { %s191_s9 = sshll.u32 %s17588_s3, 4  ;;  %s13178_s10 = smov 64   ;;  %s192_s9 = int_to_ptr.hbm [resolvable:$true] %s191_s9 }
   0xe   : > { %p12944_p9 = pneg %p13260_p8  ;;  %s13179_s11 = smov 4  }
   0xf   : > { %s13180_s12 = smov [#allocation10]   ;;  %s13273_s14 = sadd.s32 1, %s13175_s21  }
  0x10   : > { %p12945_p10 = pnand %p12944_p9, %p43_p1  ;;  %s193_s13 = sshll.u32 %s13180_s12, 4  ;;  %s194_s13 = int_to_ptr.vmem [resolvable:$true] %s193_s13 }
  0x11   : > { %s29_s15 = sadd.s32 1, %s13171_s20  ;;  %s26_s16 = ssub.s32 %s13175_s21, %s13273_s14 }
  0x12   : > { %12947 = dma.hbm_to_vmem [thread:$0]  (!%p12945_p10), %s175_s28, 9216, %s177_s6, [#allocation9], %s13178_s10, %s13178_s10, %s13179_s11  }
  0x13   : > { %12950 = dma.hbm_to_vmem [thread:$0]  (!%p12945_p10), %s192_s9, 9216, %s194_s13, [#allocation9], %s13178_s10, %s13178_s10, %s13179_s11  }
  0x14   : > { %p36_p12 = scmp.ne.s32.totalorder %s13171_s20, %s13167_s19  ;;  %p27_p13 = scmp.eq.s32.totalorder %s26_s16, 0 }
  0x15   : > { %p37_p0 = scmp.eq.s32.totalorder %s13175_s21, 0  ;;  %p12961_p5 = scmp.lt.s32.totalorder %s13175_s21, 2 }
  0x16   : > { %p13283_p3 = por %p150_p2, %p36_p12  ;;  %s210_s26 = sand.u32 1, %s13171_s20  }
  0x17   : > { %s13289_s23 = scalar_select %p27_p13, %s13171_s20, %s29_s15  }
  0x18   : > { %p38_p7 = por %p37_p0, %p36_p12  ;;  %s11509_s27 = sshll.u32 %s210_s26, 8 }
  0x19   : > { %s12482_s28 = sshll.u32 %s13175_s21, 8  ;;  %s214_s8 = scalar_lea.vmem [#allocation5], %s11509_s27 }
  0x1a   : > { %s219_s7 = scalar_lea.hbm %s17585_s0, %s12482_s28  ;;  %s222_s9 = sshll.u32 %s214_s8, 4  ;;  %s223_s9 = int_to_ptr.vmem [resolvable:$true] %s222_s9 }
  0x1b   : > { %s220_s10 = sshll.u32 %s219_s7, 4  ;;  %p13296_p2 = pnand %p12961_p5, %p38_p7  ;;  %s221_s10 = int_to_ptr.hbm [resolvable:$true] %s220_s10 }
  0x1c   : > { %s211_s12 = scalar_lea.sflag [#allocation6], %s210_s26  ;;  %s13075_s13 = sshra.s32 %s221_s10, 4  ;;  %s13076_s13 = int_to_ptr.hbm [resolvable:$true] %s13075_s13 }
  0x1d   : > { %s13077_s15 = scalar_lea.hbm %s13076_s13, 256  ;;  %p13079_p10 = pneg %p13296_p2 }
  0x1e   : > { %p13078_p9 = scmp.ne.s32.totalorder %s13076_s13, %s13077_s15  ;;  %s13082_s28 = scalar_lea.hbm %s17585_s0, 512 }
  0x1f   : > { %p13083_p0 = scmp.lt.s32.totalorder %s13076_s13, %s17585_s0  ;;  %p13084_p5 = scmp.lt.s32.totalorder %s13082_s28, %s13077_s15 }
  0x20   : > { %p13080_p12 = pnand %p13079_p10, %p13078_p9 }
  0x21   : > { %p13085_p7 = por %p13084_p5, %p13083_p0 }
  0x22   : > { %p13081_p13 = pneg %p13080_p12 }
  0x24   : > { %p13086_p11 = pnand %p13085_p7, %p13081_p13 }
  0x26   : > { %13089 = shalt.err (!%p13086_p11)
}
  0x27   : > { %s13181_s26 = smov 128   ;;  %s13182_s7 = smov 8  }
  0x28   : > { %12954 = dma.hbm_to_vmem [thread:$0]  (!%p13296_p2), %s221_s10, 4096, %s223_s9, %s211_s12, %s13181_s26, %s13181_s26, %s13182_s7  }
  0x29   : > { %234 = sbr.rel (%p13260_p8) target bundleno = 1579 (0x62b), region = 40 }
  0x2e   : > { %s13313_s8 = sand.u32 1, %s13167_s19  }
  0x2f   : > { %s11513_s13 = sshll.u32 %s13313_s8, 8  ;;  %s237_s15 = scalar_lea.sflag [#allocation6], %s13313_s8 }
  0x30   : > { %s13319_s16 = scalar_lea.vmem [#allocation5], %s11513_s13 }
  0x31   : > { %13150 = dma.done.wait (%p13247_p4), %s237_s15, 4096  }
  0x32   : > { %13152 = vsyncadd (%p13247_p4), %s237_s15, 4294963200 }
  0x33   : > { %13154 = dma.done.wait (%p43_p1), [#allocation9], 18432  }
  0x34   : > { %13156 = vsyncadd (%p43_p1), [#allocation9], 4294948864  ;;  %v281_v0 = vlaneseq  ;;  %vm13183_vm0 = vmmov 0   ;;  %v17638_v2 = vmov 0   ;;  %v12490_v12 = vld [vmem:[#allocation8 + $0x38] sm:$0xff]  ;;  %v12489_v16 = vld [vmem:[#allocation8 + $0x30] sm:$0xff] }
  0x35   : > { %vm972_vm1 = vmpackc.low %vm13183_vm0, %vm13183_vm0  ;;  %763 = vst [vmem:[#allocation2 + $0x4] sm:$0xf] %v17638_v2  ;;  %v12514_v13 = vld [vmem:[#allocation8 + $0x78] sm:$0xff]  ;;  %1937 = vmatpush.bf16.msra.mxu0 %v12490_v12  ;;  %12916 = vmatpush.bf16.msra.mxu2 %v12490_v12  ;;  %vm1035_vm2 = vsmask.f32 3328  ;;  %v12513_v17 = vld [vmem:[#allocation8 + $0x70] sm:$0xff]  ;;  %v13394_v38 = vunpack.c.l.b16 %v17638_v2  ;;  %v13402_v42 = vunpack.c.h.b16 %v17638_v2 }
  0x36   : > { %v13329_v1 = vshrl.u32 %v281_v0, 7  ;;  %v13332_v3 = vsel %vm972_vm1, 65537, %v17638_v2  ;;  %764 = vst [vmem:[#allocation2 + $0x8] sm:$0xf] %v17638_v2  ;;  %12924 = vmatpush.bf16.msra.mxu3 %v12514_v13  ;;  %2250 = vmatpush.bf16.msra.mxu1 %v12514_v13  ;;  %vm1036_vm5 = vsmask.f32 7440 }
  0x37   : > { %v1048_v4 = vshll.u32 %v13332_v3, 16  ;;  %v1052_v5 = vshrl.u32 %v13332_v3, 16  ;;  %765 = vst [vmem:[#allocation2 + $0xc] sm:$0xf] %v17638_v2  ;;  %v778_v22 = vld [vmem:[%s13319_s16] sm:$0xff]  ;;  %v779_v23 = vld [vmem:[%s13319_s16 + $0x8] sm:$0xff]  ;;  %vm13411_vm12 = vmor %vm1035_vm2, %vm1036_vm5 }
  0x38   : > { %v284_v6 = vadd.s32 16, %v13329_v1  ;;  %v298_v7 = vadd.s32 128, %v13329_v1  ;;  %v318_v8 = vand.u32 15, %v13329_v1  ;;  %v300_v11 = vadd.s32 144, %v13329_v1  ;;  %766 = vst [vmem:[#allocation2 + $0x90] sm:$0xf] %v17638_v2 }
  0x39   : > { %v13343_v9 = vrot.slane %v1048_v4, 5  ;;  %v1054_v10 = vrot.slane %v1052_v5, 4  ;;  %767 = vst [vmem:[#allocation2 + $0x94] sm:$0xf] %v17638_v2  ;;  %1938 = vmatpush.bf16.msra.mxu0 %v12489_v16  ;;  %12917 = vmatpush.bf16.msra.mxu2 %v12489_v16  ;;  %v12488_v25 = vld [vmem:[#allocation8 + $0x28] sm:$0xff]  ;;  %v12727_v26 = vpack.c.bf16 %v779_v23, %v778_v22  ;;  %v13378_v28 = vadd.s32 32, %v13329_v1 }
  0x3a   : > { %v332_v14 = vand.u32 15, %v284_v6  ;;  %v430_v15 = vand.u32 15, %v298_v7  ;;  %768 = vst [vmem:[#allocation2 + $0x98] sm:$0xf] %v17638_v2  ;;  %vm13352_vm3 = vcmp.eq.s32.totalorder %v318_v8, 0  ;;  %v444_v20 = vand.u32 15, %v300_v11  ;;  %12925 = vmatpush.bf16.msra.mxu3 %v12513_v17  ;;  %2251 = vmatpush.bf16.msra.mxu1 %v12513_v17 }
  0x3b   : > { %v1055_v19 = vor.u32 %v1054_v10, %v13343_v9  ;;  %771 = vst [vmem:[#allocation3 + $0x4] sm:$0xf] %v17638_v2  ;;  %vm971_vm7 = vmpackc.low %vm13352_vm3, %vm13352_vm3  ;;  %v13381_v29 = vadd.s32 160, %v13329_v1  ;;  %v12512_v30 = vld [vmem:[#allocation8 + $0x68] sm:$0xff]  ;;  %v806_v33 = vld [vmem:[%s13319_s16 + $0x60] sm:$0xff]  ;;  %v17931_v27 = vmov 0 }
  0x3c   : > { %vm13358_vm4 = vcmp.eq.s32.totalorder %v332_v14, 0  ;;  %772 = vst [vmem:[#allocation3 + $0x8] sm:$0xf] %v17638_v2  ;;  %vm13365_vm6 = vcmp.eq.s32.totalorder %v430_v15, 0  ;;  %vm13373_vm8 = vcmp.eq.s32.totalorder %v444_v20, 0  ;;  %v1003_v31 = vsel %vm971_vm7, 65537, %v17638_v2 }
  0x3d   : > { %773 = vst [vmem:[#allocation3 + $0xc] sm:$0xf] %v17638_v2  ;;  %vm973_vm9 = vmpackc.low %vm13358_vm4, %vm13358_vm4  ;;  %v13388_v32 = vrot.slane %v1055_v19, 4  ;;  %v12487_v34 = vld [vmem:[#allocation8 + $0x20] sm:$0xff]  ;;  %v1039_v36 = vshll.u32 %v1003_v31, 16  ;;  %v1042_v37 = vshrl.u32 %v1003_v31, 16  ;;  %1939 = vmatpush.bf16.msra.mxu0 %v12488_v25  ;;  %12918 = vmatpush.bf16.msra.mxu2 %v12488_v25 }
  0x3e   : > { %774 = vst [vmem:[#allocation3 + $0x90] sm:$0xf] %v17638_v2  ;;  %v1005_v35 = vsel %vm973_vm9, 65537, %v17638_v2  ;;  %v807_v39 = vld [vmem:[%s13319_s16 + $0x68] sm:$0xff]  ;;  %vm987_vm10 = vmpackc.low %vm13365_vm6, %vm13365_vm6  ;;  %v808_v43 = vld [vmem:[%s13319_s16 + $0x70] sm:$0xff]  ;;  %12926 = vmatpush.bf16.msra.mxu3 %v12512_v30  ;;  %2252 = vmatpush.bf16.msra.mxu1 %v12512_v30  ;;  %v17928_v15 = vmov 0 }
  0x3f   : > { %775 = vst [vmem:[#allocation3 + $0x94] sm:$0xf] %v17638_v2  ;;  %v1058_v40 = vshll.u32 %v1005_v35, 16  ;;  %v1062_v41 = vshrl.u32 %v1005_v35, 16  ;;  %v809_v44 = vld [vmem:[%s13319_s16 + $0x78] sm:$0xff]  ;;  %v12757_v45 = vpack.c.bf16 %v807_v39, %v806_v33  ;;  %vm989_vm11 = vmpackc.low %vm13373_vm8, %vm13373_vm8  ;;  %v1041_v47 = vrot.slane %v1039_v36, 5 }
  0x40   : > { %776 = vst [vmem:[#allocation3 + $0x98] sm:$0xf] %v17638_v2  ;;  %v1044_v48 = vrot.slane %v1042_v37, 4  ;;  %v12762_v49 = vpack.c.bf16 %v809_v44, %v808_v43  ;;  %v826_v50 = vld [vmem:[%s13319_s16 + $0x80] sm:$0xff]  ;;  %v827_v51 = vld [vmem:[%s13319_s16 + $0x88] sm:$0xff]  ;;  %v1019_v52 = vsel %vm987_vm10, 65537, %v17638_v2 }
  0x41   : > { %12884 = vst [vmem:[#allocation2 + $0x10] sm:$0xff] %v12727_v26   ;;  %v12511_v53 = vld [vmem:[#allocation8 + $0x60] sm:$0xff]  ;;  %v1060_v54 = vrot.slane %v1058_v40, 5  ;;  %v1064_v55 = vrot.slane %v1062_v41, 4  ;;  %v12767_v56 = vpack.c.bf16 %v827_v51, %v826_v50  ;;  %v13429_v57 = vsel %vm989_vm11, 65537, %v17638_v2  ;;  %1940 = vmatpush.bf16.msra.mxu0 %v12487_v34  ;;  %12919 = vmatpush.bf16.msra.mxu2 %v12487_v34  ;;  %v12486_v8 = vld [vmem:[#allocation8 + $0x18] sm:$0xff] }
  0x42   : > { %12890 = vst [vmem:[#allocation2 + $0x40] sm:$0xff] %v12757_v45   ;;  %v874_v58 = vld [vmem:[#allocation2 + $0x4] sm:$0x8]  ;;  %v1045_v59 = vor.u32 %v1044_v48, %v1041_v47  ;;  %v1357_v60 = vunpack.c.l.b16 %v1041_v47  ;;  %v1358_v61 = vunpack.c.h.b16 %v1041_v47  ;;  %v1198_v62 = vshll.u32 %v1019_v52, 16  ;;  %v876_v10 = vld [vmem:[#allocation2 + $0xc] sm:$0xf]  ;;  %12927 = vmatpush.bf16.msra.mxu3 %v12511_v53  ;;  %2253 = vmatpush.bf16.msra.mxu1 %v12511_v53 }
  0x43   : > { %12891 = vst [vmem:[#allocation2 + $0x48] sm:$0xff] %v12762_v49   ;;  %v1061_v63 = vsel %vm13411_vm12, %v13388_v32, %v1060_v54  ;;  %v1065_v0 = vor.u32 %v1064_v55, %v1060_v54  ;;  %v1202_v6 = vshrl.u32 %v1019_v52, 16  ;;  %v1218_v7 = vshll.u32 %v13429_v57, 16  ;;  %v12510_v13 = vld [vmem:[#allocation8 + $0x58] sm:$0xff]  ;;  %v12485_v22 = vld [vmem:[#allocation8 + $0x10] sm:$0xff]  ;;  %v12484_v50 = vld [vmem:[#allocation8 + $0x8] sm:$0xff] }
  0x44   : > { %12892 = vst [vmem:[#allocation2 + $0x50] sm:$0xff] %v12767_v56   ;;  %v1046_v11 = vrot.slane %v1045_v59, 4  ;;  %vm1361_vm13 = vcmp.ne.s32.totalorder %v1357_v60, %v13394_v38  ;;  %vm1362_vm14 = vcmp.ne.s32.totalorder %v1358_v61, %v13402_v42  ;;  %v1371_v12 = vunpack.c.l.b16 %v1061_v63  ;;  %v875_v26 = vld [vmem:[#allocation2 + $0x8] sm:$0xf]  ;;  %v12509_v35 = vld [vmem:[#allocation8 + $0x50] sm:$0xff]  ;;  %s17298_s26 = scalar_lea.vmem [#allocation11], %s11513_s13 }
  0x45   : > { %v1066_v14 = vrot.slane %v1065_v0, 4  ;;  %vm13437_vm15 = vmpackc.low %vm1362_vm14, %vm1361_vm13  ;;  %v1372_v16 = vunpack.c.h.b16 %v1061_v63  ;;  %v1200_v17 = vrot.slane %v1198_v62, 5  ;;  %v1204_v18 = vrot.slane %v1202_v6, 4  ;;  %1941 = vmatpush.bf16.msra.mxu0 %v12486_v8  ;;  %12920 = vmatpush.bf16.msra.mxu2 %v12486_v8  ;;  %v12508_v55 = vld [vmem:[#allocation8 + $0x48] sm:$0xff]  ;;  %s12723_s10 = sshll.u32 %s13238_s22, 8  ;;  %s11409_s28 = sshll.u32 %s17298_s26, 4  ;;  %s11410_s28 = int_to_ptr.vmem [resolvable:$true] %s11409_s28 }
  0x46   : > { %v17929_v15 = vsel %vm13437_vm15, 4294967295, %v17928_v15  ;;  %v1051_v19 = vsel %vm13411_vm12, %v1046_v11, %v13343_v9  ;;  %vm1375_vm0 = vcmp.ne.s32.totalorder %v1371_v12, %v13394_v38  ;;  %v1588_v20 = vsel %vm13437_vm15, 0, %v874_v58  ;;  %12928 = vmatpush.bf16.msra.mxu3 %v12510_v13  ;;  %2254 = vmatpush.bf16.msra.mxu1 %v12510_v13  ;;  %v12483_v11 = vld [vmem:[#allocation8] sm:$0xff]  ;;  %s11408_s27 = scalar_lea.hbm %s17590_s5, %s12723_s10  ;;  %s11397_s22 = scalar_lea.sflag [#allocation7], %s13313_s8 }
  0x47   : > { %17930 = vst [vmem:[#allocation15_spill] sm:$0xff] %v17929_v15  ;;  %v13447_v21 = vrot.slane %v1218_v7, 5  ;;  %v1071_v23 = vsel %vm13411_vm12, %v1066_v14, %v13343_v9  ;;  %v1364_v24 = vunpack.c.l.b16 %v1051_v19  ;;  %v1365_v25 = vunpack.c.h.b16 %v1051_v19  ;;  %s11411_s30 = sshll.u32 %s11408_s27, 4  ;;  %s11412_s30 = int_to_ptr.hbm [resolvable:$true] %s11411_s30 }
  0x48   : > { %vm1376_vm1 = vcmp.ne.s32.totalorder %v1372_v16, %v13402_v42  ;;  %v1378_v30 = vunpack.c.l.b16 %v1071_v23  ;;  %v1379_v31 = vunpack.c.h.b16 %v1071_v23  ;;  %v1670_v33 = vunpack.c.l.b16 %v1588_v20  ;;  %v877_v36 = vld [vmem:[#allocation2 + $0x10] sm:$0xf]  ;;  %v12507_v16 = vld [vmem:[#allocation8 + $0x40] sm:$0xff]  ;;  %s13119_s6 = sshra.s32 %s11412_s30, 4  ;;  %s13120_s6 = int_to_ptr.hbm [resolvable:$true] %s13119_s6 }
  0x49   : > { %vm13453_vm2 = vmpackc.low %vm1376_vm1, %vm1375_vm0  ;;  %v1201_v34 = vsel %vm13411_vm12, %v13388_v32, %v1200_v17  ;;  %vm1368_vm3 = vcmp.ne.s32.totalorder %v1364_v24, %v13394_v38  ;;  %vm1369_vm4 = vcmp.ne.s32.totalorder %v1365_v25, %v13402_v42  ;;  %v1205_v39 = vor.u32 %v1204_v18, %v1200_v17  ;;  %1942 = vmatpush.bf16.msra.mxu0 %v12485_v22  ;;  %v890_v63 = vld [vmem:[#allocation2 + $0x44] sm:$0xf]  ;;  %s13121_s7 = scalar_lea.hbm %s13120_s6, 256  ;;  %p13126_p11 = scmp.lt.s32.totalorder %s13120_s6, %s17590_s5 }
  0x4a   : > { %v17932_v27 = vsel %vm13453_vm2, 4294967295, %v17931_v27  ;;  %v1590_v37 = vsel %vm13453_vm2, 0, %v876_v10  ;;  %vm13464_vm5 = vmpackc.low %vm1369_vm4, %vm1368_vm3  ;;  %v17934_v40 = vmov 0  ;;  %vm1382_vm6 = vcmp.ne.s32.totalorder %v1378_v30, %v13394_v38  ;;  %12921 = vmatpush.bf16.msra.mxu2 %v12485_v22  ;;  %12929 = vmatpush.bf16.msra.mxu3 %v12509_v35  ;;  %v891_v0 = vld [vmem:[#allocation2 + $0x48] sm:$0xf]  ;;  %v12522_v30 = vld [vmem:[#allocation8 + $0xb8] sm:$0xff]  ;;  %p13122_p1 = scmp.ne.s32.totalorder %s13120_s6, %s13121_s7 }
  0x4b   : > { %17933 = vst [vmem:[#allocation16_spill] sm:$0xff] %v17932_v27  ;;  %v17935_v40 = vsel %vm13464_vm5, 4294967295, %v17934_v40  ;;  %vm1383_vm7 = vcmp.ne.s32.totalorder %v1379_v31, %v13402_v42  ;;  %v1672_v41 = vunpack.c.l.b16 %v1590_v37  ;;  %v1221_v43 = vsel %vm13411_vm12, %v13388_v32, %v13447_v21  ;;  %2255 = vmatpush.bf16.msra.mxu1 %v12509_v35  ;;  %v892_v14 = vld [vmem:[#allocation2 + $0x4c] sm:$0xf]  ;;  %v12530_v31 = vld [vmem:[#allocation8 + $0xf8] sm:$0xff]  ;;  %v12553_v10 = vld [vmem:[#allocation8 + $0x130] sm:$0xff] }
  0x4c   : > { %17936 = vst [vmem:[#allocation17_spill] sm:$0xff] %v17935_v40  ;;  %vm13474_vm8 = vmpackc.low %vm1383_vm7, %vm1382_vm6  ;;  %v17937_v44 = vmov 0  ;;  %v1589_v45 = vsel %vm13464_vm5, 0, %v875_v26  ;;  %v1206_v47 = vrot.slane %v1205_v39, 4  ;;  %v1222_v48 = vshrl.u32 %v13429_v57, 16  ;;  %v12554_v37 = vld [vmem:[#allocation8 + $0x138] sm:$0xff]  ;;  %p13123_p4 = pnand %p13122_p1, %p13283_p3 }
  0x4d   : > { %v17938_v44 = vsel %vm13474_vm8, 4294967295, %v17937_v44  ;;  %v1469_v49 = vunpack.c.l.b16 %v1201_v34  ;;  %v1591_v51 = vsel %vm13474_vm8, 0, %v877_v36  ;;  %v1671_v52 = vunpack.c.l.b16 %v1589_v45  ;;  %1943 = vmatpush.bf16.msra.mxu0 %v12484_v50  ;;  %v781_v39 = vld [vmem:[%s13319_s16 + $0x18] sm:$0xff]  ;;  %v2437_v27 = vld [vmem:[#allocation2 + $0x10] sm:$0xf] }
  0x4e   : > { %17939 = vst [vmem:[#allocation18_spill] sm:$0xff] %v17938_v44  ;;  %vm17591_vm9 = vsmask.f32 4352  ;;  %v1470_v53 = vunpack.c.h.b16 %v1201_v34  ;;  %v1483_v54 = vunpack.c.l.b16 %v1221_v43  ;;  %v1673_v56 = vunpack.c.l.b16 %v1591_v51  ;;  %12922 = vmatpush.bf16.msra.mxu2 %v12484_v50  ;;  %12930 = vmatpush.bf16.msra.mxu3 %v12508_v55  ;;  %v12491_v50 = vld [vmem:[#allocation2 + $0x8] sm:$0xff]  ;;  %v829_v51 = vld [vmem:[%s13319_s16 + $0x98] sm:$0xff]  ;;  %p13124_p8 = pneg %p13123_p4 }
  0x4f   : > { %v1211_v58 = vsel %vm13411_vm12, %v1206_v47, %v13343_v9  ;;  %v1224_v57 = vrot.slane %v1222_v48, 4  ;;  %vm1473_vm10 = vcmp.ne.s32.totalorder %v1469_v49, %v13394_v38  ;;  %v1703_v59 = vpack.c.b16 %v1671_v52, %v1670_v33  ;;  %2256 = vmatpush.bf16.msra.mxu1 %v12508_v55  ;;  %v12499_v49 = vld [vmem:[#allocation2 + $0x48] sm:$0xff] }
  0x50   : > { %vm1474_vm11 = vcmp.ne.s32.totalorder %v1470_v53, %v13402_v42  ;;  %v1476_v60 = vunpack.c.l.b16 %v1211_v58  ;;  %v1477_v61 = vunpack.c.h.b16 %v1211_v58  ;;  %v1704_v62 = vpack.c.b16 %v1673_v56, %v1672_v41  ;;  %v828_v41 = vld [vmem:[%s13319_s16 + $0x90] sm:$0xff]  ;;  %v782_v58 = vld [vmem:[%s13319_s16 + $0x20] sm:$0xff] }
  0x51   : > { %v1225_v6 = vor.u32 %v1224_v57, %v13447_v21  ;;  %vm13489_vm13 = vmpackc.low %vm1474_vm11, %vm1473_vm10  ;;  %v17940_v7 = vmov 0  ;;  %v1484_v8 = vunpack.c.h.b16 %v1221_v43  ;;  %vm13494_vm14 = vcmp.ne.s32.totalorder %v1483_v54, %v13394_v38  ;;  %v780_v21 = vld [vmem:[%s13319_s16 + $0x10] sm:$0xff]  ;;  %1944 = vmatpush.bf16.msra.mxu0 %v12483_v11  ;;  %v783_v57 = vld [vmem:[%s13319_s16 + $0x28] sm:$0xff] }
  0x52   : > { %v17941_v7 = vsel %vm13489_vm13, 4294967295, %v17940_v7  ;;  %v1722_v12 = vshrl.u32 %v1703_v59, 16  ;;  %v1725_v13 = vshll.u32 %v1703_v59, 16  ;;  %vm1480_vm0 = vcmp.ne.s32.totalorder %v1476_v60, %v13394_v38  ;;  %12923 = vmatpush.bf16.msra.mxu2 %v12483_v11  ;;  %12931 = vmatpush.bf16.msra.mxu3 %v12507_v16  ;;  %v893_v53 = vld [vmem:[#allocation2 + $0x50] sm:$0xf] }
  0x53   : > { %17942 = vst [vmem:[#allocation19_spill] sm:$0xff] %v17941_v7  ;;  %vm1481_vm1 = vcmp.ne.s32.totalorder %v1477_v61, %v13402_v42  ;;  %v1730_v17 = vshrl.u32 %v1704_v62, 16  ;;  %v1733_v18 = vshll.u32 %v1704_v62, 16  ;;  %v1226_v19 = vrot.slane %v1225_v6, 4  ;;  %2257 = vmatpush.bf16.msra.mxu1 %v12507_v16  ;;  %v12521_v61 = vld [vmem:[#allocation8 + $0xb0] sm:$0xff] }
  0x54   : > { %vm13500_vm3 = vmpackc.low %vm1481_vm1, %vm1480_vm0  ;;  %v17945_v20 = vmov 0  ;;  %vm1488_vm4 = vcmp.ne.s32.totalorder %v1484_v8, %v13402_v42  ;;  %v1724_v22 = vrot.slane %v1722_v12, 3  ;;  %v1727_v23 = vrot.slane %v1725_v13, 4  ;;  %v12529_v62 = vld [vmem:[#allocation8 + $0xf0] sm:$0xff] }
  0x55   : > { %v17946_v20 = vsel %vm13500_vm3, 4294967295, %v17945_v20  ;;  %vm13508_vm6 = vmpackc.low %vm1488_vm4, %vm13494_vm14  ;;  %v17948_v24 = vmov 0  ;;  %v1604_v25 = vsel %vm13489_vm13, 0, %v890_v63  ;;  %v1605_v26 = vsel %vm13500_vm3, 0, %v891_v0  ;;  %4389 = vmatpush.bf16.msrb.mxu0 %v12554_v37  ;;  %2298 = vmatmul.bf16.vlgmr.msra.gmra.mxu3 %v12499_v49 }
  0x56   : > { %17947 = vst [vmem:[#allocation20_spill] sm:$0xff] %v17946_v20  ;;  %v17949_v24 = vsel %vm13508_vm6, 4294967295, %v17948_v24  ;;  %v1732_v33 = vrot.slane %v1730_v17, 3  ;;  %v1735_v34 = vrot.slane %v1733_v18, 4  ;;  %v1231_v35 = vsel %vm13411_vm12, %v1226_v19, %v13343_v9  ;;  %3446 = vmatpush.bf16.msrb.mxu2 %v12522_v30  ;;  %4012 = vmatpush.bf16.msrb.mxu3 %v12530_v31 }
  0x57   : > { %17950 = vst [vmem:[#allocation21_spill] sm:$0xff] %v17949_v24  ;;  %v1606_v36 = vsel %vm13508_vm6, 0, %v892_v14  ;;  %v1728_v43 = vor.u32 %v1727_v23, %v1724_v22  ;;  %v1490_v45 = vunpack.c.l.b16 %v1231_v35  ;;  %v1491_v47 = vunpack.c.h.b16 %v1231_v35  ;;  %2258 = vmatmul.bf16.vlgmr.msra.gmra.mxu1 %v12491_v50 }
  0x58   : > { %v1686_v48 = vunpack.c.l.b16 %v1604_v25  ;;  %v13524_v52 = vor.u32 %v1735_v34, %v1732_v33  ;;  %v1687_v54 = vunpack.c.l.b16 %v1605_v26  ;;  %v1688_v55 = vunpack.c.l.b16 %v1606_v36 }
  0x59   : > { %v346_v56 = vand.u32 15, %v13378_v28  ;;  %vm1494_vm7 = vcmp.ne.s32.totalorder %v1490_v45, %v13394_v38  ;;  %vm1495_vm10 = vcmp.ne.s32.totalorder %v1491_v47, %v13402_v42  ;;  %v12732_v59 = vpack.c.bf16 %v781_v39, %v780_v21  ;;  %4390 = vmatpush.bf16.msrb.mxu0 %v12553_v10 }
  0x5a   : > { %v458_v60 = vand.u32 15, %v13381_v29  ;;  %v1737_v63 = vsel %vm17591_vm9, %v1728_v43, %v13524_v52  ;;  %vm13534_vm11 = vmpackc.low %vm1495_vm10, %vm1494_vm7  ;;  %v17951_v0 = vmov 0  ;;  %v1711_v28 = vpack.c.b16 %v1687_v54, %v1686_v48  ;;  %3447 = vmatpush.bf16.msrb.mxu2 %v12521_v61  ;;  %4013 = vmatpush.bf16.msrb.mxu3 %v12529_v62 }
  0x5b   : > { %v17952_v0 = vsel %vm13534_vm11, 4294967295, %v17951_v0  ;;  %vm13538_vm14 = vcmp.eq.s32.totalorder %v346_v56, 0  ;;  %v12772_v8 = vpack.c.bf16 %v829_v51, %v828_v41  ;;  %1945 = vmatmul.bf16.vlgmr.msra.gmra.mxu0 %v1737_v63  ;;  %v1607_v29 = vsel %vm13534_vm11, 0, %v893_v53  ;;  %12885 = vst [vmem:[#allocation2 + $0x18] sm:$0xff] %v12732_v59   ;;  %v878_v53 = vld [vmem:[#allocation2 + $0x14] sm:$0xf] }
  0x5c   : > { %17953 = vst [vmem:[#allocation22_spill] sm:$0xff] %v17952_v0  ;;  %vm975_vm0 = vmpackc.low %vm13538_vm14, %vm13538_vm14  ;;  %vm718_vm1 = vcmp.eq.s32.totalorder %v458_v60, 0  ;;  %v288_v11 = vadd.s32 48, %v13329_v1  ;;  %v12737_v12 = vpack.c.bf16 %v783_v57, %v782_v58  ;;  %v1689_v13 = vunpack.c.l.b16 %v1607_v29 }
  0x5d   : > { %v1793_v14 = vshrl.u32 %v1711_v28, 16  ;;  %v1796_v16 = vshll.u32 %v1711_v28, 16  ;;  %v1007_v17 = vsel %vm975_vm0, 65537, %v17638_v2  ;;  %12893 = vst [vmem:[#allocation2 + $0x58] sm:$0xff] %v12772_v8   ;;  %vm991_vm4 = vmpackc.low %vm718_vm1, %vm718_vm1  ;;  %v17956_v61 = vmov 0 }
  0x5e   : > { %v1078_v18 = vshll.u32 %v1007_v17, 16  ;;  %v1082_v19 = vshrl.u32 %v1007_v17, 16  ;;  %v1023_v21 = vsel %vm991_vm4, 65537, %v17638_v2  ;;  %v360_v22 = vand.u32 15, %v288_v11  ;;  %12886 = vst [vmem:[#allocation2 + $0x20] sm:$0xff] %v12737_v12  }
  0x5f   : > { %v1712_v23 = vpack.c.b16 %v1689_v13, %v1688_v55  ;;  %v1795_v25 = vrot.slane %v1793_v14, 3  ;;  %v1798_v26 = vrot.slane %v1796_v16, 4  ;;  %v1238_v30 = vshll.u32 %v1023_v21, 16  ;;  %v894_v11 = vld [vmem:[#allocation2 + $0x54] sm:$0xf] }
  0x60   : > { %v1080_v31 = vrot.slane %v1078_v18, 5  ;;  %v1084_v33 = vrot.slane %v1082_v19, 4  ;;  %v1242_v34 = vshrl.u32 %v1023_v21, 16  ;;  %vm704_vm7 = vcmp.eq.s32.totalorder %v360_v22, 0  ;;  %v12500_v16 = vld [vmem:[#allocation2 + $0x50] sm:$0xff]  ;;  %v830_v22 = vld [vmem:[%s13319_s16 + $0xa0] sm:$0xff] }
  0x61   : > { %v13550_v35 = vor.u32 %v1798_v26, %v1795_v25  ;;  %v1802_v36 = vshrl.u32 %v1712_v23, 16  ;;  %v1805_v37 = vshll.u32 %v1712_v23, 16  ;;  %v1240_v39 = vrot.slane %v1238_v30, 5  ;;  %vm977_vm10 = vmpackc.low %vm704_vm7, %vm704_vm7  ;;  %v12492_v21 = vld [vmem:[#allocation2 + $0x10] sm:$0xff] }
  0x62   : > { %v1081_v41 = vsel %vm13411_vm12, %v13388_v32, %v1080_v31  ;;  %v1085_v43 = vor.u32 %v1084_v33, %v1080_v31  ;;  %v1244_v45 = vrot.slane %v1242_v34, 4  ;;  %v1009_v47 = vsel %vm977_vm10, 65537, %v17638_v2  ;;  %v879_v12 = vld [vmem:[#allocation2 + $0x18] sm:$0xf]  ;;  %v831_v34 = vld [vmem:[%s13319_s16 + $0xa8] sm:$0xff] }
  0x63   : > { %v1804_v48 = vrot.slane %v1802_v36, 3  ;;  %v1807_v49 = vrot.slane %v1805_v37, 4  ;;  %v1385_v50 = vunpack.c.l.b16 %v1081_v41  ;;  %v1386_v51 = vunpack.c.h.b16 %v1081_v41 }
  0x64   : > { %v1086_v54 = vrot.slane %v1085_v43, 4  ;;  %v1241_v55 = vsel %vm13411_vm12, %v13388_v32, %v1240_v39  ;;  %v1245_v56 = vor.u32 %v1244_v45, %v1240_v39  ;;  %v1098_v58 = vshll.u32 %v1009_v47, 16  ;;  %v895_v25 = vld [vmem:[#allocation2 + $0x58] sm:$0xf] }
  0x65   : > { %v13559_v57 = vor.u32 %v1807_v49, %v1804_v48  ;;  %vm1389_vm14 = vcmp.ne.s32.totalorder %v1385_v50, %v13394_v38  ;;  %vm1390_vm0 = vcmp.ne.s32.totalorder %v1386_v51, %v13402_v42  ;;  %v1497_v59 = vunpack.c.l.b16 %v1241_v55  ;;  %2303 = vmatmul.bf16.gmra.mxu3 %v12500_v16  ;;  %v784_v48 = vld [vmem:[%s13319_s16 + $0x30] sm:$0xff]  ;;  %v785_v49 = vld [vmem:[%s13319_s16 + $0x38] sm:$0xff] }
  0x66   : > { %v1091_v60 = vsel %vm13411_vm12, %v1086_v54, %v13343_v9  ;;  %vm13566_vm1 = vmpackc.low %vm1390_vm0, %vm1389_vm14  ;;  %v1246_v62 = vrot.slane %v1245_v56, 4  ;;  %v1498_v63 = vunpack.c.h.b16 %v1241_v55  ;;  %v1100_v28 = vrot.slane %v1098_v58, 5  ;;  %v880_v51 = vld [vmem:[#allocation2 + $0x1c] sm:$0xf]  ;;  %v832_v56 = vld [vmem:[%s13319_s16 + $0xb0] sm:$0xff] }
  0x67   : > { %v17957_v61 = vsel %vm13566_vm1, 4294967295, %v17956_v61  ;;  %v1809_v6 = vsel %vm17591_vm9, %v13550_v35, %v13559_v57  ;;  %v1392_v8 = vunpack.c.l.b16 %v1091_v60  ;;  %v1393_v10 = vunpack.c.h.b16 %v1091_v60  ;;  %2263 = vmatmul.bf16.gmra.mxu1 %v12492_v21 }
  0x68   : > { %17958 = vst [vmem:[#allocation23_spill] sm:$0xff] %v17957_v61  ;;  %v1592_v29 = vsel %vm13566_vm1, 0, %v878_v53  ;;  %1985 = vmatmul.bf16.vlgmr.msra.gmra.mxu2 %v1809_v6  ;;  %v1251_v14 = vsel %vm13411_vm12, %v1246_v62, %v13343_v9  ;;  %vm1501_vm4 = vcmp.ne.s32.totalorder %v1497_v59, %v13394_v38  ;;  %vm1502_vm7 = vcmp.ne.s32.totalorder %v1498_v63, %v13402_v42  ;;  %v12520_v62 = vld [vmem:[#allocation8 + $0xa8] sm:$0xff]  ;;  %v833_v6 = vld [vmem:[%s13319_s16 + $0xb8] sm:$0xff] }
  0x69   : > { %v1674_v13 = vunpack.c.l.b16 %v1592_v29  ;;  %vm1396_vm10 = vcmp.ne.s32.totalorder %v1392_v8, %v13394_v38  ;;  %vm1397_vm14 = vcmp.ne.s32.totalorder %v1393_v10, %v13402_v42  ;;  %vm13582_vm0 = vmpackc.low %vm1502_vm7, %vm1501_vm4  ;;  %v17959_v17 = vmov 0  ;;  %v12528_v63 = vld [vmem:[#allocation8 + $0xe8] sm:$0xff]  ;;  %3448 = vmatpush.bf16.msrb.mxu2 %v12520_v62 }
  0x6a   : > { %v17960_v17 = vsel %vm13582_vm0, 4294967295, %v17959_v17  ;;  %v1504_v18 = vunpack.c.l.b16 %v1251_v14  ;;  %v1505_v19 = vunpack.c.h.b16 %v1251_v14  ;;  %vm13587_vm9 = vmpackc.low %vm1397_vm14, %vm1396_vm10  ;;  %v17962_v23 = vmov 0  ;;  %v12552_v10 = vld [vmem:[#allocation8 + $0x128] sm:$0xff]  ;;  %4014 = vmatpush.bf16.msrb.mxu3 %v12528_v63 }
  0x6b   : > { %17961 = vst [vmem:[#allocation24_spill] sm:$0xff] %v17960_v17  ;;  %v17963_v23 = vsel %vm13587_vm9, 4294967295, %v17962_v23  ;;  %v1608_v26 = vsel %vm13582_vm0, 0, %v894_v11  ;;  %v1101_v30 = vsel %vm13411_vm12, %v13388_v32, %v1100_v28  ;;  %v1102_v31 = vshrl.u32 %v1009_v47, 16  ;;  %4391 = vmatpush.bf16.msrb.mxu0 %v12552_v10 }
  0x6c   : > { %17964 = vst [vmem:[#allocation25_spill] sm:$0xff] %v17963_v23  ;;  %v304_v33 = vadd.s32 176, %v13329_v1  ;;  %v1593_v36 = vsel %vm13587_vm9, 0, %v879_v12  ;;  %vm1508_vm4 = vcmp.ne.s32.totalorder %v1504_v18, %v13394_v38  ;;  %vm1509_vm7 = vcmp.ne.s32.totalorder %v1505_v19, %v13402_v42 }
  0x6d   : > { %v1690_v37 = vunpack.c.l.b16 %v1608_v26  ;;  %v1675_v39 = vunpack.c.l.b16 %v1593_v36  ;;  %vm13602_vm10 = vmpackc.low %vm1509_vm7, %vm1508_vm4  ;;  %v17965_v41 = vmov 0  ;;  %v1104_v43 = vrot.slane %v1102_v31, 4 }
  0x6e   : > { %v17966_v41 = vsel %vm13602_vm10, 4294967295, %v17965_v41  ;;  %v1399_v45 = vunpack.c.l.b16 %v1101_v30  ;;  %v1400_v47 = vunpack.c.h.b16 %v1101_v30  ;;  %v1609_v50 = vsel %vm13602_vm10, 0, %v895_v25 }
  0x6f   : > { %17967 = vst [vmem:[#allocation26_spill] sm:$0xff] %v17966_v41  ;;  %v472_v53 = vand.u32 15, %v304_v33  ;;  %v12777_v54 = vpack.c.bf16 %v831_v34, %v830_v22  ;;  %v290_v55 = vadd.s32 64, %v13329_v1  ;;  %v1705_v58 = vpack.c.b16 %v1675_v39, %v1674_v13 }
  0x70   : > { %v1691_v59 = vunpack.c.l.b16 %v1609_v50  ;;  %v1105_v60 = vor.u32 %v1104_v43, %v1100_v28  ;;  %vm1403_vm14 = vcmp.ne.s32.totalorder %v1399_v45, %v13394_v38  ;;  %vm1404_vm4 = vcmp.ne.s32.totalorder %v1400_v47, %v13402_v42 }
  0x71   : > { %vm13615_vm7 = vcmp.eq.s32.totalorder %v472_v53, 0  ;;  %12894 = vst [vmem:[#allocation2 + $0x60] sm:$0xff] %v12777_v54   ;;  %v374_v29 = vand.u32 15, %v290_v55  ;;  %v12742_v11 = vpack.c.bf16 %v785_v49, %v784_v48  ;;  %v1739_v12 = vshrl.u32 %v1705_v58, 16  ;;  %vm13619_vm10 = vmpackc.low %vm1404_vm4, %vm1403_vm14  ;;  %v881_v54 = vld [vmem:[#allocation2 + $0x20] sm:$0xf] }
  0x72   : > { %v1742_v14 = vshll.u32 %v1705_v58, 16  ;;  %v1713_v13 = vpack.c.b16 %v1691_v59, %v1690_v37  ;;  %v1106_v16 = vrot.slane %v1105_v60, 4  ;;  %v17970_v28 = vmov 0  ;;  %vm993_vm0 = vmpackc.low %vm13615_vm7, %vm13615_vm7 }
  0x73   : > { %v17971_v28 = vsel %vm13619_vm10, 4294967295, %v17970_v28  ;;  %v1594_v18 = vsel %vm13619_vm10, 0, %v880_v51  ;;  %vm706_vm11 = vcmp.eq.s32.totalorder %v374_v29, 0  ;;  %12887 = vst [vmem:[#allocation2 + $0x28] sm:$0xff] %v12742_v11   ;;  %v306_v19 = vadd.s32 192, %v13329_v1 }
  0x74   : > { %17972 = vst [vmem:[#allocation27_spill] sm:$0xff] %v17971_v28  ;;  %v12782_v21 = vpack.c.bf16 %v833_v6, %v832_v56  ;;  %v1741_v22 = vrot.slane %v1739_v12, 3  ;;  %v1744_v25 = vrot.slane %v1742_v14, 4  ;;  %v1811_v26 = vshrl.u32 %v1713_v13, 16  ;;  %vm979_vm14 = vmpackc.low %vm706_vm11, %vm706_vm11 }
  0x75   : > { %v1814_v30 = vshll.u32 %v1713_v13, 16  ;;  %v1111_v31 = vsel %vm13411_vm12, %v1106_v16, %v13343_v9  ;;  %v1676_v33 = vunpack.c.l.b16 %v1594_v18  ;;  %v1025_v34 = vsel %vm993_vm0, 65537, %v17638_v2 }
  0x76   : > { %v1011_v36 = vsel %vm979_vm14, 65537, %v17638_v2  ;;  %12895 = vst [vmem:[#allocation2 + $0x68] sm:$0xff] %v12782_v21   ;;  %v13634_v37 = vor.u32 %v1744_v25, %v1741_v22  ;;  %v1813_v39 = vrot.slane %v1811_v26, 3  ;;  %v1406_v45 = vunpack.c.l.b16 %v1111_v31  ;;  %v896_v26 = vld [vmem:[#allocation2 + $0x5c] sm:$0xf] }
  0x77   : > { %v1816_v43 = vrot.slane %v1814_v30, 4  ;;  %v1407_v47 = vunpack.c.h.b16 %v1111_v31  ;;  %v1258_v48 = vshll.u32 %v1025_v34, 16  ;;  %v1262_v49 = vshrl.u32 %v1025_v34, 16  ;;  %v882_v30 = vld [vmem:[#allocation2 + $0x24] sm:$0xf] }
  0x78   : > { %v1118_v50 = vshll.u32 %v1011_v36, 16  ;;  %vm17973_vm11 = vsmask.f32 4352  ;;  %vm1410_vm0 = vcmp.ne.s32.totalorder %v1406_v45, %v13394_v38  ;;  %v1122_v55 = vshrl.u32 %v1011_v36, 16  ;;  %v897_v45 = vld [vmem:[#allocation2 + $0x60] sm:$0xf] }
  0x79   : > { %v1746_v51 = vsel %vm17973_vm11, %v13524_v52, %v13634_v37  ;;  %v13639_v53 = vor.u32 %v1816_v43, %v1813_v39  ;;  %vm1411_vm4 = vcmp.ne.s32.totalorder %v1407_v47, %v13402_v42  ;;  %v1260_v56 = vrot.slane %v1258_v48, 5  ;;  %vm17974_vm7 = vmmov %vm17973_vm11  ;;  %v12501_v52 = vld [vmem:[#allocation2 + $0x58] sm:$0xff] }
  0x7a   : > { %1950 = vmatmul.bf16.gmra.mxu0 %v1746_v51  ;;  %v1264_v58 = vrot.slane %v1262_v49, 4  ;;  %v1120_v59 = vrot.slane %v1118_v50, 5  ;;  %vm13646_vm14 = vmpackc.low %vm1411_vm4, %vm1410_vm0  ;;  %v17975_v62 = vmov 0  ;;  %v1124_v63 = vrot.slane %v1122_v55, 4  ;;  %2308 = vmatmul.bf16.gmra.mxu3 %v12501_v52  ;;  %v12519_v50 = vld [vmem:[#allocation8 + $0xa0] sm:$0xff] }
  0x7b   : > { %v1818_v60 = vsel %vm17974_vm7, %v13559_v57, %v13639_v53  ;;  %v17976_v62 = vsel %vm13646_vm14, 4294967295, %v17975_v62  ;;  %v486_v6 = vand.u32 15, %v306_v19  ;;  %v13651_v8 = vadd.s32 80, %v13329_v1  ;;  %v12493_v57 = vld [vmem:[#allocation2 + $0x18] sm:$0xff]  ;;  %3449 = vmatpush.bf16.msrb.mxu2 %v12519_v50 }
  0x7c   : > { %17977 = vst [vmem:[#allocation28_spill] sm:$0xff] %v17976_v62  ;;  %1990 = vmatmul.bf16.gmra.mxu2 %v1818_v60  ;;  %v1595_v10 = vsel %vm13646_vm14, 0, %v881_v54  ;;  %v1261_v29 = vsel %vm13411_vm12, %v13388_v32, %v1260_v56  ;;  %v1265_v11 = vor.u32 %v1264_v58, %v1260_v56  ;;  %v1121_v12 = vsel %vm13411_vm12, %v13388_v32, %v1120_v59  ;;  %v12527_v58 = vld [vmem:[#allocation8 + $0xe0] sm:$0xff] }
  0x7d   : > { %v1677_v14 = vunpack.c.l.b16 %v1595_v10  ;;  %v1511_v13 = vunpack.c.l.b16 %v1261_v29  ;;  %v1512_v16 = vunpack.c.h.b16 %v1261_v29  ;;  %v1125_v18 = vor.u32 %v1124_v63, %v1120_v59  ;;  %2268 = vmatmul.bf16.gmra.mxu1 %v12493_v57  ;;  %v12551_v59 = vld [vmem:[#allocation8 + $0x120] sm:$0xff]  ;;  %4015 = vmatpush.bf16.msrb.mxu3 %v12527_v58 }
  0x7e   : > { %v1266_v19 = vrot.slane %v1265_v11, 4  ;;  %v1413_v21 = vunpack.c.l.b16 %v1121_v12  ;;  %v1414_v22 = vunpack.c.h.b16 %v1121_v12  ;;  %vm722_vm11 = vcmp.eq.s32.totalorder %v486_v6, 0  ;;  %4392 = vmatpush.bf16.msrb.mxu0 %v12551_v59  ;;  %v802_v57 = vld [vmem:[%s13319_s16 + $0x40] sm:$0xff]  ;;  %v803_v12 = vld [vmem:[%s13319_s16 + $0x48] sm:$0xff] }
  0x7f   : > { %v1706_v25 = vpack.c.b16 %v1677_v14, %v1676_v33  ;;  %vm1515_vm0 = vcmp.ne.s32.totalorder %v1511_v13, %v13394_v38  ;;  %vm1516_vm4 = vcmp.ne.s32.totalorder %v1512_v16, %v13402_v42  ;;  %v1126_v31 = vrot.slane %v1125_v18, 4  ;;  %vm995_vm7 = vmpackc.low %vm722_vm11, %vm722_vm11  ;;  %v883_v16 = vld [vmem:[#allocation2 + $0x28] sm:$0xf]  ;;  %v12502_v58 = vld [vmem:[#allocation2 + $0x60] sm:$0xff] }
  0x80   : > { %v1271_v34 = vsel %vm13411_vm12, %v1266_v19, %v13343_v9  ;;  %vm13666_vm6 = vmpackc.low %vm1516_vm4, %vm1515_vm0  ;;  %v17978_v36 = vmov 0  ;;  %vm1417_vm3 = vcmp.ne.s32.totalorder %v1413_v21, %v13394_v38  ;;  %vm1418_vm13 = vcmp.ne.s32.totalorder %v1414_v22, %v13402_v42 }
  0x81   : > { %v17979_v36 = vsel %vm13666_vm6, 4294967295, %v17978_v36  ;;  %v1027_v33 = vsel %vm995_vm7, 65537, %v17638_v2  ;;  %v1748_v39 = vshrl.u32 %v1706_v25, 16  ;;  %v1751_v43 = vshll.u32 %v1706_v25, 16  ;;  %vm13673_vm11 = vmpackc.low %vm1418_vm13, %vm1417_vm3 }
  0x82   : > { %17980 = vst [vmem:[#allocation29_spill] sm:$0xff] %v17979_v36  ;;  %v1518_v47 = vunpack.c.l.b16 %v1271_v34  ;;  %v1519_v48 = vunpack.c.h.b16 %v1271_v34  ;;  %v17981_v49 = vmov 0  ;;  %v1610_v51 = vsel %vm13666_vm6, 0, %v896_v26 }
  0x83   : > { %v17982_v49 = vsel %vm13673_vm11, 4294967295, %v17981_v49  ;;  %v1131_v54 = vsel %vm13411_vm12, %v1126_v31, %v13343_v9  ;;  %v1596_v55 = vsel %vm13673_vm11, 0, %v882_v30  ;;  %v1278_v56 = vshll.u32 %v1027_v33, 16 }
  0x84   : > { %17983 = vst [vmem:[#allocation30_spill] sm:$0xff] %v17982_v49  ;;  %v1750_v60 = vrot.slane %v1748_v39, 3  ;;  %v1753_v52 = vrot.slane %v1751_v43, 4  ;;  %vm1522_vm13 = vcmp.ne.s32.totalorder %v1518_v47, %v13394_v38  ;;  %vm1523_vm3 = vcmp.ne.s32.totalorder %v1519_v48, %v13402_v42  ;;  %v898_v47 = vld [vmem:[#allocation2 + $0x64] sm:$0xf] }
  0x85   : > { %vm13686_vm0 = vmpackc.low %vm1523_vm3, %vm1522_vm13  ;;  %v17984_v63 = vmov 0  ;;  %v1692_v6 = vunpack.c.l.b16 %v1610_v51  ;;  %v1420_v10 = vunpack.c.l.b16 %v1131_v54  ;;  %v1421_v29 = vunpack.c.h.b16 %v1131_v54 }
  0x86   : > { %v17985_v63 = vsel %vm13686_vm0, 4294967295, %v17984_v63  ;;  %v1678_v11 = vunpack.c.l.b16 %v1596_v55  ;;  %v13692_v14 = vor.u32 %v1753_v52, %v1750_v60  ;;  %v1611_v13 = vsel %vm13686_vm0, 0, %v897_v45 }
  0x87   : > { %17986 = vst [vmem:[#allocation31_spill] sm:$0xff] %v17985_v63  ;;  %v1280_v18 = vrot.slane %v1278_v56, 5  ;;  %v1282_v19 = vshrl.u32 %v1027_v33, 16  ;;  %v1693_v21 = vunpack.c.l.b16 %v1611_v13  ;;  %vm1424_vm4 = vcmp.ne.s32.totalorder %v1420_v10, %v13394_v38 }
  0x88   : > { %vm1425_vm7 = vcmp.ne.s32.totalorder %v1421_v29, %v13402_v42  ;;  %v388_v22 = vand.u32 15, %v13651_v8  ;;  %vm17987_vm13 = vsmask.f32 4352  ;;  %v17988_v26 = vmov 0  ;;  %v12494_v29 = vld [vmem:[#allocation2 + $0x20] sm:$0xff] }
  0x89   : > { %v1755_v25 = vsel %vm17987_vm13, %v13634_v37, %v13692_v14  ;;  %vm13702_vm3 = vmpackc.low %vm1425_vm7, %vm1424_vm4  ;;  %v1281_v30 = vsel %vm13411_vm12, %v13388_v32, %v1280_v18  ;;  %v1284_v31 = vrot.slane %v1282_v19, 4  ;;  %v12747_v34 = vpack.c.bf16 %v803_v12, %v802_v57 }
  0x8a   : > { %v17989_v26 = vsel %vm13702_vm3, 4294967295, %v17988_v26  ;;  %v1714_v33 = vpack.c.b16 %v1693_v21, %v1692_v6  ;;  %v1597_v39 = vsel %vm13702_vm3, 0, %v883_v16  ;;  %v1525_v43 = vunpack.c.l.b16 %v1281_v30  ;;  %1955 = vmatmul.bf16.gmra.mxu0 %v1755_v25  ;;  %v850_v25 = vld [vmem:[%s13319_s16 + $0xc0] sm:$0xff]  ;;  %2313 = vmatmul.bf16.gmra.mxu3 %v12502_v58 }
  0x8b   : > { %17990 = vst [vmem:[#allocation32_spill] sm:$0xff] %v17989_v26  ;;  %v1526_v8 = vunpack.c.h.b16 %v1281_v30  ;;  %v1679_v45 = vunpack.c.l.b16 %v1597_v39  ;;  %v1285_v48 = vor.u32 %v1284_v31, %v1280_v18  ;;  %vm708_vm13 = vcmp.eq.s32.totalorder %v388_v22, 0  ;;  %v851_v30 = vld [vmem:[%s13319_s16 + $0xc8] sm:$0xff] }
  0x8c   : > { %12888 = vst [vmem:[#allocation2 + $0x30] sm:$0xff] %v12747_v34   ;;  %v308_v37 = vadd.s32 208, %v13329_v1  ;;  %v1820_v50 = vshrl.u32 %v1714_v33, 16  ;;  %v1823_v51 = vshll.u32 %v1714_v33, 16  ;;  %vm1529_vm4 = vcmp.ne.s32.totalorder %v1525_v43, %v13394_v38  ;;  %vm981_vm0 = vmpackc.low %vm708_vm13, %vm708_vm13  ;;  %v899_v33 = vld [vmem:[#allocation2 + $0x68] sm:$0xf] }
  0x8d   : > { %vm1530_vm7 = vcmp.ne.s32.totalorder %v1526_v8, %v13402_v42  ;;  %v1707_v54 = vpack.c.b16 %v1679_v45, %v1678_v11  ;;  %v1286_v55 = vrot.slane %v1285_v48, 4  ;;  %v17991_v56 = vmov 0  ;;  %2273 = vmatmul.bf16.gmra.mxu1 %v12494_v29 }
  0x8e   : > { %vm13714_vm6 = vmpackc.low %vm1530_vm7, %vm1529_vm4  ;;  %v1013_v59 = vsel %vm981_vm0, 65537, %v17638_v2  ;;  %v500_v60 = vand.u32 15, %v308_v37  ;;  %v1822_v52 = vrot.slane %v1820_v50, 3  ;;  %v1825_v6 = vrot.slane %v1823_v51, 4  ;;  %v12518_v51 = vld [vmem:[#allocation8 + $0x98] sm:$0xff] }
  0x8f   : > { %v17992_v56 = vsel %vm13714_vm6, 4294967295, %v17991_v56  ;;  %v1612_v10 = vsel %vm13714_vm6, 0, %v898_v47  ;;  %v1138_v57 = vshll.u32 %v1013_v59, 16  ;;  %v1757_v12 = vshrl.u32 %v1707_v54, 16  ;;  %3450 = vmatpush.bf16.msrb.mxu2 %v12518_v51 }
  0x90   : > { %17993 = vst [vmem:[#allocation33_spill] sm:$0xff] %v17992_v56  ;;  %v1760_v11 = vshll.u32 %v1707_v54, 16  ;;  %v1291_v13 = vsel %vm13411_vm12, %v1286_v55, %v13343_v9  ;;  %v1694_v16 = vunpack.c.l.b16 %v1612_v10  ;;  %v13724_v18 = vor.u32 %v1825_v6, %v1822_v52  ;;  %v804_v54 = vld [vmem:[%s13319_s16 + $0x50] sm:$0xff]  ;;  %v12550_v52 = vld [vmem:[#allocation8 + $0x118] sm:$0xff] }
  0x91   : > { %v1532_v19 = vunpack.c.l.b16 %v1291_v13  ;;  %v1533_v21 = vunpack.c.h.b16 %v1291_v13  ;;  %v1140_v22 = vrot.slane %v1138_v57, 5  ;;  %v1759_v31 = vrot.slane %v1757_v12, 3  ;;  %v805_v10 = vld [vmem:[%s13319_s16 + $0x58] sm:$0xff]  ;;  %v884_v12 = vld [vmem:[#allocation2 + $0x2c] sm:$0xf]  ;;  %4393 = vmatpush.bf16.msrb.mxu0 %v12550_v52 }
  0x92   : > { %v1762_v34 = vrot.slane %v1760_v11, 4  ;;  %v1142_v39 = vshrl.u32 %v1013_v59, 16  ;;  %vm13728_vm0 = vcmp.eq.s32.totalorder %v500_v60, 0  ;;  %vm17996_vm13 = vsmask.f32 4352  ;;  %v12526_v60 = vld [vmem:[#allocation8 + $0xd8] sm:$0xff] }
  0x93   : > { %v1827_v8 = vsel %vm17996_vm13, %v13639_v53, %v13724_v18  ;;  %vm1536_vm4 = vcmp.ne.s32.totalorder %v1532_v19, %v13394_v38  ;;  %vm1537_vm7 = vcmp.ne.s32.totalorder %v1533_v21, %v13402_v42  ;;  %v1141_v45 = vsel %vm13411_vm12, %v13388_v32, %v1140_v22  ;;  %vm997_vm6 = vmpackc.low %vm13728_vm0, %vm13728_vm0  ;;  %4016 = vmatpush.bf16.msrb.mxu3 %v12526_v60 }
  0x94   : > { %1995 = vmatmul.bf16.gmra.mxu2 %v1827_v8  ;;  %v13743_v47 = vor.u32 %v1762_v34, %v1759_v31  ;;  %vm13745_vm3 = vmpackc.low %vm1537_vm7, %vm1536_vm4  ;;  %v17997_v48 = vmov 0  ;;  %v1144_v53 = vrot.slane %v1142_v39, 4  ;;  %v1427_v37 = vunpack.c.l.b16 %v1141_v45 }
  0x95   : > { %v17998_v48 = vsel %vm13745_vm3, 4294967295, %v17997_v48  ;;  %v1428_v50 = vunpack.c.h.b16 %v1141_v45  ;;  %v1613_v55 = vsel %vm13745_vm3, 0, %v899_v33  ;;  %v12787_v58 = vpack.c.bf16 %v851_v30, %v850_v25  ;;  %vm18000_vm0 = vmmov %vm17996_vm13 }
  0x96   : > { %17999 = vst [vmem:[#allocation34_spill] sm:$0xff] %v17998_v48  ;;  %v1029_v59 = vsel %vm997_vm6, 65537, %v17638_v2  ;;  %v294_v6 = vadd.s32 96, %v13329_v1  ;;  %v1764_v29 = vsel %vm18000_vm0, %v13692_v14, %v13743_v47  ;;  %v1695_v57 = vunpack.c.l.b16 %v1613_v55 }
  0x97   : > { %v1145_v11 = vor.u32 %v1144_v53, %v1140_v22  ;;  %vm1431_vm13 = vcmp.ne.s32.totalorder %v1427_v37, %v13394_v38  ;;  %vm1432_vm4 = vcmp.ne.s32.totalorder %v1428_v50, %v13402_v42  ;;  %12896 = vst [vmem:[#allocation2 + $0x70] sm:$0xff] %v12787_v58   ;;  %v1298_v13 = vshll.u32 %v1029_v59, 16 }
  0x98   : > { %v1302_v19 = vshrl.u32 %v1029_v59, 16  ;;  %v402_v21 = vand.u32 15, %v294_v6  ;;  %v1715_v25 = vpack.c.b16 %v1695_v57, %v1694_v16  ;;  %vm13760_vm6 = vmpackc.low %vm1432_vm4, %vm1431_vm13  ;;  %v18001_v31 = vmov 0  ;;  %v885_v59 = vld [vmem:[#allocation2 + $0x30] sm:$0xf] }
  0x99   : > { %v1146_v30 = vrot.slane %v1145_v11, 4  ;;  %v18002_v31 = vsel %vm13760_vm6, 4294967295, %v18001_v31  ;;  %v12752_v14 = vpack.c.bf16 %v805_v10, %v804_v54  ;;  %v310_v22 = vadd.s32 224, %v13329_v1  ;;  %v900_v11 = vld [vmem:[#allocation2 + $0x6c] sm:$0xf] }
  0x9a   : > { %18003 = vst [vmem:[#allocation35_spill] sm:$0xff] %v18002_v31  ;;  %v1598_v34 = vsel %vm13760_vm6, 0, %v884_v12  ;;  %v1300_v33 = vrot.slane %v1298_v13, 5  ;;  %v1304_v39 = vrot.slane %v1302_v19, 4  ;;  %vm13767_vm7 = vcmp.eq.s32.totalorder %v402_v21, 0  ;;  %1960 = vmatmul.bf16.gmra.mxu0 %v1764_v29  ;;  %v12503_v29 = vld [vmem:[#allocation2 + $0x68] sm:$0xff] }
  0x9b   : > { %v1829_v8 = vshrl.u32 %v1715_v25, 16  ;;  %v1832_v45 = vshll.u32 %v1715_v25, 16  ;;  %v1151_v16 = vsel %vm13411_vm12, %v1146_v30, %v13343_v9  ;;  %v1680_v53 = vunpack.c.l.b16 %v1598_v34  ;;  %12889 = vst [vmem:[#allocation2 + $0x38] sm:$0xff] %v12752_v14   ;;  %vm983_vm0 = vmpackc.low %vm13767_vm7, %vm13767_vm7  ;;  %v12495_v30 = vld [vmem:[#allocation2 + $0x28] sm:$0xff]  ;;  %2318 = vmatmul.bf16.gmra.mxu3 %v12503_v29  ;;  %v12517_v29 = vld [vmem:[#allocation8 + $0x90] sm:$0xff] }
  0x9c   : > { %v1434_v37 = vunpack.c.l.b16 %v1151_v16  ;;  %v1435_v50 = vunpack.c.h.b16 %v1151_v16  ;;  %v1301_v51 = vsel %vm13411_vm12, %v13388_v32, %v1300_v33  ;;  %v1305_v54 = vor.u32 %v1304_v39, %v1300_v33  ;;  %v853_v16 = vld [vmem:[%s13319_s16 + $0xd8] sm:$0xff]  ;;  %3451 = vmatpush.bf16.msrb.mxu2 %v12517_v29 }
  0x9d   : > { %v1831_v55 = vrot.slane %v1829_v8, 3  ;;  %v1834_v58 = vrot.slane %v1832_v45, 4  ;;  %v1539_v60 = vunpack.c.l.b16 %v1301_v51  ;;  %v1540_v52 = vunpack.c.h.b16 %v1301_v51  ;;  %v852_v45 = vld [vmem:[%s13319_s16 + $0xd0] sm:$0xff]  ;;  %2278 = vmatmul.bf16.gmra.mxu1 %v12495_v30 }
  0x9e   : > { %vm1438_vm13 = vcmp.ne.s32.totalorder %v1434_v37, %v13394_v38  ;;  %vm1439_vm4 = vcmp.ne.s32.totalorder %v1435_v50, %v13402_v42  ;;  %v1306_v6 = vrot.slane %v1305_v54, 4  ;;  %v1015_v10 = vsel %vm983_vm0, 65537, %v17638_v2  ;;  %v901_v37 = vld [vmem:[#allocation2 + $0x70] sm:$0xf] }
  0x9f   : > { %v13783_v57 = vor.u32 %v1834_v58, %v1831_v55  ;;  %vm13785_vm7 = vmpackc.low %vm1439_vm4, %vm1438_vm13  ;;  %v18006_v12 = vmov 0  ;;  %vm1543_vm3 = vcmp.ne.s32.totalorder %v1539_v60, %v13394_v38  ;;  %vm1544_vm6 = vcmp.ne.s32.totalorder %v1540_v52, %v13402_v42 }
  0xa0   : > { %v18007_v12 = vsel %vm13785_vm7, 4294967295, %v18006_v12  ;;  %v1158_v13 = vshll.u32 %v1015_v10, 16  ;;  %v1599_v19 = vsel %vm13785_vm7, 0, %v885_v59  ;;  %v1311_v21 = vsel %vm13411_vm12, %v1306_v6, %v13343_v9  ;;  %vm13796_vm0 = vmpackc.low %vm1544_vm6, %vm1543_vm3 }
  0xa1   : > { %18008 = vst [vmem:[#allocation36_spill] sm:$0xff] %v18007_v12  ;;  %v18009_v25 = vmov 0  ;;  %v1162_v14 = vshrl.u32 %v1015_v10, 16  ;;  %v514_v34 = vand.u32 15, %v310_v22  ;;  %vm18012_vm13 = vsmask.f32 4352 }
  0xa2   : > { %v18010_v25 = vsel %vm13796_vm0, 4294967295, %v18009_v25  ;;  %v1836_v33 = vsel %vm18012_vm13, %v13724_v18, %v13783_v57  ;;  %v1681_v39 = vunpack.c.l.b16 %v1599_v19  ;;  %v1546_v43 = vunpack.c.l.b16 %v1311_v21 }
  0xa3   : > { %18011 = vst [vmem:[#allocation37_spill] sm:$0xff] %v18010_v25  ;;  %v1547_v8 = vunpack.c.h.b16 %v1311_v21  ;;  %v1614_v50 = vsel %vm13796_vm0, 0, %v900_v11  ;;  %v1160_v51 = vrot.slane %v1158_v13, 5  ;;  %v1164_v54 = vrot.slane %v1162_v14, 4  ;;  %v12525_v13 = vld [vmem:[#allocation8 + $0xd0] sm:$0xff] }
  0xa4   : > { %vm726_vm3 = vcmp.eq.s32.totalorder %v514_v34, 0  ;;  %v1708_v55 = vpack.c.b16 %v1681_v39, %v1680_v53  ;;  %vm1550_vm6 = vcmp.ne.s32.totalorder %v1546_v43, %v13394_v38  ;;  %v1696_v22 = vunpack.c.l.b16 %v1614_v50  ;;  %2000 = vmatmul.bf16.gmra.mxu2 %v1836_v33  ;;  %v12549_v34 = vld [vmem:[#allocation8 + $0x110] sm:$0xff]  ;;  %4017 = vmatpush.bf16.msrb.mxu3 %v12525_v13 }
  0xa5   : > { %vm1551_vm4 = vcmp.ne.s32.totalorder %v1547_v8, %v13402_v42  ;;  %vm999_vm13 = vmpackc.low %vm726_vm3, %vm726_vm3  ;;  %v18013_v18 = vmov 0  ;;  %v1161_v58 = vsel %vm13411_vm12, %v13388_v32, %v1160_v51  ;;  %v1165_v59 = vor.u32 %v1164_v54, %v1160_v51  ;;  %v886_v8 = vld [vmem:[#allocation2 + $0x34] sm:$0xf]  ;;  %4394 = vmatpush.bf16.msrb.mxu0 %v12549_v34 }
  0xa6   : > { %vm13809_vm7 = vmpackc.low %vm1551_vm4, %vm1550_vm6  ;;  %v12792_v60 = vpack.c.bf16 %v853_v16, %v852_v45  ;;  %v1031_v53 = vsel %vm999_vm13, 65537, %v17638_v2  ;;  %v1766_v52 = vshrl.u32 %v1708_v55, 16  ;;  %v1769_v6 = vshll.u32 %v1708_v55, 16 }
  0xa7   : > { %v18014_v18 = vsel %vm13809_vm7, 4294967295, %v18013_v18  ;;  %v1615_v10 = vsel %vm13809_vm7, 0, %v901_v37  ;;  %v1441_v11 = vunpack.c.l.b16 %v1161_v58  ;;  %v1166_v21 = vrot.slane %v1165_v59, 4 }
  0xa8   : > { %18015 = vst [vmem:[#allocation38_spill] sm:$0xff] %v18014_v18  ;;  %v1697_v19 = vunpack.c.l.b16 %v1615_v10  ;;  %v1442_v30 = vunpack.c.h.b16 %v1161_v58  ;;  %v1318_v14 = vshll.u32 %v1031_v53, 16  ;;  %v1768_v39 = vrot.slane %v1766_v52, 3  ;;  %v3640_v18 = vld [vmem:[#allocation2 + $0x30] sm:$0xf] }
  0xa9   : > { %12897 = vst [vmem:[#allocation2 + $0x78] sm:$0xff] %v12792_v60   ;;  %v1771_v43 = vrot.slane %v1769_v6, 4  ;;  %vm1445_vm3 = vcmp.ne.s32.totalorder %v1441_v11, %v13394_v38  ;;  %v1322_v33 = vshrl.u32 %v1031_v53, 16  ;;  %v1171_v16 = vsel %vm13411_vm12, %v1166_v21, %v13343_v9  ;;  %v887_v60 = vld [vmem:[#allocation2 + $0x38] sm:$0xf] }
  0xaa   : > { %v1716_v45 = vpack.c.b16 %v1697_v19, %v1696_v22  ;;  %vm1446_vm6 = vcmp.ne.s32.totalorder %v1442_v30, %v13402_v42  ;;  %v1320_v37 = vrot.slane %v1318_v14, 5  ;;  %v18016_v51 = vmov 0  ;;  %v854_v30 = vld [vmem:[%s13319_s16 + $0xe0] sm:$0xff]  ;;  %v855_v14 = vld [vmem:[%s13319_s16 + $0xe8] sm:$0xff] }
  0xab   : > { %v13824_v50 = vor.u32 %v1771_v43, %v1768_v39  ;;  %vm13826_vm4 = vmpackc.low %vm1446_vm6, %vm1445_vm3  ;;  %v1448_v54 = vunpack.c.l.b16 %v1171_v16  ;;  %v1449_v55 = vunpack.c.h.b16 %v1171_v16  ;;  %v1324_v58 = vrot.slane %v1322_v33, 4 }
  0xac   : > { %v18017_v51 = vsel %vm13826_vm4, 4294967295, %v18016_v51  ;;  %v1838_v22 = vshrl.u32 %v1716_v45, 16  ;;  %v1841_v59 = vshll.u32 %v1716_v45, 16  ;;  %v1600_v53 = vsel %vm13826_vm4, 0, %v886_v8  ;;  %v902_v45 = vld [vmem:[#allocation2 + $0x74] sm:$0xf] }
  0xad   : > { %18018 = vst [vmem:[#allocation39_spill] sm:$0xff] %v18017_v51  ;;  %v1321_v52 = vsel %vm13411_vm12, %v13388_v32, %v1320_v37  ;;  %vm18019_vm13 = vsmask.f32 4352  ;;  %vm1452_vm3 = vcmp.ne.s32.totalorder %v1448_v54, %v13394_v38  ;;  %vm1453_vm6 = vcmp.ne.s32.totalorder %v1449_v55, %v13402_v42 }
  0xae   : > { %v1773_v6 = vsel %vm18019_vm13, %v13743_v47, %v13824_v50  ;;  %v1682_v10 = vunpack.c.l.b16 %v1600_v53  ;;  %v1840_v11 = vrot.slane %v1838_v22, 3  ;;  %v1843_v29 = vrot.slane %v1841_v59, 4  ;;  %vm13840_vm7 = vmpackc.low %vm1453_vm6, %vm1452_vm3  ;;  %v12496_v53 = vld [vmem:[#allocation2 + $0x30] sm:$0xff] }
  0xaf   : > { %v18020_v13 = vmov 0  ;;  %v1325_v19 = vor.u32 %v1324_v58, %v1320_v37  ;;  %v1553_v21 = vunpack.c.l.b16 %v1321_v52  ;;  %v1601_v34 = vsel %vm13840_vm7, 0, %v887_v60  ;;  %1965 = vmatmul.bf16.gmra.mxu0 %v1773_v6  ;;  %v12504_v37 = vld [vmem:[#allocation2 + $0x70] sm:$0xff]  ;;  %2283 = vmatmul.bf16.gmra.mxu1 %v12496_v53  ;;  %v12548_v53 = vld [vmem:[#allocation8 + $0x108] sm:$0xff] }
  0xb0   : > { %v18021_v13 = vsel %vm13840_vm7, 4294967295, %v18020_v13  ;;  %v1554_v39 = vunpack.c.h.b16 %v1321_v52  ;;  %v296_v47 = vadd.s32 112, %v13329_v1  ;;  %v312_v43 = vadd.s32 240, %v13329_v1  ;;  %2323 = vmatmul.bf16.gmra.mxu3 %v12504_v37  ;;  %v12516_v37 = vld [vmem:[#allocation8 + $0x88] sm:$0xff]  ;;  %4395 = vmatpush.bf16.msrb.mxu0 %v12548_v53 }
  0xb1   : > { %18022 = vst [vmem:[#allocation40_spill] sm:$0xff] %v18021_v13  ;;  %v13850_v8 = vor.u32 %v1843_v29, %v1840_v11  ;;  %v1683_v33 = vunpack.c.l.b16 %v1601_v34  ;;  %v1326_v16 = vrot.slane %v1325_v19, 4  ;;  %vm1557_vm13 = vcmp.ne.s32.totalorder %v1553_v21, %v13394_v38  ;;  %v903_v21 = vld [vmem:[#allocation2 + $0x78] sm:$0xf]  ;;  %3452 = vmatpush.bf16.msrb.mxu2 %v12516_v37 }
  0xb2   : > { %vm1558_vm3 = vcmp.ne.s32.totalorder %v1554_v39, %v13402_v42  ;;  %v416_v54 = vand.u32 15, %v296_v47  ;;  %v528_v55 = vand.u32 15, %v312_v43  ;;  %v12797_v58 = vpack.c.bf16 %v855_v14, %v854_v30 }
  0xb3   : > { %v1709_v22 = vpack.c.b16 %v1683_v33, %v1682_v10  ;;  %v1331_v59 = vsel %vm13411_vm12, %v1326_v16, %v13343_v9  ;;  %vm13857_vm6 = vmpackc.low %vm1558_vm3, %vm1557_vm13  ;;  %v18023_v60 = vmov 0  ;;  %vm18026_vm7 = vsmask.f32 4352 }
  0xb4   : > { %v18024_v60 = vsel %vm13857_vm6, 4294967295, %v18023_v60  ;;  %v1560_v52 = vunpack.c.l.b16 %v1331_v59  ;;  %v1561_v6 = vunpack.c.h.b16 %v1331_v59  ;;  %v1616_v11 = vsel %vm13857_vm6, 0, %v902_v45  ;;  %12898 = vst [vmem:[#allocation2 + $0x80] sm:$0xff] %v12797_v58  }
  0xb5   : > { %18025 = vst [vmem:[#allocation41_spill] sm:$0xff] %v18024_v60  ;;  %vm712_vm0 = vcmp.eq.s32.totalorder %v416_v54, 0  ;;  %v1845_v10 = vsel %vm18026_vm7, %v13783_v57, %v13850_v8  ;;  %v1775_v29 = vshrl.u32 %v1709_v22, 16  ;;  %v1778_v19 = vshll.u32 %v1709_v22, 16  ;;  %v12524_v54 = vld [vmem:[#allocation8 + $0xc8] sm:$0xff] }
  0xb6   : > { %vm985_vm4 = vmpackc.low %vm712_vm0, %vm712_vm0  ;;  %vm13866_vm13 = vcmp.eq.s32.totalorder %v528_v55, 0  ;;  %vm1564_vm3 = vcmp.ne.s32.totalorder %v1560_v52, %v13394_v38  ;;  %vm1565_vm11 = vcmp.ne.s32.totalorder %v1561_v6, %v13402_v42  ;;  %v1698_v14 = vunpack.c.l.b16 %v1616_v11  ;;  %2005 = vmatmul.bf16.gmra.mxu2 %v1845_v10  ;;  %v12562_v11 = vld [vmem:[#allocation8 + $0x178] sm:$0xff]  ;;  %4018 = vmatpush.bf16.msrb.mxu3 %v12524_v54 }
  0xb7   : > { %v1017_v34 = vsel %vm985_vm4, 65537, %v17638_v2  ;;  %vm1001_vm7 = vmpackc.low %vm13866_vm13, %vm13866_vm13  ;;  %v1777_v57 = vrot.slane %v1775_v29, 3  ;;  %v1780_v39 = vrot.slane %v1778_v19, 4  ;;  %v18029_v47 = vmov 0  ;;  %4935 = vmatpush.bf16.msrb.mxu1 %v12562_v11 }
  0xb8   : > { %vm13876_vm6 = vmpackc.low %vm1565_vm11, %vm1564_vm3  ;;  %v1178_v43 = vshll.u32 %v1017_v34, 16  ;;  %v1182_v33 = vshrl.u32 %v1017_v34, 16  ;;  %v1033_v16 = vsel %vm1001_vm7, 65537, %v17638_v2  ;;  %v1581_v55 = vunpack.c.l.b16 %v13388_v32 }
  0xb9   : > { %v18030_v47 = vsel %vm13876_vm6, 4294967295, %v18029_v47  ;;  %v1617_v45 = vsel %vm13876_vm6, 0, %v903_v21  ;;  %v1582_v58 = vunpack.c.h.b16 %v13388_v32  ;;  %v13885_v22 = vor.u32 %v1780_v39, %v1777_v57 }
  0xba   : > { %18031 = vst [vmem:[#allocation42_spill] sm:$0xff] %v18030_v47  ;;  %v1699_v59 = vunpack.c.l.b16 %v1617_v45  ;;  %v1180_v52 = vrot.slane %v1178_v43, 5  ;;  %v1184_v6 = vrot.slane %v1182_v33, 4  ;;  %v1338_v29 = vshll.u32 %v1033_v16, 16 }
  0xbb   : > { %v1342_v10 = vshrl.u32 %v1033_v16, 16  ;;  %vm1585_vm11 = vcmp.ne.s32.totalorder %v1581_v55, %v13394_v38  ;;  %vm1586_vm0 = vcmp.ne.s32.totalorder %v1582_v58, %v13402_v42  ;;  %vm18032_vm4 = vsmask.f32 4352  ;;  %v906_v57 = vld [vmem:[#allocation2 + $0x84] sm:$0xf] }
  0xbc   : > { %v1782_v19 = vsel %vm18032_vm4, %v13824_v50, %v13885_v22  ;;  %v1717_v21 = vpack.c.b16 %v1699_v59, %v1698_v14  ;;  %v1181_v30 = vsel %vm13411_vm12, %v13388_v32, %v1180_v52  ;;  %v1185_v34 = vor.u32 %v1184_v6, %v1180_v52  ;;  %vm13895_vm13 = vmpackc.low %vm1586_vm0, %vm1585_vm11  ;;  %v888_v50 = vld [vmem:[#allocation2 + $0x3c] sm:$0xf]  ;;  %v905_v46 = vld [vmem:[#allocation2 + $0x80] sm:$0xf] }
  0xbd   : > { %v18033_v39 = vmov 0  ;;  %v1455_v43 = vunpack.c.l.b16 %v1181_v30  ;;  %v1456_v33 = vunpack.c.h.b16 %v1181_v30  ;;  %v1340_v45 = vrot.slane %v1338_v29, 5 }
  0xbe   : > { %v18034_v39 = vsel %vm13895_vm13, 4294967295, %v18033_v39  ;;  %v1344_v16 = vrot.slane %v1342_v10, 4  ;;  %v1847_v37 = vshrl.u32 %v1717_v21, 16  ;;  %v1850_v54 = vshll.u32 %v1717_v21, 16 }
  0xbf   : > { %18035 = vst [vmem:[#allocation43_spill] sm:$0xff] %v18034_v39  ;;  %v1186_v14 = vrot.slane %v1185_v34, 4  ;;  %v1620_v55 = vsel %vm13895_vm13, 0, %v906_v57  ;;  %vm1459_vm3 = vcmp.ne.s32.totalorder %v1455_v43, %v13394_v38  ;;  %vm1460_vm7 = vcmp.ne.s32.totalorder %v1456_v33, %v13402_v42  ;;  %1970 = vmatmul.bf16.gmra.mxu0 %v1782_v19  ;;  %v889_v57 = vld [vmem:[#allocation2 + $0x40] sm:$0xf]  ;;  %v12505_v19 = vld [vmem:[#allocation2 + $0x78] sm:$0xff] }
  0xc0   : > { %v1341_v58 = vsel %vm13411_vm12, %v13388_v32, %v1340_v45  ;;  %v1345_v59 = vor.u32 %v1344_v16, %v1340_v45  ;;  %v1849_v52 = vrot.slane %v1847_v37, 3  ;;  %v1852_v6 = vrot.slane %v1850_v54, 4  ;;  %vm13909_vm11 = vmpackc.low %vm1460_vm7, %vm1459_vm3  ;;  %v904_v16 = vld [vmem:[#allocation2 + $0x7c] sm:$0xf]  ;;  %2328 = vmatmul.bf16.gmra.mxu3 %v12505_v19  ;;  %v12561_v45 = vld [vmem:[#allocation8 + $0x170] sm:$0xff] }
  0xc1   : > { %v1191_v53 = vsel %vm13411_vm12, %v1186_v14, %v13343_v9  ;;  %v18036_v11 = vmov 0  ;;  %v1567_v29 = vunpack.c.l.b16 %v1341_v58  ;;  %v1602_v30 = vsel %vm13909_vm11, 0, %v888_v50  ;;  %4936 = vmatpush.bf16.msrb.mxu1 %v12561_v45  ;;  %v2435_v39 = vld [vmem:[#allocation2 + $0x8] sm:$0xf] }
  0xc2   : > { %v18037_v11 = vsel %vm13909_vm11, 4294967295, %v18036_v11  ;;  %v1462_v10 = vunpack.c.l.b16 %v1191_v53  ;;  %v1463_v21 = vunpack.c.h.b16 %v1191_v53  ;;  %v1346_v34 = vrot.slane %v1345_v59, 4 }
  0xc3   : > { %18038 = vst [vmem:[#allocation44_spill] sm:$0xff] %v18037_v11  ;;  %v13915_v32 = vor.u32 %v1852_v6, %v1849_v52  ;;  %v1684_v43 = vunpack.c.l.b16 %v1602_v30  ;;  %v1568_v33 = vunpack.c.h.b16 %v1341_v58  ;;  %vm13918_vm0 = vcmp.ne.s32.totalorder %v1567_v29, %v13394_v38  ;;  %v12497_v52 = vld [vmem:[#allocation2 + $0x38] sm:$0xff] }
  0xc4   : > { %vm1466_vm4 = vcmp.ne.s32.totalorder %v1462_v10, %v13394_v38  ;;  %vm1467_vm3 = vcmp.ne.s32.totalorder %v1463_v21, %v13402_v42  ;;  %v1351_v37 = vsel %vm13411_vm12, %v1346_v34, %v13343_v9  ;;  %v1702_v54 = vunpack.c.l.b16 %v1620_v55  ;;  %2288 = vmatmul.bf16.gmra.mxu1 %v12497_v52 }
  0xc5   : > { %vm18041_vm7 = vsmask.f32 4352  ;;  %vm13930_vm13 = vmpackc.low %vm1467_vm3, %vm1466_vm4  ;;  %v18042_v14 = vmov 0  ;;  %vm1572_vm6 = vcmp.ne.s32.totalorder %v1568_v33, %v13402_v42  ;;  %v1574_v58 = vunpack.c.l.b16 %v1351_v37 }
  0xc6   : > { %v1854_v50 = vsel %vm18041_vm7, %v13850_v8, %v13915_v32  ;;  %v18043_v14 = vsel %vm13930_vm13, 4294967295, %v18042_v14  ;;  %v1575_v59 = vunpack.c.h.b16 %v1351_v37  ;;  %v1603_v6 = vsel %vm13930_vm13, 0, %v889_v57  ;;  %vm13939_vm12 = vmpackc.low %vm1572_vm6, %vm13918_vm0 }
  0xc7   : > { %18044 = vst [vmem:[#allocation45_spill] sm:$0xff] %v18043_v14  ;;  %v18045_v9 = vmov 0  ;;  %v13943_v8 = vpack.c.b16 %v1702_v54, %v1702_v54  ;;  %v283_v55 = vadd.s32 8, %v13329_v1  ;;  %v285_v53 = vadd.s32 24, %v13329_v1  ;;  %2010 = vmatmul.bf16.gmra.mxu2 %v1854_v50 }
  0xc8   : > { %v18046_v9 = vsel %vm13939_vm12, 4294967295, %v18045_v9  ;;  %v1685_v29 = vunpack.c.l.b16 %v1603_v6  ;;  %vm1578_vm4 = vcmp.ne.s32.totalorder %v1574_v58, %v13394_v38  ;;  %vm1579_vm3 = vcmp.ne.s32.totalorder %v1575_v59, %v13402_v42  ;;  %v12515_v59 = vld [vmem:[#allocation8 + $0x80] sm:$0xff] }
  0xc9   : > { %18047 = vst [vmem:[#allocation46_spill] sm:$0xff] %v18046_v9  ;;  %v1618_v10 = vsel %vm13939_vm12, 0, %v904_v16  ;;  %vm13951_vm7 = vmpackc.low %vm1579_vm3, %vm1578_vm4  ;;  %v18048_v21 = vmov 0  ;;  %v325_v34 = vand.u32 15, %v283_v55  ;;  %v339_v37 = vand.u32 15, %v285_v53  ;;  %v12523_v16 = vld [vmem:[#allocation8 + $0xc0] sm:$0xff]  ;;  %3453 = vmatpush.bf16.msrb.mxu2 %v12515_v59 }
  0xca   : > { %v18049_v21 = vsel %vm13951_vm7, 4294967295, %v18048_v21  ;;  %v1700_v30 = vunpack.c.l.b16 %v1618_v10  ;;  %v1710_v57 = vpack.c.b16 %v1685_v29, %v1684_v43  ;;  %v1619_v33 = vsel %vm13951_vm7, 0, %v905_v46  ;;  %v12560_v43 = vld [vmem:[#allocation8 + $0x168] sm:$0xff]  ;;  %v12547_v55 = vld [vmem:[#allocation8 + $0x100] sm:$0xff]  ;;  %4019 = vmatpush.bf16.msrb.mxu3 %v12523_v16 }
  0xcb   : > { %18050 = vst [vmem:[#allocation47_spill] sm:$0xff] %v18049_v21  ;;  %v1701_v54 = vunpack.c.l.b16 %v1619_v33  ;;  %v1865_v58 = vshrl.u32 %v13943_v8, 16  ;;  %vm13958_vm6 = vcmp.eq.s32.totalorder %v325_v34, 15  ;;  %vm13962_vm0 = vcmp.eq.s32.totalorder %v339_v37, 15  ;;  %4396 = vmatpush.bf16.msrb.mxu0 %v12547_v55  ;;  %4937 = vmatpush.bf16.msrb.mxu1 %v12560_v43 }
  0xcc   : > { %v1784_v10 = vshrl.u32 %v1710_v57, 16  ;;  %v1787_v19 = vshll.u32 %v1710_v57, 16  ;;  %v2602_v50 = vrot.slane %v1052_v5, 7  ;;  %v1868_v34 = vshll.u32 %v13943_v8, 16  ;;  %vm2533_vm4 = vmpackc.low %vm13958_vm6, %vm13958_vm6  ;;  %v12559_v8 = vld [vmem:[#allocation8 + $0x160] sm:$0xff] }
  0xcd   : > { %v1718_v52 = vpack.c.b16 %v1701_v54, %v1700_v30  ;;  %vm2596_vm3 = vsmask.f32 256  ;;  %v13972_v45 = vrot.slane %v1865_v58, 3  ;;  %vm2535_vm7 = vmpackc.low %vm13962_vm0, %vm13962_vm0  ;;  %v2565_v5 = vsel %vm2533_vm4, 65537, %v17638_v2 }
  0xce   : > { %v1786_v53 = vrot.slane %v1784_v10, 3  ;;  %v1789_v29 = vrot.slane %v1787_v19, 4  ;;  %v2567_v37 = vsel %vm2535_vm7, 65537, %v17638_v2  ;;  %vm2597_vm12 = vsmask.f32 4368  ;;  %v12498_v2 = vld [vmem:[#allocation2 + $0x40] sm:$0xff] }
  0xcf   : > { %v1856_v57 = vshrl.u32 %v1718_v52, 16  ;;  %v1859_v33 = vshll.u32 %v1718_v52, 16  ;;  %v13983_v54 = vor.u32 %v2602_v50, %v1048_v4  ;;  %v2608_v16 = vshrl.u32 %v2565_v5, 16  ;;  %v3631_v10 = vld [vmem:[#allocation2 + $0xc] sm:$0x8]  ;;  %4938 = vmatpush.bf16.msrb.mxu1 %v12559_v8  ;;  %vm13998_vm7 = vmor %vm2596_vm3, %vm2597_vm12 }
  0xd0   : > { %v13978_v30 = vor.u32 %v1789_v29, %v1786_v53  ;;  %v2611_v6 = vshll.u32 %v2565_v5, 16  ;;  %vm18055_vm6 = vsmask.f32 4352  ;;  %v13988_v55 = vrot.slane %v2602_v50, 4  ;;  %v3632_v52 = vld [vmem:[#allocation2 + $0x10] sm:$0xf] }
  0xd1   : > { %v1858_v59 = vrot.slane %v1856_v57, 3  ;;  %v1861_v58 = vrot.slane %v1859_v33, 4  ;;  %v2626_v43 = vshrl.u32 %v2567_v37, 16  ;;  %v2629_v46 = vshll.u32 %v2567_v37, 16  ;;  %v3633_v57 = vld [vmem:[#allocation2 + $0x14] sm:$0xf]  ;;  %vm18058_vm0 = vmmov %vm18055_vm6 }
  0xd2   : > { %v1791_v19 = vsel %vm18055_vm6, %v13885_v22, %v13978_v30  ;;  %v2610_v29 = vrot.slane %v2608_v16, 7  ;;  %v2886_v3 = vunpack.c.l.b16 %v13983_v54  ;;  %v2887_v4 = vunpack.c.h.b16 %v13983_v54  ;;  %v12558_v5 = vld [vmem:[#allocation8 + $0x158] sm:$0xff] }
  0xd3   : > { %v13990_v53 = vor.u32 %v1861_v58, %v1858_v59  ;;  %1975 = vmatmul.bf16.gmra.mxu0 %v1791_v19  ;;  %v13994_v33 = vrot.slane %v1868_v34, 4  ;;  %v14002_v50 = vrot.slane %v2626_v43, 7  ;;  %v3634_v37 = vld [vmem:[#allocation2 + $0x18] sm:$0xf]  ;;  %v3664_v59 = vsel %vm13437_vm15, 0, %v3631_v10  ;;  %v12506_v34 = vld [vmem:[#allocation2 + $0x80] sm:$0xff]  ;;  %4939 = vmatpush.bf16.msrb.mxu1 %v12558_v5 }
  0xd4   : > { %v2613_v16 = vor.u32 %v2611_v6, %v2610_v29  ;;  %v2615_v8 = vrot.slane %v2610_v29, 4  ;;  %v3665_v19 = vsel %vm13464_vm5, 0, %v3632_v52  ;;  %vm2890_vm12 = vcmp.ne.s32.totalorder %v2886_v3, %v13394_v38  ;;  %v2436_v29 = vld [vmem:[#allocation2 + $0xc] sm:$0xf]  ;;  %2333 = vmatmul.bf16.gmra.mxu3 %v12506_v34  ;;  %2293 = vmatmul.bf16.gmra.mxu1 %v12498_v2  ;;  %v12557_v5 = vld [vmem:[#allocation8 + $0x150] sm:$0xff] }
  0xd5   : > { %v1863_v58 = vsel %vm18058_vm0, %v13915_v32, %v13990_v53  ;;  %v2631_v21 = vor.u32 %v2629_v46, %v14002_v50  ;;  %vm2891_vm4 = vcmp.ne.s32.totalorder %v2887_v4, %v13402_v42  ;;  %v3666_v10 = vsel %vm13453_vm2, 0, %v3633_v57 }
  0xd6   : > { %v2614_v32 = vsel %vm13998_vm7, %v13988_v55, %v2613_v16  ;;  %v2623_v6 = vsel %vm13998_vm7, %v2615_v8, %v13983_v54  ;;  %vm14022_vm3 = vmpackc.low %vm2891_vm4, %vm2890_vm12  ;;  %v18059_v43 = vmov 0  ;;  %v3667_v46 = vsel %vm13474_vm8, 0, %v3634_v37  ;;  %v2438_v8 = vld [vmem:[#allocation2 + $0x14] sm:$0xf]  ;;  %v4574_v37 = vld [vmem:[#allocation2 + $0x10] sm:$0xf] }
  0xd7   : > { %v18060_v43 = vsel %vm14022_vm3, 4294967295, %v18059_v43  ;;  %v3746_v52 = vunpack.c.l.b16 %v3664_v59  ;;  %v2632_v3 = vsel %vm13998_vm7, %v13988_v55, %v2631_v21  ;;  %v2893_v4 = vunpack.c.l.b16 %v2614_v32  ;;  %v4575_v59 = vld [vmem:[#allocation2 + $0x14] sm:$0xf]  ;;  %2015 = vmatmul.bf16.gmra.mxu2 %v1863_v58  ;;  %4940 = vmatpush.bf16.msrb.mxu1 %v12557_v5 }
  0xd8   : > { %18061 = vst [vmem:[#allocation48_spill] sm:$0xff] %v18060_v43  ;;  %v2894_v57 = vunpack.c.h.b16 %v2614_v32  ;;  %v2900_v16 = vunpack.c.l.b16 %v2623_v6  ;;  %v2901_v40 = vunpack.c.h.b16 %v2623_v6  ;;  %v2907_v15 = vunpack.c.l.b16 %v2632_v3  ;;  %v12594_v32 = vld [vmem:[#allocation8 + $0x1f8] sm:$0xff]  ;;  %v3639_v43 = vld [vmem:[#allocation2 + $0x2c] sm:$0xf] }
  0xd9   : > { %v2908_v9 = vunpack.c.h.b16 %v2632_v3  ;;  %v3117_v44 = vsel %vm14022_vm3, 0, %v2435_v39  ;;  %vm2897_vm6 = vcmp.ne.s32.totalorder %v2893_v4, %v13394_v38  ;;  %v18062_v34 = vmov 0  ;;  %v12570_v39 = vld [vmem:[#allocation8 + $0x1b8] sm:$0xff]  ;;  %v12556_v4 = vld [vmem:[#allocation8 + $0x148] sm:$0xff]  ;;  %5878 = vmatpush.bf16.msra.mxu3 %v12594_v32 }
  0xda   : > { %vm2898_vm0 = vcmp.ne.s32.totalorder %v2894_v57, %v13402_v42  ;;  %vm2904_vm12 = vcmp.ne.s32.totalorder %v2900_v16, %v13394_v38  ;;  %v3199_v21 = vunpack.c.l.b16 %v3117_v44  ;;  %vm2905_vm8 = vcmp.ne.s32.totalorder %v2901_v40, %v13402_v42  ;;  %5501 = vmatpush.bf16.msra.mxu2 %v12570_v39  ;;  %v12602_v57 = vld [vmem:[#allocation8 + $0x238] sm:$0xff] }
  0xdb   : > { %vm14036_vm4 = vmpackc.low %vm2898_vm0, %vm2897_vm6  ;;  %vm2911_vm2 = vcmp.ne.s32.totalorder %v2907_v15, %v13394_v38  ;;  %vm2912_vm5 = vcmp.ne.s32.totalorder %v2908_v9, %v13402_v42  ;;  %v3747_v2 = vunpack.c.l.b16 %v3665_v19  ;;  %v18065_v6 = vmov 0  ;;  %v4576_v16 = vld [vmem:[#allocation2 + $0x18] sm:$0xf]  ;;  %6424 = vmatpush.bf16.msra.mxu0 %v12602_v57  ;;  %4941 = vmatpush.bf16.msrb.mxu1 %v12556_v4 }
  0xdc   : > { %v18063_v34 = vsel %vm14036_vm4, 4294967295, %v18062_v34  ;;  %vm14043_vm15 = vmpackc.low %vm2905_vm8, %vm2904_vm12  ;;  %v3118_v44 = vsel %vm14036_vm4, 0, %v2436_v29  ;;  %v3748_v58 = vunpack.c.l.b16 %v3666_v10  ;;  %v3749_v3 = vunpack.c.l.b16 %v3667_v46 }
  0xdd   : > { %18064 = vst [vmem:[#allocation49_spill] sm:$0xff] %v18063_v34  ;;  %v18066_v6 = vsel %vm14043_vm15, 4294967295, %v18065_v6  ;;  %v1871_v40 = vor.u32 %v13994_v33, %v13972_v45  ;;  %vm14051_vm6 = vmpackc.low %vm2912_vm5, %vm2911_vm2  ;;  %v18068_v15 = vmov 0  ;;  %v3200_v9 = vunpack.c.l.b16 %v3118_v44  ;;  %v4577_v33 = vld [vmem:[#allocation2 + $0x1c] sm:$0xf] }
  0xde   : > { %18067 = vst [vmem:[#allocation50_spill] sm:$0xff] %v18066_v6  ;;  %v18069_v15 = vsel %vm14051_vm6, 4294967295, %v18068_v15  ;;  %v3779_v19 = vpack.c.b16 %v3747_v2, %v3746_v52  ;;  %v4607_v29 = vsel %vm14022_vm3, 0, %v4574_v37  ;;  %v3119_v10 = vsel %vm14043_vm15, 0, %v2437_v27  ;;  %v12555_v27 = vld [vmem:[#allocation8 + $0x140] sm:$0xff] }
  0xdf   : > { %18070 = vst [vmem:[#allocation51_spill] sm:$0xff] %v18069_v15  ;;  %v3120_v46 = vsel %vm14051_vm6, 0, %v2438_v8  ;;  %v3780_v45 = vpack.c.b16 %v3749_v3, %v3748_v58  ;;  %v4608_v5 = vsel %vm14036_vm4, 0, %v4575_v59  ;;  %v14063_v44 = vpack.c.b16 %v3200_v9, %v3199_v21  ;;  %4942 = vmatpush.bf16.msrb.mxu1 %v12555_v27 }
  0xe0   : > { %v3797_v52 = vshrl.u32 %v3779_v19, 16  ;;  %v3800_v2 = vshll.u32 %v3779_v19, 16  ;;  %v4609_v39 = vsel %vm14043_vm15, 0, %v4576_v16  ;;  %v4610_v8 = vsel %vm14051_vm6, 0, %v4577_v33 }
  0xe1   : > { %v3805_v37 = vshrl.u32 %v3780_v45, 16  ;;  %v3808_v32 = vshll.u32 %v3780_v45, 16  ;;  %v4689_v58 = vunpack.c.l.b16 %v4607_v29  ;;  %vm18071_vm2 = vsmask.f32 4352 }
  0xe2   : > { %v1800_v59 = vsel %vm18071_vm2, %v13978_v30, %v13550_v35  ;;  %v3201_v21 = vunpack.c.l.b16 %v3119_v10  ;;  %v3202_v3 = vunpack.c.l.b16 %v3120_v46  ;;  %v3799_v9 = vrot.slane %v3797_v52, 3  ;;  %vm18072_vm8 = vmmov %vm18071_vm2 }
  0xe3   : > { %v3802_v19 = vrot.slane %v3800_v2, 4  ;;  %v3807_v57 = vrot.slane %v3805_v37, 3  ;;  %v3810_v34 = vrot.slane %v3808_v32, 4  ;;  %v4690_v6 = vunpack.c.l.b16 %v4608_v5  ;;  %1980 = vmatmul.bf16.gmra.mxu0 %v1800_v59  ;;  %vm18073_vm0 = vmmov %vm18071_vm2  ;;  %v3635_v37 = vld [vmem:[#allocation2 + $0x1c] sm:$0xf]  ;;  %v1946_v32 = vpop.f32.mrf.mxu0 }
  0xe4   : > { %vm17672_vm5 = vsmask.f32 7424  ;;  %v3253_v16 = vshll.u32 %v14063_v44, 16  ;;  %v4691_v4 = vunpack.c.l.b16 %v4609_v39  ;;  %v4692_v45 = vunpack.c.l.b16 %v4610_v8 }
  0xe5   : > { %v3803_v15 = vor.u32 %v3802_v19, %v3799_v9  ;;  %v14073_v33 = vor.u32 %v3810_v34, %v3807_v57  ;;  %v4722_v29 = vpack.c.b16 %v4690_v6, %v4689_v58  ;;  %v287_v35 = vadd.s32 40, %v13329_v1  ;;  %v2259_v6 = vpop.f32.mrf.mxu1  ;;  %v3636_v58 = vld [vmem:[#allocation2 + $0x20] sm:$0xf] }
  0xe6   : > { %v1872_v30 = vsel %vm18072_vm8, %v13990_v53, %v1871_v40  ;;  %v14078_v10 = vpack.c.b16 %v3202_v3, %v3201_v21  ;;  %v14080_v46 = vpack.c.b16 %v4692_v45, %v4691_v4  ;;  %v2633_v5 = vrot.slane %v14002_v50, 4 }
  0xe7   : > { %v3812_v52 = vsel %vm18073_vm0, %v3803_v15, %v14073_v33  ;;  %v4740_v2 = vshrl.u32 %v4722_v29, 16  ;;  %v4742_v39 = vshll.u32 %v4722_v29, 16  ;;  %v353_v34 = vand.u32 15, %v287_v35  ;;  %2020 = vmatmul.bf16.gmra.mxu2 %v1872_v30 }
  0xe8   : > { %v3251_v27 = vshrl.u32 %v14063_v44, 16  ;;  %v3255_v8 = vrot.slane %v3253_v16, 1  ;;  %v4747_v53 = vshll.u32 %v14080_v46, 16  ;;  %v2641_v40 = vsel %vm13998_vm7, %v2633_v5, %v13983_v54  ;;  %4020 = vmatmul.bf16.vlgmr.msrb.gmra.mxu3 %v3812_v52  ;;  %v14102_v5 = vpop.f32.mrf.mxu3 }
  0xe9   : > { %v14090_v50 = vadd.f32 %v2259_v6, %v1946_v32  ;;  %v4744_v59 = vrot.slane %v4742_v39, 1  ;;  %vm735_vm12 = vcmp.eq.s32.totalorder %v353_v34, 15  ;;  %v2914_v15 = vunpack.c.l.b16 %v2641_v40  ;;  %v2439_v39 = vld [vmem:[#allocation2 + $0x18] sm:$0xf]  ;;  %v4578_v32 = vld [vmem:[#allocation2 + $0x20] sm:$0xf] }
  0xea   : > { %v3258_v21 = vshll.u32 %v14078_v10, 16  ;;  %v14093_v3 = vrot.slane %v4747_v53, 1  ;;  %vm2537_vm2 = vmpackc.low %vm735_vm12, %vm735_vm12  ;;  %v2915_v44 = vunpack.c.h.b16 %v2641_v40  ;;  %v3668_v9 = vsel %vm13566_vm1, 0, %v3635_v37 }
  0xeb   : > { %v4745_v19 = vor.u32 %v4744_v59, %v4740_v2  ;;  %v18074_v57 = vmov 0   ;;  %vm2918_vm8 = vcmp.ne.s32.totalorder %v2914_v15, %v13394_v38  ;;  %v3669_v4 = vsel %vm13587_vm9, 0, %v3636_v58  ;;  %v3637_v59 = vld [vmem:[#allocation2 + $0x24] sm:$0xf]  ;;  %v3638_v15 = vld [vmem:[#allocation2 + $0x28] sm:$0xf]  ;;  %v1986_v61 = vpop.f32.mrf.mxu2 }
  0xec   : > { %v2569_v16 = vsel %vm2537_vm2, 65537, %v18074_v57  ;;  %vm2919_vm0 = vcmp.ne.s32.totalorder %v2915_v44, %v13402_v42  ;;  %v3750_v35 = vunpack.c.l.b16 %v3668_v9  ;;  %v18075_v2 = vmov 0 }
  0xed   : > { %v2644_v45 = vshrl.u32 %v2569_v16, 16  ;;  %v2647_v29 = vshll.u32 %v2569_v16, 16  ;;  %v4750_v52 = vsel %vm17672_vm5, %v4745_v19, %v14093_v3  ;;  %vm14106_vm12 = vmpackc.low %vm2919_vm0, %vm2918_vm8  ;;  %v3751_v34 = vunpack.c.l.b16 %v3669_v4  ;;  %v14113_v44 = vpop.f32.mrf.mxu1 }
  0xee   : > { %v18076_v2 = vsel %vm14106_vm12, 4294967295, %v18075_v2  ;;  %v289_v37 = vadd.s32 56, %v13329_v1  ;;  %4943 = vmatmul.bf16.vlgmr.msrb.gmra.mxu1 %v4750_v52  ;;  %v3256_v6 = vor.u32 %v3255_v8, %v3251_v27  ;;  %v14111_v53 = vrot.slane %v3258_v21, 1  ;;  %v12531_v52 = vld [vmem:[#allocation2 + $0x10] sm:$0xff] }
  0xef   : > { %18077 = vst [vmem:[#allocation52_spill] sm:$0xff] %v18076_v2  ;;  %v2646_v30 = vrot.slane %v2644_v45, 7  ;;  %v3781_v40 = vpack.c.b16 %v3751_v34, %v3750_v35  ;;  %v3121_v19 = vsel %vm14106_vm12, 0, %v2439_v39  ;;  %v3670_v4 = vsel %vm13619_vm10, 0, %v3637_v59 }
  0xf0   : > { %v367_v58 = vand.u32 15, %v289_v37  ;;  %v3671_v27 = vsel %vm13646_vm14, 0, %v3638_v15  ;;  %v4611_v21 = vsel %vm14106_vm12, 0, %v4578_v32  ;;  %v3752_v35 = vunpack.c.l.b16 %v3670_v4  ;;  %v14131_v32 = vpop.f32.mrf.mxu3 }
  0xf1   : > { %v2649_v9 = vor.u32 %v2647_v29, %v2646_v30  ;;  %v2651_v16 = vrot.slane %v2646_v30, 4  ;;  %v3814_v45 = vshrl.u32 %v3781_v40, 16  ;;  %v3817_v23 = vshll.u32 %v3781_v40, 16  ;;  %v2440_v40 = vld [vmem:[#allocation2 + $0x1c] sm:$0xf] }
  0xf2   : > { %vm737_vm2 = vcmp.eq.s32.totalorder %v367_v58, 15  ;;  %v4579_v58 = vld [vmem:[#allocation2 + $0x24] sm:$0xf]  ;;  %v4751_v59 = vshrl.u32 %v14080_v46, 16  ;;  %v3753_v62 = vunpack.c.l.b16 %v3671_v27  ;;  %v4693_v46 = vunpack.c.l.b16 %v4611_v21 }
  0xf3   : > { %v2650_v8 = vsel %vm13998_vm7, %v13988_v55, %v2649_v9  ;;  %vm2539_vm8 = vmpackc.low %vm737_vm2, %vm737_vm2  ;;  %v2659_v29 = vsel %vm13998_vm7, %v2651_v16, %v13983_v54  ;;  %v3816_v37 = vrot.slane %v3814_v45, 3  ;;  %v3819_v30 = vrot.slane %v3817_v23, 4  ;;  %4397 = vmatmul.bf16.vlgmr.msrb.gmra.mxu0 %v12531_v52 }
  0xf4   : > { %v2921_v39 = vunpack.c.l.b16 %v2650_v8  ;;  %v2922_v34 = vunpack.c.h.b16 %v2650_v8  ;;  %v2571_v15 = vsel %vm2539_vm8, 65537, %v18074_v57  ;;  %v2928_v9 = vunpack.c.l.b16 %v2659_v29 }
  0xf5   : > { %v14135_v16 = vor.u32 %v3819_v30, %v3816_v37  ;;  %v2662_v4 = vshrl.u32 %v2571_v15, 16  ;;  %v18078_v23 = vmov 0  ;;  %v3203_v45 = vunpack.c.l.b16 %v3121_v19  ;;  %v14150_v30 = vpop.f32.mrf.mxu0  ;;  %v14152_v19 = vpop.f32.mrf.mxu1 }
  0xf6   : > { %vm2925_vm0 = vcmp.ne.s32.totalorder %v2921_v39, %v13394_v38  ;;  %vm2926_vm2 = vcmp.ne.s32.totalorder %v2922_v34, %v13402_v42  ;;  %v2665_v8 = vshll.u32 %v2571_v15, 16  ;;  %v2929_v28 = vunpack.c.h.b16 %v2659_v29 }
  0xf7   : > { %vm14137_vm5 = vmpackc.low %vm2926_vm2, %vm2925_vm0  ;;  %vm18081_vm8 = vsmask.f32 4352  ;;  %v2664_v34 = vrot.slane %v2662_v4, 7  ;;  %vm18082_vm0 = vsmask.f32 7424  ;;  %v3782_v15 = vpack.c.b16 %v3753_v62, %v3752_v35 }
  0xf8   : > { %v18079_v23 = vsel %vm14137_vm5, 4294967295, %v18078_v23  ;;  %v3122_v52 = vsel %vm14137_vm5, 0, %v2440_v40  ;;  %v3821_v27 = vsel %vm18081_vm8, %v14073_v33, %v14135_v16  ;;  %v4612_v39 = vsel %vm14137_vm5, 0, %v4579_v58 }
  0xf9   : > { %18080 = vst [vmem:[#allocation53_spill] sm:$0xff] %v18079_v23  ;;  %v3261_v37 = vsel %vm18082_vm0, %v3256_v6, %v14111_v53  ;;  %v3204_v21 = vunpack.c.l.b16 %v3122_v52  ;;  %v4694_v29 = vunpack.c.l.b16 %v4612_v39  ;;  %v4753_v40 = vor.u32 %v4751_v59, %v14093_v3  ;;  %4025 = vmatmul.bf16.gmra.mxu3 %v3821_v27  ;;  %v12569_v27 = vld [vmem:[#allocation8 + $0x1b0] sm:$0xff] }
  0xfa   : > { %v2667_v2 = vor.u32 %v2665_v8, %v2664_v34  ;;  %vm14156_vm2 = vcmp.ne.s32.totalorder %v2928_v9, %v13394_v38  ;;  %v291_v58 = vadd.s32 72, %v13329_v1  ;;  %v14162_v6 = vadd.f32 %v14102_v5, %v1986_v61  ;;  %3454 = vmatmul.bf16.vlgmr.msrb.gmra.mxu2 %v3261_v37  ;;  %v2441_v5 = vld [vmem:[#allocation2 + $0x20] sm:$0xf] }
  0xfb   : > { %v14164_v4 = vpack.c.b16 %v4694_v29, %v4693_v46  ;;  %vm14167_vm8 = vcmp.ne.s32.totalorder %v2929_v28, %v13402_v42  ;;  %v3823_v3 = vshrl.u32 %v3782_v15, 16  ;;  %v14171_v35 = vpack.c.b16 %v3204_v21, %v3203_v45  ;;  %v12593_v28 = vld [vmem:[#allocation8 + $0x1f0] sm:$0xff]  ;;  %v14177_v29 = vpop.f32.mrf.mxu3  ;;  %v4580_v21 = vld [vmem:[#allocation2 + $0x28] sm:$0xf]  ;;  %5502 = vmatpush.bf16.msra.mxu2 %v12569_v27  ;;  %v1988_v27 = vpop.f32.mrf.mxu2 }
  0xfc   : > { %18085 = vst [vmem:[#allocation54_spill] sm:$0xff] %v14162_v6  ;;  %v2668_v59 = vsel %vm13998_vm7, %v13988_v55, %v2667_v2  ;;  %v3826_v9 = vshll.u32 %v3782_v15, 16  ;;  %v381_v8 = vand.u32 15, %v291_v58  ;;  %v2669_v39 = vrot.slane %v2664_v34, 4  ;;  %vm14183_vm0 = vmpackc.low %vm14167_vm8, %vm14156_vm2  ;;  %v2442_v58 = vld [vmem:[#allocation2 + $0x24] sm:$0xf]  ;;  %5879 = vmatpush.bf16.msra.mxu3 %v12593_v28 }
  0xfd   : > { %v4755_v61 = vshll.u32 %v14164_v4, 16  ;;  %v2935_v46 = vunpack.c.l.b16 %v2668_v59  ;;  %v2936_v52 = vunpack.c.h.b16 %v2668_v59  ;;  %v18088_v45 = vmov 0  ;;  %v4581_v34 = vld [vmem:[#allocation2 + $0x2c] sm:$0xf]  ;;  %v12532_v28 = vld [vmem:[#allocation2 + $0x18] sm:$0xff] }
  0xfe   : > { %v18089_v45 = vsel %vm14183_vm0, 4294967295, %v18088_v45  ;;  %v3825_v2 = vrot.slane %v3823_v3, 3  ;;  %v3828_v37 = vrot.slane %v3826_v9, 4  ;;  %vm739_vm14 = vcmp.eq.s32.totalorder %v381_v8, 15  ;;  %v2266_v8 = vpop.f32.mrf.mxu1 }
  0xff   : > { %18090 = vst [vmem:[#allocation55_spill] sm:$0xff] %v18089_v45  ;;  %v4757_v15 = vrot.slane %v4755_v61, 1  ;;  %vm2939_vm10 = vcmp.ne.s32.totalorder %v2935_v46, %v13394_v38  ;;  %vm2940_vm9 = vcmp.ne.s32.totalorder %v2936_v52, %v13402_v42  ;;  %vm2541_vm1 = vmpackc.low %vm739_vm14, %vm739_vm14  ;;  %v3262_v33 = vshrl.u32 %v14078_v10, 16  ;;  %v12601_v52 = vld [vmem:[#allocation8 + $0x230] sm:$0xff]  ;;  %v1951_v45 = vpop.f32.mrf.mxu0 }
 0x100   : > { %v3266_v62 = vshll.u32 %v14171_v35, 16  ;;  %vm14191_vm2 = vmpackc.low %vm2940_vm9, %vm2939_vm10  ;;  %v18091_v59 = vmov 0  ;;  %v4613_v3 = vsel %vm14183_vm0, 0, %v4580_v21  ;;  %v2573_v9 = vsel %vm2541_vm1, 65537, %v18074_v57  ;;  %6425 = vmatpush.bf16.msra.mxu0 %v12601_v52 }
 0x101   : > { %v18092_v59 = vsel %vm14191_vm2, 4294967295, %v18091_v59  ;;  %vm18094_vm8 = vsmask.f32 7424  ;;  %v3123_v46 = vsel %vm14183_vm0, 0, %v2441_v5  ;;  %v2677_v10 = vsel %vm13998_vm7, %v2669_v39, %v13983_v54 }
 0x102   : > { %18093 = vst [vmem:[#allocation56_spill] sm:$0xff] %v18092_v59  ;;  %v4758_v61 = vsel %vm18094_vm8, %v4753_v40, %v4757_v15  ;;  %v3124_v6 = vsel %vm14191_vm2, 0, %v2442_v58  ;;  %v14206_v21 = vor.u32 %v3828_v37, %v3825_v2  ;;  %v4614_v23 = vsel %vm14191_vm2, 0, %v4581_v34 }
 0x103   : > { %4948 = vmatmul.bf16.gmra.mxu1 %v4758_v61  ;;  %v4695_v40 = vunpack.c.l.b16 %v4613_v3  ;;  %v14211_v5 = vadd.f32 %v14131_v32, %v1988_v27  ;;  %v4696_v47 = vunpack.c.l.b16 %v4614_v23  ;;  %v2680_v39 = vshrl.u32 %v2573_v9, 16  ;;  %4402 = vmatmul.bf16.gmra.mxu0 %v12532_v28  ;;  %v14223_v23 = vpop.f32.mrf.mxu3 }
 0x104   : > { %v2683_v60 = vshll.u32 %v2573_v9, 16  ;;  %v14214_v61 = vadd.f32 %v14152_v19, %v1951_v45  ;;  %v3264_v2 = vor.u32 %v3262_v33, %v14111_v53  ;;  %v14217_v37 = vrot.slane %v3266_v62, 1 }
 0x105   : > { %18095 = vst [vmem:[#allocation57_spill] sm:$0xff] %v14211_v5  ;;  %v2942_v58 = vunpack.c.l.b16 %v2677_v10  ;;  %v14219_v34 = vpack.c.b16 %v4696_v47, %v4695_v40  ;;  %v2682_v3 = vrot.slane %v2680_v39, 7  ;;  %v2943_v59 = vunpack.c.h.b16 %v2677_v10  ;;  %v3642_v5 = vld [vmem:[#allocation2 + $0x38] sm:$0xf] }
 0x106   : > { %vm18096_vm9 = vnez %v17982_v49  ;;  %v3205_v9 = vunpack.c.l.b16 %v3123_v46  ;;  %v3206_v52 = vunpack.c.l.b16 %v3124_v6  ;;  %v4759_v19 = vshrl.u32 %v14164_v4, 16  ;;  %v2269_v46 = vpop.f32.mrf.mxu1 }
 0x107   : > { %v3672_v32 = vsel %vm18096_vm9, 0, %v3639_v43  ;;  %vm18097_vm1 = vnez %v17989_v26  ;;  %vm18098_vm10 = vsmask.f32 4352  ;;  %v4763_v45 = vshll.u32 %v14219_v34, 16  ;;  %v1953_v39 = vpop.f32.mrf.mxu0 }
 0x108   : > { %v3673_v53 = vsel %vm18097_vm1, 0, %v3640_v18  ;;  %v3830_v47 = vsel %vm18098_vm10, %v14135_v16, %v14206_v21  ;;  %v2685_v33 = vor.u32 %v2683_v60, %v2682_v3  ;;  %v3754_v62 = vunpack.c.l.b16 %v3672_v32  ;;  %v2443_v32 = vld [vmem:[#allocation2 + $0x28] sm:$0xf] }
 0x109   : > { %vm14233_vm14 = vcmp.ne.s32.totalorder %v2942_v58, %v13394_v38  ;;  %vm14238_vm8 = vcmp.ne.s32.totalorder %v2943_v59, %v13402_v42  ;;  %v3755_v4 = vunpack.c.l.b16 %v3673_v53  ;;  %v293_v18 = vadd.s32 88, %v13329_v1  ;;  %v1991_v59 = vpop.f32.mrf.mxu2  ;;  %4030 = vmatmul.bf16.gmra.mxu3 %v3830_v47 }
 0x10a   : > { %vm18103_vm1 = vsmask.f32 7424  ;;  %v2686_v60 = vsel %vm13998_vm7, %v13988_v55, %v2685_v33  ;;  %v4761_v10 = vor.u32 %v4759_v19, %v4757_v15  ;;  %v14248_v27 = vrot.slane %v4763_v45, 1  ;;  %v2444_v33 = vld [vmem:[#allocation2 + $0x2c] sm:$0xf] }
 0x10b   : > { %v3269_v16 = vsel %vm18103_vm1, %v3264_v2, %v14217_v37  ;;  %v2949_v28 = vunpack.c.l.b16 %v2686_v60  ;;  %v2950_v40 = vunpack.c.h.b16 %v2686_v60  ;;  %v14250_v58 = vpack.c.b16 %v3206_v52, %v3205_v9  ;;  %vm14256_vm1 = vmpackc.low %vm14238_vm8, %vm14233_vm14  ;;  %v14276_v43 = vpop.f32.mrf.mxu3 }
 0x10c   : > { %v18104_v2 = vmov 0  ;;  %v3783_v53 = vpack.c.b16 %v3755_v4, %v3754_v62  ;;  %v395_v15 = vand.u32 15, %v293_v18  ;;  %v14261_v19 = vadd.f32 %v14177_v29, %v1991_v59  ;;  %3459 = vmatmul.bf16.gmra.mxu2 %v3269_v16  ;;  %v4582_v18 = vld [vmem:[#allocation2 + $0x30] sm:$0xf]  ;;  %v4583_v16 = vld [vmem:[#allocation2 + $0x34] sm:$0xf] }
 0x10d   : > { %v18105_v2 = vsel %vm14256_vm1, 4294967295, %v18104_v2  ;;  %v14263_v45 = vadd.f32 %v2266_v8, %v1953_v39  ;;  %vm2953_vm10 = vcmp.ne.s32.totalorder %v2949_v28, %v13394_v38  ;;  %vm2954_vm9 = vcmp.ne.s32.totalorder %v2950_v40, %v13402_v42  ;;  %v12533_v62 = vld [vmem:[#allocation2 + $0x20] sm:$0xff] }
 0x10e   : > { %18106 = vst [vmem:[#allocation58_spill] sm:$0xff] %v18105_v2  ;;  %vm14267_vm2 = vmpackc.low %vm2954_vm9, %vm2953_vm10  ;;  %v18109_v9 = vmov 0  ;;  %v3832_v52 = vshrl.u32 %v3783_v53, 16  ;;  %v3835_v47 = vshll.u32 %v3783_v53, 16  ;;  %vm14271_vm14 = vcmp.eq.s32.totalorder %v395_v15, 15  ;;  %v2271_v53 = vpop.f32.mrf.mxu1 }
 0x10f   : > { %18107 = vst [vmem:[#allocation59_spill] sm:$0xff] %v14261_v19  ;;  %v18110_v9 = vsel %vm14267_vm2, 4294967295, %v18109_v9  ;;  %v2687_v29 = vrot.slane %v2682_v3, 4  ;;  %v3270_v8 = vshrl.u32 %v14171_v35, 16  ;;  %vm18114_vm8 = vsmask.f32 7424  ;;  %vm2543_vm9 = vmpackc.low %vm14271_vm14, %vm14271_vm14  ;;  %v1956_v49 = vpop.f32.mrf.mxu0 }
 0x110   : > { %18108 = vst [vmem:[#allocation60_spill] sm:$0xff] %v14263_v45  ;;  %v4766_v6 = vsel %vm18114_vm8, %v4761_v10, %v14248_v27  ;;  %v3125_v4 = vsel %vm14256_vm1, 0, %v2443_v32  ;;  %v3126_v60 = vsel %vm14267_vm2, 0, %v2444_v33  ;;  %v3834_v3 = vrot.slane %v3832_v52, 3  ;;  %v3641_v52 = vld [vmem:[#allocation2 + $0x34] sm:$0xf] }
 0x111   : > { %18111 = vst [vmem:[#allocation61_spill] sm:$0xff] %v18110_v9  ;;  %v3837_v28 = vrot.slane %v3835_v47, 4  ;;  %v4615_v35 = vsel %vm14256_vm1, 0, %v4582_v18  ;;  %v4616_v10 = vsel %vm14267_vm2, 0, %v4583_v16  ;;  %v2575_v59 = vsel %vm2543_vm9, 65537, %v18074_v57 }
 0x112   : > { %v4697_v40 = vunpack.c.l.b16 %v4615_v35  ;;  %v2695_v39 = vsel %vm13998_vm7, %v2687_v29, %v13983_v54  ;;  %v3274_v32 = vshll.u32 %v14250_v58, 16  ;;  %v4698_v15 = vunpack.c.l.b16 %v4616_v10  ;;  %v1993_v35 = vpop.f32.mrf.mxu2 }
 0x113   : > { %v2698_v33 = vshrl.u32 %v2575_v59, 16  ;;  %v3272_v47 = vor.u32 %v3270_v8, %v14217_v37  ;;  %4953 = vmatmul.bf16.gmra.mxu1 %v4766_v6  ;;  %v2701_v18 = vshll.u32 %v2575_v59, 16  ;;  %v2956_v26 = vunpack.c.l.b16 %v2695_v39  ;;  %4407 = vmatmul.bf16.gmra.mxu0 %v12533_v62 }
 0x114   : > { %v2957_v16 = vunpack.c.h.b16 %v2695_v39  ;;  %v3207_v19 = vunpack.c.l.b16 %v3125_v4  ;;  %v3208_v9 = vunpack.c.l.b16 %v3126_v60  ;;  %v14297_v2 = vpack.c.b16 %v4698_v15, %v4697_v40 }
 0x115   : > { %v14299_v29 = vrot.slane %v2698_v33, 7  ;;  %v14302_v10 = vadd.f32 %v14223_v23, %v1993_v35  ;;  %v14304_v45 = vadd.f32 %v2269_v46, %v1956_v49  ;;  %v14306_v37 = vor.u32 %v3837_v28, %v3834_v3  ;;  %v14319_v23 = vpop.f32.mrf.mxu3  ;;  %v2445_v33 = vld [vmem:[#allocation2 + $0x30] sm:$0xf] }
 0x116   : > { %vm18116_vm10 = vnez %v18002_v31  ;;  %v14310_v6 = vrot.slane %v3274_v32, 1  ;;  %v4767_v4 = vshrl.u32 %v14219_v34, 16  ;;  %vm14315_vm14 = vcmp.ne.s32.totalorder %v2956_v26, %v13394_v38  ;;  %v2274_v15 = vpop.f32.mrf.mxu1  ;;  %v3643_v31 = vld [vmem:[#allocation2 + $0x3c] sm:$0xf] }
 0x117   : > { %18115 = vst [vmem:[#allocation62_spill] sm:$0xff] %v14302_v10  ;;  %v3674_v8 = vsel %vm18116_vm10, 0, %v3641_v52  ;;  %v2703_v60 = vor.u32 %v2701_v18, %v14299_v29  ;;  %v4771_v49 = vshll.u32 %v14297_v2, 16  ;;  %vm2961_vm8 = vcmp.ne.s32.totalorder %v2957_v16, %v13402_v42  ;;  %v3644_v10 = vld [vmem:[#allocation2 + $0x40] sm:$0xf] }
 0x118   : > { %vm18119_vm9 = vnez %v18007_v12  ;;  %v295_v3 = vadd.s32 104, %v13329_v1  ;;  %v3756_v26 = vunpack.c.l.b16 %v3674_v8  ;;  %v14329_v28 = vpack.c.b16 %v3208_v9, %v3207_v19 }
 0x119   : > { %v3675_v46 = vsel %vm18119_vm9, 0, %v3642_v5  ;;  %v2704_v34 = vsel %vm13998_vm7, %v13988_v55, %v2703_v60  ;;  %vm18120_vm10 = vsmask.f32 4352  ;;  %vm14336_vm9 = vmpackc.low %vm2961_vm8, %vm14315_vm14  ;;  %v18121_v5 = vmov 0 }
 0x11a   : > { %v3839_v59 = vsel %vm18120_vm10, %v14206_v21, %v14306_v37  ;;  %v2963_v39 = vunpack.c.l.b16 %v2704_v34  ;;  %v2964_v32 = vunpack.c.h.b16 %v2704_v34  ;;  %v18122_v5 = vsel %vm14336_vm9, 4294967295, %v18121_v5  ;;  %v1958_v21 = vpop.f32.mrf.mxu0  ;;  %v12592_v34 = vld [vmem:[#allocation8 + $0x1e8] sm:$0xff]  ;;  %v1996_v16 = vpop.f32.mrf.mxu2 }
 0x11b   : > { %18123 = vst [vmem:[#allocation63_spill] sm:$0xff] %v18122_v5  ;;  %v3757_v52 = vunpack.c.l.b16 %v3675_v46  ;;  %v409_v62 = vand.u32 15, %v295_v3  ;;  %vm18124_vm2 = vsmask.f32 7424  ;;  %v4769_v9 = vor.u32 %v4767_v4, %v14248_v27  ;;  %4035 = vmatmul.bf16.gmra.mxu3 %v3839_v59  ;;  %v2446_v4 = vld [vmem:[#allocation2 + $0x34] sm:$0xf] }
 0x11c   : > { %v3277_v19 = vsel %vm18124_vm2, %v3272_v47, %v14310_v6  ;;  %v14343_v18 = vrot.slane %v4771_v49, 1  ;;  %vm14346_vm10 = vcmp.ne.s32.totalorder %v2963_v39, %v13394_v38  ;;  %vm14351_vm14 = vcmp.ne.s32.totalorder %v2964_v32, %v13402_v42  ;;  %v12568_v3 = vld [vmem:[#allocation8 + $0x1a8] sm:$0xff]  ;;  %v4584_v39 = vld [vmem:[#allocation2 + $0x38] sm:$0xf]  ;;  %v4585_v32 = vld [vmem:[#allocation2 + $0x3c] sm:$0xf]  ;;  %5880 = vmatpush.bf16.msra.mxu3 %v12592_v34 }
 0x11d   : > { %v3784_v8 = vpack.c.b16 %v3757_v52, %v3756_v26  ;;  %vm743_vm8 = vcmp.eq.s32.totalorder %v409_v62, 15  ;;  %v14355_v60 = vadd.f32 %v2271_v53, %v1958_v21  ;;  %v3278_v27 = vshrl.u32 %v14250_v58, 16  ;;  %3464 = vmatmul.bf16.gmra.mxu2 %v3277_v19  ;;  %v14363_v53 = vpop.f32.mrf.mxu3  ;;  %vm14369_vm1 = vmpackc.low %vm14351_vm14, %vm14346_vm10  ;;  %v12534_v5 = vld [vmem:[#allocation2 + $0x28] sm:$0xff] }
 0x11e   : > { %v3282_v47 = vshll.u32 %v14329_v28, 16  ;;  %v3127_v40 = vsel %vm14336_vm9, 0, %v2445_v33  ;;  %vm2545_vm2 = vmpackc.low %vm743_vm8, %vm743_vm8  ;;  %v2705_v26 = vrot.slane %v14299_v29, 4  ;;  %v18129_v58 = vmov 0  ;;  %5503 = vmatpush.bf16.msra.mxu2 %v12568_v3 }
 0x11f   : > { %v3841_v49 = vshrl.u32 %v3784_v8, 16  ;;  %v3844_v46 = vshll.u32 %v3784_v8, 16  ;;  %v2577_v59 = vsel %vm2545_vm2, 65537, %v18074_v57  ;;  %v18130_v58 = vsel %vm14369_vm1, 4294967295, %v18129_v58 }
 0x120   : > { %18131 = vst [vmem:[#allocation64_spill] sm:$0xff] %v18130_v58  ;;  %v2716_v33 = vshrl.u32 %v2577_v59, 16  ;;  %v2719_v52 = vshll.u32 %v2577_v59, 16  ;;  %vm18132_vm8 = vsmask.f32 7424  ;;  %v4617_v29 = vsel %vm14336_vm9, 0, %v4584_v39 }
 0x121   : > { %v4774_v62 = vsel %vm18132_vm8, %v4769_v9, %v14343_v18  ;;  %v3843_v19 = vrot.slane %v3841_v49, 3  ;;  %v3846_v21 = vrot.slane %v3844_v46, 4  ;;  %v4618_v35 = vsel %vm14369_vm1, 0, %v4585_v32  ;;  %v2276_v9 = vpop.f32.mrf.mxu1  ;;  %v12600_v46 = vld [vmem:[#allocation8 + $0x228] sm:$0xff]  ;;  %vm18136_vm2 = vmmov %vm18132_vm8  ;;  %v2448_v58 = vld [vmem:[#allocation2 + $0x3c] sm:$0xf] }
 0x122   : > { %v4699_v8 = vunpack.c.l.b16 %v4617_v29  ;;  %v14379_v12 = vrot.slane %v2716_v33, 7  ;;  %v14382_v59 = vadd.f32 %v14276_v43, %v1996_v16  ;;  %v3128_v49 = vsel %vm14369_vm1, 0, %v2446_v4  ;;  %v1961_v43 = vpop.f32.mrf.mxu0  ;;  %6426 = vmatpush.bf16.msra.mxu0 %v12600_v46 }
 0x123   : > { %v4700_v3 = vunpack.c.l.b16 %v4618_v35  ;;  %v3280_v34 = vor.u32 %v3278_v27, %v14310_v6  ;;  %v14387_v39 = vrot.slane %v3282_v47, 1  ;;  %4958 = vmatmul.bf16.gmra.mxu1 %v4774_v62  ;;  %v2713_v32 = vsel %vm13998_vm7, %v2705_v26, %v13983_v54  ;;  %4412 = vmatmul.bf16.gmra.mxu0 %v12534_v5 }
 0x124   : > { %18133 = vst [vmem:[#allocation65_spill] sm:$0xff] %v14382_v59  ;;  %v2721_v33 = vor.u32 %v2719_v52, %v14379_v12  ;;  %v3209_v29 = vunpack.c.l.b16 %v3127_v40  ;;  %vm18134_vm10 = vnez %v18017_v51  ;;  %vm18135_vm14 = vnez %v18021_v13  ;;  %v2447_v51 = vld [vmem:[#allocation2 + $0x38] sm:$0xf]  ;;  %v12535_v59 = vld [vmem:[#allocation2 + $0x30] sm:$0xff] }
 0x125   : > { %v14393_v16 = vpack.c.b16 %v4700_v3, %v4699_v8  ;;  %v3676_v4 = vsel %vm18134_vm10, 0, %v3643_v31  ;;  %v3677_v6 = vsel %vm18135_vm14, 0, %v3644_v10  ;;  %v14399_v27 = vadd.f32 %v2274_v15, %v1961_v43  ;;  %v14408_v31 = vpop.f32.mrf.mxu3 }
 0x126   : > { %v3210_v47 = vunpack.c.l.b16 %v3128_v49  ;;  %v14401_v62 = vor.u32 %v3846_v21, %v3843_v19  ;;  %v2722_v26 = vsel %vm13998_vm7, %v13988_v55, %v2721_v33  ;;  %v4775_v40 = vshrl.u32 %v14297_v2, 16  ;;  %v1998_v49 = vpop.f32.mrf.mxu2 }
 0x127   : > { %v4779_v52 = vshll.u32 %v14393_v16, 16  ;;  %v2970_v35 = vunpack.c.l.b16 %v2713_v32  ;;  %v2971_v8 = vunpack.c.h.b16 %v2713_v32  ;;  %v2977_v46 = vunpack.c.l.b16 %v2722_v26 }
 0x128   : > { %v2978_v10 = vunpack.c.h.b16 %v2722_v26  ;;  %v3758_v15 = vunpack.c.l.b16 %v3676_v4  ;;  %v3759_v3 = vunpack.c.l.b16 %v3677_v6  ;;  %v3285_v19 = vsel %vm18136_vm2, %v3280_v34, %v14387_v39 }
 0x129   : > { %vm18137_vm8 = vsmask.f32 4352  ;;  %v297_v33 = vadd.s32 120, %v13329_v1  ;;  %v14417_v32 = vadd.f32 %v14319_v23, %v1998_v49  ;;  %v2279_v5 = vpop.f32.mrf.mxu1  ;;  %v14419_v43 = vpack.c.b16 %v3210_v47, %v3209_v29 }
 0x12a   : > { %v3848_v21 = vsel %vm18137_vm8, %v14306_v37, %v14401_v62  ;;  %v3785_v2 = vpack.c.b16 %v3759_v3, %v3758_v15  ;;  %vm2974_vm14 = vcmp.ne.s32.totalorder %v2970_v35, %v13394_v38  ;;  %vm2975_vm10 = vcmp.ne.s32.totalorder %v2971_v8, %v13402_v42  ;;  %v1963_v37 = vpop.f32.mrf.mxu0  ;;  %v4586_v8 = vld [vmem:[#allocation2 + $0x40] sm:$0xf] }
 0x12b   : > { %18138 = vst [vmem:[#allocation66_spill] sm:$0xff] %v14417_v32  ;;  %v4777_v4 = vor.u32 %v4775_v40, %v14343_v18  ;;  %v14424_v34 = vrot.slane %v4779_v52, 1  ;;  %vm2981_vm2 = vcmp.ne.s32.totalorder %v2977_v46, %v13394_v38  ;;  %vm2982_vm8 = vcmp.ne.s32.totalorder %v2978_v10, %v13402_v42  ;;  %4040 = vmatmul.bf16.gmra.mxu3 %v3848_v21  ;;  %vm14430_vm1 = vmpackc.low %vm2975_vm10, %vm2974_vm14  ;;  %v4587_v46 = vld [vmem:[#allocation2 + $0x44] sm:$0xf] }
 0x12c   : > { %v423_v6 = vand.u32 15, %v297_v33  ;;  %v14428_v23 = vadd.f32 %v2276_v9, %v1963_v37  ;;  %v18139_v29 = vmov 0  ;;  %v3850_v47 = vshrl.u32 %v3785_v2, 16  ;;  %vm14434_vm9 = vmpackc.low %vm2982_vm8, %vm2981_vm2  ;;  %v3645_v37 = vld [vmem:[#allocation2 + $0x44] sm:$0xf] }
 0x12d   : > { %v18140_v29 = vsel %vm14430_vm1, 4294967295, %v18139_v29  ;;  %v3853_v26 = vshll.u32 %v3785_v2, 16  ;;  %3469 = vmatmul.bf16.gmra.mxu2 %v3285_v19  ;;  %v18142_v18 = vmov 0  ;;  %v3286_v40 = vshrl.u32 %v14329_v28, 16  ;;  %v14440_v35 = vpop.f32.mrf.mxu3 }
 0x12e   : > { %18141 = vst [vmem:[#allocation67_spill] sm:$0xff] %v18140_v29  ;;  %v18143_v18 = vsel %vm14434_vm9, 4294967295, %v18142_v18  ;;  %vm745_vm0 = vcmp.eq.s32.totalorder %v423_v6, 15  ;;  %v3290_v52 = vshll.u32 %v14419_v43, 16  ;;  %vm18145_vm5 = vsmask.f32 7424  ;;  %v2001_v49 = vpop.f32.mrf.mxu2 }
 0x12f   : > { %18144 = vst [vmem:[#allocation68_spill] sm:$0xff] %v18143_v18  ;;  %v4782_v9 = vsel %vm18145_vm5, %v4777_v4, %v14424_v34  ;;  %vm2547_vm10 = vmpackc.low %vm745_vm0, %vm745_vm0  ;;  %v4619_v10 = vsel %vm14430_vm1, 0, %v4586_v8  ;;  %v4620_v15 = vsel %vm14434_vm9, 0, %v4587_v46  ;;  %v2723_v28 = vrot.slane %v14379_v12, 4  ;;  %v3646_v4 = vld [vmem:[#allocation2 + $0x48] sm:$0xf] }
 0x130   : > { %v2579_v3 = vsel %vm2547_vm10, 65537, %v18074_v57  ;;  %v3852_v19 = vrot.slane %v3850_v47, 3  ;;  %v3855_v21 = vrot.slane %v3853_v26, 4  ;;  %v4701_v2 = vunpack.c.l.b16 %v4619_v10  ;;  %v3648_v18 = vld [vmem:[#allocation2 + $0x50] sm:$0xf]  ;;  %v12536_v29 = vld [vmem:[#allocation2 + $0x38] sm:$0xff] }
 0x131   : > { %v4702_v33 = vunpack.c.l.b16 %v4620_v15  ;;  %v14451_v6 = vadd.f32 %v14363_v53, %v2001_v49  ;;  %v2281_v13 = vpop.f32.mrf.mxu1  ;;  %v2734_v8 = vshrl.u32 %v2579_v3, 16  ;;  %v2737_v32 = vshll.u32 %v2579_v3, 16 }
 0x132   : > { %v3288_v46 = vor.u32 %v3286_v40, %v14387_v39  ;;  %v3678_v47 = vsel %vm13909_vm11, 0, %v3645_v37  ;;  %v1966_v26 = vpop.f32.mrf.mxu0  ;;  %v2731_v53 = vsel %vm13998_vm7, %v2723_v28, %v13983_v54  ;;  %v3679_v15 = vsel %vm13930_vm13, 0, %v3646_v4 }
 0x133   : > { %18146 = vst [vmem:[#allocation69_spill] sm:$0xff] %v14451_v6  ;;  %4963 = vmatmul.bf16.gmra.mxu1 %v4782_v9  ;;  %v14454_v12 = vpack.c.b16 %v4702_v33, %v4701_v2  ;;  %v14461_v10 = vrot.slane %v2734_v8, 7  ;;  %v3760_v3 = vunpack.c.l.b16 %v3678_v47  ;;  %v14465_v39 = vadd.f32 %v2279_v5, %v1966_v26  ;;  %4417 = vmatmul.bf16.gmra.mxu0 %v12535_v59 }
 0x134   : > { %v14467_v40 = vrot.slane %v3290_v52, 1  ;;  %v3129_v9 = vsel %vm14430_vm1, 0, %v2447_v51  ;;  %v14471_v49 = vor.u32 %v3855_v21, %v3852_v19  ;;  %v3130_v2 = vsel %vm14434_vm9, 0, %v2448_v58 }
 0x135   : > { %v2739_v28 = vor.u32 %v2737_v32, %v14461_v10  ;;  %v3761_v33 = vunpack.c.l.b16 %v3679_v15  ;;  %v299_v37 = vadd.s32 136, %v13329_v1  ;;  %v14477_v4 = vpop.f32.mrf.mxu3  ;;  %v4783_v5 = vshrl.u32 %v14393_v16, 16 }
 0x136   : > { %v4787_v52 = vshll.u32 %v14454_v12, 16  ;;  %v2984_v8 = vunpack.c.l.b16 %v2731_v53  ;;  %v2985_v47 = vunpack.c.h.b16 %v2731_v53  ;;  %v2003_v21 = vpop.f32.mrf.mxu2  ;;  %v3293_v32 = vsel %vm18145_vm5, %v3288_v46, %v14467_v40  ;;  %v2450_v46 = vld [vmem:[#allocation2 + $0x44] sm:$0xf] }
 0x137   : > { %v2740_v51 = vsel %vm13998_vm7, %v13988_v55, %v2739_v28  ;;  %v3786_v19 = vpack.c.b16 %v3761_v33, %v3760_v3  ;;  %v437_v58 = vand.u32 15, %v299_v37  ;;  %vm18147_vm0 = vsmask.f32 4352 }
 0x138   : > { %v3857_v59 = vsel %vm18147_vm0, %v14401_v62, %v14471_v49  ;;  %v2991_v26 = vunpack.c.l.b16 %v2740_v51  ;;  %v2992_v16 = vunpack.c.h.b16 %v2740_v51  ;;  %v14490_v15 = vadd.f32 %v14408_v31, %v2003_v21  ;;  %v2449_v51 = vld [vmem:[#allocation2 + $0x40] sm:$0xf] }
 0x139   : > { %v2284_v53 = vpop.f32.mrf.mxu1  ;;  %v3211_v14 = vunpack.c.l.b16 %v3129_v9  ;;  %v3212_v11 = vunpack.c.l.b16 %v3130_v2  ;;  %vm747_vm14 = vcmp.eq.s32.totalorder %v437_v58, 15  ;;  %v4785_v3 = vor.u32 %v4783_v5, %v14424_v34  ;;  %v12567_v21 = vld [vmem:[#allocation8 + $0x1a0] sm:$0xff] }
 0x13a   : > { %18148 = vst [vmem:[#allocation70_spill] sm:$0xff] %v14490_v15  ;;  %v14493_v28 = vrot.slane %v4787_v52, 1  ;;  %vm14496_vm2 = vcmp.ne.s32.totalorder %v2984_v8, %v13394_v38  ;;  %vm14501_vm8 = vcmp.ne.s32.totalorder %v2985_v47, %v13402_v42  ;;  %vm2549_vm10 = vmpackc.low %vm747_vm14, %vm747_vm14  ;;  %v1968_v31 = vpop.f32.mrf.mxu0  ;;  %vm14506_vm5 = vcmp.ne.s32.totalorder %v2991_v26, %v13394_v38  ;;  %5504 = vmatpush.bf16.msra.mxu2 %v12567_v21 }
 0x13b   : > { %4045 = vmatmul.bf16.gmra.mxu3 %v3857_v59  ;;  %vm14511_vm0 = vcmp.ne.s32.totalorder %v2992_v16, %v13402_v42  ;;  %v3859_v2 = vshrl.u32 %v3786_v19, 16  ;;  %v2581_v33 = vsel %vm2549_vm10, 65537, %v18074_v57  ;;  %v14516_v37 = vadd.f32 %v2281_v13, %v1968_v31  ;;  %vm14525_vm14 = vmpackc.low %vm14501_vm8, %vm14496_vm2  ;;  %v12591_v59 = vld [vmem:[#allocation8 + $0x1e0] sm:$0xff] }
 0x13c   : > { %v3862_v5 = vshll.u32 %v3786_v19, 16  ;;  %v2752_v52 = vshrl.u32 %v2581_v33, 16  ;;  %v14518_v8 = vpack.c.b16 %v3212_v11, %v3211_v14  ;;  %v3294_v47 = vshrl.u32 %v14419_v43, 16  ;;  %vm14535_vm10 = vmpackc.low %vm14511_vm0, %vm14506_vm5  ;;  %v4588_v14 = vld [vmem:[#allocation2 + $0x48] sm:$0xf]  ;;  %5881 = vmatpush.bf16.msra.mxu3 %v12591_v59  ;;  %v12599_v59 = vld [vmem:[#allocation8 + $0x220] sm:$0xff] }
 0x13d   : > { %3474 = vmatmul.bf16.gmra.mxu2 %v3293_v32  ;;  %v18157_v58 = vmov 0  ;;  %v2755_v13 = vshll.u32 %v2581_v33, 16  ;;  %v14529_v26 = vpop.f32.mrf.mxu3  ;;  %v18160_v11 = vmov 0  ;;  %v4589_v43 = vld [vmem:[#allocation2 + $0x4c] sm:$0xf]  ;;  %v2741_v19 = vrot.slane %v14461_v10, 4  ;;  %6427 = vmatpush.bf16.msra.mxu0 %v12599_v59 }
 0x13e   : > { %v18158_v58 = vsel %vm14525_vm14, 4294967295, %v18157_v58  ;;  %v18161_v11 = vsel %vm14535_vm10, 4294967295, %v18160_v11  ;;  %v14540_v32 = vrot.slane %v2752_v52, 7  ;;  %vm18163_vm2 = vsmask.f32 7424  ;;  %v2006_v34 = vpop.f32.mrf.mxu2 }
 0x13f   : > { %18159 = vst [vmem:[#allocation71_spill] sm:$0xff] %v18158_v58  ;;  %v4790_v16 = vsel %vm18163_vm2, %v4785_v3, %v14493_v28  ;;  %v3861_v62 = vrot.slane %v3859_v2, 3  ;;  %v4621_v31 = vsel %vm14525_vm14, 0, %v4588_v14  ;;  %v4622_v9 = vsel %vm14535_vm10, 0, %v4589_v43  ;;  %v3647_v52 = vld [vmem:[#allocation2 + $0x4c] sm:$0xf] }
 0x140   : > { %18162 = vst [vmem:[#allocation72_spill] sm:$0xff] %v18161_v11  ;;  %v3864_v33 = vrot.slane %v3862_v5, 4  ;;  %v4703_v15 = vunpack.c.l.b16 %v4621_v31  ;;  %v4704_v6 = vunpack.c.l.b16 %v4622_v9  ;;  %v2757_v10 = vor.u32 %v2755_v13, %v14540_v32 }
 0x141   : > { %v14550_v3 = vadd.f32 %v14440_v35, %v2006_v34  ;;  %v3298_v2 = vshll.u32 %v14518_v8, 16  ;;  %v2286_v21 = vpop.f32.mrf.mxu1  ;;  %vm18165_vm8 = vnez %v17941_v7  ;;  %v3131_v5 = vsel %vm14525_vm14, 0, %v2449_v51 }
 0x142   : > { %v3680_v14 = vsel %vm18165_vm8, 0, %v3647_v52  ;;  %v3132_v13 = vsel %vm14535_vm10, 0, %v2450_v46  ;;  %v14559_v43 = vpack.c.b16 %v4704_v6, %v4703_v15  ;;  %v2749_v35 = vsel %vm13998_vm7, %v2741_v19, %v13983_v54  ;;  %v1971_v31 = vpop.f32.mrf.mxu0 }
 0x143   : > { %18164 = vst [vmem:[#allocation73_spill] sm:$0xff] %v14550_v3  ;;  %4968 = vmatmul.bf16.gmra.mxu1 %v4790_v16  ;;  %v3296_v9 = vor.u32 %v3294_v47, %v14467_v40  ;;  %vm18166_vm5 = vnez %v17946_v20  ;;  %v14567_v16 = vadd.f32 %v2284_v53, %v1971_v31  ;;  %v14569_v52 = vor.u32 %v3864_v33, %v3861_v62  ;;  %v3650_v20 = vld [vmem:[#allocation2 + $0x58] sm:$0xf]  ;;  %v12537_v3 = vld [vmem:[#allocation2 + $0x40] sm:$0xff] }
 0x144   : > { %v3681_v34 = vsel %vm18166_vm5, 0, %v3648_v18  ;;  %v2758_v6 = vsel %vm13998_vm7, %v13988_v55, %v2757_v10  ;;  %v3762_v15 = vunpack.c.l.b16 %v3680_v14  ;;  %v14574_v51 = vrot.slane %v3298_v2, 1  ;;  %4422 = vmatmul.bf16.gmra.mxu0 %v12536_v29 }
 0x145   : > { %v3213_v46 = vunpack.c.l.b16 %v3131_v5  ;;  %v3214_v19 = vunpack.c.l.b16 %v3132_v13  ;;  %v2998_v7 = vunpack.c.l.b16 %v2749_v35  ;;  %v14576_v40 = vpop.f32.mrf.mxu3  ;;  %v4791_v47 = vshrl.u32 %v14454_v12, 16 }
 0x146   : > { %v4795_v18 = vshll.u32 %v14559_v43, 16  ;;  %v2999_v53 = vunpack.c.h.b16 %v2749_v35  ;;  %v3763_v62 = vunpack.c.l.b16 %v3681_v34  ;;  %v3005_v33 = vunpack.c.l.b16 %v2758_v6  ;;  %v2008_v10 = vpop.f32.mrf.mxu2 }
 0x147   : > { %v3006_v59 = vunpack.c.h.b16 %v2758_v6  ;;  %v301_v31 = vadd.s32 152, %v13329_v1  ;;  %vm18167_vm0 = vsmask.f32 4352  ;;  %v14585_v29 = vadd.f32 %v14477_v4, %v2008_v10 }
 0x148   : > { %v3866_v2 = vsel %vm18167_vm0, %v14471_v49, %v14569_v52  ;;  %v3787_v14 = vpack.c.b16 %v3763_v62, %v3762_v15  ;;  %v3301_v12 = vsel %vm18163_vm2, %v3296_v9, %v14574_v51  ;;  %v14589_v13 = vpack.c.b16 %v3214_v19, %v3213_v46  ;;  %v4591_v62 = vld [vmem:[#allocation2 + $0x54] sm:$0xf] }
 0x149   : > { %18168 = vst [vmem:[#allocation74_spill] sm:$0xff] %v14585_v29  ;;  %v2289_v5 = vpop.f32.mrf.mxu1  ;;  %v451_v35 = vand.u32 15, %v301_v31  ;;  %v4793_v34 = vor.u32 %v4791_v47, %v14493_v28  ;;  %v14592_v6 = vrot.slane %v4795_v18, 1  ;;  %vm3002_vm5 = vcmp.ne.s32.totalorder %v2998_v7, %v13394_v38 }
 0x14a   : > { %vm3003_vm8 = vcmp.ne.s32.totalorder %v2999_v53, %v13402_v42  ;;  %v1973_v49 = vpop.f32.mrf.mxu0  ;;  %vm3009_vm0 = vcmp.ne.s32.totalorder %v3005_v33, %v13394_v38  ;;  %vm3010_vm13 = vcmp.ne.s32.totalorder %v3006_v59, %v13402_v42  ;;  %v3868_v9 = vshrl.u32 %v3787_v14, 16  ;;  %v4590_v53 = vld [vmem:[#allocation2 + $0x50] sm:$0xf] }
 0x14b   : > { %4050 = vmatmul.bf16.gmra.mxu3 %v3866_v2  ;;  %vm749_vm11 = vcmp.eq.s32.totalorder %v451_v35, 15  ;;  %v14598_v4 = vadd.f32 %v2286_v21, %v1973_v49  ;;  %v3871_v15 = vshll.u32 %v3787_v14, 16  ;;  %v3302_v28 = vshrl.u32 %v14518_v8, 16  ;;  %vm14601_vm10 = vmpackc.low %vm3003_vm8, %vm3002_vm5  ;;  %v3649_v49 = vld [vmem:[#allocation2 + $0x54] sm:$0xf] }
 0x14c   : > { %vm2551_vm2 = vmpackc.low %vm749_vm11, %vm749_vm11  ;;  %v18170_v46 = vmov 0  ;;  %v3306_v19 = vshll.u32 %v14589_v13, 16  ;;  %vm18173_vm14 = vsmask.f32 7424  ;;  %v18174_v18 = vmov 0 }
 0x14d   : > { %18169 = vst [vmem:[#allocation75_spill] sm:$0xff] %v14598_v4  ;;  %3479 = vmatmul.bf16.gmra.mxu2 %v3301_v12  ;;  %v18171_v46 = vsel %vm14601_vm10, 4294967295, %v18170_v46  ;;  %v2583_v7 = vsel %vm2551_vm2, 65537, %v18074_v57  ;;  %v14607_v47 = vpop.f32.mrf.mxu3  ;;  %v4798_v21 = vsel %vm18173_vm14, %v4793_v34, %v14592_v6  ;;  %vm14611_vm9 = vmpackc.low %vm3010_vm13, %vm3009_vm0  ;;  %v4623_v33 = vsel %vm14601_vm10, 0, %v4590_v53  ;;  %v2451_v53 = vld [vmem:[#allocation2 + $0x48] sm:$0xf] }
 0x14e   : > { %18172 = vst [vmem:[#allocation76_spill] sm:$0xff] %v18171_v46  ;;  %v18175_v18 = vsel %vm14611_vm9, 4294967295, %v18174_v18  ;;  %v2770_v8 = vshrl.u32 %v2583_v7, 16  ;;  %v4624_v59 = vsel %vm14611_vm9, 0, %v4591_v62  ;;  %v2759_v31 = vrot.slane %v14540_v32, 4  ;;  %v2011_v2 = vpop.f32.mrf.mxu2 }
 0x14f   : > { %18176 = vst [vmem:[#allocation77_spill] sm:$0xff] %v18175_v18  ;;  %v2773_v10 = vshll.u32 %v2583_v7, 16  ;;  %v3870_v14 = vrot.slane %v3868_v9, 3  ;;  %v3873_v12 = vrot.slane %v3871_v15, 4  ;;  %v4705_v35 = vunpack.c.l.b16 %v4623_v33  ;;  %v2452_v62 = vld [vmem:[#allocation2 + $0x4c] sm:$0xf] }
 0x150   : > { %v4706_v34 = vunpack.c.l.b16 %v4624_v59  ;;  %v14621_v29 = vadd.f32 %v14529_v26, %v2011_v2  ;;  %v14623_v58 = vrot.slane %v2770_v8, 7  ;;  %vm18178_vm13 = vnez %v17949_v24  ;;  %v3655_v46 = vld [vmem:[#allocation2 + $0x6c] sm:$0xf] }
 0x151   : > { %v2291_v11 = vpop.f32.mrf.mxu1  ;;  %v3682_v32 = vsel %vm18178_vm13, 0, %v3649_v49  ;;  %vm18179_vm11 = vnez %v17952_v0  ;;  %v3304_v7 = vor.u32 %v3302_v28, %v14574_v51  ;;  %v2767_v26 = vsel %vm13998_vm7, %v2759_v31, %v13983_v54 }
 0x152   : > { %18177 = vst [vmem:[#allocation78_spill] sm:$0xff] %v14621_v29  ;;  %v14625_v4 = vpack.c.b16 %v4706_v34, %v4705_v35  ;;  %v3683_v9 = vsel %vm18179_vm11, 0, %v3650_v20  ;;  %v1976_v15 = vpop.f32.mrf.mxu0  ;;  %v2775_v8 = vor.u32 %v2773_v10, %v14623_v58  ;;  %v14638_v59 = vrot.slane %v3306_v19, 1  ;;  %v3652_v29 = vld [vmem:[#allocation2 + $0x60] sm:$0xf] }
 0x153   : > { %4973 = vmatmul.bf16.gmra.mxu1 %v4798_v21  ;;  %v3764_v21 = vunpack.c.l.b16 %v3682_v32  ;;  %v14636_v33 = vadd.f32 %v2289_v5, %v1976_v15  ;;  %v14640_v2 = vor.u32 %v3873_v12, %v3870_v14  ;;  %v3765_v35 = vunpack.c.l.b16 %v3683_v9 }
 0x154   : > { %v3133_v20 = vsel %vm14601_vm10, 0, %v2451_v53  ;;  %v3134_v51 = vsel %vm14611_vm9, 0, %v2452_v62  ;;  %v2776_v28 = vsel %vm13998_vm7, %v13988_v55, %v2775_v8  ;;  %v303_v31 = vadd.s32 168, %v13329_v1  ;;  %4427 = vmatmul.bf16.gmra.mxu0 %v12537_v3 }
 0x155   : > { %v14650_v5 = vpop.f32.mrf.mxu3  ;;  %v4799_v19 = vshrl.u32 %v14559_v43, 16  ;;  %v4803_v10 = vshll.u32 %v14625_v4, 16  ;;  %v3012_v14 = vunpack.c.l.b16 %v2767_v26  ;;  %v3013_v12 = vunpack.c.h.b16 %v2767_v26 }
 0x156   : > { %v3019_v34 = vunpack.c.l.b16 %v2776_v28  ;;  %v3020_v49 = vunpack.c.h.b16 %v2776_v28  ;;  %v3788_v53 = vpack.c.b16 %v3765_v35, %v3764_v21  ;;  %v465_v32 = vand.u32 15, %v303_v31  ;;  %v2013_v62 = vpop.f32.mrf.mxu2 }
 0x157   : > { %v3309_v9 = vsel %vm18173_vm14, %v3304_v7, %v14638_v59  ;;  %vm18180_vm8 = vsmask.f32 4352  ;;  %v14660_v15 = vadd.f32 %v14576_v40, %v2013_v62  ;;  %v3215_v43 = vunpack.c.l.b16 %v3133_v20 }
 0x158   : > { %v3875_v3 = vsel %vm18180_vm8, %v14569_v52, %v14640_v2  ;;  %v3216_v8 = vunpack.c.l.b16 %v3134_v51  ;;  %vm751_vm5 = vcmp.eq.s32.totalorder %v465_v32, 15  ;;  %v4801_v26 = vor.u32 %v4799_v19, %v14592_v6  ;;  %v12590_v32 = vld [vmem:[#allocation8 + $0x1d8] sm:$0xff] }
 0x159   : > { %18181 = vst [vmem:[#allocation79_spill] sm:$0xff] %v14660_v15  ;;  %v2294_v0 = vpop.f32.mrf.mxu1  ;;  %v14663_v28 = vrot.slane %v4803_v10, 1  ;;  %vm14666_vm0 = vcmp.ne.s32.totalorder %v3012_v14, %v13394_v38  ;;  %vm14671_vm2 = vcmp.ne.s32.totalorder %v3013_v12, %v13402_v42  ;;  %vm2553_vm14 = vmpackc.low %vm751_vm5, %vm751_vm5  ;;  %vm14676_vm8 = vcmp.ne.s32.totalorder %v3019_v34, %v13394_v38  ;;  %v2453_v12 = vld [vmem:[#allocation2 + $0x50] sm:$0xf]  ;;  %5882 = vmatpush.bf16.msra.mxu3 %v12590_v32 }
 0x15a   : > { %v1978_v52 = vpop.f32.mrf.mxu0  ;;  %vm14681_vm11 = vcmp.ne.s32.totalorder %v3020_v49, %v13402_v42  ;;  %v3877_v35 = vshrl.u32 %v3788_v53, 16  ;;  %v2585_v20 = vsel %vm2553_vm14, 65537, %v18074_v57  ;;  %v3880_v31 = vshll.u32 %v3788_v53, 16  ;;  %vm14694_vm5 = vmpackc.low %vm14671_vm2, %vm14666_vm0  ;;  %v12566_v49 = vld [vmem:[#allocation8 + $0x198] sm:$0xff] }
 0x15b   : > { %4055 = vmatmul.bf16.gmra.mxu3 %v3875_v3  ;;  %v14686_v51 = vadd.f32 %v2291_v11, %v1978_v52  ;;  %v2788_v19 = vshrl.u32 %v2585_v20, 16  ;;  %v2791_v10 = vshll.u32 %v2585_v20, 16  ;;  %v14688_v14 = vpack.c.b16 %v3216_v8, %v3215_v43  ;;  %vm14706_vm13 = vmpackc.low %vm14681_vm11, %vm14676_vm8  ;;  %v4593_v3 = vld [vmem:[#allocation2 + $0x5c] sm:$0xf]  ;;  %v2454_v8 = vld [vmem:[#allocation2 + $0x54] sm:$0xf]  ;;  %5505 = vmatpush.bf16.msra.mxu2 %v12566_v49 }
 0x15c   : > { %v18190_v34 = vmov 0  ;;  %vm18193_vm14 = vsmask.f32 7424  ;;  %v18194_v53 = vmov 0  ;;  %v3879_v21 = vrot.slane %v3877_v35, 3 }
 0x15d   : > { %3484 = vmatmul.bf16.gmra.mxu2 %v3309_v9  ;;  %v18191_v34 = vsel %vm14694_vm5, 4294967295, %v18190_v34  ;;  %v14698_v62 = vpop.f32.mrf.mxu3  ;;  %v4806_v11 = vsel %vm18193_vm14, %v4801_v26, %v14663_v28  ;;  %v18195_v53 = vsel %vm14706_vm13, 4294967295, %v18194_v53  ;;  %v4592_v9 = vld [vmem:[#allocation2 + $0x58] sm:$0xf]  ;;  %v14710_v43 = vrot.slane %v2788_v19, 7  ;;  %vm18202_vm8 = vmmov %vm18193_vm14 }
 0x15e   : > { %18192 = vst [vmem:[#allocation80_spill] sm:$0xff] %v18191_v34  ;;  %v4625_v7 = vsel %vm14694_vm5, 0, %v4592_v9  ;;  %v4626_v26 = vsel %vm14706_vm13, 0, %v4593_v3  ;;  %v2777_v52 = vrot.slane %v14623_v58, 4  ;;  %v2016_v40 = vpop.f32.mrf.mxu2  ;;  %v3882_v6 = vrot.slane %v3880_v31, 4  ;;  %v12538_v3 = vld [vmem:[#allocation2 + $0x48] sm:$0xff] }
 0x15f   : > { %18196 = vst [vmem:[#allocation81_spill] sm:$0xff] %v18195_v53  ;;  %v4707_v20 = vunpack.c.l.b16 %v4625_v7  ;;  %v4708_v24 = vunpack.c.l.b16 %v4626_v26  ;;  %v2793_v15 = vor.u32 %v2791_v10, %v14710_v43  ;;  %v3651_v19 = vld [vmem:[#allocation2 + $0x5c] sm:$0xf]  ;;  %v14719_v35 = vadd.f32 %v14607_v47, %v2016_v40  ;;  %v3653_v53 = vld [vmem:[#allocation2 + $0x64] sm:$0xf] }
 0x160   : > { %v3310_v49 = vshrl.u32 %v14589_v13, 16  ;;  %v3314_v32 = vshll.u32 %v14688_v14, 16  ;;  %vm18198_vm11 = vnez %v17960_v17  ;;  %v3135_v58 = vsel %vm14694_vm5, 0, %v2453_v12  ;;  %v3654_v34 = vld [vmem:[#allocation2 + $0x68] sm:$0xf] }
 0x161   : > { %18197 = vst [vmem:[#allocation82_spill] sm:$0xff] %v14719_v35  ;;  %v3684_v9 = vsel %vm18198_vm11, 0, %v3651_v19  ;;  %vm18199_vm0 = vnez %v17966_v41  ;;  %v3136_v47 = vsel %vm14706_vm13, 0, %v2454_v8  ;;  %v14731_v7 = vpack.c.b16 %v4708_v24, %v4707_v20  ;;  %v2296_v40 = vpop.f32.mrf.mxu1 }
 0x162   : > { %v3685_v31 = vsel %vm18199_vm0, 0, %v3652_v29  ;;  %v1981_v10 = vpop.f32.mrf.mxu0  ;;  %v2785_v13 = vsel %vm13998_vm7, %v2777_v52, %v13983_v54  ;;  %v2794_v12 = vsel %vm13998_vm7, %v13988_v55, %v2793_v15  ;;  %v3766_v29 = vunpack.c.l.b16 %v3684_v9 }
 0x163   : > { %4978 = vmatmul.bf16.gmra.mxu1 %v4806_v11  ;;  %v14736_v26 = vadd.f32 %v2294_v0, %v1981_v10  ;;  %v14738_v11 = vor.u32 %v3882_v6, %v3879_v21  ;;  %v3312_v19 = vor.u32 %v3310_v49, %v14638_v59  ;;  %v14744_v41 = vrot.slane %v3314_v32, 1  ;;  %v12598_v6 = vld [vmem:[#allocation8 + $0x218] sm:$0xff] }
 0x164   : > { %v3217_v24 = vunpack.c.l.b16 %v3135_v58  ;;  %v3767_v8 = vunpack.c.l.b16 %v3685_v31  ;;  %4432 = vmatmul.bf16.gmra.mxu0 %v12538_v3  ;;  %v3218_v52 = vunpack.c.l.b16 %v3136_v47  ;;  %v3026_v0 = vunpack.c.l.b16 %v2785_v13 }
 0x165   : > { %v14746_v20 = vpop.f32.mrf.mxu3  ;;  %v3027_v10 = vunpack.c.h.b16 %v2785_v13  ;;  %v305_v21 = vadd.s32 184, %v13329_v1  ;;  %v4807_v17 = vshrl.u32 %v14625_v4, 16  ;;  %v4811_v15 = vshll.u32 %v14731_v7, 16  ;;  %6428 = vmatpush.bf16.msra.mxu0 %v12598_v6 }
 0x166   : > { %v3033_v9 = vunpack.c.l.b16 %v2794_v12  ;;  %v3034_v35 = vunpack.c.h.b16 %v2794_v12  ;;  %v2018_v59 = vpop.f32.mrf.mxu2  ;;  %vm18200_vm2 = vsmask.f32 4352  ;;  %v3789_v32 = vpack.c.b16 %v3767_v8, %v3766_v29 }
 0x167   : > { %v3884_v49 = vsel %vm18200_vm2, %v14640_v2, %v14738_v11  ;;  %v479_v3 = vand.u32 15, %v305_v21  ;;  %v14755_v58 = vadd.f32 %v14650_v5, %v2018_v59  ;;  %v3317_v31 = vsel %vm18202_vm8, %v3312_v19, %v14744_v41  ;;  %v4595_v59 = vld [vmem:[#allocation2 + $0x64] sm:$0xf] }
 0x168   : > { %v14759_v47 = vpack.c.b16 %v3218_v52, %v3217_v24  ;;  %vm14762_vm14 = vcmp.ne.s32.totalorder %v3026_v0, %v13394_v38  ;;  %vm14767_vm0 = vcmp.ne.s32.totalorder %v3027_v10, %v13402_v42  ;;  %v4809_v5 = vor.u32 %v4807_v17, %v14663_v28  ;;  %v2455_v10 = vld [vmem:[#allocation2 + $0x58] sm:$0xf] }
 0x169   : > { %18201 = vst [vmem:[#allocation83_spill] sm:$0xff] %v14755_v58  ;;  %vm753_vm2 = vcmp.eq.s32.totalorder %v479_v3, 15  ;;  %v14772_v12 = vrot.slane %v4811_v15, 1  ;;  %vm14775_vm8 = vcmp.ne.s32.totalorder %v3033_v9, %v13394_v38  ;;  %vm14780_vm11 = vcmp.ne.s32.totalorder %v3034_v35, %v13402_v42  ;;  %vm14794_vm5 = vmpackc.low %vm14767_vm0, %vm14762_vm14  ;;  %v4594_v9 = vld [vmem:[#allocation2 + $0x60] sm:$0xf] }
 0x16a   : > { %v1983_v2 = vpop.f32.mrf.mxu0  ;;  %vm2555_vm13 = vmpackc.low %vm753_vm2, %vm753_vm2  ;;  %v3886_v52 = vshrl.u32 %v3789_v32, 16  ;;  %v3889_v0 = vshll.u32 %v3789_v32, 16  ;;  %v3318_v28 = vshrl.u32 %v14688_v14, 16  ;;  %v18212_v35 = vmov 0  ;;  %v2456_v3 = vld [vmem:[#allocation2 + $0x5c] sm:$0xf] }
 0x16b   : > { %4060 = vmatmul.bf16.gmra.mxu3 %v3884_v49  ;;  %v14784_v24 = vadd.f32 %v2296_v40, %v1983_v2  ;;  %v14786_v8 = vpop.f32.mrf.mxu1  ;;  %v2587_v17 = vsel %vm2555_vm13, 65537, %v18074_v57  ;;  %v18213_v35 = vsel %vm14794_vm5, 4294967295, %v18212_v35  ;;  %v3322_v6 = vshll.u32 %v14759_v47, 16  ;;  %vm14805_vm13 = vmpackc.low %vm14780_vm11, %vm14775_vm8 }
 0x16c   : > { %18214 = vst [vmem:[#allocation85_spill] sm:$0xff] %v18213_v35  ;;  %v2806_v40 = vshrl.u32 %v2587_v17, 16  ;;  %v2809_v21 = vshll.u32 %v2587_v17, 16  ;;  %v18215_v14 = vmov 0  ;;  %v2795_v49 = vrot.slane %v14710_v43, 4 }
 0x16d   : > { %18211 = vst [vmem:[#allocation84_spill] sm:$0xff] %v14784_v24  ;;  %3489 = vmatmul.bf16.gmra.mxu2 %v3317_v31  ;;  %v14799_v15 = vpop.f32.mrf.mxu3  ;;  %v18216_v14 = vsel %vm14805_vm13, 4294967295, %v18215_v14  ;;  %vm18218_vm0 = vsmask.f32 7424  ;;  %v4627_v31 = vsel %vm14794_vm5, 0, %v4594_v9  ;;  %v4628_v4 = vsel %vm14805_vm13, 0, %v4595_v59 }
 0x16e   : > { %18217 = vst [vmem:[#allocation86_spill] sm:$0xff] %v18216_v14  ;;  %v4814_v32 = vsel %vm18218_vm0, %v4809_v5, %v14772_v12  ;;  %v14816_v13 = vrot.slane %v2806_v40, 7  ;;  %v2021_v2 = vpop.f32.mrf.mxu2  ;;  %v3888_v29 = vrot.slane %v3886_v52, 3  ;;  %v3891_v19 = vrot.slane %v3889_v0, 4  ;;  %v12539_v40 = vld [vmem:[#allocation2 + $0x50] sm:$0xff] }
 0x16f   : > { %v4709_v17 = vunpack.c.l.b16 %v4627_v31  ;;  %v4710_v58 = vunpack.c.l.b16 %v4628_v4  ;;  %v14819_v43 = vadd.f32 %v14698_v62, %v2021_v2  ;;  %v3137_v5 = vsel %vm14794_vm5, 0, %v2455_v10  ;;  %v3656_v24 = vld [vmem:[#allocation2 + $0x70] sm:$0xf] }
 0x170   : > { %v2811_v9 = vor.u32 %v2809_v21, %v14816_v13  ;;  %vm18220_vm11 = vnez %v17979_v36  ;;  %v3138_v52 = vsel %vm14805_vm13, 0, %v2456_v3  ;;  %v2803_v62 = vsel %vm13998_vm7, %v2795_v49, %v13983_v54 }
 0x171   : > { %18219 = vst [vmem:[#allocation87_spill] sm:$0xff] %v14819_v43  ;;  %v3686_v59 = vsel %vm18220_vm11, 0, %v3653_v53  ;;  %v14828_v0 = vpack.c.b16 %v4710_v58, %v4709_v17  ;;  %vm18221_vm14 = vnez %v17985_v63  ;;  %v307_v53 = vadd.s32 200, %v13329_v1 }
 0x172   : > { %v3687_v31 = vsel %vm18221_vm14, 0, %v3654_v34  ;;  %v14835_v10 = vpop.f32.mrf.mxu0  ;;  %v3768_v21 = vunpack.c.l.b16 %v3686_v59  ;;  %v14839_v2 = vrot.slane %v3322_v6, 1  ;;  %v14841_v3 = vor.u32 %v3891_v19, %v3888_v29 }
 0x173   : > { %4983 = vmatmul.bf16.gmra.mxu1 %v4814_v32  ;;  %v3769_v4 = vunpack.c.l.b16 %v3687_v31  ;;  %v3320_v32 = vor.u32 %v3318_v28, %v14744_v41  ;;  %v2812_v58 = vsel %vm13998_vm7, %v13988_v55, %v2811_v9  ;;  %v3219_v49 = vunpack.c.l.b16 %v3137_v5  ;;  %v14846_v63 = vpop.f32.mrf.mxu1 }
 0x174   : > { %v3220_v17 = vunpack.c.l.b16 %v3138_v52  ;;  %v3040_v34 = vunpack.c.l.b16 %v2803_v62  ;;  %v493_v36 = vand.u32 15, %v307_v53  ;;  %4437 = vmatmul.bf16.gmra.mxu0 %v12539_v40  ;;  %v4815_v31 = vshrl.u32 %v14731_v7, 16  ;;  %v12589_v52 = vld [vmem:[#allocation8 + $0x1d0] sm:$0xff] }
 0x175   : > { %v14848_v59 = vpop.f32.mrf.mxu3  ;;  %v4819_v41 = vshll.u32 %v14828_v0, 16  ;;  %v3041_v28 = vunpack.c.h.b16 %v2803_v62  ;;  %v3047_v6 = vunpack.c.l.b16 %v2812_v58  ;;  %v3048_v29 = vunpack.c.h.b16 %v2812_v58  ;;  %5883 = vmatpush.bf16.msra.mxu3 %v12589_v52 }
 0x176   : > { %v3790_v19 = vpack.c.b16 %v3769_v4, %v3768_v21  ;;  %vm755_vm2 = vcmp.eq.s32.totalorder %v493_v36, 15  ;;  %v2023_v43 = vpop.f32.mrf.mxu2  ;;  %vm18222_vm8 = vsmask.f32 4352  ;;  %vm18224_vm14 = vsmask.f32 7424 }
 0x177   : > { %v3893_v5 = vsel %vm18222_vm8, %v14738_v11, %v14841_v3  ;;  %vm2557_vm0 = vmpackc.low %vm755_vm2, %vm755_vm2  ;;  %v14856_v9 = vadd.f32 %v14746_v20, %v2023_v43  ;;  %v3325_v40 = vsel %vm18224_vm14, %v3320_v32, %v14839_v2  ;;  %v14860_v7 = vpack.c.b16 %v3220_v17, %v3219_v49  ;;  %v2457_v32 = vld [vmem:[#allocation2 + $0x60] sm:$0xf]  ;;  %v12565_v49 = vld [vmem:[#allocation8 + $0x190] sm:$0xff] }
 0x178   : > { %vm14863_vm11 = vcmp.ne.s32.totalorder %v3040_v34, %v13394_v38  ;;  %v4817_v36 = vor.u32 %v4815_v31, %v14772_v12  ;;  %v14868_v62 = vrot.slane %v4819_v41, 1  ;;  %vm3045_vm8 = vcmp.ne.s32.totalorder %v3041_v28, %v13402_v42  ;;  %v4596_v28 = vld [vmem:[#allocation2 + $0x68] sm:$0xf]  ;;  %5506 = vmatpush.bf16.msra.mxu2 %v12565_v49 }
 0x179   : > { %18223 = vst [vmem:[#allocation88_spill] sm:$0xff] %v14856_v9  ;;  %v2589_v11 = vsel %vm2557_vm0, 65537, %v18074_v57  ;;  %vm3051_vm14 = vcmp.ne.s32.totalorder %v3047_v6, %v13394_v38  ;;  %vm3052_vm2 = vcmp.ne.s32.totalorder %v3048_v29, %v13402_v42  ;;  %v3895_v43 = vshrl.u32 %v3790_v19, 16  ;;  %vm14879_vm13 = vmpackc.low %vm3045_vm8, %vm14863_vm11 }
 0x17a   : > { %v14872_v20 = vpop.f32.mrf.mxu0  ;;  %v2824_v21 = vshrl.u32 %v2589_v11, 16  ;;  %v3898_v4 = vshll.u32 %v3790_v19, 16  ;;  %v2827_v53 = vshll.u32 %v2589_v11, 16  ;;  %v3326_v12 = vshrl.u32 %v14759_v47, 16  ;;  %vm14888_vm0 = vmpackc.low %vm3052_vm2, %vm3051_vm14  ;;  %v4597_v47 = vld [vmem:[#allocation2 + $0x6c] sm:$0xf] }
 0x17b   : > { %4065 = vmatmul.bf16.gmra.mxu3 %v3893_v5  ;;  %v18227_v58 = vmov 0  ;;  %v3330_v34 = vshll.u32 %v14860_v7, 16  ;;  %v18230_v41 = vmov 0  ;;  %v2813_v6 = vrot.slane %v14816_v13, 4  ;;  %v2458_v5 = vld [vmem:[#allocation2 + $0x64] sm:$0xf] }
 0x17c   : > { %v18228_v58 = vsel %vm14879_vm13, 4294967295, %v18227_v58  ;;  %v14883_v17 = vrot.slane %v2824_v21, 7  ;;  %v18231_v41 = vsel %vm14888_vm0, 4294967295, %v18230_v41  ;;  %vm18233_vm11 = vsmask.f32 7424 }
 0x17d   : > { %3494 = vmatmul.bf16.gmra.mxu2 %v3325_v40  ;;  %18229 = vst [vmem:[#allocation89_spill] sm:$0xff] %v18228_v58  ;;  %v14886_v31 = vpop.f32.mrf.mxu3  ;;  %v4822_v19 = vsel %vm18233_vm11, %v4817_v36, %v14868_v62  ;;  %v3897_v40 = vrot.slane %v3895_v43, 3  ;;  %v4629_v11 = vsel %vm14879_vm13, 0, %v4596_v28  ;;  %v4630_v21 = vsel %vm14888_vm0, 0, %v4597_v47  ;;  %v12540_v47 = vld [vmem:[#allocation2 + $0x58] sm:$0xff] }
 0x17e   : > { %18232 = vst [vmem:[#allocation90_spill] sm:$0xff] %v18231_v41  ;;  %v3455_v9 = vpop.f32.mrf.mxu2  ;;  %v3900_v14 = vrot.slane %v3898_v4, 4  ;;  %v4711_v35 = vunpack.c.l.b16 %v4629_v11  ;;  %v4712_v18 = vunpack.c.l.b16 %v4630_v21  ;;  %v2829_v13 = vor.u32 %v2827_v53, %v14883_v17 }
 0x17f   : > { %v3567_v36 = vadd.f32 %v3455_v9, %v14090_v50  ;;  %v3139_v43 = vsel %vm14879_vm13, 0, %v2457_v32  ;;  %vm18234_vm8 = vnez %v17992_v56  ;;  %v2372_v28 = vadd.f32 %v14113_v44, %v14150_v30 }
 0x180   : > { %v14893_v29 = vpop.f32.mrf.mxu1  ;;  %v3688_v49 = vsel %vm18234_vm8, 0, %v3655_v46  ;;  %v3140_v4 = vsel %vm14888_vm0, 0, %v2458_v5  ;;  %v14911_v53 = vpack.c.b16 %v4712_v18, %v4711_v35  ;;  %v2821_v50 = vsel %vm13998_vm7, %v2813_v6, %v13983_v54 }
 0x181   : > { %v4133_v9 = vadd.f32 %v14799_v15, %v3567_v36  ;;  %v3328_v46 = vor.u32 %v3326_v12, %v14839_v2  ;;  %vm18235_vm14 = vnez %v17998_v48  ;;  %v3770_v30 = vunpack.c.l.b16 %v3688_v49 }
 0x182   : > { %v14917_v32 = vpop.f32.mrf.mxu0  ;;  %v3689_v44 = vsel %vm18235_vm14, 0, %v3656_v24  ;;  %v3221_v52 = vunpack.c.l.b16 %v3139_v43  ;;  %v14924_v5 = vor.u32 %v3900_v14, %v3897_v40  ;;  %v2830_v18 = vsel %vm13998_vm7, %v13988_v55, %v2829_v13  ;;  %v12597_v13 = vld [vmem:[#allocation8 + $0x210] sm:$0xff] }
 0x183   : > { %4988 = vmatmul.bf16.gmra.mxu1 %v4822_v19  ;;  %v14922_v19 = vrot.slane %v3330_v34, 1  ;;  %v4510_v35 = vadd.f32 %v14835_v10, %v4133_v9  ;;  %v3222_v15 = vunpack.c.l.b16 %v3140_v4  ;;  %v3054_v6 = vunpack.c.l.b16 %v2821_v50  ;;  %6429 = vmatpush.bf16.msra.mxu0 %v12597_v13 }
 0x184   : > { %v3771_v11 = vunpack.c.l.b16 %v3689_v44  ;;  %4442 = vmatmul.bf16.gmra.mxu0 %v12540_v47  ;;  %v4823_v24 = vshrl.u32 %v14828_v0, 16  ;;  %v4827_v12 = vshll.u32 %v14911_v53, 16  ;;  %v3055_v34 = vunpack.c.h.b16 %v2821_v50 }
 0x185   : > { %v14930_v2 = vpop.f32.mrf.mxu3  ;;  %v309_v14 = vadd.s32 216, %v13329_v1  ;;  %v14936_v40 = vadd.f32 %v14786_v8, %v4510_v35  ;;  %v3061_v10 = vunpack.c.l.b16 %v2830_v18  ;;  %v3062_v36 = vunpack.c.h.b16 %v2830_v18 }
 0x186   : > { %v3791_v43 = vpack.c.b16 %v3771_v11, %v3770_v30  ;;  %v3457_v49 = vpop.f32.mrf.mxu2  ;;  %vm18236_vm2 = vsmask.f32 4352  ;;  %v3333_v50 = vsel %vm18233_vm11, %v3328_v46, %v14922_v19  ;;  %v14945_v9 = vpack.c.b16 %v3222_v15, %v3221_v52  ;;  %v12610_v52 = vld [vmem:[#allocation10 + $0x38] sm:$0xff] }
 0x187   : > { %v3902_v47 = vsel %vm18236_vm2, %v14841_v3, %v14924_v5  ;;  %v507_v0 = vand.u32 15, %v309_v14  ;;  %v3568_v4 = vadd.f32 %v3457_v49, %v2372_v28  ;;  %vm14948_vm14 = vcmp.ne.s32.totalorder %v3054_v6, %v13394_v38  ;;  %7166 = vmatpush.bf16.msra.mxu1 %v12610_v52 }
 0x188   : > { %v14938_v21 = vpop.f32.mrf.mxu1  ;;  %v4825_v44 = vor.u32 %v4823_v24, %v14868_v62  ;;  %v14953_v30 = vrot.slane %v4827_v12, 1  ;;  %vm14956_vm8 = vcmp.ne.s32.totalorder %v3055_v34, %v13402_v42  ;;  %vm14964_vm11 = vcmp.ne.s32.totalorder %v3061_v10, %v13394_v38  ;;  %v2459_v12 = vld [vmem:[#allocation2 + $0x68] sm:$0xf]  ;;  %v2460_v34 = vld [vmem:[#allocation2 + $0x6c] sm:$0xf] }
 0x189   : > { %vm757_vm2 = vcmp.eq.s32.totalorder %v507_v0, 15  ;;  %v4134_v28 = vadd.f32 %v14848_v59, %v3568_v4  ;;  %vm14969_vm0 = vcmp.ne.s32.totalorder %v3062_v36, %v13402_v42  ;;  %v3904_v35 = vshrl.u32 %v3791_v43, 16  ;;  %vm14981_vm5 = vmpackc.low %vm14956_vm8, %vm14948_vm14  ;;  %v4598_v36 = vld [vmem:[#allocation2 + $0x70] sm:$0xf] }
 0x18a   : > { %v14961_v46 = vpop.f32.mrf.mxu0  ;;  %vm2559_vm13 = vmpackc.low %vm757_vm2, %vm757_vm2  ;;  %v3334_v15 = vshrl.u32 %v14860_v7, 16  ;;  %v3907_v6 = vshll.u32 %v3791_v43, 16  ;;  %v3338_v24 = vshll.u32 %v14945_v9, 16  ;;  %v18245_v14 = vmov 0  ;;  %v4599_v43 = vld [vmem:[#allocation2 + $0x74] sm:$0xf] }
 0x18b   : > { %4070 = vmatmul.bf16.gmra.mxu3 %v3902_v47  ;;  %v2591_v59 = vsel %vm2559_vm13, 65537, %v18074_v57  ;;  %v4511_v11 = vadd.f32 %v14872_v20, %v4134_v28  ;;  %v18246_v14 = vsel %vm14981_vm5, 4294967295, %v18245_v14  ;;  %vm18248_vm13 = vsmask.f32 7424  ;;  %vm14993_vm2 = vmpackc.low %vm14969_vm0, %vm14964_vm11 }
 0x18c   : > { %18247 = vst [vmem:[#allocation91_spill] sm:$0xff] %v18246_v14  ;;  %v2842_v7 = vshrl.u32 %v2591_v59, 16  ;;  %v4830_v10 = vsel %vm18248_vm13, %v4825_v44, %v14953_v30  ;;  %v18249_v20 = vmov 0  ;;  %v2831_v49 = vrot.slane %v14883_v17, 4  ;;  %v3657_v17 = vld [vmem:[#allocation2 + $0x74] sm:$0xf]  ;;  %vm18256_vm14 = vmmov %vm18248_vm13 }
 0x18d   : > { %3499 = vmatmul.bf16.gmra.mxu2 %v3333_v50  ;;  %v14985_v13 = vpop.f32.mrf.mxu3  ;;  %v18250_v20 = vsel %vm14993_vm2, 4294967295, %v18249_v20  ;;  %v2845_v47 = vshll.u32 %v2591_v59, 16  ;;  %v14999_v0 = vadd.f32 %v14846_v63, %v4511_v11  ;;  %v3906_v50 = vrot.slane %v3904_v35, 3  ;;  %v3658_v59 = vld [vmem:[#allocation2 + $0x78] sm:$0xf] }
 0x18e   : > { %18251 = vst [vmem:[#allocation92_spill] sm:$0xff] %v18250_v20  ;;  %v4631_v8 = vsel %vm14981_vm5, 0, %v4598_v36  ;;  %v4632_v44 = vsel %vm14993_vm2, 0, %v4599_v43  ;;  %v3909_v28 = vrot.slane %v3907_v6, 4  ;;  %v15007_v62 = vrot.slane %v2842_v7, 7  ;;  %v12541_v43 = vld [vmem:[#allocation2 + $0x60] sm:$0xff] }
 0x18f   : > { %v3460_v3 = vpop.f32.mrf.mxu2  ;;  %v4713_v52 = vunpack.c.l.b16 %v4631_v8  ;;  %v4714_v18 = vunpack.c.l.b16 %v4632_v44  ;;  %v3141_v11 = vsel %vm14981_vm5, 0, %v2459_v12  ;;  %v3142_v35 = vsel %vm14993_vm2, 0, %v2460_v34  ;;  %v12542_v20 = vld [vmem:[#allocation2 + $0x68] sm:$0xff] }
 0x190   : > { %v15001_v4 = vpop.f32.mrf.mxu1  ;;  %v3569_v63 = vadd.f32 %v3460_v3, %v14214_v61  ;;  %vm18252_vm0 = vnez %v18010_v25  ;;  %v2839_v7 = vsel %vm13998_vm7, %v2831_v49, %v13983_v54  ;;  %v2847_v8 = vor.u32 %v2845_v47, %v15007_v62  ;;  %v18253_v61 = vld [vmem:[#allocation38_spill] sm:$0xff] }
 0x191   : > { %v3690_v36 = vsel %vm18252_vm0, 0, %v3657_v17  ;;  %v15016_v6 = vpack.c.b16 %v4714_v18, %v4713_v52  ;;  %vm18254_vm8 = vnez %v18253_v61  ;;  %v3336_v34 = vor.u32 %v3334_v15, %v14922_v19 }
 0x192   : > { %v3691_v44 = vsel %vm18254_vm8, 0, %v3658_v59  ;;  %v4135_v12 = vadd.f32 %v14886_v31, %v3569_v63  ;;  %v15025_v3 = vpop.f32.mrf.mxu0  ;;  %v3772_v17 = vunpack.c.l.b16 %v3690_v36  ;;  %v15030_v52 = vor.u32 %v3909_v28, %v3906_v50 }
 0x193   : > { %4993 = vmatmul.bf16.gmra.mxu1 %v4830_v10  ;;  %v3773_v25 = vunpack.c.l.b16 %v3691_v44  ;;  %v15028_v10 = vrot.slane %v3338_v24, 1  ;;  %v2848_v49 = vsel %vm13998_vm7, %v13988_v55, %v2847_v8  ;;  %v311_v47 = vadd.s32 232, %v13329_v1 }
 0x194   : > { %v4512_v18 = vadd.f32 %v14917_v32, %v4135_v12  ;;  %v3223_v59 = vunpack.c.l.b16 %v3141_v11  ;;  %v3224_v31 = vunpack.c.l.b16 %v3142_v35  ;;  %v3068_v63 = vunpack.c.l.b16 %v2839_v7  ;;  %4447 = vmatmul.bf16.gmra.mxu0 %v12541_v43  ;;  %v18258_v43 = vld [vmem:[#allocation60_spill] sm:$0xff] }
 0x195   : > { %v15037_v61 = vpop.f32.mrf.mxu3  ;;  %v4831_v19 = vshrl.u32 %v14911_v53, 16  ;;  %v4835_v15 = vshll.u32 %v15016_v6, 16  ;;  %v3069_v24 = vunpack.c.h.b16 %v2839_v7  ;;  %v3075_v50 = vunpack.c.l.b16 %v2848_v49 }
 0x196   : > { %v15042_v28 = vadd.f32 %v14893_v29, %v4512_v18  ;;  %v3076_v8 = vunpack.c.h.b16 %v2848_v49  ;;  %v3792_v44 = vpack.c.b16 %v3773_v25, %v3772_v17  ;;  %v521_v32 = vand.u32 15, %v311_v47  ;;  %v12588_v29 = vld [vmem:[#allocation8 + $0x1c8] sm:$0xff] }
 0x197   : > { %v3462_v11 = vpop.f32.mrf.mxu2  ;;  %v3341_v35 = vsel %vm18256_vm14, %v3336_v34, %v15028_v10  ;;  %vm18257_vm11 = vsmask.f32 4352  ;;  %v15052_v7 = vpack.c.b16 %v3224_v31, %v3223_v59  ;;  %vm15055_vm13 = vcmp.ne.s32.totalorder %v3068_v63, %v13394_v38  ;;  %5884 = vmatpush.bf16.msra.mxu3 %v12588_v29 }
 0x198   : > { %18255 = vst [vmem:[#allocation93_spill] sm:$0xff] %v15042_v28  ;;  %v15044_v36 = vpop.f32.mrf.mxu1  ;;  %v3911_v53 = vsel %vm18257_vm11, %v14924_v5, %v15030_v52  ;;  %v3570_v12 = vadd.f32 %v3462_v11, %v18258_v43  ;;  %vm759_vm8 = vcmp.eq.s32.totalorder %v521_v32, 15  ;;  %v4833_v25 = vor.u32 %v4831_v19, %v14953_v30  ;;  %v4601_v32 = vld [vmem:[#allocation2 + $0x7c] sm:$0xf] }
 0x199   : > { %v15060_v17 = vrot.slane %v4835_v15, 1  ;;  %vm15063_vm14 = vcmp.ne.s32.totalorder %v3069_v24, %v13402_v42  ;;  %vm15068_vm11 = vcmp.ne.s32.totalorder %v3075_v50, %v13394_v38  ;;  %vm2561_vm0 = vmpackc.low %vm759_vm8, %vm759_vm8  ;;  %vm3080_vm2 = vcmp.ne.s32.totalorder %v3076_v8, %v13402_v42  ;;  %v12564_v24 = vld [vmem:[#allocation8 + $0x188] sm:$0xff]  ;;  %v3659_v28 = vld [vmem:[#allocation2 + $0x7c] sm:$0xf] }
 0x19a   : > { %v4136_v49 = vadd.f32 %v14930_v2, %v3570_v12  ;;  %v15073_v47 = vpop.f32.mrf.mxu0  ;;  %v3913_v30 = vshrl.u32 %v3792_v44, 16  ;;  %v2593_v18 = vsel %vm2561_vm0, 65537, %v18074_v57  ;;  %v3916_v59 = vshll.u32 %v3792_v44, 16  ;;  %vm15084_vm8 = vmpackc.low %vm15063_vm14, %vm15055_vm13  ;;  %5507 = vmatpush.bf16.msra.mxu2 %v12564_v24 }
 0x19b   : > { %4075 = vmatmul.bf16.gmra.mxu3 %v3911_v53  ;;  %v2860_v31 = vshrl.u32 %v2593_v18, 16  ;;  %v3342_v19 = vshrl.u32 %v14945_v9, 16  ;;  %v3346_v15 = vshll.u32 %v15052_v7, 16  ;;  %v18265_v2 = vmov 0  ;;  %vm15094_vm5 = vmpackc.low %vm3080_vm2, %vm15068_vm11 }
 0x19c   : > { %v4513_v63 = vadd.f32 %v14961_v46, %v4136_v49  ;;  %v18266_v2 = vsel %vm15084_vm8, 4294967295, %v18265_v2  ;;  %v2863_v50 = vshll.u32 %v2593_v18, 16  ;;  %vm18268_vm0 = vsmask.f32 7424  ;;  %v4600_v46 = vld [vmem:[#allocation2 + $0x78] sm:$0xf] }
 0x19d   : > { %3504 = vmatmul.bf16.gmra.mxu2 %v3341_v35  ;;  %18267 = vst [vmem:[#allocation60_spill] sm:$0xff] %v18266_v2  ;;  %v4838_v44 = vsel %vm18268_vm0, %v4833_v25, %v15060_v17  ;;  %v18269_v9 = vmov 0  ;;  %v2849_v11 = vrot.slane %v15007_v62, 4  ;;  %v15099_v35 = vrot.slane %v2860_v31, 7  ;;  %vm18277_vm14 = vmmov %vm18268_vm0 }
 0x19e   : > { %v15088_v8 = vpop.f32.mrf.mxu3  ;;  %v18270_v9 = vsel %vm15094_vm5, 4294967295, %v18269_v9  ;;  %v15102_v53 = vadd.f32 %v14938_v21, %v4513_v63  ;;  %v3915_v12 = vrot.slane %v3913_v30, 3  ;;  %v4633_v25 = vsel %vm15084_vm8, 0, %v4600_v46  ;;  %v3660_v21 = vld [vmem:[#allocation2 + $0x80] sm:$0xf]  ;;  %v18273_v30 = vld [vmem:[#allocation41_spill] sm:$0xff] }
 0x19f   : > { %18271 = vst [vmem:[#allocation94_spill] sm:$0xff] %v18270_v9  ;;  %v4634_v34 = vsel %vm15094_vm5, 0, %v4601_v32  ;;  %v3918_v49 = vrot.slane %v3916_v59, 4  ;;  %v4715_v18 = vunpack.c.l.b16 %v4633_v25  ;;  %v2865_v31 = vor.u32 %v2863_v50, %v15099_v35  ;;  %v2462_v46 = vld [vmem:[#allocation2 + $0x74] sm:$0xf]  ;;  %v18275_v32 = vld [vmem:[#allocation42_spill] sm:$0xff] }
 0x1a0   : > { %18272 = vst [vmem:[#allocation95_spill] sm:$0xff] %v15102_v53  ;;  %v15104_v43 = vpop.f32.mrf.mxu1  ;;  %v3465_v5 = vpop.f32.mrf.mxu2  ;;  %v4716_v62 = vunpack.c.l.b16 %v4634_v34  ;;  %v2461_v53 = vld [vmem:[#allocation2 + $0x70] sm:$0xf]  ;;  %vm18274_vm2 = vnez %v18273_v30  ;;  %v2857_v59 = vsel %vm13998_vm7, %v2849_v11, %v13983_v54  ;;  %vm18276_vm13 = vnez %v18275_v32 }
 0x1a1   : > { %v3571_v63 = vadd.f32 %v3465_v5, %v14304_v45  ;;  %v3692_v24 = vsel %vm18274_vm2, 0, %v3659_v28  ;;  %v3693_v50 = vsel %vm18276_vm13, 0, %v3660_v21  ;;  %v3344_v29 = vor.u32 %v3342_v19, %v15028_v10 }
 0x1a2   : > { %v15114_v14 = vpack.c.b16 %v4716_v62, %v4715_v18  ;;  %v15122_v45 = vpop.f32.mrf.mxu0  ;;  %v15125_v34 = vrot.slane %v3346_v15, 1  ;;  %v2866_v28 = vsel %vm13998_vm7, %v13988_v55, %v2865_v31  ;;  %v15132_v11 = vor.u32 %v3918_v49, %v3915_v12  ;;  %v856_v12 = vld [vmem:[%s13319_s16 + $0xf0] sm:$0xff]  ;;  %v857_v49 = vld [vmem:[%s13319_s16 + $0xf8] sm:$0xff] }
 0x1a3   : > { %4998 = vmatmul.bf16.gmra.mxu1 %v4838_v44  ;;  %v4137_v25 = vadd.f32 %v14985_v13, %v3571_v63  ;;  %v3143_v44 = vsel %vm15084_vm8, 0, %v2461_v53  ;;  %v3774_v5 = vunpack.c.l.b16 %v3692_v24  ;;  %v3775_v18 = vunpack.c.l.b16 %v3693_v50  ;;  %v12596_v50 = vld [vmem:[#allocation8 + $0x208] sm:$0xff] }
 0x1a4   : > { %v3144_v10 = vsel %vm15094_vm5, 0, %v2462_v46  ;;  %v3082_v19 = vunpack.c.l.b16 %v2857_v59  ;;  %v3083_v15 = vunpack.c.h.b16 %v2857_v59  ;;  %4452 = vmatmul.bf16.gmra.mxu0 %v12542_v20  ;;  %v4839_v31 = vshrl.u32 %v15016_v6, 16 }
 0x1a5   : > { %v4514_v13 = vadd.f32 %v15025_v3, %v4137_v25  ;;  %v4843_v21 = vshll.u32 %v15114_v14, 16  ;;  %v3089_v63 = vunpack.c.l.b16 %v2866_v28  ;;  %v3793_v53 = vpack.c.b16 %v3775_v18, %v3774_v5  ;;  %6430 = vmatpush.bf16.msra.mxu0 %v12596_v50 }
 0x1a6   : > { %v15137_v62 = vpop.f32.mrf.mxu3  ;;  %v3090_v46 = vunpack.c.h.b16 %v2866_v28  ;;  %v313_v59 = vadd.s32 248, %v13329_v1  ;;  %v12802_v20 = vpack.c.bf16 %v857_v49, %v856_v12  ;;  %v3349_v6 = vsel %vm18277_vm14, %v3344_v29, %v15125_v34  ;;  %v4603_v49 = vld [vmem:[#allocation2 + $0x84] sm:$0xf] }
 0x1a7   : > { %v15144_v24 = vadd.f32 %v15001_v4, %v4514_v13  ;;  %v3225_v32 = vunpack.c.l.b16 %v3143_v44  ;;  %vm18278_vm11 = vsmask.f32 4352  ;;  %v3226_v4 = vunpack.c.l.b16 %v3144_v10  ;;  %v3661_v13 = vld [vmem:[#allocation2 + $0x84] sm:$0xf] }
 0x1a8   : > { %v15146_v3 = vpop.f32.mrf.mxu1  ;;  %v3467_v25 = vpop.f32.mrf.mxu2  ;;  %v3920_v5 = vsel %vm18278_vm11, %v15030_v52, %v15132_v11  ;;  %vm15156_vm0 = vcmp.ne.s32.totalorder %v3082_v19, %v13394_v38  ;;  %v535_v1 = vand.u32 15, %v313_v59  ;;  %12899 = vst [vmem:[#allocation2 + $0x88] sm:$0xff] %v12802_v20   ;;  %v4841_v28 = vor.u32 %v4839_v31, %v15060_v17 }
 0x1a9   : > { %v3572_v18 = vadd.f32 %v3467_v25, %v14355_v60  ;;  %v15161_v12 = vrot.slane %v4843_v21, 1  ;;  %vm3087_vm14 = vcmp.ne.s32.totalorder %v3083_v15, %v13402_v42  ;;  %v3922_v29 = vshrl.u32 %v3793_v53, 16  ;;  %v12609_v60 = vld [vmem:[#allocation10 + $0x30] sm:$0xff] }
 0x1aa   : > { %v15165_v44 = vpop.f32.mrf.mxu0  ;;  %vm3093_vm11 = vcmp.ne.s32.totalorder %v3089_v63, %v13394_v38  ;;  %vm3094_vm13 = vcmp.ne.s32.totalorder %v3090_v46, %v13402_v42  ;;  %vm761_vm2 = vcmp.eq.s32.totalorder %v535_v1, 15  ;;  %v3925_v10 = vshll.u32 %v3793_v53, 16  ;;  %7167 = vmatpush.bf16.msra.mxu1 %v12609_v60  ;;  %vm15172_vm8 = vmpackc.low %vm3087_vm14, %vm15156_vm0  ;;  %v4602_v53 = vld [vmem:[#allocation2 + $0x80] sm:$0xf]  ;;  %v12543_v60 = vld [vmem:[#allocation2 + $0x70] sm:$0xff] }
 0x1ab   : > { %v4138_v52 = vadd.f32 %v15037_v61, %v3572_v18  ;;  %4080 = vmatmul.bf16.gmra.mxu3 %v3920_v5  ;;  %vm2563_vm5 = vmpackc.low %vm761_vm2, %vm761_vm2  ;;  %v18281_v19 = vmov 0  ;;  %v15177_v15 = vpack.c.b16 %v3226_v4, %v3225_v32  ;;  %vm18284_vm9 = vsmask.f32 7424 }
 0x1ac   : > { %v18282_v19 = vsel %vm15172_vm8, 4294967295, %v18281_v19  ;;  %v2595_v61 = vsel %vm2563_vm5, 65537, %v18074_v57  ;;  %v4846_v21 = vsel %vm18284_vm9, %v4841_v28, %v15161_v12  ;;  %vm15183_vm2 = vmpackc.low %vm3094_vm13, %vm3093_vm11  ;;  %v18285_v63 = vmov 0 }
 0x1ad   : > { %3509 = vmatmul.bf16.gmra.mxu2 %v3349_v6  ;;  %v4515_v17 = vadd.f32 %v15073_v47, %v4138_v52  ;;  %18283 = vst [vmem:[#allocation96_spill] sm:$0xff] %v18282_v19  ;;  %v18286_v63 = vsel %vm15183_vm2, 4294967295, %v18285_v63  ;;  %v3924_v47 = vrot.slane %v3922_v29, 3  ;;  %v2878_v50 = vshrl.u32 %v2595_v61, 16 }
 0x1ae   : > { %v15179_v31 = vpop.f32.mrf.mxu3  ;;  %18287 = vst [vmem:[#allocation97_spill] sm:$0xff] %v18286_v63  ;;  %v4635_v57 = vsel %vm15172_vm8, 0, %v4602_v53  ;;  %v4636_v32 = vsel %vm15183_vm2, 0, %v4603_v49  ;;  %v2867_v20 = vrot.slane %v15099_v35, 4  ;;  %v3927_v6 = vrot.slane %v3925_v10, 4  ;;  %v18290_v53 = vld [vmem:[#allocation47_spill] sm:$0xff] }
 0x1af   : > { %v15188_v46 = vadd.f32 %v15044_v36, %v4515_v17  ;;  %v4717_v5 = vunpack.c.l.b16 %v4635_v57  ;;  %v4718_v18 = vunpack.c.l.b16 %v4636_v32  ;;  %v15197_v4 = vrot.slane %v2878_v50, 7  ;;  %v3662_v1 = vld [vmem:[#allocation2 + $0x88] sm:$0xf]  ;;  %v18288_v17 = vld [vmem:[#allocation46_spill] sm:$0xff] }
 0x1b0   : > { %v15190_v59 = vpop.f32.mrf.mxu1  ;;  %v3470_v25 = vpop.f32.mrf.mxu2  ;;  %v3350_v28 = vshrl.u32 %v15052_v7, 16  ;;  %v2881_v29 = vshll.u32 %v2595_v61, 16  ;;  %v3354_v52 = vshll.u32 %v15177_v15, 16  ;;  %vm18289_vm9 = vnez %v18288_v17  ;;  %v2463_v57 = vld [vmem:[#allocation2 + $0x78] sm:$0xf] }
 0x1b1   : > { %v3573_v36 = vadd.f32 %v3470_v25, %v14399_v27  ;;  %v3694_v35 = vsel %vm18289_vm9, 0, %v3661_v13  ;;  %vm18291_vm5 = vnez %v18290_v53  ;;  %v2464_v32 = vld [vmem:[#allocation2 + $0x7c] sm:$0xf]  ;;  %v15209_v27 = vpack.c.b16 %v4718_v18, %v4717_v5 }
 0x1b2   : > { %v3695_v10 = vsel %vm18291_vm5, 0, %v3662_v1  ;;  %v15207_v50 = vpop.f32.mrf.mxu0  ;;  %v2875_v7 = vsel %vm13998_vm7, %v2867_v20, %v13983_v54  ;;  %v2883_v61 = vor.u32 %v2881_v29, %v15197_v4  ;;  %v3776_v25 = vunpack.c.l.b16 %v3694_v35 }
 0x1b3   : > { %5003 = vmatmul.bf16.gmra.mxu1 %v4846_v21  ;;  %v4139_v49 = vadd.f32 %v15088_v8, %v3573_v36  ;;  %v15215_v21 = vor.u32 %v3927_v6, %v3924_v47  ;;  %v3777_v13 = vunpack.c.l.b16 %v3695_v10  ;;  %v3352_v8 = vor.u32 %v3350_v28, %v15125_v34 }
 0x1b4   : > { %v2884_v36 = vsel %vm13998_vm7, %v13988_v55, %v2883_v61  ;;  %v15222_v5 = vrot.slane %v3354_v52, 1  ;;  %4457 = vmatmul.bf16.gmra.mxu0 %v12543_v60  ;;  %v3145_v54 = vsel %vm15172_vm8, 0, %v2463_v57  ;;  %v3146_v47 = vsel %vm15183_vm2, 0, %v2464_v32 }
 0x1b5   : > { %v4516_v1 = vadd.f32 %v15122_v45, %v4139_v49  ;;  %v3096_v20 = vunpack.c.l.b16 %v2875_v7  ;;  %v4847_v22 = vshrl.u32 %v15114_v14, 16  ;;  %v4851_v55 = vshll.u32 %v15209_v27, 16  ;;  %v18306_v14 = vld [vmem:[#allocation43_spill] sm:$0xff] }
 0x1b6   : > { %v15224_v18 = vpop.f32.mrf.mxu3  ;;  %v3097_v6 = vunpack.c.h.b16 %v2875_v7  ;;  %vm18293_vm7 = vsmask.f32 4352  ;;  %v3103_v52 = vunpack.c.l.b16 %v2884_v36  ;;  %v3104_v60 = vunpack.c.h.b16 %v2884_v36 }
 0x1b7   : > { %v15231_v45 = vadd.f32 %v15104_v43, %v4516_v1  ;;  %v3929_v29 = vsel %vm18293_vm7, %v15132_v11, %v15215_v21  ;;  %v3794_v35 = vpack.c.b16 %v3777_v13, %v3776_v25  ;;  %vm18294_vm13 = vsmask.f32 7424  ;;  %v12563_v1 = vld [vmem:[#allocation8 + $0x180] sm:$0xff] }
 0x1b8   : > { %v15233_v34 = vpop.f32.mrf.mxu1  ;;  %v3472_v28 = vpop.f32.mrf.mxu2  ;;  %v3357_v43 = vsel %vm18294_vm13, %v3352_v8, %v15222_v5  ;;  %v3227_v49 = vunpack.c.l.b16 %v3145_v54  ;;  %v3228_v57 = vunpack.c.l.b16 %v3146_v47  ;;  %vm15244_vm0 = vcmp.ne.s32.totalorder %v3096_v20, %v13394_v38  ;;  %v4604_v54 = vld [vmem:[#allocation2 + $0x88] sm:$0xf]  ;;  %v4605_v47 = vld [vmem:[#allocation2 + $0x8c] sm:$0xf]  ;;  %5508 = vmatpush.bf16.msra.mxu2 %v12563_v1  ;;  %v2465_v1 = vld [vmem:[#allocation2 + $0x80] sm:$0xf] }
 0x1b9   : > { %18292 = vst [vmem:[#allocation98_spill] sm:$0xff] %v15233_v34  ;;  %v3574_v10 = vadd.f32 %v3472_v28, %v14428_v23  ;;  %v4849_v11 = vor.u32 %v4847_v22, %v15161_v12  ;;  %v15252_v61 = vrot.slane %v4851_v55, 1  ;;  %vm3101_vm14 = vcmp.ne.s32.totalorder %v3097_v6, %v13402_v42  ;;  %v12587_v6 = vld [vmem:[#allocation8 + $0x1c0] sm:$0xff]  ;;  %v12544_v23 = vld [vmem:[#allocation2 + $0x78] sm:$0xff] }
 0x1ba   : > { %v15249_v7 = vpop.f32.mrf.mxu0  ;;  %vm15256_vm11 = vcmp.ne.s32.totalorder %v3103_v52, %v13394_v38  ;;  %vm3108_vm7 = vcmp.ne.s32.totalorder %v3104_v60, %v13402_v42  ;;  %v3931_v25 = vshrl.u32 %v3794_v35, 16  ;;  %v3934_v13 = vshll.u32 %v3794_v35, 16  ;;  %vm15268_vm13 = vmpackc.low %vm3101_vm14, %vm15244_vm0  ;;  %5885 = vmatpush.bf16.msra.mxu3 %v12587_v6 }
 0x1bb   : > { %v4140_v32 = vadd.f32 %v15137_v62, %v3574_v10  ;;  %4085 = vmatmul.bf16.gmra.mxu3 %v3929_v29  ;;  %v15262_v8 = vpack.c.b16 %v3228_v57, %v3227_v49  ;;  %v18299_v36 = vmov 0  ;;  %vm18302_vm5 = vsmask.f32 7424  ;;  %vm15281_vm9 = vmpackc.low %vm3108_vm7, %vm15256_vm11  ;;  %v3663_v10 = vld [vmem:[#allocation2 + $0x8c] sm:$0xf] }
 0x1bc   : > { %v18300_v36 = vsel %vm15268_vm13, 4294967295, %v18299_v36  ;;  %v18303_v55 = vmov 0  ;;  %v4637_v28 = vsel %vm15268_vm13, 0, %v4604_v54  ;;  %v3933_v52 = vrot.slane %v3931_v25, 3  ;;  %v2466_v54 = vld [vmem:[#allocation2 + $0x84] sm:$0xf] }
 0x1bd   : > { %3514 = vmatmul.bf16.gmra.mxu2 %v3357_v43  ;;  %v4517_v62 = vadd.f32 %v15165_v44, %v4140_v32  ;;  %18301 = vst [vmem:[#allocation99_spill] sm:$0xff] %v18300_v36  ;;  %v4854_v44 = vsel %vm18302_vm5, %v4849_v11, %v15252_v61  ;;  %v18304_v55 = vsel %vm15281_vm9, 4294967295, %v18303_v55  ;;  %v4638_v60 = vsel %vm15281_vm9, 0, %v4605_v47 }
 0x1be   : > { %v15264_v12 = vpop.f32.mrf.mxu3  ;;  %18305 = vst [vmem:[#allocation100_spill] sm:$0xff] %v18304_v55  ;;  %v4719_v35 = vunpack.c.l.b16 %v4637_v28  ;;  %v3358_v49 = vshrl.u32 %v15177_v15, 16  ;;  %v4720_v57 = vunpack.c.l.b16 %v4638_v60  ;;  %vm18307_vm5 = vnez %v18306_v14 }
 0x1bf   : > { %v15273_v20 = vadd.f32 %v15146_v3, %v4517_v62  ;;  %v3936_v3 = vrot.slane %v3934_v13, 4  ;;  %v3696_v32 = vsel %vm18307_vm5, 0, %v3663_v10  ;;  %v3362_v11 = vshll.u32 %v15262_v8, 16 }
 0x1c0   : > { %v15275_v22 = vpop.f32.mrf.mxu1  ;;  %v3475_v29 = vpop.f32.mrf.mxu2  ;;  %v2885_v25 = vrot.slane %v15197_v4, 4  ;;  %v15296_v47 = vpack.c.b16 %v4720_v57, %v4719_v35  ;;  %v3778_v15 = vunpack.c.l.b16 %v3696_v32  ;;  %v3360_v28 = vor.u32 %v3358_v49, %v15222_v5 }
 0x1c1   : > { %v3575_v43 = vadd.f32 %v3475_v29, %v14465_v39  ;;  %v15298_v39 = vor.u32 %v3936_v3, %v3933_v52  ;;  %v3364_v29 = vrot.slane %v3362_v11, 1  ;;  %v3147_v4 = vsel %vm15268_vm13, 0, %v2465_v1  ;;  %v12595_v3 = vld [vmem:[#allocation8 + $0x200] sm:$0xff] }
 0x1c2   : > { %v4423_v62 = vpop.f32.mrf.mxu0  ;;  %v4859_v5 = vshll.u32 %v15296_v47, 16  ;;  %v3111_v10 = vunpack.c.h.b16 %v2885_v25  ;;  %vm18309_vm0 = vsmask.f32 4352  ;;  %v3795_v57 = vpack.c.b16 %v3778_v15, %v3778_v15  ;;  %6431 = vmatpush.bf16.msra.mxu0 %v12595_v3 }
 0x1c3   : > { %5008 = vmatmul.bf16.gmra.mxu1 %v4854_v44  ;;  %v4141_v13 = vadd.f32 %v15179_v31, %v3575_v43  ;;  %v3148_v31 = vsel %vm15281_vm9, 0, %v2466_v54  ;;  %v3110_v44 = vunpack.c.l.b16 %v2885_v25  ;;  %v3938_v49 = vsel %vm18309_vm0, %v15215_v21, %v15298_v39  ;;  %v12608_v54 = vld [vmem:[#allocation10 + $0x28] sm:$0xff] }
 0x1c4   : > { %4462 = vmatmul.bf16.gmra.mxu0 %v12544_v23  ;;  %vm18310_vm14 = vsmask.f32 7424  ;;  %v3229_v11 = vunpack.c.l.b16 %v3147_v4  ;;  %v3230_v23 = vunpack.c.l.b16 %v3148_v31  ;;  %v4861_v1 = vrot.slane %v4859_v5, 1  ;;  %7168 = vmatpush.bf16.msra.mxu1 %v12608_v54 }
 0x1c5   : > { %v4518_v6 = vadd.f32 %v15207_v50, %v4141_v13  ;;  %v4855_v50 = vshrl.u32 %v15209_v27, 16  ;;  %vm3114_vm11 = vcmp.ne.s32.totalorder %v3110_v44, %v13394_v38  ;;  %vm3115_vm7 = vcmp.ne.s32.totalorder %v3111_v10, %v13402_v42 }
 0x1c6   : > { %v15302_v60 = vpop.f32.mrf.mxu3  ;;  %v3940_v21 = vshrl.u32 %v3795_v57, 16  ;;  %v3943_v15 = vshll.u32 %v3795_v57, 16  ;;  %vm15333_vm0 = vmpackc.low %vm3115_vm7, %vm3114_vm11  ;;  %v3366_v38 = vshrl.u32 %v15262_v8, 16  ;;  %vm18316_vm11 = vsmask.f32 4352 }
 0x1c7   : > { %v15309_v35 = vadd.f32 %v15190_v59, %v4518_v6  ;;  %v3365_v59 = vsel %vm18310_vm14, %v3360_v28, %v3364_v29  ;;  %v4857_v25 = vor.u32 %v4855_v50, %v15252_v61  ;;  %v15327_v6 = vpack.c.b16 %v3230_v23, %v3229_v11  ;;  %v4606_v61 = vld [vmem:[#allocation2 + $0x90] sm:$0x1]  ;;  %vm18318_vm7 = vmmov %vm18310_vm14 }
 0x1c8   : > { %v15311_v52 = vpop.f32.mrf.mxu1  ;;  %v3477_v43 = vpop.f32.mrf.mxu2  ;;  %v3942_v3 = vrot.slane %v3940_v21, 3  ;;  %v3945_v50 = vrot.slane %v3943_v15, 4  ;;  %vm18370_vm9 = vsmask.f32 7424 }
 0x1c9   : > { %18308 = vst [vmem:[#allocation101_spill] sm:$0xff] %v15311_v52  ;;  %v3576_v32 = vadd.f32 %v3477_v43, %v14516_v37  ;;  %v4862_v42 = vsel %vm18310_vm14, %v4857_v25, %v4861_v1  ;;  %v3370_v44 = vshll.u32 %v15327_v6, 16  ;;  %v12545_v43 = vld [vmem:[#allocation2 + $0x80] sm:$0xff]  ;;  %vm18322_vm14 = vmmov %vm18318_vm7  ;;  %v18327_v52 = vld [vmem:[#allocation17_spill] sm:$0xff] }
 0x1ca   : > { %v4425_v13 = vpop.f32.mrf.mxu0  ;;  %v3946_v11 = vor.u32 %v3945_v50, %v3942_v3  ;;  %v6064_v3 = vld [vmem:[#allocation2 + $0x1c] sm:$0xf] }
 0x1cb   : > { %v4142_v27 = vadd.f32 %v15224_v18, %v3576_v32  ;;  %4090 = vmatmul.bf16.gmra.mxu3 %v3938_v49  ;;  %v18311_v18 = vmov 0  ;;  %v2467_v32 = vld [vmem:[#allocation2 + $0x88] sm:$0x1]  ;;  %v3372_v25 = vrot.slane %v3370_v44, 1 }
 0x1cc   : > { %v18312_v18 = vsel %vm15333_vm0, 4294967295, %v18311_v18 }
 0x1cd   : > { %3519 = vmatmul.bf16.gmra.mxu2 %v3365_v59  ;;  %v15325_v37 = vadd.f32 %v15249_v7, %v4142_v27  ;;  %18313 = vst [vmem:[#allocation102_spill] sm:$0xff] %v18312_v18  ;;  %v4639_v7 = vsel %vm15333_vm0, 0, %v4606_v61  ;;  %v3368_v27 = vor.u32 %v3366_v38, %v3364_v29  ;;  %v18317_v29 = vld [vmem:[#allocation75_spill] sm:$0xff] }
 0x1ce   : > { %v15329_v28 = vpop.f32.mrf.mxu3  ;;  %v4721_v5 = vunpack.c.l.b16 %v4639_v7 }
 0x1cf   : > { %v3373_v50 = vsel %vm18318_vm7, %v3368_v27, %v3372_v25  ;;  %vm18328_vm7 = vnez %v18327_v52 }
 0x1d0   : > { %v15337_v4 = vpop.f32.mrf.mxu1  ;;  %v3480_v31 = vpop.f32.mrf.mxu2  ;;  %v4738_v59 = vpack.c.b16 %v4721_v5, %v4721_v5 }
 0x1d1   : > { %v3577_v10 = vadd.f32 %v3480_v31, %v14567_v16  ;;  %v3149_v16 = vsel %vm15333_vm0, 0, %v2467_v32  ;;  %v6063_v31 = vld [vmem:[#allocation2 + $0x18] sm:$0xf] }
 0x1d2   : > { %v4428_v57 = vpop.f32.mrf.mxu0  ;;  %v4867_v15 = vshll.u32 %v4738_v59, 16  ;;  %v3231_v7 = vunpack.c.l.b16 %v3149_v16  ;;  %v6096_v44 = vsel %vm14022_vm3, 0, %v6063_v31  ;;  %v6065_v59 = vld [vmem:[#allocation2 + $0x20] sm:$0xf]  ;;  %v5121_v16 = vld [vmem:[#allocation2 + $0x18] sm:$0xf] }
 0x1d3   : > { %5013 = vmatmul.bf16.gmra.mxu1 %v4862_v42  ;;  %v4143_v49 = vadd.f32 %v15264_v12, %v3577_v10  ;;  %v4863_v12 = vshrl.u32 %v15296_v47, 16 }
 0x1d4   : > { %4467 = vmatmul.bf16.gmra.mxu0 %v12545_v43  ;;  %v4869_v38 = vrot.slane %v4867_v15, 1  ;;  %v3248_v32 = vpack.c.b16 %v3231_v7, %v3231_v7  ;;  %v5123_v15 = vld [vmem:[#allocation2 + $0x20] sm:$0xf] }
 0x1d5   : > { %v4520_v23 = vadd.f32 %v4423_v62, %v4143_v49  ;;  %v3947_v62 = vsel %vm18316_vm11, %v15298_v39, %v3946_v11  ;;  %v4865_v10 = vor.u32 %v4863_v12, %v4861_v1  ;;  %v6097_v39 = vsel %vm14036_vm4, 0, %v6064_v3  ;;  %v6066_v11 = vld [vmem:[#allocation2 + $0x24] sm:$0xf]  ;;  %v5122_v12 = vld [vmem:[#allocation2 + $0x1c] sm:$0xf] }
 0x1d6   : > { %v15346_v54 = vpop.f32.mrf.mxu3  ;;  %v6099_v7 = vsel %vm14051_vm6, 0, %v6066_v11  ;;  %vm18335_vm6 = vsmask.f32 7424  ;;  %vm18344_vm4 = vsmask.f32 7424 }
 0x1d7   : > { %v15351_v8 = vadd.f32 %v15275_v22, %v4520_v23  ;;  %v4870_v1 = vsel %vm18322_vm14, %v4865_v10, %v4869_v38  ;;  %v18325_v10 = vld [vmem:[#allocation15_spill] sm:$0xff] }
 0x1d8   : > { %v15353_v21 = vpop.f32.mrf.mxu1  ;;  %v3482_v61 = vpop.f32.mrf.mxu2  ;;  %vm18326_vm11 = vnez %v18325_v10 }
 0x1d9   : > { %18314 = vst [vmem:[#allocation103_spill] sm:$0xff] %v15351_v8  ;;  %v3578_v42 = vadd.f32 %v3482_v61, %v18317_v29  ;;  %v6178_v61 = vunpack.c.l.b16 %v6096_v44  ;;  %v5154_v44 = vsel %vm18328_vm7, 0, %v5121_v16 }
 0x1da   : > { %18315 = vst [vmem:[#allocation104_spill] sm:$0xff] %v15353_v21  ;;  %v15361_v22 = vpop.f32.mrf.mxu0  ;;  %v12546_v21 = vld [vmem:[#allocation2 + $0x88] sm:$0xff]  ;;  %v5236_v14 = vunpack.c.l.b16 %v5154_v44 }
 0x1db   : > { %v4144_v5 = vadd.f32 %v15302_v60, %v3578_v42  ;;  %4095 = vmatmul.bf16.gmra.mxu3 %v3947_v62  ;;  %v5120_v60 = vld [vmem:[#allocation2 + $0x14] sm:$0x8]  ;;  %v6179_v62 = vunpack.c.l.b16 %v6097_v39  ;;  %v18329_v39 = vld [vmem:[#allocation16_spill] sm:$0xff] }
 0x1dc   : > { %v5153_v38 = vsel %vm18326_vm11, 0, %v5120_v60  ;;  %vm18330_vm14 = vnez %v18329_v39 }
 0x1dd   : > { %3524 = vmatmul.bf16.gmra.mxu2 %v3373_v50  ;;  %v15367_v49 = vadd.f32 %v4425_v13, %v4144_v5  ;;  %v6098_v13 = vsel %vm14043_vm15, 0, %v6065_v59  ;;  %v3374_v50 = vshrl.u32 %v15327_v6, 16  ;;  %v3378_v5 = vshll.u32 %v3248_v32, 16  ;;  %v18331_v59 = vld [vmem:[#allocation18_spill] sm:$0xff] }
 0x1de   : > { %v15369_v23 = vpop.f32.mrf.mxu3  ;;  %vm18332_vm15 = vnez %v18331_v59  ;;  %v6181_v6 = vunpack.c.l.b16 %v6099_v7  ;;  %v6211_v32 = vpack.c.b16 %v6179_v62, %v6178_v61 }
 0x1df   : > { %18321 = vst [vmem:[#allocation75_spill] sm:$0xff] %v15367_v49  ;;  %v5155_v49 = vsel %vm18330_vm14, 0, %v5122_v12  ;;  %v5156_v31 = vsel %vm18332_vm15, 0, %v5123_v15  ;;  %v3376_v8 = vor.u32 %v3374_v50, %v3372_v25  ;;  %v3380_v60 = vrot.slane %v3378_v5, 1  ;;  %v12571_v15 = vld [vmem:[#allocation2 + $0x18] sm:$0xff] }
 0x1e0   : > { %v15371_v27 = vpop.f32.mrf.mxu1  ;;  %v3485_v29 = vpop.f32.mrf.mxu2  ;;  %v5237_v16 = vunpack.c.l.b16 %v5155_v49  ;;  %v5238_v43 = vunpack.c.l.b16 %v5156_v31  ;;  %v6229_v31 = vshrl.u32 %v6211_v32, 16 }
 0x1e1   : > { %v3579_v3 = vadd.f32 %v3485_v29, %v14636_v33  ;;  %v6180_v29 = vunpack.c.l.b16 %v6098_v13  ;;  %v3381_v25 = vsel %vm18335_vm6, %v3376_v8, %v3380_v60 }
 0x1e2   : > { %v4433_v33 = vpop.f32.mrf.mxu0 }
 0x1e3   : > { %5018 = vmatmul.bf16.gmra.mxu1 %v4870_v1  ;;  %v4145_v11 = vadd.f32 %v15329_v28, %v3579_v3  ;;  %v5235_v1 = vunpack.c.l.b16 %v5153_v38  ;;  %v15394_v47 = vpack.c.b16 %v6181_v6, %v6180_v29  ;;  %v6231_v28 = vshll.u32 %v6211_v32, 16  ;;  %v12607_v3 = vld [vmem:[#allocation10 + $0x20] sm:$0xff]  ;;  %v5125_v32 = vld [vmem:[#allocation2 + $0x28] sm:$0xf] }
 0x1e4   : > { %4472 = vmatmul.bf16.gmra.mxu0 %v12546_v21  ;;  %v5269_v21 = vpack.c.b16 %v5238_v43, %v5237_v16  ;;  %7169 = vmatpush.bf16.msra.mxu1 %v12607_v3  ;;  %v5124_v6 = vld [vmem:[#allocation2 + $0x24] sm:$0xf] }
 0x1e5   : > { %v4522_v42 = vadd.f32 %v4428_v57, %v4145_v11  ;;  %v5268_v62 = vpack.c.b16 %v5236_v14, %v5235_v1  ;;  %v6068_v14 = vld [vmem:[#allocation2 + $0x2c] sm:$0xf] }
 0x1e6   : > { %v15389_v18 = vpop.f32.mrf.mxu3  ;;  %v5294_v8 = vshrl.u32 %v5269_v21, 16  ;;  %v5297_v43 = vshll.u32 %v5269_v21, 16  ;;  %v18340_v21 = vld [vmem:[#allocation23_spill] sm:$0xff] }
 0x1e7   : > { %v15392_v12 = vadd.f32 %v15337_v4, %v4522_v42  ;;  %v6233_v4 = vrot.slane %v6231_v28, 1  ;;  %v6236_v42 = vshll.u32 %v15394_v47, 16  ;;  %v5286_v5 = vshrl.u32 %v5268_v62, 16 }
 0x1e8   : > { %v15396_v13 = vpop.f32.mrf.mxu1  ;;  %v3487_v61 = vpop.f32.mrf.mxu2  ;;  %v5289_v38 = vshll.u32 %v5268_v62, 16  ;;  %v5296_v62 = vrot.slane %v5294_v8, 3  ;;  %vm18341_vm5 = vnez %v18340_v21 }
 0x1e9   : > { %18333 = vst [vmem:[#allocation105_spill] sm:$0xff] %v15392_v12  ;;  %v3580_v57 = vadd.f32 %v3487_v61, %v14686_v51  ;;  %v6067_v51 = vld [vmem:[#allocation2 + $0x28] sm:$0xf]  ;;  %v6238_v11 = vrot.slane %v6236_v42, 1  ;;  %v5288_v61 = vrot.slane %v5286_v5, 3 }
 0x1ea   : > { %18334 = vst [vmem:[#allocation106_spill] sm:$0xff] %v15396_v13  ;;  %v4435_v49 = vpop.f32.mrf.mxu0  ;;  %v6100_v16 = vsel %vm14106_vm12, 0, %v6067_v51  ;;  %vm18355_vm12 = vsmask.f32 7424 }
 0x1eb   : > { %v4146_v7 = vadd.f32 %v15346_v54, %v3580_v57  ;;  %5886 = vmatmul.bf16.vlgmr.msra.gmra.mxu3 %v12571_v15  ;;  %v6234_v54 = vor.u32 %v6233_v4, %v6229_v31  ;;  %v5291_v57 = vrot.slane %v5289_v38, 4  ;;  %v18342_v31 = vld [vmem:[#allocation25_spill] sm:$0xff]  ;;  %v6182_v13 = vunpack.c.l.b16 %v6100_v16 }
 0x1ec   : > { %vm18343_vm0 = vnez %v18342_v31 }
 0x1ed   : > { %3529 = vmatmul.bf16.gmra.mxu2 %v3381_v25  ;;  %v15403_v50 = vadd.f32 %v15361_v22, %v4146_v7  ;;  %v18338_v22 = vld [vmem:[#allocation53_spill] sm:$0xff]  ;;  %v5299_v25 = vrot.slane %v5297_v43, 4  ;;  %v5157_v7 = vsel %vm18341_vm5, 0, %v5124_v6  ;;  %v5158_v4 = vsel %vm18343_vm0, 0, %v5125_v32  ;;  %v12572_v6 = vld [vmem:[#allocation2 + $0x20] sm:$0xff] }
 0x1ee   : > { %v4061_v44 = vpop.f32.mrf.mxu3  ;;  %vm18339_vm6 = vnez %v18338_v22  ;;  %v6239_v51 = vsel %vm18344_vm4, %v6234_v54, %v6238_v11  ;;  %v5292_v60 = vor.u32 %v5291_v57, %v5288_v61  ;;  %v5239_v38 = vunpack.c.l.b16 %v5157_v7 }
 0x1ef   : > { %18336 = vst [vmem:[#allocation107_spill] sm:$0xff] %v15403_v50  ;;  %v6101_v15 = vsel %vm18339_vm6, 0, %v6068_v14  ;;  %v5240_v8 = vunpack.c.l.b16 %v5158_v4  ;;  %vm18348_vm4 = vsmask.f32 4352  ;;  %v6240_v57 = vshrl.u32 %v15394_v47, 16 }
 0x1f0   : > { %v15405_v29 = vpop.f32.mrf.mxu1  ;;  %v3490_v1 = vpop.f32.mrf.mxu2  ;;  %v6183_v22 = vunpack.c.l.b16 %v6101_v15 }
 0x1f1   : > { %v3581_v28 = vadd.f32 %v3490_v1, %v14736_v26  ;;  %v5300_v26 = vor.u32 %v5299_v25, %v5296_v62  ;;  %v6069_v62 = vld [vmem:[#allocation2 + $0x30] sm:$0xf]  ;;  %v6070_v25 = vld [vmem:[#allocation2 + $0x34] sm:$0xf] }
 0x1f2   : > { %v4438_v3 = vpop.f32.mrf.mxu0  ;;  %v15421_v1 = vpack.c.b16 %v6183_v22, %v6182_v13 }
 0x1f3   : > { %v4147_v42 = vadd.f32 %v15369_v23, %v3581_v28  ;;  %v18347_v28 = vld [vmem:[#allocation84_spill] sm:$0xff]  ;;  %v5301_v16 = vsel %vm18348_vm4, %v5292_v60, %v5300_v26 }
 0x1f4   : > { %6432 = vmatmul.bf16.vlgmr.msra.gmra.mxu0 %v6239_v51 }
 0x1f5   : > { %v4524_v14 = vadd.f32 %v4433_v33, %v4147_v42  ;;  %v5270_v33 = vpack.c.b16 %v5240_v8, %v5239_v38  ;;  %v6242_v42 = vor.u32 %v6240_v57, %v6238_v11  ;;  %v18352_v38 = vld [vmem:[#allocation56_spill] sm:$0xff] }
 0x1f6   : > { %v4063_v5 = vpop.f32.mrf.mxu3  ;;  %vm18353_vm6 = vnez %v18352_v38 }
 0x1f7   : > { %v15419_v43 = vadd.f32 %v15371_v27, %v4524_v14  ;;  %v6244_v27 = vshll.u32 %v15421_v1, 16  ;;  %v5303_v22 = vshrl.u32 %v5270_v33, 16  ;;  %v5306_v7 = vshll.u32 %v5270_v33, 16  ;;  %v18350_v14 = vld [vmem:[#allocation55_spill] sm:$0xff] }
 0x1f8   : > { %v15423_v32 = vpop.f32.mrf.mxu1  ;;  %v3492_v23 = vpop.f32.mrf.mxu2  ;;  %vm18351_vm4 = vnez %v18350_v14  ;;  %v6103_v47 = vsel %vm18353_vm6, 0, %v6070_v25 }
 0x1f9   : > { %18345 = vst [vmem:[#allocation108_spill] sm:$0xff] %v15419_v43  ;;  %v3582_v54 = vadd.f32 %v3492_v23, %v18347_v28  ;;  %v6246_v51 = vrot.slane %v6244_v27, 1  ;;  %v5127_v23 = vld [vmem:[#allocation2 + $0x30] sm:$0xf]  ;;  %v18354_v28 = vld [vmem:[#allocation54_spill] sm:$0xff]  ;;  %v6185_v33 = vunpack.c.l.b16 %v6103_v47  ;;  %v18356_v27 = vld [vmem:[#allocation27_spill] sm:$0xff] }
 0x1fa   : > { %18346 = vst [vmem:[#allocation109_spill] sm:$0xff] %v15423_v32  ;;  %v4440_v61 = vpop.f32.mrf.mxu0  ;;  %vm18357_vm3 = vnez %v18356_v27  ;;  %v18362_v47 = vld [vmem:[#allocation57_spill] sm:$0xff] }
 0x1fb   : > { %v4148_v15 = vadd.f32 %v15389_v18, %v3582_v54  ;;  %5891 = vmatmul.bf16.gmra.mxu3 %v12572_v6  ;;  %v6102_v18 = vsel %vm18351_vm4, 0, %v6069_v62  ;;  %v5126_v6 = vld [vmem:[#allocation2 + $0x2c] sm:$0xf]  ;;  %v6247_v57 = vsel %vm18355_vm12, %v6242_v42, %v6246_v51  ;;  %vm18363_vm12 = vsmask.f32 4352 }
 0x1fc   : > { %v5159_v14 = vsel %vm18357_vm3, 0, %v5126_v6  ;;  %v18358_v62 = vld [vmem:[#allocation28_spill] sm:$0xff] }
 0x1fd   : > { %5509 = vmatmul.bf16.vlgmr.msra.gmra.mxu2 %v5301_v16  ;;  %v15430_v13 = vadd.f32 %v4435_v49, %v4148_v15  ;;  %v5305_v49 = vrot.slane %v5303_v22, 3  ;;  %v5308_v16 = vrot.slane %v5306_v7, 4  ;;  %v6184_v15 = vunpack.c.l.b16 %v6102_v18 }
 0x1fe   : > { %v4066_v4 = vpop.f32.mrf.mxu3  ;;  %vm18359_vm4 = vnez %v18358_v62  ;;  %v5241_v50 = vunpack.c.l.b16 %v5159_v14 }
 0x1ff   : > { %18349 = vst [vmem:[#allocation84_spill] sm:$0xff] %v15430_v13  ;;  %v5160_v38 = vsel %vm18359_vm4, 0, %v5127_v23  ;;  %v5309_v13 = vor.u32 %v5308_v16, %v5305_v49  ;;  %v15444_v22 = vpack.c.b16 %v6185_v33, %v6184_v15  ;;  %v6071_v49 = vld [vmem:[#allocation2 + $0x38] sm:$0xf]  ;;  %v6072_v16 = vld [vmem:[#allocation2 + $0x3c] sm:$0xf] }
 0x200   : > { %v15432_v60 = vpop.f32.mrf.mxu1  ;;  %v3495_v8 = vpop.f32.mrf.mxu2 }
 0x201   : > { %v3583_v54 = vadd.f32 %v3495_v8, %v18354_v28  ;;  %v5242_v8 = vunpack.c.l.b16 %v5160_v38  ;;  %v5310_v28 = vsel %vm18363_vm12, %v5300_v26, %v5309_v13 }
 0x202   : > { %v4443_v11 = vpop.f32.mrf.mxu0 }
 0x203   : > { %v4149_v32 = vadd.f32 %v4061_v44, %v3583_v54  ;;  %v12573_v44 = vld [vmem:[#allocation2 + $0x28] sm:$0xff]  ;;  %v5271_v23 = vpack.c.b16 %v5242_v8, %v5241_v50  ;;  %v12606_v54 = vld [vmem:[#allocation10 + $0x18] sm:$0xff]  ;;  %v5128_v50 = vld [vmem:[#allocation2 + $0x34] sm:$0xf] }
 0x204   : > { %6437 = vmatmul.bf16.gmra.mxu0 %v6247_v57  ;;  %7170 = vmatpush.bf16.msra.mxu1 %v12606_v54 }
 0x205   : > { %v4526_v25 = vadd.f32 %v4438_v3, %v4149_v32  ;;  %v6248_v3 = vshrl.u32 %v15421_v1, 16  ;;  %v6252_v32 = vshll.u32 %v15444_v22, 16  ;;  %v5312_v15 = vshrl.u32 %v5271_v23, 16 }
 0x206   : > { %v4068_v43 = vpop.f32.mrf.mxu3  ;;  %v5315_v33 = vshll.u32 %v5271_v23, 16 }
 0x207   : > { %v15447_v7 = vadd.f32 %v15405_v29, %v4526_v25  ;;  %v6250_v57 = vor.u32 %v6248_v3, %v6246_v51  ;;  %v6254_v25 = vrot.slane %v6252_v32, 1  ;;  %v18371_v51 = vld [vmem:[#allocation30_spill] sm:$0xff] }
 0x208   : > { %v15449_v18 = vpop.f32.mrf.mxu1  ;;  %v3497_v42 = vpop.f32.mrf.mxu2  ;;  %v5317_v54 = vrot.slane %v5315_v33, 4  ;;  %vm18372_vm13 = vnez %v18371_v51  ;;  %v12574_v33 = vld [vmem:[#allocation2 + $0x30] sm:$0xff] }
 0x209   : > { %18360 = vst [vmem:[#allocation54_spill] sm:$0xff] %v15447_v7  ;;  %v3584_v6 = vadd.f32 %v3497_v42, %v18362_v47  ;;  %v5129_v42 = vld [vmem:[#allocation2 + $0x38] sm:$0xf]  ;;  %v18367_v47 = vld [vmem:[#allocation61_spill] sm:$0xff]  ;;  %v6255_v23 = vsel %vm18370_vm9, %v6250_v57, %v6254_v25  ;;  %v5161_v3 = vsel %vm18372_vm13, 0, %v5128_v50 }
 0x20a   : > { %18361 = vst [vmem:[#allocation110_spill] sm:$0xff] %v15449_v18  ;;  %v4445_v38 = vpop.f32.mrf.mxu0  ;;  %vm18368_vm6 = vnez %v18367_v47  ;;  %v5243_v47 = vunpack.c.l.b16 %v5161_v3  ;;  %vm18377_vm9 = vsmask.f32 4352 }
 0x20b   : > { %v4150_v14 = vadd.f32 %v4063_v5, %v3584_v6  ;;  %5896 = vmatmul.bf16.gmra.mxu3 %v12573_v44  ;;  %v18365_v5 = vld [vmem:[#allocation58_spill] sm:$0xff]  ;;  %v18369_v6 = vld [vmem:[#allocation59_spill] sm:$0xff] }
 0x20c   : > { %vm18366_vm12 = vnez %v18365_v5 }
 0x20d   : > { %5514 = vmatmul.bf16.gmra.mxu2 %v5310_v28  ;;  %v15455_v29 = vadd.f32 %v4440_v61, %v4150_v14  ;;  %v6104_v44 = vsel %vm18366_vm12, 0, %v6071_v49  ;;  %v6105_v61 = vsel %vm18368_vm6, 0, %v6072_v16  ;;  %v5314_v14 = vrot.slane %v5312_v15, 3 }
 0x20e   : > { %v4071_v26 = vpop.f32.mrf.mxu3  ;;  %v6186_v12 = vunpack.c.l.b16 %v6104_v44  ;;  %v6187_v5 = vunpack.c.l.b16 %v6105_v61  ;;  %vm18385_vm12 = vsmask.f32 7424 }
 0x20f   : > { %18364 = vst [vmem:[#allocation57_spill] sm:$0xff] %v15455_v29  ;;  %v18373_v29 = vld [vmem:[#allocation32_spill] sm:$0xff]  ;;  %v5318_v34 = vor.u32 %v5317_v54, %v5314_v14  ;;  %v6256_v14 = vshrl.u32 %v15444_v22, 16  ;;  %v6074_v54 = vld [vmem:[#allocation2 + $0x44] sm:$0xf] }
 0x210   : > { %v3500_v8 = vpop.f32.mrf.mxu2  ;;  %v15457_v1 = vpop.f32.mrf.mxu1  ;;  %vm18374_vm4 = vnez %v18373_v29  ;;  %v15472_v57 = vpack.c.b16 %v6187_v5, %v6186_v12  ;;  %v5130_v22 = vld [vmem:[#allocation2 + $0x3c] sm:$0xf] }
 0x211   : > { %v3585_v28 = vadd.f32 %v3500_v8, %v18369_v6  ;;  %v5162_v7 = vsel %vm18374_vm4, 0, %v5129_v42 }
 0x212   : > { %v4448_v18 = vpop.f32.mrf.mxu0  ;;  %v5244_v8 = vunpack.c.l.b16 %v5162_v7  ;;  %v6260_v7 = vshll.u32 %v15472_v57, 16 }
 0x213   : > { %v4151_v32 = vadd.f32 %v4066_v4, %v3585_v28  ;;  %v18376_v4 = vld [vmem:[#allocation62_spill] sm:$0xff]  ;;  %v5319_v28 = vsel %vm18377_vm9, %v5309_v13, %v5318_v34 }
 0x214   : > { %6442 = vmatmul.bf16.gmra.mxu0 %v6255_v23  ;;  %v5272_v42 = vpack.c.b16 %v5244_v8, %v5243_v47  ;;  %v6262_v13 = vrot.slane %v6260_v7, 1  ;;  %v18380_v47 = vld [vmem:[#allocation63_spill] sm:$0xff] }
 0x215   : > { %v4528_v49 = vadd.f32 %v4443_v11, %v4151_v32  ;;  %v6258_v32 = vor.u32 %v6256_v14, %v6254_v25  ;;  %vm18381_vm9 = vnez %v18380_v47  ;;  %v18386_v14 = vld [vmem:[#allocation35_spill] sm:$0xff] }
 0x216   : > { %v4073_v16 = vpop.f32.mrf.mxu3  ;;  %v5321_v5 = vshrl.u32 %v5272_v42, 16  ;;  %v5324_v23 = vshll.u32 %v5272_v42, 16  ;;  %vm18387_vm4 = vnez %v18386_v14 }
 0x217   : > { %v15470_v15 = vadd.f32 %v15432_v60, %v4528_v49  ;;  %v6073_v60 = vld [vmem:[#allocation2 + $0x40] sm:$0xf]  ;;  %v6263_v25 = vsel %vm18385_vm12, %v6258_v32, %v6262_v13  ;;  %v5163_v7 = vsel %vm18387_vm4, 0, %v5130_v22  ;;  %vm18392_vm12 = vsmask.f32 4352 }
 0x218   : > { %v3502_v50 = vpop.f32.mrf.mxu2  ;;  %v15476_v44 = vpop.f32.mrf.mxu1  ;;  %v6106_v49 = vsel %vm18381_vm9, 0, %v6073_v60  ;;  %v18388_v60 = vld [vmem:[#allocation36_spill] sm:$0xff] }
 0x219   : > { %18375 = vst [vmem:[#allocation59_spill] sm:$0xff] %v15470_v15  ;;  %v3586_v6 = vadd.f32 %v3502_v50, %v18376_v4  ;;  %v5131_v50 = vld [vmem:[#allocation2 + $0x40] sm:$0xf]  ;;  %v18384_v4 = vld [vmem:[#allocation65_spill] sm:$0xff]  ;;  %vm18389_vm9 = vnez %v18388_v60 }
 0x21a   : > { %18378 = vst [vmem:[#allocation62_spill] sm:$0xff] %v15476_v44  ;;  %v4450_v61 = vpop.f32.mrf.mxu0  ;;  %v5323_v44 = vrot.slane %v5321_v5, 3 }
 0x21b   : > { %v4152_v11 = vadd.f32 %v4068_v43, %v3586_v6  ;;  %5901 = vmatmul.bf16.gmra.mxu3 %v12574_v33  ;;  %v18382_v43 = vld [vmem:[#allocation64_spill] sm:$0xff] }
 0x21c   : > { %vm18383_vm6 = vnez %v18382_v43  ;;  %v5164_v43 = vsel %vm18389_vm9, 0, %v5131_v50  ;;  %v6264_v50 = vshrl.u32 %v15472_v57, 16  ;;  %v5132_v57 = vld [vmem:[#allocation2 + $0x44] sm:$0xf] }
 0x21d   : > { %5519 = vmatmul.bf16.gmra.mxu2 %v5319_v28  ;;  %v15480_v12 = vadd.f32 %v4445_v38, %v4152_v11  ;;  %v6107_v8 = vsel %vm18383_vm6, 0, %v6074_v54  ;;  %v5326_v28 = vrot.slane %v5324_v23, 4  ;;  %v6188_v38 = vunpack.c.l.b16 %v6106_v49  ;;  %v12575_v49 = vld [vmem:[#allocation2 + $0x38] sm:$0xff] }
 0x21e   : > { %v4076_v3 = vpop.f32.mrf.mxu3  ;;  %v6189_v11 = vunpack.c.l.b16 %v6107_v8  ;;  %v5246_v5 = vunpack.c.l.b16 %v5164_v43  ;;  %v18391_v8 = vld [vmem:[#allocation66_spill] sm:$0xff]  ;;  %v12605_v43 = vld [vmem:[#allocation10 + $0x10] sm:$0xff]  ;;  %vm18399_vm6 = vsmask.f32 7424 }
 0x21f   : > { %18379 = vst [vmem:[#allocation111_spill] sm:$0xff] %v15480_v12  ;;  %v5327_v15 = vor.u32 %v5326_v28, %v5323_v44  ;;  %7171 = vmatpush.bf16.msra.mxu1 %v12605_v43 }
 0x220   : > { %v3505_v33 = vpop.f32.mrf.mxu2  ;;  %v4999_v54 = vpop.f32.mrf.mxu1  ;;  %v15492_v23 = vpack.c.b16 %v6189_v11, %v6188_v38 }
 0x221   : > { %v3587_v6 = vadd.f32 %v3505_v33, %v18384_v4  ;;  %v5245_v33 = vunpack.c.l.b16 %v5163_v7  ;;  %v5328_v22 = vsel %vm18392_vm12, %v5318_v34, %v5327_v15 }
 0x222   : > { %v4453_v42 = vpop.f32.mrf.mxu0 }
 0x223   : > { %v4153_v12 = vadd.f32 %v4071_v26, %v3587_v6  ;;  %v5273_v6 = vpack.c.b16 %v5246_v5, %v5245_v33 }
 0x224   : > { %6447 = vmatmul.bf16.gmra.mxu0 %v6263_v25  ;;  %v6266_v25 = vor.u32 %v6264_v50, %v6262_v13  ;;  %v18400_v13 = vld [vmem:[#allocation39_spill] sm:$0xff] }
 0x225   : > { %v4530_v47 = vadd.f32 %v4448_v18, %v4153_v12  ;;  %v6268_v18 = vshll.u32 %v15492_v23, 16  ;;  %v5330_v38 = vshrl.u32 %v5273_v6, 16  ;;  %v5333_v11 = vshll.u32 %v5273_v6, 16 }
 0x226   : > { %v4078_v29 = vpop.f32.mrf.mxu3  ;;  %vm18401_vm9 = vnez %v18400_v13 }
 0x227   : > { %v15495_v26 = vadd.f32 %v15457_v1, %v4530_v47  ;;  %v6075_v1 = vld [vmem:[#allocation2 + $0x48] sm:$0xf]  ;;  %v6076_v47 = vld [vmem:[#allocation2 + $0x4c] sm:$0xf]  ;;  %v6270_v7 = vrot.slane %v6268_v18, 1  ;;  %v5335_v43 = vrot.slane %v5333_v11, 4 }
 0x228   : > { %v3507_v32 = vpop.f32.mrf.mxu2  ;;  %v15503_v34 = vpop.f32.mrf.mxu1  ;;  %v5165_v50 = vsel %vm18401_vm9, 0, %v5132_v57  ;;  %v12576_v11 = vld [vmem:[#allocation2 + $0x40] sm:$0xff] }
 0x229   : > { %18390 = vst [vmem:[#allocation65_spill] sm:$0xff] %v15495_v26  ;;  %v3588_v4 = vadd.f32 %v3507_v32, %v18391_v8  ;;  %v5133_v32 = vld [vmem:[#allocation2 + $0x48] sm:$0xf]  ;;  %v6271_v6 = vsel %vm18399_vm6, %v6266_v25, %v6270_v7  ;;  %vm18406_vm6 = vsmask.f32 4352 }
 0x22a   : > { %v4455_v12 = vpop.f32.mrf.mxu0  ;;  %18394 = vst [vmem:[#allocation112_spill] sm:$0xff] %v15503_v34  ;;  %v18396_v8 = vld [vmem:[#allocation68_spill] sm:$0xff] }
 0x22b   : > { %v4154_v44 = vadd.f32 %v4073_v16, %v3588_v4  ;;  %5906 = vmatmul.bf16.gmra.mxu3 %v12575_v49  ;;  %v6108_v49 = vsel %vm14430_vm1, 0, %v6075_v1  ;;  %vm18397_vm12 = vnez %v18396_v8  ;;  %v18398_v4 = vld [vmem:[#allocation69_spill] sm:$0xff]  ;;  %v5247_v8 = vunpack.c.l.b16 %v5165_v50 }
 0x22c   : > { %v6190_v60 = vunpack.c.l.b16 %v6108_v49  ;;  %vm18414_vm1 = vsmask.f32 7424 }
 0x22d   : > { %5524 = vmatmul.bf16.gmra.mxu2 %v5328_v22  ;;  %v15501_v28 = vadd.f32 %v4450_v61, %v4154_v44  ;;  %v6109_v61 = vsel %vm18397_vm12, 0, %v6076_v47  ;;  %v5332_v44 = vrot.slane %v5330_v38, 3 }
 0x22e   : > { %v4081_v33 = vpop.f32.mrf.mxu3  ;;  %v6191_v16 = vunpack.c.l.b16 %v6109_v61 }
 0x22f   : > { %18393 = vst [vmem:[#allocation66_spill] sm:$0xff] %v15501_v28  ;;  %v18402_v28 = vld [vmem:[#allocation40_spill] sm:$0xff]  ;;  %v5336_v14 = vor.u32 %v5335_v43, %v5332_v44 }
 0x230   : > { %v3510_v5 = vpop.f32.mrf.mxu2  ;;  %vm18403_vm4 = vnez %v18402_v28  ;;  %v15517_v25 = vpack.c.b16 %v6191_v16, %v6190_v60  ;;  %v5004_v57 = vpop.f32.mrf.mxu1 }
 0x231   : > { %v3589_v22 = vadd.f32 %v3510_v5, %v18398_v4  ;;  %v5166_v26 = vsel %vm18403_vm4, 0, %v5133_v32  ;;  %v5337_v28 = vsel %vm18406_vm6, %v5327_v15, %v5336_v14 }
 0x232   : > { %v4458_v34 = vpop.f32.mrf.mxu0  ;;  %v5248_v5 = vunpack.c.l.b16 %v5166_v26  ;;  %v6276_v44 = vshll.u32 %v15517_v25, 16  ;;  %v6077_v26 = vld [vmem:[#allocation2 + $0x50] sm:$0xf] }
 0x233   : > { %v4155_v18 = vadd.f32 %v4076_v3, %v3589_v22  ;;  %v18405_v3 = vld [vmem:[#allocation70_spill] sm:$0xff] }
 0x234   : > { %6452 = vmatmul.bf16.gmra.mxu0 %v6271_v6  ;;  %v5274_v32 = vpack.c.b16 %v5248_v5, %v5247_v8 }
 0x235   : > { %v4532_v1 = vadd.f32 %v4453_v42, %v4155_v18  ;;  %v6272_v42 = vshrl.u32 %v15492_v23, 16  ;;  %v6278_v18 = vrot.slane %v6276_v44, 1  ;;  %v5134_v23 = vld [vmem:[#allocation2 + $0x4c] sm:$0xf] }
 0x236   : > { %v4083_v47 = vpop.f32.mrf.mxu3  ;;  %v5339_v60 = vshrl.u32 %v5274_v32, 16  ;;  %v5342_v16 = vshll.u32 %v5274_v32, 16  ;;  %v18415_v44 = vld [vmem:[#allocation44_spill] sm:$0xff] }
 0x237   : > { %v15515_v38 = vadd.f32 %v4999_v54, %v4532_v1  ;;  %v6078_v54 = vld [vmem:[#allocation2 + $0x54] sm:$0xf]  ;;  %v6274_v50 = vor.u32 %v6272_v42, %v6270_v7  ;;  %v18408_v1 = vld [vmem:[#allocation71_spill] sm:$0xff] }
 0x238   : > { %v3512_v4 = vpop.f32.mrf.mxu2  ;;  %vm18409_vm6 = vnez %v18408_v1 }
 0x239   : > { %18404 = vst [vmem:[#allocation69_spill] sm:$0xff] %v15515_v38  ;;  %v3590_v22 = vadd.f32 %v3512_v4, %v18405_v3  ;;  %v6110_v15 = vsel %vm18409_vm6, 0, %v6077_v26  ;;  %v18412_v4 = vld [vmem:[#allocation73_spill] sm:$0xff]  ;;  %v6279_v42 = vsel %vm18414_vm1, %v6274_v50, %v6278_v18  ;;  %vm18416_vm6 = vnez %v18415_v44 }
 0x23a   : > { %v4460_v61 = vpop.f32.mrf.mxu0  ;;  %v5167_v26 = vsel %vm18416_vm6, 0, %v5134_v23  ;;  %vm18421_vm1 = vsmask.f32 4352 }
 0x23b   : > { %v4156_v49 = vadd.f32 %v4078_v29, %v3590_v22  ;;  %5911 = vmatmul.bf16.gmra.mxu3 %v12576_v11  ;;  %v18410_v29 = vld [vmem:[#allocation72_spill] sm:$0xff]  ;;  %v5135_v11 = vld [vmem:[#allocation2 + $0x50] sm:$0xf]  ;;  %v5341_v22 = vrot.slane %v5339_v60, 3  ;;  %v5249_v60 = vunpack.c.l.b16 %v5167_v26 }
 0x23c   : > { %vm18411_vm12 = vnez %v18410_v29  ;;  %v18417_v29 = vld [vmem:[#allocation45_spill] sm:$0xff] }
 0x23d   : > { %5529 = vmatmul.bf16.gmra.mxu2 %v5337_v28  ;;  %v15523_v43 = vadd.f32 %v4455_v12, %v4156_v49  ;;  %v6111_v8 = vsel %vm18411_vm12, 0, %v6078_v54  ;;  %v5344_v28 = vrot.slane %v5342_v16, 4  ;;  %v15530_v12 = vpop.f32.mrf.mxu1  ;;  %v6192_v49 = vunpack.c.l.b16 %v6110_v15 }
 0x23e   : > { %v4086_v6 = vpop.f32.mrf.mxu3  ;;  %18413 = vst [vmem:[#allocation73_spill] sm:$0xff] %v15530_v12  ;;  %v6193_v32 = vunpack.c.l.b16 %v6111_v8  ;;  %vm18418_vm12 = vnez %v18417_v29  ;;  %v6280_v29 = vshrl.u32 %v15517_v25, 16 }
 0x23f   : > { %18407 = vst [vmem:[#allocation70_spill] sm:$0xff] %v15523_v43  ;;  %v5168_v54 = vsel %vm18418_vm12, 0, %v5135_v11  ;;  %v5345_v38 = vor.u32 %v5344_v28, %v5341_v22  ;;  %v12604_v22 = vld [vmem:[#allocation10 + $0x8] sm:$0xff]  ;;  %vm18427_vm12 = vsmask.f32 7424 }
 0x240   : > { %v3515_v5 = vpop.f32.mrf.mxu2  ;;  %v5250_v16 = vunpack.c.l.b16 %v5168_v54  ;;  %7172 = vmatpush.bf16.msra.mxu1 %v12604_v22  ;;  %v6282_v26 = vor.u32 %v6280_v29, %v6278_v18 }
 0x241   : > { %v3591_v3 = vadd.f32 %v3515_v5, %v18412_v4  ;;  %v15537_v4 = vpack.c.b16 %v6193_v32, %v6192_v49  ;;  %v5346_v12 = vsel %vm18421_vm1, %v5336_v14, %v5345_v38 }
 0x242   : > { %v4463_v7 = vpop.f32.mrf.mxu0  ;;  %v5275_v23 = vpack.c.b16 %v5250_v16, %v5249_v60  ;;  %v5136_v60 = vld [vmem:[#allocation2 + $0x54] sm:$0xf]  ;;  %v5137_v16 = vld [vmem:[#allocation2 + $0x58] sm:$0xf] }
 0x243   : > { %v4157_v43 = vadd.f32 %v4081_v33, %v3591_v3  ;;  %v12577_v33 = vld [vmem:[#allocation2 + $0x48] sm:$0xff]  ;;  %v18420_v3 = vld [vmem:[#allocation74_spill] sm:$0xff] }
 0x244   : > { %6457 = vmatmul.bf16.gmra.mxu0 %v6279_v42  ;;  %v5348_v32 = vshrl.u32 %v5275_v23, 16  ;;  %v5351_v42 = vshll.u32 %v5275_v23, 16 }
 0x245   : > { %v4534_v1 = vadd.f32 %v4458_v34, %v4157_v43  ;;  %v6284_v34 = vshll.u32 %v15537_v4, 16  ;;  %v5009_v28 = vpop.f32.mrf.mxu1 }
 0x246   : > { %v4088_v5 = vpop.f32.mrf.mxu3 }
 0x247   : > { %v15539_v15 = vadd.f32 %v5004_v57, %v4534_v1  ;;  %v6079_v57 = vld [vmem:[#allocation2 + $0x58] sm:$0xf]  ;;  %v6080_v1 = vld [vmem:[#allocation2 + $0x5c] sm:$0xf]  ;;  %v6286_v14 = vrot.slane %v6284_v34, 1  ;;  %v18430_v34 = vld [vmem:[#allocation20_spill] sm:$0xff] }
 0x248   : > { %v3517_v8 = vpop.f32.mrf.mxu2  ;;  %vm18431_vm4 = vnez %v18430_v34 }
 0x249   : > { %18419 = vst [vmem:[#allocation113_spill] sm:$0xff] %v15539_v15  ;;  %v3592_v50 = vadd.f32 %v3517_v8, %v18420_v3  ;;  %v6287_v22 = vsel %vm18427_vm12, %v6282_v26, %v6286_v14  ;;  %v5170_v15 = vsel %vm18431_vm4, 0, %v5137_v16  ;;  %v12578_v26 = vld [vmem:[#allocation2 + $0x50] sm:$0xff]  ;;  %vm18435_vm12 = vsmask.f32 4352 }
 0x24a   : > { %v4465_v11 = vpop.f32.mrf.mxu0 }
 0x24b   : > { %v4158_v43 = vadd.f32 %v4083_v47, %v3592_v50  ;;  %5916 = vmatmul.bf16.gmra.mxu3 %v12577_v33  ;;  %v6112_v47 = vsel %vm14601_vm10, 0, %v6079_v57  ;;  %v18424_v33 = vld [vmem:[#allocation77_spill] sm:$0xff]  ;;  %v5350_v50 = vrot.slane %v5348_v32, 3  ;;  %vm18442_vm10 = vsmask.f32 7424 }
 0x24c   : > { %vm18425_vm1 = vnez %v18424_v33  ;;  %v6194_v44 = vunpack.c.l.b16 %v6112_v47 }
 0x24d   : > { %5534 = vmatmul.bf16.gmra.mxu2 %v5346_v12  ;;  %v15545_v49 = vadd.f32 %v4460_v61, %v4158_v43  ;;  %v6113_v3 = vsel %vm18425_vm1, 0, %v6080_v1  ;;  %v18426_v12 = vld [vmem:[#allocation78_spill] sm:$0xff]  ;;  %v5353_v43 = vrot.slane %v5351_v42, 4  ;;  %v15557_v1 = vpop.f32.mrf.mxu1  ;;  %v5252_v42 = vunpack.c.l.b16 %v5170_v15 }
 0x24e   : > { %v4091_v54 = vpop.f32.mrf.mxu3  ;;  %v6195_v8 = vunpack.c.l.b16 %v6113_v3  ;;  %18432 = vst [vmem:[#allocation78_spill] sm:$0xff] %v15557_v1 }
 0x24f   : > { %18422 = vst [vmem:[#allocation74_spill] sm:$0xff] %v15545_v49  ;;  %v18428_v49 = vld [vmem:[#allocation19_spill] sm:$0xff]  ;;  %v5354_v13 = vor.u32 %v5353_v43, %v5350_v50 }
 0x250   : > { %v3520_v25 = vpop.f32.mrf.mxu2  ;;  %vm18429_vm6 = vnez %v18428_v49  ;;  %v6219_v33 = vpack.c.b16 %v6195_v8, %v6194_v44  ;;  %v6081_v43 = vld [vmem:[#allocation2 + $0x60] sm:$0xf] }
 0x251   : > { %v3593_v61 = vadd.f32 %v3520_v25, %v18426_v12  ;;  %v5169_v18 = vsel %vm18429_vm6, 0, %v5136_v60  ;;  %v5355_v34 = vsel %vm18435_vm12, %v5345_v38, %v5354_v13 }
 0x252   : > { %v4468_v23 = vpop.f32.mrf.mxu0  ;;  %v5251_v32 = vunpack.c.l.b16 %v5169_v18  ;;  %v6292_v50 = vshll.u32 %v6219_v33, 16 }
 0x253   : > { %v4159_v29 = vadd.f32 %v4086_v6, %v3593_v61  ;;  %v18434_v6 = vld [vmem:[#allocation79_spill] sm:$0xff] }
 0x254   : > { %6462 = vmatmul.bf16.gmra.mxu0 %v6287_v22  ;;  %v5276_v16 = vpack.c.b16 %v5252_v42, %v5251_v32  ;;  %v6082_v22 = vld [vmem:[#allocation2 + $0x64] sm:$0xf]  ;;  %v18439_v32 = vld [vmem:[#allocation81_spill] sm:$0xff] }
 0x255   : > { %v4536_v57 = vadd.f32 %v4463_v7, %v4159_v29  ;;  %v6288_v7 = vshrl.u32 %v15537_v4, 16  ;;  %v6294_v29 = vrot.slane %v6292_v50, 1  ;;  %vm18440_vm12 = vnez %v18439_v32  ;;  %v5138_v4 = vld [vmem:[#allocation2 + $0x5c] sm:$0xf] }
 0x256   : > { %v4093_v25 = vpop.f32.mrf.mxu3  ;;  %v5360_v18 = vshll.u32 %v5276_v16, 16 }
 0x257   : > { %v15559_v12 = vadd.f32 %v5009_v28, %v4536_v57  ;;  %v5357_v28 = vshrl.u32 %v5276_v16, 16  ;;  %v6290_v8 = vor.u32 %v6288_v7, %v6286_v14  ;;  %v18437_v57 = vld [vmem:[#allocation80_spill] sm:$0xff]  ;;  %v18443_v7 = vld [vmem:[#allocation21_spill] sm:$0xff] }
 0x258   : > { %v3522_v60 = vpop.f32.mrf.mxu2  ;;  %vm18438_vm1 = vnez %v18437_v57  ;;  %vm18444_vm4 = vnez %v18443_v7 }
 0x259   : > { %18433 = vst [vmem:[#allocation114_spill] sm:$0xff] %v15559_v12  ;;  %v3594_v61 = vadd.f32 %v3522_v60, %v18434_v6  ;;  %v6114_v38 = vsel %vm18438_vm1, 0, %v6081_v43  ;;  %v5139_v60 = vld [vmem:[#allocation2 + $0x60] sm:$0xf]  ;;  %v18441_v6 = vld [vmem:[#allocation82_spill] sm:$0xff]  ;;  %v6295_v14 = vsel %vm18442_vm10, %v6290_v8, %v6294_v29  ;;  %v5171_v50 = vsel %vm18444_vm4, 0, %v5138_v4 }
 0x25a   : > { %v4470_v3 = vpop.f32.mrf.mxu0  ;;  %v18445_v43 = vld [vmem:[#allocation22_spill] sm:$0xff]  ;;  %v5253_v49 = vunpack.c.l.b16 %v5171_v50  ;;  %vm18449_vm10 = vsmask.f32 4352 }
 0x25b   : > { %v4160_v47 = vadd.f32 %v4088_v5, %v3594_v61  ;;  %5921 = vmatmul.bf16.gmra.mxu3 %v12578_v26  ;;  %v6115_v5 = vsel %vm18440_vm12, 0, %v6082_v22  ;;  %v5014_v26 = vpop.f32.mrf.mxu1  ;;  %vm18446_vm1 = vnez %v18445_v43 }
 0x25c   : > { %v6197_v1 = vunpack.c.l.b16 %v6115_v5  ;;  %v5172_v22 = vsel %vm18446_vm1, 0, %v5139_v60  ;;  %v18448_v5 = vld [vmem:[#allocation83_spill] sm:$0xff]  ;;  %v6296_v60 = vshrl.u32 %v6219_v33, 16  ;;  %vm18457_vm1 = vsmask.f32 7424 }
 0x25d   : > { %5539 = vmatmul.bf16.gmra.mxu2 %v5355_v34  ;;  %v15564_v15 = vadd.f32 %v4465_v11, %v4160_v47  ;;  %v5359_v34 = vrot.slane %v5357_v28, 3  ;;  %v5362_v11 = vrot.slane %v5360_v18, 4  ;;  %v6196_v47 = vunpack.c.l.b16 %v6114_v38 }
 0x25e   : > { %v4096_v44 = vpop.f32.mrf.mxu3 }
 0x25f   : > { %18436 = vst [vmem:[#allocation79_spill] sm:$0xff] %v15564_v15  ;;  %v5363_v57 = vor.u32 %v5362_v11, %v5359_v34  ;;  %v15576_v28 = vpack.c.b16 %v6197_v1, %v6196_v47 }
 0x260   : > { %v3525_v42 = vpop.f32.mrf.mxu2 }
 0x261   : > { %v3595_v61 = vadd.f32 %v3525_v42, %v18441_v6  ;;  %v5254_v42 = vunpack.c.l.b16 %v5172_v22  ;;  %v5364_v6 = vsel %vm18449_vm10, %v5354_v13, %v5363_v57  ;;  %v5140_v13 = vld [vmem:[#allocation2 + $0x64] sm:$0xf] }
 0x262   : > { %v4473_v15 = vpop.f32.mrf.mxu0 }
 0x263   : > { %v4161_v16 = vadd.f32 %v4091_v54, %v3595_v61  ;;  %v12579_v54 = vld [vmem:[#allocation2 + $0x58] sm:$0xff]  ;;  %v15582_v4 = vpop.f32.mrf.mxu1  ;;  %v5277_v61 = vpack.c.b16 %v5254_v42, %v5253_v49  ;;  %v18452_v49 = vld [vmem:[#allocation85_spill] sm:$0xff] }
 0x264   : > { %6467 = vmatmul.bf16.gmra.mxu0 %v6295_v14  ;;  %18450 = vst [vmem:[#allocation83_spill] sm:$0xff] %v15582_v4  ;;  %v6298_v14 = vor.u32 %v6296_v60, %v6294_v29  ;;  %vm18453_vm10 = vnez %v18452_v49  ;;  %v18454_v42 = vld [vmem:[#allocation86_spill] sm:$0xff]  ;;  %v18458_v4 = vld [vmem:[#allocation24_spill] sm:$0xff] }
 0x265   : > { %v4538_v32 = vadd.f32 %v4468_v23, %v4161_v16  ;;  %v6300_v23 = vshll.u32 %v15576_v28, 16  ;;  %v5366_v47 = vshrl.u32 %v5277_v61, 16  ;;  %v5369_v16 = vshll.u32 %v5277_v61, 16 }
 0x266   : > { %v4098_v12 = vpop.f32.mrf.mxu3  ;;  %vm18455_vm12 = vnez %v18454_v42  ;;  %vm18459_vm4 = vnez %v18458_v4  ;;  %v12603_v42 = vld [vmem:[#allocation10] sm:$0xff] }
 0x267   : > { %v15578_v18 = vadd.f32 %v5014_v26, %v4538_v32  ;;  %v6083_v32 = vld [vmem:[#allocation2 + $0x68] sm:$0xf]  ;;  %v6084_v26 = vld [vmem:[#allocation2 + $0x6c] sm:$0xf]  ;;  %v6302_v50 = vrot.slane %v6300_v23, 1  ;;  %v5173_v29 = vsel %vm18459_vm4, 0, %v5140_v13  ;;  %7173 = vmatpush.bf16.msra.mxu1 %v12603_v42 }
 0x268   : > { %v3527_v38 = vpop.f32.mrf.mxu2  ;;  %v6116_v33 = vsel %vm18453_vm10, 0, %v6083_v32  ;;  %v18460_v23 = vld [vmem:[#allocation26_spill] sm:$0xff]  ;;  %vm18472_vm4 = vsmask.f32 7424 }
 0x269   : > { %18447 = vst [vmem:[#allocation82_spill] sm:$0xff] %v15578_v18  ;;  %v3596_v8 = vadd.f32 %v3527_v38, %v18448_v5  ;;  %v5141_v5 = vld [vmem:[#allocation2 + $0x68] sm:$0xf]  ;;  %vm18461_vm6 = vnez %v18460_v23  ;;  %v6198_v18 = vunpack.c.l.b16 %v6116_v33 }
 0x26a   : > { %v4475_v11 = vpop.f32.mrf.mxu0 }
 0x26b   : > { %v4162_v34 = vadd.f32 %v4093_v25, %v3596_v8  ;;  %5926 = vmatmul.bf16.gmra.mxu3 %v12579_v54  ;;  %v6117_v25 = vsel %vm18455_vm12, 0, %v6084_v26  ;;  %v18456_v54 = vld [vmem:[#allocation87_spill] sm:$0xff]  ;;  %v5019_v32 = vpop.f32.mrf.mxu1  ;;  %vm18467_vm12 = vnez %v18231_v41  ;;  %v12634_v41 = vld [vmem:[#allocation10 + $0x78] sm:$0xff] }
 0x26c   : > { %v6199_v49 = vunpack.c.l.b16 %v6117_v25  ;;  %7479 = vmatpush.bf16.msrb.mxu2 %v12634_v41 }
 0x26d   : > { %5544 = vmatmul.bf16.gmra.mxu2 %v5364_v6  ;;  %v15585_v1 = vadd.f32 %v4470_v3, %v4162_v34  ;;  %v5368_v3 = vrot.slane %v5366_v47, 3  ;;  %v5371_v6 = vrot.slane %v5369_v16, 4  ;;  %v6303_v34 = vsel %vm18457_vm1, %v6298_v14, %v6302_v50  ;;  %v12580_v14 = vld [vmem:[#allocation2 + $0x60] sm:$0xff] }
 0x26e   : > { %v5887_v22 = vpop.f32.mrf.mxu3  ;;  %v5255_v47 = vunpack.c.l.b16 %v5173_v29  ;;  %v15599_v13 = vpack.c.b16 %v6199_v49, %v6198_v18  ;;  %vm18464_vm1 = vsmask.f32 4352  ;;  %v5142_v18 = vld [vmem:[#allocation2 + $0x6c] sm:$0xf]  ;;  %v5143_v49 = vld [vmem:[#allocation2 + $0x70] sm:$0xf] }
 0x26f   : > { %18451 = vst [vmem:[#allocation115_spill] sm:$0xff] %v15585_v1  ;;  %v5174_v1 = vsel %vm18461_vm6, 0, %v5141_v5  ;;  %v5372_v26 = vor.u32 %v5371_v6, %v5368_v3  ;;  %v6304_v3 = vshrl.u32 %v15576_v28, 16 }
 0x270   : > { %v3530_v38 = vpop.f32.mrf.mxu2  ;;  %v5256_v16 = vunpack.c.l.b16 %v5174_v1  ;;  %v6308_v6 = vshll.u32 %v15599_v13, 16  ;;  %v6085_v1 = vld [vmem:[#allocation2 + $0x70] sm:$0xf] }
 0x271   : > { %v3597_v8 = vadd.f32 %v3530_v38, %v18456_v54  ;;  %v5373_v5 = vsel %vm18464_vm1, %v5363_v57, %v5372_v26  ;;  %v6306_v57 = vor.u32 %v6304_v3, %v6302_v50  ;;  %vm18466_vm1 = vnez %v18228_v58  ;;  %v12642_v58 = vld [vmem:[#allocation10 + $0xb8] sm:$0xff] }
 0x272   : > { %v6433_v60 = vpop.f32.mrf.mxu0  ;;  %v5278_v33 = vpack.c.b16 %v5256_v16, %v5255_v47  ;;  %v18468_v47 = vld [vmem:[#allocation29_spill] sm:$0xff]  ;;  %8025 = vmatpush.bf16.msrb.mxu3 %v12642_v58 }
 0x273   : > { %v4163_v61 = vadd.f32 %v4096_v44, %v3597_v8  ;;  %v18463_v8 = vld [vmem:[#allocation88_spill] sm:$0xff]  ;;  %vm18469_vm10 = vnez %v18468_v47 }
 0x274   : > { %6472 = vmatmul.bf16.gmra.mxu0 %v6303_v34  ;;  %v5375_v34 = vshrl.u32 %v5278_v33, 16  ;;  %v5378_v29 = vshll.u32 %v5278_v33, 16  ;;  %v5175_v16 = vsel %vm18469_vm10, 0, %v5142_v18  ;;  %vm18481_vm10 = vsmask.f32 7424 }
 0x275   : > { %v4540_v43 = vadd.f32 %v4473_v15, %v4163_v61 }
 0x276   : > { %v5889_v38 = vpop.f32.mrf.mxu3 }
 0x277   : > { %v15597_v54 = vadd.f32 %v5019_v32, %v4540_v43  ;;  %v6086_v43 = vld [vmem:[#allocation2 + $0x74] sm:$0xf]  ;;  %v6310_v32 = vrot.slane %v6308_v6, 1  ;;  %v5257_v6 = vunpack.c.l.b16 %v5175_v16  ;;  %v6312_v16 = vshrl.u32 %v15599_v13, 16 }
 0x278   : > { %v3532_v44 = vpop.f32.mrf.mxu2  ;;  %v6119_v28 = vsel %vm18467_vm12, 0, %v6086_v43  ;;  %vm18475_vm12 = vnez %v17998_v48 }
 0x279   : > { %18462 = vst [vmem:[#allocation87_spill] sm:$0xff] %v15597_v54  ;;  %v3598_v23 = vadd.f32 %v3532_v44, %v18463_v8  ;;  %v5377_v8 = vrot.slane %v5375_v34, 3  ;;  %v6201_v50 = vunpack.c.l.b16 %v6119_v28  ;;  %v6311_v3 = vsel %vm18472_vm4, %v6306_v57, %v6310_v32  ;;  %v12581_v34 = vld [vmem:[#allocation2 + $0x68] sm:$0xff]  ;;  %v15630_v57 = vld [vmem:[%s17587_s2] ss:$0 sm:$0xff]  ;;  %v12650_v28 = vld [vmem:[#allocation10 + $0xf8] sm:$0xff] }
 0x27a   : > { %v6435_v15 = vpop.f32.mrf.mxu0  ;;  %vm18473_vm4 = vsmask.f32 4352  ;;  %8591 = vmatpush.bf16.msrb.mxu0 %v12650_v28  ;;  %v6314_v13 = vor.u32 %v6312_v16, %v6310_v32 }
 0x27b   : > { %v4164_v25 = vadd.f32 %v4098_v12, %v3598_v23  ;;  %5931 = vmatmul.bf16.gmra.mxu3 %v12580_v14  ;;  %v6118_v12 = vsel %vm18466_vm1, 0, %v6085_v1 }
 0x27c   : > { %v6200_v33 = vunpack.c.l.b16 %v6118_v12 }
 0x27d   : > { %5549 = vmatmul.bf16.gmra.mxu2 %v5373_v5  ;;  %v15605_v42 = vadd.f32 %v4475_v11, %v4164_v25  ;;  %v18470_v11 = vld [vmem:[#allocation31_spill] sm:$0xff]  ;;  %v5380_v5 = vrot.slane %v5378_v29, 4 }
 0x27e   : > { %v15607_v61 = vpop.f32.mrf.mxu3  ;;  %vm18471_vm6 = vnez %v18470_v11 }
 0x27f   : > { %18465 = vst [vmem:[#allocation88_spill] sm:$0xff] %v15605_v42  ;;  %v5176_v14 = vsel %vm18471_vm6, 0, %v5143_v49  ;;  %v15621_v42 = vor.u32 %v5380_v5, %v5377_v8  ;;  %v15625_v49 = vpack.c.b16 %v6201_v50, %v6200_v33  ;;  %v6785_v8 = vld [vmem:[#allocation3 + $0x4] sm:$0x8]  ;;  %v6786_v5 = vld [vmem:[#allocation3 + $0x8] sm:$0xf] }
 0x280   : > { %v5510_v23 = vpop.f32.mrf.mxu2  ;;  %v5258_v1 = vunpack.c.l.b16 %v5176_v14  ;;  %v5144_v33 = vld [vmem:[#allocation2 + $0x74] sm:$0xf] }
 0x281   : > { %v5622_v44 = vadd.f32 %v5510_v23, %v14936_v40  ;;  %v5382_v23 = vsel %vm18473_vm4, %v5372_v26, %v15621_v42  ;;  %v6316_v14 = vshll.u32 %v15625_v49, 16  ;;  %v6087_v26 = vld [vmem:[#allocation2 + $0x78] sm:$0xf]  ;;  %vm18474_vm4 = vnez %v17992_v56 }
 0x282   : > { %v15618_v25 = vpop.f32.mrf.mxu0  ;;  %v5279_v40 = vpack.c.b16 %v5258_v1, %v5257_v6  ;;  %v6088_v6 = vld [vmem:[#allocation2 + $0x7c] sm:$0xf] }
 0x283   : > { %v5999_v43 = vadd.f32 %v5887_v22, %v5622_v44  ;;  %v15640_v1 = vrot.slane %v6316_v14, 1 }
 0x284   : > { %6477 = vmatmul.bf16.gmra.mxu0 %v6311_v3  ;;  %v5384_v58 = vshrl.u32 %v5279_v40, 16  ;;  %v5145_v3 = vld [vmem:[#allocation2 + $0x78] sm:$0xf] }
 0x285   : > { %v6545_v12 = vadd.f32 %v6433_v60, %v5999_v43  ;;  %v5387_v60 = vshll.u32 %v5279_v40, 16  ;;  %v6818_v40 = vsel %vm18326_vm11, 0, %v6785_v8  ;;  %v5178_v32 = vsel %vm18475_vm12, 0, %v5145_v3  ;;  %v18480_v8 = vld [vmem:[#allocation93_spill] sm:$0xff] }
 0x286   : > { %v15623_v18 = vpop.f32.mrf.mxu3  ;;  %v5260_v3 = vunpack.c.l.b16 %v5178_v32  ;;  %vm18489_vm12 = vnez %v18270_v9 }
 0x287   : > { %v5389_v54 = vrot.slane %v5387_v60, 4 }
 0x288   : > { %v5512_v29 = vpop.f32.mrf.mxu2 }
 0x289   : > { %v5623_v22 = vadd.f32 %v5512_v29, %v14999_v0  ;;  %v6621_v0 = vadd.f32 %v15630_v57, %v6545_v12  ;;  %v5386_v12 = vrot.slane %v5384_v58, 3 }
 0x28a   : > { %v15637_v41 = vpop.f32.mrf.mxu0 }
 0x28b   : > { %v6000_v44 = vadd.f32 %v5889_v38, %v5623_v22  ;;  %5936 = vmatmul.bf16.gmra.mxu3 %v12581_v34  ;;  %v6819_v34 = vsel %vm18328_vm7, 0, %v6786_v5  ;;  %v18476_v22 = vld [vmem:[#allocation91_spill] sm:$0xff]  ;;  %v6629_v14 = vmax.f32 %v6621_v0, 0.0  ;;  %v6319_v5 = vsel %vm18481_vm10, %v6314_v13, %v15640_v1  ;;  %v12674_v0 = vld [vmem:[#allocation10 + $0x138] sm:$0xff] }
 0x28c   : > { %vm18477_vm1 = vnez %v18476_v22  ;;  %v6901_v56 = vunpack.c.l.b16 %v6819_v34  ;;  %8968 = vmatpush.bf16.msrb.mxu1 %v12674_v0  ;;  %v12582_v34 = vld [vmem:[#allocation2 + $0x70] sm:$0xff]  ;;  %vm18483_vm10 = vsmask.f32 4352 }
 0x28d   : > { %v6546_v50 = vadd.f32 %v6435_v15, %v6000_v44  ;;  %5554 = vmatmul.bf16.gmra.mxu2 %v5382_v23  ;;  %v5177_v15 = vsel %vm18474_vm4, 0, %v5144_v33  ;;  %v6120_v28 = vsel %vm18477_vm1, 0, %v6087_v26  ;;  %v18478_v23 = vld [vmem:[#allocation92_spill] sm:$0xff]  ;;  %v6900_v33 = vunpack.c.l.b16 %v6818_v40 }
 0x28e   : > { %v15642_v38 = vpop.f32.mrf.mxu3  ;;  %vm18479_vm6 = vnez %v18478_v23  ;;  %v5259_v58 = vunpack.c.l.b16 %v5177_v15  ;;  %v6202_v22 = vunpack.c.l.b16 %v6120_v28  ;;  %v18482_v28 = vld [vmem:[#allocation95_spill] sm:$0xff]  ;;  %vm18488_vm1 = vnez %v18266_v2 }
 0x28f   : > { %v6622_v43 = vadd.f32 %v15630_v57, %v6546_v50  ;;  %v6121_v16 = vsel %vm18479_vm6, 0, %v6088_v6  ;;  %v6933_v13 = vpack.c.b16 %v6901_v56, %v6900_v33  ;;  %v6320_v56 = vshrl.u32 %v15625_v49, 16  ;;  %v5146_v33 = vld [vmem:[#allocation2 + $0x7c] sm:$0xf] }
 0x290   : > { %v5515_v29 = vpop.f32.mrf.mxu2  ;;  %v6203_v26 = vunpack.c.l.b16 %v6121_v16  ;;  %v5280_v40 = vpack.c.b16 %v5260_v3, %v5259_v58  ;;  %v5147_v58 = vld [vmem:[#allocation2 + $0x80] sm:$0xf] }
 0x291   : > { %v6630_v44 = vmax.f32 %v6622_v43, 0.0  ;;  %v5624_v50 = vadd.f32 %v5515_v29, %v18480_v8  ;;  %v15663_v43 = vor.u32 %v5389_v54, %v5386_v12  ;;  %v6787_v29 = vld [vmem:[#allocation3 + $0xc] sm:$0xf]  ;;  %v6951_v12 = vshrl.u32 %v6933_v13, 16 }
 0x292   : > { %v15660_v48 = vpop.f32.mrf.mxu0  ;;  %v15667_v15 = vpack.c.b16 %v6203_v26, %v6202_v22  ;;  %v6954_v16 = vshll.u32 %v6933_v13, 16  ;;  %v5393_v8 = vshrl.u32 %v5280_v40, 16  ;;  %v5396_v26 = vshll.u32 %v5280_v40, 16 }
 0x293   : > { %v12807_v11 = vpack.c.bf16 %v6630_v44, %v6629_v14  ;;  %v6001_v6 = vadd.f32 %v15607_v61, %v5624_v50  ;;  %v6820_v61 = vsel %vm18330_vm14, 0, %v6787_v29  ;;  %v5391_v54 = vsel %vm18483_vm10, %v15621_v42, %v15663_v43 }
 0x294   : > { %6482 = vmatmul.bf16.gmra.mxu0 %v6319_v5  ;;  %v6902_v5 = vunpack.c.l.b16 %v6820_v61  ;;  %v6953_v29 = vrot.slane %v6951_v12, 3  ;;  %v6956_v13 = vrot.slane %v6954_v16, 4  ;;  %v18486_v61 = vld [vmem:[#allocation38_spill] sm:$0xff] }
 0x295   : > { %12900 = vst [vmem:[#allocation3 + $0x10] sm:$0xff] %v12807_v11   ;;  %v6547_v32 = vadd.f32 %v15618_v25, %v6001_v6  ;;  %v6324_v25 = vshll.u32 %v15667_v15, 16  ;;  %v6090_v6 = vld [vmem:[#allocation2 + $0x84] sm:$0xf]  ;;  %vm18487_vm6 = vnez %v18486_v61 }
 0x296   : > { %v15665_v60 = vpop.f32.mrf.mxu3 }
 0x297   : > { %v6623_v3 = vadd.f32 %v15630_v57, %v6547_v32  ;;  %v18484_v32 = vld [vmem:[#allocation37_spill] sm:$0xff] }
 0x298   : > { %v5517_v14 = vpop.f32.mrf.mxu2  ;;  %vm18485_vm10 = vnez %v18484_v32 }
 0x299   : > { %v5625_v11 = vadd.f32 %v5517_v14, %v18482_v28  ;;  %v6631_v16 = vmax.f32 %v6623_v3, 0.0 }
 0x29a   : > { %v15678_v22 = vpop.f32.mrf.mxu0 }
 0x29b   : > { %v6002_v44 = vadd.f32 %v15623_v18, %v5625_v11  ;;  %5941 = vmatmul.bf16.gmra.mxu3 %v12582_v34  ;;  %v6089_v18 = vld [vmem:[#allocation2 + $0x80] sm:$0xf]  ;;  %v6322_v34 = vor.u32 %v6320_v56, %v15640_v1  ;;  %v15689_v11 = vrot.slane %v6324_v25, 1  ;;  %v6123_v1 = vsel %vm18489_vm12, 0, %v6090_v6 }
 0x29c   : > { %v6788_v50 = vld [vmem:[#allocation3 + $0x10] sm:$0xf]  ;;  %v6122_v12 = vsel %vm18488_vm1, 0, %v6089_v18  ;;  %v6205_v18 = vunpack.c.l.b16 %v6123_v1  ;;  %vm18501_vm1 = vnez %v18304_v55 }
 0x29d   : > { %v6548_v42 = vadd.f32 %v15637_v41, %v6002_v44  ;;  %5559 = vmatmul.bf16.gmra.mxu2 %v5391_v54  ;;  %v6821_v49 = vsel %vm18332_vm15, 0, %v6788_v50  ;;  %v5179_v41 = vsel %vm18485_vm10, 0, %v5146_v33  ;;  %v5180_v54 = vsel %vm18487_vm6, 0, %v5147_v58 }
 0x29e   : > { %v6903_v0 = vunpack.c.l.b16 %v6821_v49  ;;  %v15686_v14 = vpop.f32.mrf.mxu3  ;;  %v5395_v50 = vrot.slane %v5393_v8, 3  ;;  %v5261_v33 = vunpack.c.l.b16 %v5179_v41  ;;  %v5262_v32 = vunpack.c.l.b16 %v5180_v54 }
 0x29f   : > { %v6624_v28 = vadd.f32 %v15630_v57, %v6548_v42  ;;  %v5398_v42 = vrot.slane %v5396_v26, 4  ;;  %vm18490_vm6 = vsmask.f32 7424  ;;  %v12641_v26 = vld [vmem:[#allocation10 + $0xb0] sm:$0xff] }
 0x2a0   : > { %v5520_v40 = vpop.f32.mrf.mxu2  ;;  %v6934_v44 = vpack.c.b16 %v6903_v0, %v6902_v5  ;;  %v6327_v8 = vsel %vm18490_vm6, %v6322_v34, %v15689_v11  ;;  %v6204_v5 = vunpack.c.l.b16 %v6122_v12  ;;  %v6957_v0 = vor.u32 %v6956_v13, %v6953_v29  ;;  %8026 = vmatpush.bf16.msrb.mxu3 %v12641_v26 }
 0x2a1   : > { %v6632_v56 = vmax.f32 %v6624_v28, 0.0  ;;  %v5626_v25 = vadd.f32 %v5520_v40, %v15144_v24  ;;  %v12633_v24 = vld [vmem:[#allocation10 + $0x70] sm:$0xff]  ;;  %v15707_v41 = vor.u32 %v5398_v42, %v5395_v50  ;;  %v5281_v40 = vpack.c.b16 %v5262_v32, %v5261_v33  ;;  %v6091_v42 = vld [vmem:[#allocation2 + $0x88] sm:$0xf] }
 0x2a2   : > { %v6959_v49 = vshrl.u32 %v6934_v44, 16  ;;  %v6962_v23 = vshll.u32 %v6934_v44, 16  ;;  %v15700_v58 = vpop.f32.mrf.mxu0  ;;  %v12583_v44 = vld [vmem:[#allocation2 + $0x78] sm:$0xff]  ;;  %v15711_v34 = vpack.c.b16 %v6205_v18, %v6204_v5  ;;  %7480 = vmatpush.bf16.msrb.mxu2 %v12633_v24  ;;  %vm18491_vm6 = vsmask.f32 4352 }
 0x2a3   : > { %v12812_v61 = vpack.c.bf16 %v6632_v56, %v6631_v16  ;;  %v6003_v3 = vadd.f32 %v15642_v38, %v5626_v25  ;;  %v6789_v38 = vld [vmem:[#allocation3 + $0x14] sm:$0xf]  ;;  %vm18492_vm12 = vmmov %vm18491_vm6  ;;  %v5402_v50 = vshrl.u32 %v5281_v40, 16  ;;  %v6328_v12 = vshrl.u32 %v15667_v15, 16  ;;  %v5148_v15 = vld [vmem:[#allocation2 + $0x84] sm:$0xf] }
 0x2a4   : > { %v6961_v9 = vrot.slane %v6959_v49, 3  ;;  %v6964_v6 = vrot.slane %v6962_v23, 4  ;;  %6487 = vmatmul.bf16.gmra.mxu0 %v6327_v8  ;;  %v5400_v32 = vsel %vm18492_vm12, %v15663_v43, %v15707_v41  ;;  %v6822_v56 = vsel %vm18341_vm5, 0, %v6789_v38  ;;  %v6092_v49 = vld [vmem:[#allocation2 + $0x8c] sm:$0xf] }
 0x2a5   : > { %12901 = vst [vmem:[#allocation3 + $0x18] sm:$0xff] %v12812_v61   ;;  %v6549_v13 = vadd.f32 %v15660_v48, %v6003_v3  ;;  %v12649_v61 = vld [vmem:[#allocation10 + $0xf0] sm:$0xff]  ;;  %v5405_v25 = vshll.u32 %v5281_v40, 16  ;;  %v6332_v48 = vshll.u32 %v15711_v34, 16  ;;  %v6904_v8 = vunpack.c.l.b16 %v6822_v56 }
 0x2a6   : > { %v15705_v28 = vor.u32 %v6964_v6, %v6961_v9  ;;  %v15709_v54 = vpop.f32.mrf.mxu3  ;;  %8592 = vmatpush.bf16.msrb.mxu0 %v12649_v61  ;;  %v6330_v18 = vor.u32 %v6328_v12, %v15689_v11  ;;  %v5149_v6 = vld [vmem:[#allocation2 + $0x88] sm:$0xf]  ;;  %v6124_v26 = vsel %vm15172_vm8, 0, %v6091_v42  ;;  %vm18493_vm12 = vnez %v18273_v30  ;;  %v18494_v61 = vld [vmem:[#allocation42_spill] sm:$0xff] }
 0x2a7   : > { %v6625_v43 = vadd.f32 %v15630_v57, %v6549_v13  ;;  %v6334_v24 = vrot.slane %v6332_v48, 1  ;;  %v5181_v38 = vsel %vm18493_vm12, 0, %v5148_v15  ;;  %v6206_v56 = vunpack.c.l.b16 %v6124_v26 }
 0x2a8   : > { %v5522_v29 = vpop.f32.mrf.mxu2  ;;  %v6966_v23 = vsel %vm18491_vm6, %v6957_v0, %v15705_v28  ;;  %vm18495_vm6 = vnez %v18494_v61  ;;  %vm18503_vm12 = vnez %v18288_v17 }
 0x2a9   : > { %v5627_v9 = vadd.f32 %v5522_v29, %v15188_v46  ;;  %7174 = vmatmul.bf16.vlgmr.msra.gmra.mxu1 %v6966_v23  ;;  %v5404_v29 = vrot.slane %v5402_v50, 3  ;;  %v5407_v23 = vrot.slane %v5405_v25, 4  ;;  %v6633_v11 = vmax.f32 %v6625_v43, 0.0 }
 0x2aa   : > { %v15722_v16 = vpop.f32.mrf.mxu0 }
 0x2ab   : > { %v6004_v1 = vadd.f32 %v15665_v60, %v5627_v9  ;;  %5946 = vmatmul.bf16.gmra.mxu3 %v12583_v44 }
 0x2ac   : > { %v6790_v46 = vld [vmem:[#allocation3 + $0x18] sm:$0xf] }
 0x2ad   : > { %v6550_v33 = vadd.f32 %v15678_v22, %v6004_v1  ;;  %5564 = vmatmul.bf16.gmra.mxu2 %v5400_v32  ;;  %v6823_v60 = vsel %vm18343_vm0, 0, %v6790_v46  ;;  %v6125_v22 = vsel %vm15183_vm2, 0, %v6092_v49  ;;  %v5182_v32 = vsel %vm18495_vm6, 0, %v5149_v6 }
 0x2ae   : > { %v6905_v5 = vunpack.c.l.b16 %v6823_v60  ;;  %v15732_v0 = vpop.f32.mrf.mxu3  ;;  %v6207_v48 = vunpack.c.l.b16 %v6125_v22  ;;  %vm18496_vm2 = vsmask.f32 7424  ;;  %v5264_v60 = vunpack.c.l.b16 %v5182_v32  ;;  %v6791_v22 = vld [vmem:[#allocation3 + $0x1c] sm:$0xf] }
 0x2af   : > { %v6626_v3 = vadd.f32 %v15630_v57, %v6550_v33  ;;  %v6335_v50 = vsel %vm18496_vm2, %v6330_v18, %v6334_v24  ;;  %v5263_v33 = vunpack.c.l.b16 %v5181_v38  ;;  %vm18497_vm2 = vsmask.f32 4352 }
 0x2b0   : > { %v5525_v40 = vpop.f32.mrf.mxu2  ;;  %v6935_v44 = vpack.c.b16 %v6905_v5, %v6904_v8  ;;  %v15750_v8 = vor.u32 %v5407_v23, %v5404_v29  ;;  %v15754_v6 = vpack.c.b16 %v6207_v48, %v6206_v56  ;;  %vm18498_vm8 = vmmov %vm18497_vm2  ;;  %v6336_v23 = vshrl.u32 %v15711_v34, 16 }
 0x2b1   : > { %v6634_v13 = vmax.f32 %v6626_v3, 0.0  ;;  %v5628_v9 = vadd.f32 %v5525_v40, %v15231_v45  ;;  %v12673_v45 = vld [vmem:[#allocation10 + $0x130] sm:$0xff]  ;;  %v12584_v3 = vld [vmem:[#allocation2 + $0x80] sm:$0xff]  ;;  %v5282_v40 = vpack.c.b16 %v5264_v60, %v5263_v33  ;;  %vm18502_vm6 = vsmask.f32 7424 }
 0x2b2   : > { %v6968_v12 = vshrl.u32 %v6935_v44, 16  ;;  %v6971_v1 = vshll.u32 %v6935_v44, 16  ;;  %v15744_v42 = vpop.f32.mrf.mxu0  ;;  %8969 = vmatpush.bf16.msrb.mxu1 %v12673_v45  ;;  %v5409_v29 = vsel %vm18498_vm8, %v15707_v41, %v15750_v8  ;;  %v6340_v38 = vshll.u32 %v15754_v6, 16 }
 0x2b3   : > { %v12817_v46 = vpack.c.bf16 %v6634_v13, %v6633_v11  ;;  %v6005_v43 = vadd.f32 %v15686_v14, %v5628_v9  ;;  %v5411_v9 = vshrl.u32 %v5282_v40, 16  ;;  %vm18499_vm8 = vnez %v18358_v62 }
 0x2b4   : > { %v6970_v25 = vrot.slane %v6968_v12, 3  ;;  %v6973_v49 = vrot.slane %v6971_v1, 4  ;;  %6492 = vmatmul.bf16.gmra.mxu0 %v6335_v50  ;;  %v5414_v34 = vshll.u32 %v5282_v40, 16  ;;  %v6093_v12 = vld [vmem:[#allocation2 + $0x90] sm:$0xf]  ;;  %v6338_v48 = vor.u32 %v6336_v23, %v6334_v24 }
 0x2b5   : > { %12902 = vst [vmem:[#allocation3 + $0x20] sm:$0xff] %v12817_v46   ;;  %v6551_v14 = vadd.f32 %v15700_v58, %v6005_v43  ;;  %v6094_v1 = vld [vmem:[#allocation2 + $0x94] sm:$0xf]  ;;  %v15775_v46 = vrot.slane %v6340_v38, 1  ;;  %v5151_v43 = vld [vmem:[#allocation2 + $0x90] sm:$0xf] }
 0x2b6   : > { %v15748_v15 = vor.u32 %v6973_v49, %v6970_v25  ;;  %v15752_v5 = vpop.f32.mrf.mxu3  ;;  %v5150_v49 = vld [vmem:[#allocation2 + $0x8c] sm:$0xf] }
 0x2b8   : > { %v5527_v18 = vpop.f32.mrf.mxu2  ;;  %v6975_v26 = vsel %vm18497_vm2, %v15705_v28, %v15748_v15  ;;  %v6824_v28 = vsel %vm18357_vm3, 0, %v6791_v22  ;;  %vm18500_vm2 = vnez %v18300_v36  ;;  %v5416_v22 = vrot.slane %v5414_v34, 4 }
 0x2b9   : > { %v5629_v44 = vadd.f32 %v5527_v18, %v15273_v20  ;;  %7179 = vmatmul.bf16.gmra.mxu1 %v6975_v26  ;;  %v6627_v20 = vadd.f32 %v15630_v57, %v6551_v14  ;;  %v6126_v45 = vsel %vm18500_vm2, 0, %v6093_v12  ;;  %vm18504_vm2 = vnez %v18290_v53 }
 0x2ba   : > { %v15767_v13 = vpop.f32.mrf.mxu0  ;;  %v5184_v38 = vsel %vm18504_vm2, 0, %v5151_v43  ;;  %v12631_v43 = vld [vmem:[#allocation10 + $0x60] sm:$0xff] }
 0x2bb   : > { %v6006_v11 = vadd.f32 %v15709_v54, %v5629_v44  ;;  %5951 = vmatmul.bf16.gmra.mxu3 %v12584_v3  ;;  %v6906_v54 = vunpack.c.l.b16 %v6824_v28  ;;  %v6127_v3 = vsel %vm18501_vm1, 0, %v6094_v1  ;;  %v6635_v18 = vmax.f32 %v6627_v20, 0.0  ;;  %v12640_v20 = vld [vmem:[#allocation10 + $0xa8] sm:$0xff] }
 0x2bc   : > { %v6792_v58 = vld [vmem:[#allocation3 + $0x20] sm:$0xf]  ;;  %v5183_v44 = vsel %vm18503_vm12, 0, %v5150_v49  ;;  %v6209_v28 = vunpack.c.l.b16 %v6127_v3  ;;  %v6793_v49 = vld [vmem:[#allocation3 + $0x24] sm:$0xf]  ;;  %8027 = vmatpush.bf16.msrb.mxu3 %v12640_v20 }
 0x2bd   : > { %v6552_v32 = vadd.f32 %v15722_v16, %v6006_v11  ;;  %5569 = vmatmul.bf16.gmra.mxu2 %v5409_v29  ;;  %v6825_v41 = vsel %vm18499_vm8, 0, %v6792_v58  ;;  %v5413_v16 = vrot.slane %v5411_v9, 3  ;;  %v6208_v11 = vunpack.c.l.b16 %v6126_v45  ;;  %v12639_v45 = vld [vmem:[#allocation10 + $0xa0] sm:$0xff]  ;;  %v6095_v20 = vld [vmem:[#allocation2 + $0x98] sm:$0x1] }
 0x2be   : > { %v6907_v56 = vunpack.c.l.b16 %v6825_v41  ;;  %v15777_v50 = vpop.f32.mrf.mxu3  ;;  %v12647_v3 = vld [vmem:[#allocation10 + $0xe0] sm:$0xff] }
 0x2bf   : > { %v6628_v25 = vadd.f32 %v15630_v57, %v6552_v32  ;;  %v6343_v57 = vsel %vm18502_vm6, %v6338_v48, %v15775_v46  ;;  %v12648_v32 = vld [vmem:[#allocation10 + $0xe8] sm:$0xff]  ;;  %v15796_v12 = vor.u32 %v5416_v22, %v5413_v16  ;;  %v18505_v48 = vld [vmem:[#allocation98_spill] sm:$0xff]  ;;  %vm18506_vm6 = vsmask.f32 4352 }
 0x2c0   : > { %v5530_v33 = vpop.f32.mrf.mxu2  ;;  %v6936_v60 = vpack.c.b16 %v6907_v56, %v6906_v54  ;;  %v5265_v54 = vunpack.c.l.b16 %v5183_v44  ;;  %v5266_v56 = vunpack.c.l.b16 %v5184_v38  ;;  %8593 = vmatpush.bf16.msrb.mxu0 %v12648_v32  ;;  %vm18507_vm1 = vmmov %vm18506_vm6  ;;  %v6344_v44 = vshrl.u32 %v15754_v6, 16  ;;  %8028 = vmatpush.bf16.msrb.mxu3 %v12639_v45  ;;  %v12638_v32 = vld [vmem:[#allocation10 + $0x98] sm:$0xff] }
 0x2c1   : > { %v6636_v26 = vmax.f32 %v6628_v25, 0.0  ;;  %v5630_v24 = vadd.f32 %v5530_v33, %v15309_v35  ;;  %v12632_v35 = vld [vmem:[#allocation10 + $0x68] sm:$0xff]  ;;  %v5065_v25 = vadd.f32 %v18505_v48, %v15325_v37  ;;  %v15811_v37 = vld [vmem:[%s17587_s2] ss:$0 sm:$0xff]  ;;  %v5418_v22 = vsel %vm18507_vm1, %v15750_v8, %v15796_v12  ;;  %v12646_v6 = vld [vmem:[#allocation10 + $0xd8] sm:$0xff] }
 0x2c2   : > { %v6977_v40 = vshrl.u32 %v6936_v60, 16  ;;  %v6980_v14 = vshll.u32 %v6936_v60, 16  ;;  %v15789_v23 = vpop.f32.mrf.mxu0  ;;  %7481 = vmatpush.bf16.msrb.mxu2 %v12632_v35  ;;  %v12585_v33 = vld [vmem:[#allocation2 + $0x88] sm:$0xff]  ;;  %v15802_v60 = vpack.c.b16 %v6209_v28, %v6208_v11  ;;  %v12630_v11 = vld [vmem:[#allocation10 + $0x58] sm:$0xff] }
 0x2c3   : > { %v12822_v29 = vpack.c.bf16 %v6636_v26, %v6635_v18  ;;  %v6007_v41 = vadd.f32 %v15732_v0, %v5630_v24  ;;  %v7664_v24 = vld [vmem:[#allocation3 + $0x8] sm:$0xf] }
 0x2c4   : > { %v6979_v58 = vrot.slane %v6977_v40, 3  ;;  %v6982_v9 = vrot.slane %v6980_v14, 4  ;;  %6497 = vmatmul.bf16.gmra.mxu0 %v6343_v57  ;;  %v5283_v40 = vpack.c.b16 %v5266_v56, %v5265_v54  ;;  %v18508_v8 = vld [vmem:[#allocation48_spill] sm:$0xff]  ;;  %8029 = vmatpush.bf16.msrb.mxu3 %v12638_v32  ;;  %v18518_v32 = vld [vmem:[#allocation43_spill] sm:$0xff] }
 0x2c5   : > { %12903 = vst [vmem:[#allocation3 + $0x28] sm:$0xff] %v12822_v29   ;;  %v6553_v18 = vadd.f32 %v15744_v42, %v6007_v41  ;;  %v6826_v42 = vsel %vm18372_vm13, 0, %v6793_v49  ;;  %v6348_v29 = vshll.u32 %v15802_v60, 16  ;;  %8594 = vmatpush.bf16.msrb.mxu0 %v12647_v3  ;;  %vm18509_vm1 = vnez %v18508_v8  ;;  %v18512_v41 = vld [vmem:[#allocation49_spill] sm:$0xff] }
 0x2c6   : > { %v15794_v34 = vor.u32 %v6982_v9, %v6979_v58  ;;  %v15798_v1 = vpop.f32.mrf.mxu3  ;;  %7482 = vmatpush.bf16.msrb.mxu2 %v12631_v43  ;;  %v7697_v28 = vsel %vm18509_vm1, 0, %v7664_v24  ;;  %v18510_v9 = vld [vmem:[#allocation32_spill] sm:$0xff]  ;;  %vm18513_vm2 = vnez %v18512_v41  ;;  %v6908_v56 = vunpack.c.l.b16 %v6826_v42  ;;  %v5152_v43 = vld [vmem:[#allocation2 + $0x94] sm:$0xf] }
 0x2c7   : > { %v6665_v58 = vadd.f32 %v15811_v37, %v6553_v18  ;;  %v5423_v49 = vshll.u32 %v5283_v40, 16  ;;  %v18514_v18 = vld [vmem:[#allocation102_spill] sm:$0xff]  ;;  %v12629_v24 = vld [vmem:[#allocation10 + $0x50] sm:$0xff] }
 0x2c8   : > { %v5532_v0 = vpop.f32.mrf.mxu2  ;;  %v6984_v16 = vsel %vm18506_vm6, %v15748_v15, %v15794_v34  ;;  %v7665_v15 = vld [vmem:[#allocation3 + $0xc] sm:$0xf]  ;;  %vm18511_vm6 = vnez %v18510_v9  ;;  %vm18515_vm1 = vnez %v18514_v18 }
 0x2c9   : > { %v5631_v26 = vadd.f32 %v5532_v0, %v5065_v25  ;;  %7184 = vmatmul.bf16.gmra.mxu1 %v6984_v16  ;;  %v7698_v54 = vsel %vm18513_vm2, 0, %v7665_v15  ;;  %v5420_v25 = vshrl.u32 %v5283_v40, 16  ;;  %v15835_v16 = vrot.slane %v6348_v29, 1  ;;  %8595 = vmatpush.bf16.msrb.mxu0 %v12646_v6  ;;  %v12645_v40 = vld [vmem:[#allocation10 + $0xd0] sm:$0xff] }
 0x2ca   : > { %v15817_v57 = vpop.f32.mrf.mxu0  ;;  %7483 = vmatpush.bf16.msrb.mxu2 %v12630_v11  ;;  %v7779_v15 = vunpack.c.l.b16 %v7697_v28  ;;  %v5425_v6 = vrot.slane %v5423_v49, 4  ;;  %vm18517_vm2 = vsmask.f32 7424 }
 0x2cb   : > { %v6008_v14 = vadd.f32 %v15752_v5, %v5631_v26  ;;  %5956 = vmatmul.bf16.gmra.mxu3 %v12585_v33  ;;  %v6128_v26 = vsel %vm18515_vm1, 0, %v6095_v20  ;;  %vm18519_vm1 = vnez %v18518_v32  ;;  %v18676_v32 = vld [vmem:[#allocation18_spill] sm:$0xff] }
 0x2cc   : > { %v6794_v38 = vld [vmem:[#allocation3 + $0x28] sm:$0xf]  ;;  %v5185_v28 = vsel %vm18519_vm1, 0, %v5152_v43 }
 0x2cd   : > { %v6554_v5 = vadd.f32 %v15767_v13, %v6008_v14  ;;  %5574 = vmatmul.bf16.gmra.mxu2 %v5418_v22  ;;  %v6827_v35 = vsel %vm18511_vm6, 0, %v6794_v38  ;;  %v6346_v13 = vor.u32 %v6344_v44, %v15775_v46  ;;  %v12637_v22 = vld [vmem:[#allocation10 + $0x90] sm:$0xff]  ;;  %v6673_v14 = vmax.f32 %v6665_v58, 0.0  ;;  %v18516_v38 = vld [vmem:[#allocation103_spill] sm:$0xff]  ;;  %8596 = vmatpush.bf16.msrb.mxu0 %v12645_v40 }
 0x2ce   : > { %v6909_v48 = vunpack.c.l.b16 %v6827_v35  ;;  %v15831_v33 = vpop.f32.mrf.mxu3  ;;  %v7780_v46 = vunpack.c.l.b16 %v7698_v54  ;;  %v5422_v35 = vrot.slane %v5420_v25, 3  ;;  %7484 = vmatpush.bf16.msrb.mxu2 %v12629_v24  ;;  %v6210_v58 = vunpack.c.l.b16 %v6128_v26  ;;  %8030 = vmatpush.bf16.msrb.mxu3 %v12637_v22  ;;  %v12628_v54 = vld [vmem:[#allocation10 + $0x48] sm:$0xff] }
 0x2cf   : > { %v6666_v0 = vadd.f32 %v15811_v37, %v6554_v5  ;;  %v7666_v5 = vld [vmem:[#allocation3 + $0x10] sm:$0xf]  ;;  %v6351_v20 = vsel %vm18517_vm2, %v6346_v13, %v15835_v16  ;;  %v12644_v25 = vld [vmem:[#allocation10 + $0xc8] sm:$0xff]  ;;  %v5267_v22 = vunpack.c.l.b16 %v5185_v28  ;;  %v12643_v28 = vld [vmem:[#allocation10 + $0xc0] sm:$0xff] }
 0x2d0   : > { %v5535_v45 = vpop.f32.mrf.mxu2  ;;  %v6937_v3 = vpack.c.b16 %v6909_v48, %v6908_v56  ;;  %v7667_v56 = vld [vmem:[#allocation3 + $0x14] sm:$0xf]  ;;  %v12672_v24 = vld [vmem:[#allocation10 + $0x128] sm:$0xff]  ;;  %v15853_v43 = vor.u32 %v5425_v6, %v5422_v35  ;;  %v15857_v40 = vpack.c.b16 %v7780_v46, %v7779_v15  ;;  %v12627_v6 = vld [vmem:[#allocation10 + $0x40] sm:$0xff] }
 0x2d1   : > { %v6674_v42 = vmax.f32 %v6666_v0, 0.0  ;;  %v5632_v11 = vadd.f32 %v5535_v45, %v18516_v38  ;;  %v18522_v38 = vld [vmem:[#allocation51_spill] sm:$0xff]  ;;  %8970 = vmatpush.bf16.msrb.mxu1 %v12672_v24  ;;  %8597 = vmatpush.bf16.msrb.mxu0 %v12644_v25  ;;  %v8212_v24 = vld [vmem:[#allocation3 + $0x14] sm:$0xf]  ;;  %v5284_v25 = vpack.c.b16 %v5267_v22, %v5267_v22 }
 0x2d2   : > { %v6986_v44 = vshrl.u32 %v6937_v3, 16  ;;  %v6989_v29 = vshll.u32 %v6937_v3, 16  ;;  %v15840_v41 = vpop.f32.mrf.mxu0  ;;  %v12636_v3 = vld [vmem:[#allocation10 + $0x88] sm:$0xff]  ;;  %vm18523_vm2 = vnez %v18522_v38  ;;  %7485 = vmatpush.bf16.msrb.mxu2 %v12628_v54  ;;  %v7830_v22 = vshrl.u32 %v15857_v40, 16 }
 0x2d3   : > { %v12827_v48 = vpack.c.bf16 %v6674_v42, %v6673_v14  ;;  %v6009_v49 = vadd.f32 %v15777_v50, %v5632_v11  ;;  %v18520_v14 = vld [vmem:[#allocation50_spill] sm:$0xff]  ;;  %v7700_v13 = vsel %vm18523_vm2, 0, %v7667_v56  ;;  %v18525_v50 = vld [vmem:[#allocation101_spill] sm:$0xff]  ;;  %vm18526_vm2 = vsmask.f32 4352  ;;  %8031 = vmatpush.bf16.msrb.mxu3 %v12636_v3 }
 0x2d4   : > { %v6988_v0 = vrot.slane %v6986_v44, 3  ;;  %v6991_v45 = vrot.slane %v6989_v29, 4  ;;  %vm18521_vm12 = vnez %v18520_v14  ;;  %6502 = vmatmul.bf16.gmra.mxu0 %v6351_v20  ;;  %v18524_v44 = vld [vmem:[#allocation75_spill] sm:$0xff]  ;;  %v6795_v29 = vld [vmem:[#allocation3 + $0x2c] sm:$0xf]  ;;  %v7782_v15 = vunpack.c.l.b16 %v7700_v13 }
 0x2d5   : > { %12904 = vst [vmem:[#allocation3 + $0x30] sm:$0xff] %v12827_v48   ;;  %v7699_v42 = vsel %vm18521_vm12, 0, %v7666_v5  ;;  %v5067_v11 = vadd.f32 %v18525_v50, %v18524_v44  ;;  %v12586_v5 = vld [vmem:[#allocation2 + $0x90] sm:$0xff]  ;;  %v6227_v48 = vpack.c.b16 %v6210_v58, %v6210_v58  ;;  %v12635_v20 = vld [vmem:[#allocation10 + $0x80] sm:$0xff]  ;;  %v6555_v46 = vadd.f32 %v15789_v23, %v6009_v49  ;;  %v8210_v54 = vld [vmem:[#allocation3 + $0xc] sm:$0x8]  ;;  %8598 = vmatpush.bf16.msrb.mxu0 %v12643_v28 }
 0x2d6   : > { %v15851_v8 = vor.u32 %v6991_v45, %v6988_v0  ;;  %v15855_v26 = vpop.f32.mrf.mxu3  ;;  %v7781_v0 = vunpack.c.l.b16 %v7699_v42  ;;  %vm18527_vm12 = vmmov %vm18526_vm2  ;;  %7486 = vmatpush.bf16.msrb.mxu2 %v12627_v6  ;;  %v8213_v3 = vld [vmem:[#allocation3 + $0x18] sm:$0xf]  ;;  %v18528_v42 = vld [vmem:[#allocation35_spill] sm:$0xff]  ;;  %v6352_v49 = vshrl.u32 %v15802_v60, 16  ;;  %v5429_v28 = vshrl.u32 %v5284_v25, 16 }
 0x2d7   : > { %v5427_v58 = vsel %vm18527_vm12, %v15796_v12, %v15853_v43  ;;  %v6356_v13 = vshll.u32 %v6227_v48, 16  ;;  %8032 = vmatpush.bf16.msrb.mxu3 %v12635_v20  ;;  %v18530_v60 = vld [vmem:[#allocation36_spill] sm:$0xff]  ;;  %v8211_v48 = vld [vmem:[#allocation3 + $0x10] sm:$0xf]  ;;  %v8246_v6 = vsel %vm18332_vm15, 0, %v8213_v3 }
 0x2d8   : > { %v5537_v56 = vpop.f32.mrf.mxu2  ;;  %v6993_v35 = vsel %vm18526_vm2, %v15794_v34, %v15851_v8  ;;  %v7832_v34 = vshll.u32 %v15857_v40, 16  ;;  %vm18529_vm2 = vnez %v18528_v42  ;;  %v15875_v12 = vpack.c.b16 %v7782_v15, %v7781_v0 }
 0x2d9   : > { %v5633_v45 = vadd.f32 %v5537_v56, %v5067_v11  ;;  %7189 = vmatmul.bf16.gmra.mxu1 %v6993_v35  ;;  %v6828_v23 = vsel %vm18529_vm2, 0, %v6795_v29  ;;  %v8243_v56 = vsel %vm18326_vm11, 0, %v8210_v54  ;;  %v6667_v35 = vadd.f32 %v15811_v37, %v6555_v46 }
 0x2da   : > { %v15870_v50 = vpop.f32.mrf.mxu0  ;;  %vm18531_vm12 = vnez %v18530_v60  ;;  %v6910_v20 = vunpack.c.l.b16 %v6828_v23  ;;  %v5432_v0 = vshll.u32 %v5284_v25, 16  ;;  %v6354_v46 = vor.u32 %v6352_v49, %v15835_v16 }
 0x2db   : > { %v6010_v44 = vadd.f32 %v15798_v1, %v5633_v45  ;;  %5961 = vmatmul.bf16.gmra.mxu3 %v12586_v5  ;;  %v8245_v1 = vsel %vm18330_vm14, 0, %v8212_v24  ;;  %v6358_v54 = vrot.slane %v6356_v13, 1  ;;  %v8328_v38 = vunpack.c.l.b16 %v8246_v6 }
 0x2dc   : > { %v6796_v11 = vld [vmem:[#allocation3 + $0x30] sm:$0xf]  ;;  %v6675_v3 = vmax.f32 %v6667_v35, 0.0  ;;  %v7837_v25 = vshll.u32 %v15875_v12, 16  ;;  %v5434_v59 = vrot.slane %v5432_v0, 4  ;;  %v8325_v13 = vunpack.c.l.b16 %v8243_v56  ;;  %v18535_v56 = vld [vmem:[#allocation104_spill] sm:$0xff] }
 0x2dd   : > { %v6556_v29 = vadd.f32 %v15817_v57, %v6010_v44  ;;  %5579 = vmatmul.bf16.gmra.mxu2 %v5427_v58  ;;  %v6829_v5 = vsel %vm18531_vm12, 0, %v6796_v11  ;;  %v7834_v57 = vrot.slane %v7832_v34, 1  ;;  %v8244_v44 = vsel %vm18328_vm7, 0, %v8211_v48  ;;  %v7668_v35 = vld [vmem:[#allocation3 + $0x18] sm:$0xf] }
 0x2de   : > { %v6911_v40 = vunpack.c.l.b16 %v6829_v5  ;;  %v15888_v15 = vpop.f32.mrf.mxu3  ;;  %v8327_v11 = vunpack.c.l.b16 %v8245_v1  ;;  %v18532_v5 = vld [vmem:[#allocation105_spill] sm:$0xff]  ;;  %vm18533_vm11 = vsmask.f32 7424  ;;  %vm18540_vm7 = vsmask.f32 4352 }
 0x2df   : > { %v6668_v45 = vadd.f32 %v15811_v37, %v6556_v29  ;;  %v5431_v29 = vrot.slane %v5429_v28, 3  ;;  %v6359_v34 = vsel %vm18533_vm11, %v6354_v46, %v6358_v54  ;;  %v7835_v0 = vor.u32 %v7834_v57, %v7830_v22  ;;  %v18534_v46 = vld [vmem:[#allocation107_spill] sm:$0xff]  ;;  %vm18541_vm15 = vmmov %vm18540_vm7 }
 0x2e0   : > { %v5540_v24 = vpop.f32.mrf.mxu2  ;;  %v6938_v58 = vpack.c.b16 %v6911_v40, %v6910_v20  ;;  %v8326_v20 = vunpack.c.l.b16 %v8244_v44  ;;  %v8359_v6 = vpack.c.b16 %v8328_v38, %v8327_v11  ;;  %v7669_v40 = vld [vmem:[#allocation3 + $0x1c] sm:$0xf]  ;;  %v5069_v54 = vadd.f32 %v18535_v56, %v18534_v46  ;;  %v18538_v44 = vld [vmem:[#allocation53_spill] sm:$0xff]  ;;  %v18544_v46 = vld [vmem:[#allocation40_spill] sm:$0xff] }
 0x2e1   : > { %v6676_v23 = vmax.f32 %v6668_v45, 0.0  ;;  %v5634_v14 = vadd.f32 %v5540_v24, %v18532_v5  ;;  %vm18539_vm14 = vnez %v18538_v44 }
 0x2e2   : > { %v6995_v10 = vshrl.u32 %v6938_v58, 16  ;;  %v6998_v39 = vshll.u32 %v6938_v58, 16  ;;  %v15896_v49 = vpop.f32.mrf.mxu0  ;;  %v5435_v58 = vor.u32 %v5434_v59, %v5431_v29  ;;  %v7702_v11 = vsel %vm18539_vm14, 0, %v7669_v40 }
 0x2e3   : > { %v12832_v16 = vpack.c.bf16 %v6676_v23, %v6675_v3  ;;  %v6011_v45 = vadd.f32 %v15831_v33, %v5634_v14  ;;  %v15904_v3 = vrot.slane %v7837_v25, 1  ;;  %v6797_v14 = vld [vmem:[#allocation3 + $0x34] sm:$0xf]  ;;  %v8384_v23 = vshrl.u32 %v8359_v6, 16 }
 0x2e4   : > { %v6997_v48 = vrot.slane %v6995_v10, 3  ;;  %v7000_v1 = vrot.slane %v6998_v39, 4  ;;  %6507 = vmatmul.bf16.gmra.mxu0 %v6359_v34  ;;  %v8358_v10 = vpack.c.b16 %v8326_v20, %v8325_v13  ;;  %v18536_v39 = vld [vmem:[#allocation52_spill] sm:$0xff]  ;;  %v8387_v22 = vshll.u32 %v8359_v6, 16  ;;  %v8215_v13 = vld [vmem:[#allocation3 + $0x20] sm:$0xf] }
 0x2e5   : > { %12905 = vst [vmem:[#allocation3 + $0x38] sm:$0xff] %v12832_v16   ;;  %vm18537_vm11 = vnez %v18536_v39  ;;  %v6557_v57 = vadd.f32 %v15840_v41, %v6011_v45  ;;  %v5436_v25 = vsel %vm18541_vm15, %v15853_v43, %v5435_v58  ;;  %v7784_v34 = vunpack.c.l.b16 %v7702_v11  ;;  %v8214_v43 = vld [vmem:[#allocation3 + $0x1c] sm:$0xf]  ;;  %v7674_v39 = vld [vmem:[#allocation3 + $0x30] sm:$0xf] }
 0x2e6   : > { %v15900_v24 = vor.u32 %v7000_v1, %v6997_v48  ;;  %v15902_v28 = vpop.f32.mrf.mxu3  ;;  %v7701_v38 = vsel %vm18537_vm11, 0, %v7668_v35  ;;  %vm18542_vm11 = vsmask.f32 7424  ;;  %v6830_v1 = vsel %vm18401_vm9, 0, %v6797_v14 }
 0x2e7   : > { %v7840_v29 = vsel %vm18542_vm11, %v7835_v0, %v15904_v3  ;;  %v7783_v16 = vunpack.c.l.b16 %v7701_v38  ;;  %v8376_v41 = vshrl.u32 %v8358_v10, 16  ;;  %v8379_v6 = vshll.u32 %v8358_v10, 16 }
 0x2e8   : > { %v5542_v33 = vpop.f32.mrf.mxu2  ;;  %v7002_v59 = vsel %vm18540_vm7, %v15851_v8, %v15900_v24  ;;  %v8386_v40 = vrot.slane %v8384_v23, 3  ;;  %v8389_v45 = vrot.slane %v8387_v22, 4  ;;  %v6669_v58 = vadd.f32 %v15811_v37, %v6557_v57 }
 0x2e9   : > { %v5635_v5 = vadd.f32 %v5542_v33, %v5069_v54  ;;  %7194 = vmatmul.bf16.gmra.mxu1 %v7002_v59  ;;  %vm18545_vm15 = vnez %v18544_v46  ;;  %v8248_v56 = vsel %vm18343_vm0, 0, %v8215_v13  ;;  %v6912_v54 = vunpack.c.l.b16 %v6830_v1 }
 0x2ea   : > { %v15921_v48 = vpop.f32.mrf.mxu0  ;;  %v15933_v10 = vpack.c.b16 %v7784_v34, %v7783_v16  ;;  %v8378_v59 = vrot.slane %v8376_v41, 3  ;;  %v8381_v14 = vrot.slane %v8379_v6, 4  ;;  %v8330_v57 = vunpack.c.l.b16 %v8248_v56  ;;  %v7671_v56 = vld [vmem:[#allocation3 + $0x24] sm:$0xf] }
 0x2eb   : > { %v6012_v20 = vadd.f32 %v15855_v26, %v5635_v5  ;;  %8033 = vmatmul.bf16.vlgmr.msrb.gmra.mxu3 %v7840_v29  ;;  %v6677_v5 = vmax.f32 %v6669_v58, 0.0  ;;  %v18546_v29 = vld [vmem:[#allocation108_spill] sm:$0xff] }
 0x2ec   : > { %v6798_v35 = vld [vmem:[#allocation3 + $0x38] sm:$0xf]  ;;  %v7845_v16 = vshll.u32 %v15933_v10, 16  ;;  %v8382_v6 = vor.u32 %v8381_v14, %v8378_v59  ;;  %v18547_v14 = vld [vmem:[#allocation84_spill] sm:$0xff] }
 0x2ed   : > { %v6558_v0 = vadd.f32 %v15870_v50, %v6012_v20  ;;  %5584 = vmatmul.bf16.gmra.mxu2 %v5436_v25  ;;  %v6831_v26 = vsel %vm18545_vm15, 0, %v6798_v35  ;;  %v8247_v50 = vsel %vm18341_vm5, 0, %v8214_v43  ;;  %v15939_v20 = vor.u32 %v8389_v45, %v8386_v40  ;;  %v12671_v45 = vld [vmem:[#allocation10 + $0x120] sm:$0xff]  ;;  %v7676_v60 = vld [vmem:[#allocation3 + $0x38] sm:$0xf] }
 0x2ee   : > { %v6913_v38 = vunpack.c.l.b16 %v6831_v26  ;;  %v15931_v11 = vpop.f32.mrf.mxu3  ;;  %v8329_v34 = vunpack.c.l.b16 %v8247_v50  ;;  %v7841_v50 = vshrl.u32 %v15875_v12, 16  ;;  %v15952_v59 = vrot.slane %v7845_v16, 1  ;;  %8971 = vmatpush.bf16.msrb.mxu1 %v12671_v45 }
 0x2ef   : > { %v6670_v33 = vadd.f32 %v15811_v37, %v6558_v0  ;;  %v8391_v40 = vsel %vm18540_vm7, %v8382_v6, %v15939_v20  ;;  %v12611_v6 = vld [vmem:[#allocation3 + $0x8] sm:$0xff]  ;;  %vm18579_vm5 = vsmask.f32 7424 }
 0x2f0   : > { %v5545_v23 = vpop.f32.mrf.mxu2  ;;  %v6939_v22 = vpack.c.b16 %v6913_v38, %v6912_v54  ;;  %v8360_v44 = vpack.c.b16 %v8330_v57, %v8329_v34  ;;  %v7670_v54 = vld [vmem:[#allocation3 + $0x20] sm:$0xf]  ;;  %v7843_v12 = vor.u32 %v7841_v50, %v15904_v3 }
 0x2f1   : > { %v6678_v25 = vmax.f32 %v6670_v33, 0.0  ;;  %v5636_v13 = vadd.f32 %v5545_v23, %v18546_v29  ;;  %v18548_v23 = vld [vmem:[#allocation106_spill] sm:$0xff]  ;;  %v18549_v57 = vld [vmem:[#allocation55_spill] sm:$0xff] }
 0x2f2   : > { %v7004_v1 = vshrl.u32 %v6939_v22, 16  ;;  %v7007_v35 = vshll.u32 %v6939_v22, 16  ;;  %v15942_v41 = vpop.f32.mrf.mxu0  ;;  %v5071_v22 = vadd.f32 %v18548_v23, %v18547_v14  ;;  %vm18550_vm11 = vnez %v18549_v57  ;;  %v7672_v57 = vld [vmem:[#allocation3 + $0x28] sm:$0xf] }
 0x2f3   : > { %v12837_v0 = vpack.c.bf16 %v6678_v25, %v6677_v5  ;;  %v6013_v58 = vadd.f32 %v15888_v15, %v5636_v13  ;;  %v7703_v15 = vsel %vm18550_vm11, 0, %v7670_v54  ;;  %v18551_v5 = vld [vmem:[#allocation56_spill] sm:$0xff]  ;;  %v8396_v16 = vshll.u32 %v8360_v44, 16 }
 0x2f4   : > { %v7006_v26 = vrot.slane %v7004_v1, 3  ;;  %v7009_v43 = vrot.slane %v7007_v35, 4  ;;  %8599 = vmatmul.bf16.vlgmr.msrb.gmra.mxu0 %v8391_v40  ;;  %vm18552_vm14 = vnez %v18551_v5  ;;  %v6799_v1 = vld [vmem:[#allocation3 + $0x3c] sm:$0xf]  ;;  %v8393_v35 = vshrl.u32 %v8360_v44, 16 }
 0x2f5   : > { %12906 = vst [vmem:[#allocation3 + $0x40] sm:$0xff] %v12837_v0   ;;  %v7704_v25 = vsel %vm18552_vm14, 0, %v7671_v56  ;;  %v6559_v34 = vadd.f32 %v15896_v49, %v6013_v58  ;;  %vm18553_vm11 = vsmask.f32 7424  ;;  %v8217_v56 = vld [vmem:[#allocation3 + $0x28] sm:$0xf] }
 0x2f6   : > { %v15947_v38 = vor.u32 %v7009_v43, %v7006_v26  ;;  %v15949_v33 = vpop.f32.mrf.mxu3  ;;  %v7848_v26 = vsel %vm18553_vm11, %v7843_v12, %v15952_v59  ;;  %v7785_v43 = vunpack.c.l.b16 %v7703_v15  ;;  %v7786_v54 = vunpack.c.l.b16 %v7704_v25  ;;  %v8216_v58 = vld [vmem:[#allocation3 + $0x24] sm:$0xf] }
 0x2f7   : > { %v8395_v50 = vrot.slane %v8393_v35, 3  ;;  %v8398_v49 = vrot.slane %v8396_v16, 4  ;;  %v6671_v14 = vadd.f32 %v15811_v37, %v6559_v34  ;;  %v8249_v35 = vsel %vm18357_vm3, 0, %v8216_v58 }
 0x2f8   : > { %v5547_v29 = vpop.f32.mrf.mxu2  ;;  %v7011_v13 = vsel %vm18540_vm7, %v15900_v24, %v15947_v38  ;;  %v18554_v24 = vld [vmem:[#allocation44_spill] sm:$0xff]  ;;  %vm18559_vm14 = vsmask.f32 4352 }
 0x2f9   : > { %v5637_v0 = vadd.f32 %v5547_v29, %v5071_v22  ;;  %7199 = vmatmul.bf16.gmra.mxu1 %v7011_v13  ;;  %vm18555_vm7 = vnez %v18554_v24  ;;  %v18556_v22 = vld [vmem:[#allocation45_spill] sm:$0xff] }
 0x2fa   : > { %v15968_v45 = vpop.f32.mrf.mxu0  ;;  %v6832_v3 = vsel %vm18555_vm7, 0, %v6799_v1  ;;  %vm18557_vm11 = vnez %v18556_v22  ;;  %v15980_v1 = vpack.c.b16 %v7786_v54, %v7785_v43  ;;  %v8331_v43 = vunpack.c.l.b16 %v8249_v35  ;;  %v18560_v35 = vld [vmem:[#allocation57_spill] sm:$0xff] }
 0x2fb   : > { %v6014_v40 = vadd.f32 %v15902_v28, %v5637_v0  ;;  %8038 = vmatmul.bf16.gmra.mxu3 %v7848_v26  ;;  %v8250_v28 = vsel %vm18499_vm8, 0, %v8217_v56  ;;  %v6914_v25 = vunpack.c.l.b16 %v6832_v3  ;;  %v6679_v0 = vmax.f32 %v6671_v14, 0.0  ;;  %v18558_v26 = vld [vmem:[#allocation54_spill] sm:$0xff] }
 0x2fc   : > { %v6800_v44 = vld [vmem:[#allocation3 + $0x40] sm:$0xf]  ;;  %v8332_v34 = vunpack.c.l.b16 %v8250_v28 }
 0x2fd   : > { %v6560_v23 = vadd.f32 %v15921_v48, %v6014_v40  ;;  %7487 = vmatmul.bf16.vlgmr.msrb.gmra.mxu2 %v12611_v6  ;;  %v6833_v15 = vsel %vm18557_vm11, 0, %v6800_v44  ;;  %v15986_v44 = vor.u32 %v8398_v49, %v8395_v50  ;;  %v7678_v27 = vld [vmem:[#allocation3 + $0x40] sm:$0xf] }
 0x2fe   : > { %v6915_v29 = vunpack.c.l.b16 %v6833_v15  ;;  %v15978_v13 = vpop.f32.mrf.mxu3  ;;  %v7853_v15 = vshll.u32 %v15980_v1, 16  ;;  %v8361_v58 = vpack.c.b16 %v8332_v34, %v8331_v43  ;;  %v18562_v34 = vld [vmem:[#allocation58_spill] sm:$0xff]  ;;  %v16016_v43 = vld [vmem:[%s17587_s2] ss:$0 sm:$0xff] }
 0x2ff   : > { %v6672_v12 = vadd.f32 %v15811_v37, %v6560_v23  ;;  %v8400_v50 = vsel %vm18559_vm14, %v15939_v20, %v15986_v44  ;;  %vm18563_vm3 = vnez %v18562_v34 }
 0x300   : > { %v5550_v16 = vpop.f32.mrf.mxu2  ;;  %v6940_v48 = vpack.c.b16 %v6915_v29, %v6914_v25  ;;  %v7673_v25 = vld [vmem:[#allocation3 + $0x2c] sm:$0xf]  ;;  %v7849_v29 = vshrl.u32 %v15933_v10, 16  ;;  %v8402_v10 = vshrl.u32 %v8361_v58, 16 }
 0x301   : > { %v6680_v6 = vmax.f32 %v6672_v12, 0.0  ;;  %v5638_v40 = vadd.f32 %v5550_v16, %v18558_v26  ;;  %v16000_v12 = vrot.slane %v7853_v15, 1  ;;  %v18561_v16 = vld [vmem:[#allocation109_spill] sm:$0xff] }
 0x302   : > { %v7013_v56 = vshrl.u32 %v6940_v48, 16  ;;  %v7016_v3 = vshll.u32 %v6940_v48, 16  ;;  %v15989_v5 = vpop.f32.mrf.mxu0  ;;  %v5073_v48 = vadd.f32 %v18561_v16, %v18560_v35  ;;  %v8218_v16 = vld [vmem:[#allocation3 + $0x2c] sm:$0xf] }
 0x303   : > { %v12842_v54 = vpack.c.bf16 %v6680_v6, %v6679_v0  ;;  %v6015_v14 = vadd.f32 %v15931_v11, %v5638_v40  ;;  %v7705_v0 = vsel %vm18563_vm3, 0, %v7672_v57  ;;  %v18564_v11 = vld [vmem:[#allocation61_spill] sm:$0xff]  ;;  %v6801_v40 = vld [vmem:[#allocation3 + $0x44] sm:$0xf]  ;;  %vm18572_vm3 = vsmask.f32 4352 }
 0x304   : > { %v7015_v37 = vrot.slane %v7013_v56, 3  ;;  %v7018_v23 = vrot.slane %v7016_v3, 4  ;;  %8604 = vmatmul.bf16.gmra.mxu0 %v8400_v50  ;;  %vm18565_vm8 = vnez %v18564_v11  ;;  %v7851_v56 = vor.u32 %v7849_v29, %v15952_v59  ;;  %v12612_v59 = vld [vmem:[#allocation3 + $0x10] sm:$0xff] }
 0x305   : > { %12907 = vst [vmem:[#allocation3 + $0x48] sm:$0xff] %v12842_v54   ;;  %v7706_v6 = vsel %vm18565_vm8, 0, %v7673_v25  ;;  %v8405_v3 = vshll.u32 %v8361_v58, 16  ;;  %v6561_v15 = vadd.f32 %v15942_v41, %v6015_v14  ;;  %vm18566_vm8 = vsmask.f32 7424  ;;  %v18567_v58 = vld [vmem:[#allocation19_spill] sm:$0xff] }
 0x306   : > { %v15995_v49 = vor.u32 %v7018_v23, %v7015_v37  ;;  %v15997_v28 = vpop.f32.mrf.mxu3  ;;  %v7856_v54 = vsel %vm18566_vm8, %v7851_v56, %v16000_v12  ;;  %v7787_v37 = vunpack.c.l.b16 %v7705_v0  ;;  %v7788_v23 = vunpack.c.l.b16 %v7706_v6  ;;  %v18569_v0 = vld [vmem:[#allocation20_spill] sm:$0xff] }
 0x307   : > { %v8404_v29 = vrot.slane %v8402_v10, 3  ;;  %v8407_v35 = vrot.slane %v8405_v3, 4  ;;  %vm18570_vm8 = vnez %v18569_v0  ;;  %v8251_v3 = vsel %vm18372_vm13, 0, %v8218_v16 }
 0x308   : > { %v5552_v26 = vpop.f32.mrf.mxu2  ;;  %v7020_v20 = vsel %vm18559_vm14, %v15947_v38, %v15995_v49  ;;  %v8219_v38 = vld [vmem:[#allocation3 + $0x30] sm:$0xf]  ;;  %vm18568_vm14 = vnez %v18567_v58 }
 0x309   : > { %v5639_v57 = vadd.f32 %v5552_v26, %v5073_v48  ;;  %7204 = vmatmul.bf16.gmra.mxu1 %v7020_v20  ;;  %v6834_v41 = vsel %vm18568_vm14, 0, %v6801_v40  ;;  %v6709_v48 = vadd.f32 %v16016_v43, %v6561_v15  ;;  %v16033_v40 = vpack.c.b16 %v7788_v23, %v7787_v37 }
 0x30a   : > { %v16021_v50 = vpop.f32.mrf.mxu0  ;;  %v6916_v20 = vunpack.c.l.b16 %v6834_v41  ;;  %v16039_v34 = vor.u32 %v8407_v35, %v8404_v29  ;;  %v8333_v37 = vunpack.c.l.b16 %v8251_v3  ;;  %v12670_v35 = vld [vmem:[#allocation10 + $0x118] sm:$0xff] }
 0x30b   : > { %v6016_v25 = vadd.f32 %v15949_v33, %v5639_v57  ;;  %8043 = vmatmul.bf16.gmra.mxu3 %v7856_v54  ;;  %v8252_v33 = vsel %vm18511_vm6, 0, %v8219_v38  ;;  %8972 = vmatpush.bf16.msrb.mxu1 %v12670_v35  ;;  %v12613_v35 = vld [vmem:[#allocation3 + $0x18] sm:$0xff] }
 0x30c   : > { %v6802_v14 = vld [vmem:[#allocation3 + $0x48] sm:$0xf]  ;;  %v8334_v54 = vunpack.c.l.b16 %v8252_v33  ;;  %v8409_v29 = vsel %vm18572_vm3, %v15986_v44, %v16039_v34 }
 0x30d   : > { %v6562_v26 = vadd.f32 %v15968_v45, %v6016_v25  ;;  %7492 = vmatmul.bf16.gmra.mxu2 %v12612_v59  ;;  %v6835_v6 = vsel %vm18570_vm8, 0, %v6802_v14  ;;  %v6717_v25 = vmax.f32 %v6709_v48, 0.0  ;;  %v18571_v14 = vld [vmem:[#allocation59_spill] sm:$0xff]  ;;  %v7680_v24 = vld [vmem:[#allocation3 + $0x48] sm:$0xf] }
 0x30e   : > { %v6917_v56 = vunpack.c.l.b16 %v6835_v6  ;;  %v16031_v57 = vpop.f32.mrf.mxu3  ;;  %v7861_v6 = vshll.u32 %v16033_v40, 16  ;;  %v8362_v16 = vpack.c.b16 %v8334_v54, %v8333_v37 }
 0x30f   : > { %v6710_v10 = vadd.f32 %v16016_v43, %v6562_v26 }
 0x310   : > { %v5555_v15 = vpop.f32.mrf.mxu2  ;;  %v6941_v45 = vpack.c.b16 %v6917_v56, %v6916_v20  ;;  %v7675_v20 = vld [vmem:[#allocation3 + $0x34] sm:$0xf]  ;;  %v16053_v3 = vrot.slane %v7861_v6, 1 }
 0x311   : > { %v6718_v59 = vmax.f32 %v6710_v10, 0.0  ;;  %v5640_v11 = vadd.f32 %v5555_v15, %v18571_v14  ;;  %v7857_v10 = vshrl.u32 %v15980_v1, 16  ;;  %v18573_v15 = vld [vmem:[#allocation111_spill] sm:$0xff]  ;;  %v6803_v14 = vld [vmem:[#allocation3 + $0x4c] sm:$0xf] }
 0x312   : > { %v7022_v38 = vshrl.u32 %v6941_v45, 16  ;;  %v7025_v41 = vshll.u32 %v6941_v45, 16  ;;  %v16042_v9 = vpop.f32.mrf.mxu0  ;;  %v18574_v45 = vld [vmem:[#allocation110_spill] sm:$0xff] }
 0x313   : > { %v12847_v23 = vpack.c.bf16 %v6718_v59, %v6717_v25  ;;  %v6017_v48 = vadd.f32 %v15978_v13, %v5640_v11  ;;  %v5075_v54 = vadd.f32 %v18574_v45, %v18573_v15  ;;  %v18575_v25 = vld [vmem:[#allocation63_spill] sm:$0xff]  ;;  %v18577_v11 = vld [vmem:[#allocation64_spill] sm:$0xff]  ;;  %v7859_v1 = vor.u32 %v7857_v10, %v16000_v12 }
 0x314   : > { %v7024_v26 = vrot.slane %v7022_v38, 3  ;;  %v7027_v51 = vrot.slane %v7025_v41, 4  ;;  %8609 = vmatmul.bf16.gmra.mxu0 %v8409_v29  ;;  %vm18576_vm13 = vnez %v18575_v25  ;;  %vm18578_vm6 = vnez %v18577_v11 }
 0x315   : > { %12908 = vst [vmem:[#allocation3 + $0x50] sm:$0xff] %v12847_v23   ;;  %v7707_v13 = vsel %vm18576_vm13, 0, %v7674_v39  ;;  %v7708_v44 = vsel %vm18578_vm6, 0, %v7675_v20  ;;  %v8411_v38 = vshrl.u32 %v8362_v16, 16  ;;  %v8414_v41 = vshll.u32 %v8362_v16, 16 }
 0x316   : > { %v16048_v33 = vor.u32 %v7027_v51, %v7024_v26  ;;  %v16050_v56 = vpop.f32.mrf.mxu3  ;;  %v6563_v6 = vadd.f32 %v15989_v5, %v6017_v48  ;;  %v7864_v39 = vsel %vm18579_vm5, %v7859_v1, %v16053_v3  ;;  %v7789_v23 = vunpack.c.l.b16 %v7707_v13  ;;  %v8221_v20 = vld [vmem:[#allocation3 + $0x38] sm:$0xf]  ;;  %v8220_v48 = vld [vmem:[#allocation3 + $0x34] sm:$0xf] }
 0x317   : > { %v7790_v26 = vunpack.c.l.b16 %v7708_v44  ;;  %v8413_v16 = vrot.slane %v8411_v38, 3  ;;  %v8416_v5 = vrot.slane %v8414_v41, 4  ;;  %v16079_v44 = vpop.f32.mrf.mxu1  ;;  %vm18584_vm6 = vsmask.f32 4352 }
 0x318   : > { %v5557_v59 = vpop.f32.mrf.mxu2  ;;  %v7029_v51 = vsel %vm18572_vm3, %v15995_v49, %v16048_v33  ;;  %vm18580_vm3 = vnez %v18443_v7  ;;  %v6711_v10 = vadd.f32 %v16016_v43, %v6563_v6 }
 0x319   : > { %v5641_v37 = vadd.f32 %v5557_v59, %v5075_v54  ;;  %7209 = vmatmul.bf16.gmra.mxu1 %v7029_v51  ;;  %v6836_v49 = vsel %vm18580_vm3, 0, %v6803_v14  ;;  %v18581_v54 = vld [vmem:[#allocation22_spill] sm:$0xff]  ;;  %v16083_v1 = vpack.c.b16 %v7790_v26, %v7789_v23 }
 0x31a   : > { %v16069_v15 = vpop.f32.mrf.mxu0  ;;  %vm18582_vm5 = vnez %v18581_v54  ;;  %v6918_v59 = vunpack.c.l.b16 %v6836_v49 }
 0x31b   : > { %v6018_v29 = vadd.f32 %v15997_v28, %v5641_v37  ;;  %8048 = vmatmul.bf16.gmra.mxu3 %v7864_v39  ;;  %v8254_v28 = vsel %vm18531_vm12, 0, %v8221_v20  ;;  %v6719_v39 = vmax.f32 %v6711_v10, 0.0  ;;  %v7869_v11 = vshll.u32 %v16083_v1, 16 }
 0x31c   : > { %v6804_v12 = vld [vmem:[#allocation3 + $0x50] sm:$0xf]  ;;  %v8336_v37 = vunpack.c.l.b16 %v8254_v28  ;;  %vm18591_vm12 = vsmask.f32 7424 }
 0x31d   : > { %v6564_v45 = vadd.f32 %v16021_v50, %v6018_v29  ;;  %7497 = vmatmul.bf16.gmra.mxu2 %v12613_v35  ;;  %v6837_v13 = vsel %vm18582_vm5, 0, %v6804_v12  ;;  %v8253_v50 = vsel %vm18529_vm2, 0, %v8220_v48  ;;  %v18583_v35 = vld [vmem:[#allocation65_spill] sm:$0xff]  ;;  %v16089_v12 = vor.u32 %v8416_v5, %v8413_v16 }
 0x31e   : > { %v6919_v51 = vunpack.c.l.b16 %v6837_v13  ;;  %v16081_v14 = vpop.f32.mrf.mxu3  ;;  %v8335_v23 = vunpack.c.l.b16 %v8253_v50  ;;  %v16105_v50 = vrot.slane %v7869_v11, 1  ;;  %v7682_v31 = vld [vmem:[#allocation3 + $0x50] sm:$0xf] }
 0x31f   : > { %v6712_v38 = vadd.f32 %v16016_v43, %v6564_v45  ;;  %v8418_v16 = vsel %vm18584_vm6, %v16039_v34, %v16089_v12 }
 0x320   : > { %v5560_v41 = vpop.f32.mrf.mxu2  ;;  %v6942_v6 = vpack.c.b16 %v6919_v51, %v6918_v59  ;;  %v8363_v48 = vpack.c.b16 %v8336_v37, %v8335_v23  ;;  %v7677_v59 = vld [vmem:[#allocation3 + $0x3c] sm:$0xf] }
 0x321   : > { %v6720_v29 = vmax.f32 %v6712_v38, 0.0  ;;  %v5642_v20 = vadd.f32 %v5560_v41, %v18583_v35  ;;  %v7865_v38 = vshrl.u32 %v16033_v40, 16  ;;  %v18585_v41 = vld [vmem:[#allocation66_spill] sm:$0xff] }
 0x322   : > { %v7031_v49 = vshrl.u32 %v6942_v6, 16  ;;  %v7034_v13 = vshll.u32 %v6942_v6, 16  ;;  %v16092_v25 = vpop.f32.mrf.mxu0  ;;  %v18586_v6 = vld [vmem:[#allocation62_spill] sm:$0xff]  ;;  %v8420_v40 = vshrl.u32 %v8363_v48, 16  ;;  %v8423_v11 = vshll.u32 %v8363_v48, 16 }
 0x323   : > { %v12852_v26 = vpack.c.bf16 %v6720_v29, %v6719_v39  ;;  %v6019_v10 = vadd.f32 %v16031_v57, %v5642_v20  ;;  %v5077_v37 = vadd.f32 %v18586_v6, %v18585_v41  ;;  %v18587_v39 = vld [vmem:[#allocation67_spill] sm:$0xff]  ;;  %v18589_v29 = vld [vmem:[#allocation68_spill] sm:$0xff]  ;;  %v6805_v20 = vld [vmem:[#allocation3 + $0x54] sm:$0xf] }
 0x324   : > { %v7033_v45 = vrot.slane %v7031_v49, 3  ;;  %v7036_v42 = vrot.slane %v7034_v13, 4  ;;  %8614 = vmatmul.bf16.gmra.mxu0 %v8418_v16  ;;  %vm18588_vm13 = vnez %v18587_v39  ;;  %vm18590_vm2 = vnez %v18589_v29  ;;  %v12614_v41 = vld [vmem:[#allocation3 + $0x20] sm:$0xff] }
 0x325   : > { %12909 = vst [vmem:[#allocation3 + $0x58] sm:$0xff] %v12852_v26   ;;  %v7709_v57 = vsel %vm18588_vm13, 0, %v7676_v60  ;;  %v7710_v34 = vsel %vm18590_vm2, 0, %v7677_v59  ;;  %v7867_v49 = vor.u32 %v7865_v38, %v16053_v3  ;;  %v6565_v13 = vadd.f32 %v16042_v9, %v6019_v10  ;;  %v8223_v59 = vld [vmem:[#allocation3 + $0x40] sm:$0xf] }
 0x326   : > { %v16098_v5 = vpop.f32.mrf.mxu1  ;;  %v16100_v28 = vor.u32 %v7036_v42, %v7033_v45  ;;  %v16102_v51 = vpop.f32.mrf.mxu3  ;;  %v7791_v26 = vunpack.c.l.b16 %v7709_v57  ;;  %v7792_v45 = vunpack.c.l.b16 %v7710_v34  ;;  %v8422_v48 = vrot.slane %v8420_v40, 3  ;;  %v8222_v10 = vld [vmem:[#allocation3 + $0x3c] sm:$0xf] }
 0x327   : > { %v7872_v60 = vsel %vm18591_vm12, %v7867_v49, %v16105_v50  ;;  %v8425_v9 = vrot.slane %v8423_v11, 4  ;;  %v6713_v38 = vadd.f32 %v16016_v43, %v6565_v13  ;;  %v18593_v57 = vld [vmem:[#allocation26_spill] sm:$0xff]  ;;  %vm18596_vm2 = vsmask.f32 4352 }
 0x328   : > { %v5562_v35 = vpop.f32.mrf.mxu2  ;;  %v7038_v42 = vsel %vm18584_vm6, %v16048_v33, %v16100_v28  ;;  %vm18592_vm6 = vnez %v18458_v4  ;;  %vm18594_vm12 = vnez %v18593_v57  ;;  %v16135_v40 = vpack.c.b16 %v7792_v45, %v7791_v26 }
 0x329   : > { %v5643_v23 = vadd.f32 %v5562_v35, %v5077_v37  ;;  %7214 = vmatmul.bf16.gmra.mxu1 %v7038_v42  ;;  %v6838_v33 = vsel %vm18592_vm6, 0, %v6805_v20  ;;  %v16141_v29 = vor.u32 %v8425_v9, %v8422_v48  ;;  %v12669_v9 = vld [vmem:[#allocation10 + $0x110] sm:$0xff] }
 0x32a   : > { %v16121_v6 = vpop.f32.mrf.mxu0  ;;  %v6920_v42 = vunpack.c.l.b16 %v6838_v33  ;;  %v7877_v39 = vshll.u32 %v16135_v40, 16  ;;  %8973 = vmatpush.bf16.msrb.mxu1 %v12669_v9 }
 0x32b   : > { %v6020_v16 = vadd.f32 %v16050_v56, %v5643_v23  ;;  %8053 = vmatmul.bf16.gmra.mxu3 %v7872_v60  ;;  %v8256_v56 = vsel %vm18545_vm15, 0, %v8223_v59  ;;  %v8427_v48 = vsel %vm18596_vm2, %v16089_v12, %v16141_v29  ;;  %v18601_v12 = vld [vmem:[#allocation72_spill] sm:$0xff]  ;;  %vm18604_vm15 = vsmask.f32 7424 }
 0x32c   : > { %v6806_v3 = vld [vmem:[#allocation3 + $0x58] sm:$0xf]  ;;  %v8338_v60 = vunpack.c.l.b16 %v8256_v56  ;;  %vm18602_vm2 = vnez %v18601_v12 }
 0x32d   : > { %v6566_v37 = vadd.f32 %v16069_v15, %v6020_v16  ;;  %7502 = vmatmul.bf16.gmra.mxu2 %v12614_v41  ;;  %v6839_v34 = vsel %vm18594_vm12, 0, %v6806_v3  ;;  %v8255_v15 = vsel %vm18401_vm9, 0, %v8222_v10  ;;  %v6721_v16 = vmax.f32 %v6713_v38, 0.0  ;;  %v18595_v3 = vld [vmem:[#allocation69_spill] sm:$0xff]  ;;  %v7684_v18 = vld [vmem:[#allocation3 + $0x58] sm:$0xf] }
 0x32e   : > { %v16131_v35 = vpop.f32.mrf.mxu1  ;;  %v6921_v20 = vunpack.c.l.b16 %v6839_v34  ;;  %v16133_v49 = vpop.f32.mrf.mxu3  ;;  %v8337_v26 = vunpack.c.l.b16 %v8255_v15  ;;  %v7873_v15 = vshrl.u32 %v16083_v1, 16  ;;  %vm18603_vm9 = vsmask.f32 4352 }
 0x32f   : > { %v6714_v11 = vadd.f32 %v16016_v43, %v6566_v37 }
 0x330   : > { %v5565_v13 = vpop.f32.mrf.mxu2  ;;  %v6943_v23 = vpack.c.b16 %v6921_v20, %v6920_v42  ;;  %v8364_v10 = vpack.c.b16 %v8338_v60, %v8337_v26  ;;  %v7679_v42 = vld [vmem:[#allocation3 + $0x44] sm:$0xf]  ;;  %v18598_v60 = vld [vmem:[#allocation112_spill] sm:$0xff]  ;;  %v7875_v1 = vor.u32 %v7873_v15, %v16105_v50 }
 0x331   : > { %v6722_v41 = vmax.f32 %v6714_v11, 0.0  ;;  %v5644_v59 = vadd.f32 %v5565_v13, %v18595_v3  ;;  %v16157_v13 = vrot.slane %v7877_v39, 1  ;;  %v7712_v3 = vsel %vm18602_vm2, 0, %v7679_v42  ;;  %v8225_v42 = vld [vmem:[#allocation3 + $0x48] sm:$0xf] }
 0x332   : > { %v7040_v33 = vshrl.u32 %v6943_v23, 16  ;;  %v7043_v34 = vshll.u32 %v6943_v23, 16  ;;  %v16144_v46 = vpop.f32.mrf.mxu0  ;;  %v18597_v23 = vld [vmem:[#allocation70_spill] sm:$0xff]  ;;  %v8429_v39 = vshrl.u32 %v8364_v10, 16  ;;  %vm18609_vm2 = vsmask.f32 4352 }
 0x333   : > { %v12857_v45 = vpack.c.bf16 %v6722_v41, %v6721_v16  ;;  %v6021_v38 = vadd.f32 %v16081_v14, %v5644_v59  ;;  %v5079_v16 = vadd.f32 %v18598_v60, %v18597_v23  ;;  %v18599_v14 = vld [vmem:[#allocation71_spill] sm:$0xff]  ;;  %v12615_v23 = vld [vmem:[#allocation3 + $0x28] sm:$0xff] }
 0x334   : > { %v7042_v37 = vrot.slane %v7040_v33, 3  ;;  %v7045_v8 = vrot.slane %v7043_v34, 4  ;;  %8619 = vmatmul.bf16.gmra.mxu0 %v8427_v48  ;;  %vm18600_vm13 = vnez %v18599_v14  ;;  %v6807_v33 = vld [vmem:[#allocation3 + $0x5c] sm:$0xf]  ;;  %v8432_v34 = vshll.u32 %v8364_v10, 16 }
 0x335   : > { %12910 = vst [vmem:[#allocation3 + $0x60] sm:$0xff] %v12857_v45   ;;  %v7711_v41 = vsel %vm18600_vm13, 0, %v7678_v27  ;;  %v6567_v26 = vadd.f32 %v16092_v25, %v6021_v38  ;;  %v7880_v27 = vsel %vm18604_vm15, %v7875_v1, %v16157_v13  ;;  %v7794_v48 = vunpack.c.l.b16 %v7712_v3  ;;  %v8224_v38 = vld [vmem:[#allocation3 + $0x44] sm:$0xf] }
 0x336   : > { %v16150_v56 = vpop.f32.mrf.mxu1  ;;  %v16152_v20 = vor.u32 %v7045_v8, %v7042_v37  ;;  %v16154_v11 = vpop.f32.mrf.mxu3  ;;  %v7793_v37 = vunpack.c.l.b16 %v7711_v41  ;;  %v8431_v10 = vrot.slane %v8429_v39, 3  ;;  %v8434_v25 = vrot.slane %v8432_v34, 4  ;;  %v18606_v41 = vld [vmem:[#allocation31_spill] sm:$0xff] }
 0x337   : > { %v6715_v15 = vadd.f32 %v16016_v43, %v6567_v26  ;;  %vm18607_vm15 = vnez %v18606_v41 }
 0x338   : > { %v5567_v59 = vpop.f32.mrf.mxu2  ;;  %v7047_v8 = vsel %vm18603_vm9, %v16100_v28, %v16152_v20  ;;  %vm18605_vm9 = vnez %v18468_v47  ;;  %v16187_v39 = vpack.c.b16 %v7794_v48, %v7793_v37  ;;  %v16193_v12 = vor.u32 %v8434_v25, %v8431_v10 }
 0x339   : > { %v5645_v45 = vadd.f32 %v5567_v59, %v5079_v16  ;;  %7219 = vmatmul.bf16.gmra.mxu1 %v7047_v8  ;;  %v6840_v28 = vsel %vm18605_vm9, 0, %v6807_v33 }
 0x33a   : > { %v16173_v60 = vpop.f32.mrf.mxu0  ;;  %v6922_v8 = vunpack.c.l.b16 %v6840_v28  ;;  %v7885_v14 = vshll.u32 %v16187_v39, 16  ;;  %v8436_v10 = vsel %vm18609_vm2, %v16141_v29, %v16193_v12 }
 0x33b   : > { %v6022_v9 = vadd.f32 %v16102_v51, %v5645_v45  ;;  %8058 = vmatmul.bf16.gmra.mxu3 %v7880_v27  ;;  %v8258_v51 = vsel %vm18557_vm11, 0, %v8225_v42 }
 0x33c   : > { %v6808_v50 = vld [vmem:[#allocation3 + $0x60] sm:$0xf]  ;;  %v8340_v27 = vunpack.c.l.b16 %v8258_v51 }
 0x33d   : > { %v6568_v16 = vadd.f32 %v16121_v6, %v6022_v9  ;;  %7507 = vmatmul.bf16.gmra.mxu2 %v12615_v23  ;;  %v6841_v3 = vsel %vm18607_vm15, 0, %v6808_v50  ;;  %v8257_v6 = vsel %vm18555_vm7, 0, %v8224_v38  ;;  %v6723_v9 = vmax.f32 %v6715_v15, 0.0  ;;  %v18608_v50 = vld [vmem:[#allocation113_spill] sm:$0xff]  ;;  %v7686_v57 = vld [vmem:[#allocation3 + $0x60] sm:$0xf] }
 0x33e   : > { %v16183_v59 = vpop.f32.mrf.mxu1  ;;  %v6923_v33 = vunpack.c.l.b16 %v6841_v3  ;;  %v16185_v1 = vpop.f32.mrf.mxu3  ;;  %v8339_v37 = vunpack.c.l.b16 %v8257_v6  ;;  %v16209_v6 = vrot.slane %v7885_v14, 1 }
 0x33f   : > { %v6716_v34 = vadd.f32 %v16016_v43, %v6568_v16 }
 0x340   : > { %v5570_v26 = vpop.f32.mrf.mxu2  ;;  %v6944_v45 = vpack.c.b16 %v6923_v33, %v6922_v8  ;;  %v8365_v38 = vpack.c.b16 %v8340_v27, %v8339_v37  ;;  %v7681_v8 = vld [vmem:[#allocation3 + $0x4c] sm:$0xf] }
 0x341   : > { %v6724_v23 = vmax.f32 %v6716_v34, 0.0  ;;  %v5646_v42 = vadd.f32 %v5570_v26, %v18608_v50  ;;  %v7881_v34 = vshrl.u32 %v16135_v40, 16  ;;  %v18610_v26 = vld [vmem:[#allocation74_spill] sm:$0xff] }
 0x342   : > { %v7049_v28 = vshrl.u32 %v6944_v45, 16  ;;  %v7052_v3 = vshll.u32 %v6944_v45, 16  ;;  %v16196_v22 = vpop.f32.mrf.mxu0  ;;  %v18611_v45 = vld [vmem:[#allocation73_spill] sm:$0xff]  ;;  %v8438_v40 = vshrl.u32 %v8365_v38, 16  ;;  %v8441_v14 = vshll.u32 %v8365_v38, 16 }
 0x343   : > { %v12862_v48 = vpack.c.bf16 %v6724_v23, %v6723_v9  ;;  %v6023_v15 = vadd.f32 %v16133_v49, %v5646_v42  ;;  %v5081_v27 = vadd.f32 %v18611_v45, %v18610_v26  ;;  %v18612_v9 = vld [vmem:[#allocation76_spill] sm:$0xff]  ;;  %v18614_v23 = vld [vmem:[#allocation77_spill] sm:$0xff] }
 0x344   : > { %v7051_v43 = vrot.slane %v7049_v28, 3  ;;  %v7054_v16 = vrot.slane %v7052_v3, 4  ;;  %8624 = vmatmul.bf16.gmra.mxu0 %v8436_v10  ;;  %vm18613_vm13 = vnez %v18612_v9  ;;  %vm18615_vm7 = vnez %v18614_v23  ;;  %v6809_v28 = vld [vmem:[#allocation3 + $0x64] sm:$0xf]  ;;  %v18620_v9 = vld [vmem:[#allocation114_spill] sm:$0xff] }
 0x345   : > { %12911 = vst [vmem:[#allocation3 + $0x68] sm:$0xff] %v12862_v48   ;;  %v7713_v49 = vsel %vm18613_vm13, 0, %v7680_v24  ;;  %v7714_v29 = vsel %vm18615_vm7, 0, %v7681_v8  ;;  %v7883_v3 = vor.u32 %v7881_v34, %v16157_v13  ;;  %v6569_v37 = vadd.f32 %v16144_v46, %v6023_v15  ;;  %v16225_v48 = vld [vmem:[%s17587_s2] ss:$0 sm:$0xff]  ;;  %v12616_v13 = vld [vmem:[#allocation3 + $0x30] sm:$0xff] }
 0x346   : > { %v16202_v25 = vpop.f32.mrf.mxu1  ;;  %v16204_v51 = vor.u32 %v7054_v16, %v7051_v43  ;;  %v16206_v33 = vpop.f32.mrf.mxu3  ;;  %vm18616_vm7 = vsmask.f32 7424  ;;  %v7795_v16 = vunpack.c.l.b16 %v7713_v49  ;;  %v7796_v8 = vunpack.c.l.b16 %v7714_v29  ;;  %v18618_v49 = vld [vmem:[#allocation34_spill] sm:$0xff] }
 0x347   : > { %v7888_v43 = vsel %vm18616_vm7, %v7883_v3, %v16209_v6  ;;  %v6842_v46 = vsel %vm18474_vm4, 0, %v6809_v28  ;;  %v8440_v26 = vrot.slane %v8438_v40, 3  ;;  %v8443_v45 = vrot.slane %v8441_v14, 4 }
 0x348   : > { %v5572_v50 = vpop.f32.mrf.mxu2  ;;  %v7056_v42 = vsel %vm18609_vm2, %v16152_v20, %v16204_v51  ;;  %v8227_v20 = vld [vmem:[#allocation3 + $0x50] sm:$0xf]  ;;  %vm18619_vm7 = vnez %v18618_v49  ;;  %v16244_v40 = vpack.c.b16 %v7796_v8, %v7795_v16 }
 0x349   : > { %v5647_v24 = vadd.f32 %v5572_v50, %v5081_v27  ;;  %7224 = vmatmul.bf16.gmra.mxu1 %v7056_v42  ;;  %v8226_v27 = vld [vmem:[#allocation3 + $0x4c] sm:$0xf]  ;;  %v6753_v50 = vadd.f32 %v16225_v48, %v6569_v37  ;;  %v16250_v0 = vor.u32 %v8443_v45, %v8440_v26 }
 0x34a   : > { %v16230_v34 = vpop.f32.mrf.mxu0  ;;  %v7893_v62 = vshll.u32 %v16244_v40, 16  ;;  %v12668_v26 = vld [vmem:[#allocation10 + $0x108] sm:$0xff] }
 0x34b   : > { %v6024_v10 = vadd.f32 %v16154_v11, %v5647_v24  ;;  %8063 = vmatmul.bf16.gmra.mxu3 %v7888_v43  ;;  %v8260_v11 = vsel %vm18570_vm8, 0, %v8227_v20  ;;  %v6924_v24 = vunpack.c.l.b16 %v6842_v46  ;;  %8974 = vmatpush.bf16.msrb.mxu1 %v12668_v26  ;;  %vm18628_vm8 = vsmask.f32 7424 }
 0x34c   : > { %v6810_v15 = vld [vmem:[#allocation3 + $0x68] sm:$0xf] }
 0x34d   : > { %v6570_v42 = vadd.f32 %v16173_v60, %v6024_v10  ;;  %7512 = vmatmul.bf16.gmra.mxu2 %v12616_v13  ;;  %v6843_v29 = vsel %vm18619_vm7, 0, %v6810_v15  ;;  %v8259_v60 = vsel %vm18568_vm14, 0, %v8226_v27  ;;  %v8342_v13 = vunpack.c.l.b16 %v8260_v11 }
 0x34e   : > { %v16240_v3 = vpop.f32.mrf.mxu1  ;;  %v6925_v28 = vunpack.c.l.b16 %v6843_v29  ;;  %v16242_v43 = vpop.f32.mrf.mxu3  ;;  %v6761_v15 = vmax.f32 %v6753_v50, 0.0  ;;  %v8341_v16 = vunpack.c.l.b16 %v8259_v60  ;;  %v18621_v60 = vld [vmem:[#allocation79_spill] sm:$0xff]  ;;  %vm18627_vm14 = vsmask.f32 4352 }
 0x34f   : > { %v6754_v14 = vadd.f32 %v16225_v48, %v6570_v42 }
 0x350   : > { %v5575_v37 = vpop.f32.mrf.mxu2  ;;  %v6945_v10 = vpack.c.b16 %v6925_v28, %v6924_v24  ;;  %v8366_v27 = vpack.c.b16 %v8342_v13, %v8341_v16  ;;  %v7683_v24 = vld [vmem:[#allocation3 + $0x54] sm:$0xf]  ;;  %v7889_v28 = vshrl.u32 %v16187_v39, 16 }
 0x351   : > { %v6762_v23 = vmax.f32 %v6754_v14, 0.0  ;;  %v5648_v20 = vadd.f32 %v5575_v37, %v18620_v9  ;;  %v8445_v9 = vsel %vm18609_vm2, %v16193_v12, %v16250_v0  ;;  %v16266_v14 = vrot.slane %v7893_v62, 1  ;;  %v18622_v37 = vld [vmem:[#allocation78_spill] sm:$0xff]  ;;  %v18625_v12 = vld [vmem:[#allocation81_spill] sm:$0xff] }
 0x352   : > { %v7058_v46 = vshrl.u32 %v6945_v10, 16  ;;  %v7061_v29 = vshll.u32 %v6945_v10, 16  ;;  %v16253_v21 = vpop.f32.mrf.mxu0  ;;  %v5083_v10 = vadd.f32 %v18622_v37, %v18621_v60  ;;  %vm18626_vm2 = vnez %v18625_v12  ;;  %v12617_v60 = vld [vmem:[#allocation3 + $0x38] sm:$0xff] }
 0x353   : > { %v12867_v8 = vpack.c.bf16 %v6762_v23, %v6761_v15  ;;  %v6025_v50 = vadd.f32 %v16185_v1, %v5648_v20  ;;  %v18623_v1 = vld [vmem:[#allocation80_spill] sm:$0xff]  ;;  %v7716_v15 = vsel %vm18626_vm2, 0, %v7683_v24  ;;  %v7891_v39 = vor.u32 %v7889_v28, %v16209_v6  ;;  %v8229_v24 = vld [vmem:[#allocation3 + $0x58] sm:$0xf] }
 0x354   : > { %v7060_v42 = vrot.slane %v7058_v46, 3  ;;  %v7063_v58 = vrot.slane %v7061_v29, 4  ;;  %8629 = vmatmul.bf16.gmra.mxu0 %v8445_v9  ;;  %vm18624_vm13 = vnez %v18623_v1  ;;  %v6811_v46 = vld [vmem:[#allocation3 + $0x6c] sm:$0xf]  ;;  %v8447_v62 = vshrl.u32 %v8366_v27, 16  ;;  %v18632_v12 = vld [vmem:[#allocation82_spill] sm:$0xff] }
 0x355   : > { %12912 = vst [vmem:[#allocation3 + $0x70] sm:$0xff] %v12867_v8   ;;  %v7715_v13 = vsel %vm18624_vm13, 0, %v7682_v31  ;;  %v8450_v29 = vshll.u32 %v8366_v27, 16  ;;  %v6571_v16 = vadd.f32 %v16196_v22, %v6025_v50  ;;  %v7896_v31 = vsel %vm18628_vm8, %v7891_v39, %v16266_v14  ;;  %v8228_v50 = vld [vmem:[#allocation3 + $0x54] sm:$0xf] }
 0x356   : > { %v16259_v45 = vpop.f32.mrf.mxu1  ;;  %v16261_v11 = vor.u32 %v7063_v58, %v7060_v42  ;;  %v16263_v23 = vpop.f32.mrf.mxu3  ;;  %v7797_v42 = vunpack.c.l.b16 %v7715_v13  ;;  %v7798_v9 = vunpack.c.l.b16 %v7716_v15  ;;  %v6844_v6 = vsel %vm18485_vm10, 0, %v6811_v46  ;;  %v18630_v13 = vld [vmem:[#allocation38_spill] sm:$0xff] }
 0x357   : > { %v8449_v28 = vrot.slane %v8447_v62, 3  ;;  %v8452_v22 = vrot.slane %v8450_v29, 4  ;;  %v6926_v39 = vunpack.c.l.b16 %v6844_v6  ;;  %vm18633_vm8 = vsmask.f32 4352 }
 0x358   : > { %v5577_v20 = vpop.f32.mrf.mxu2  ;;  %v7065_v58 = vsel %vm18627_vm14, %v16204_v51, %v16261_v11  ;;  %vm18631_vm14 = vnez %v18630_v13  ;;  %v16296_v62 = vpack.c.b16 %v7798_v9, %v7797_v42 }
 0x359   : > { %v5649_v8 = vadd.f32 %v5577_v20, %v5083_v10  ;;  %7229 = vmatmul.bf16.gmra.mxu1 %v7065_v58  ;;  %v6755_v10 = vadd.f32 %v16225_v48, %v6571_v16  ;;  %v16302_v1 = vor.u32 %v8452_v22, %v8449_v28 }
 0x35a   : > { %v16282_v37 = vpop.f32.mrf.mxu0  ;;  %v7901_v54 = vshll.u32 %v16296_v62, 16 }
 0x35b   : > { %v6026_v26 = vadd.f32 %v16206_v33, %v5649_v8  ;;  %8068 = vmatmul.bf16.gmra.mxu3 %v7896_v31  ;;  %v8262_v33 = vsel %vm18582_vm5, 0, %v8229_v24 }
 0x35c   : > { %v6812_v27 = vld [vmem:[#allocation3 + $0x70] sm:$0xf] }
 0x35d   : > { %v6572_v20 = vadd.f32 %v16230_v34, %v6026_v26  ;;  %7517 = vmatmul.bf16.gmra.mxu2 %v12617_v60  ;;  %v6845_v15 = vsel %vm18631_vm14, 0, %v6812_v27  ;;  %v8261_v34 = vsel %vm18580_vm3, 0, %v8228_v50  ;;  %v8344_v26 = vunpack.c.l.b16 %v8262_v33 }
 0x35e   : > { %v16292_v58 = vpop.f32.mrf.mxu1  ;;  %v6927_v46 = vunpack.c.l.b16 %v6845_v15  ;;  %v16294_v8 = vpop.f32.mrf.mxu3  ;;  %v6763_v60 = vmax.f32 %v6755_v10, 0.0  ;;  %v8343_v42 = vunpack.c.l.b16 %v8261_v34  ;;  %v18634_v34 = vld [vmem:[#allocation115_spill] sm:$0xff]  ;;  %vm18640_vm3 = vsmask.f32 7424 }
 0x35f   : > { %v6756_v29 = vadd.f32 %v16225_v48, %v6572_v20 }
 0x360   : > { %v5580_v16 = vpop.f32.mrf.mxu2  ;;  %v6946_v31 = vpack.c.b16 %v6927_v46, %v6926_v39  ;;  %v8367_v50 = vpack.c.b16 %v8344_v26, %v8343_v42  ;;  %v7685_v39 = vld [vmem:[#allocation3 + $0x5c] sm:$0xf]  ;;  %v7897_v46 = vshrl.u32 %v16244_v40, 16  ;;  %v18636_v26 = vld [vmem:[#allocation85_spill] sm:$0xff] }
 0x361   : > { %v6764_v27 = vmax.f32 %v6756_v29, 0.0  ;;  %v5650_v24 = vadd.f32 %v5580_v16, %v18632_v12  ;;  %v8454_v12 = vsel %vm18633_vm8, %v16250_v0, %v16302_v1  ;;  %v16318_v29 = vrot.slane %v7901_v54, 1  ;;  %v18635_v16 = vld [vmem:[#allocation83_spill] sm:$0xff] }
 0x362   : > { %v7067_v6 = vshrl.u32 %v6946_v31, 16  ;;  %v7070_v15 = vshll.u32 %v6946_v31, 16  ;;  %v16305_v52 = vpop.f32.mrf.mxu0  ;;  %v5085_v31 = vadd.f32 %v18635_v16, %v18634_v34  ;;  %vm18637_vm2 = vnez %v18636_v26  ;;  %v12618_v34 = vld [vmem:[#allocation3 + $0x40] sm:$0xff] }
 0x363   : > { %v12872_v9 = vpack.c.bf16 %v6764_v27, %v6763_v60  ;;  %v6027_v10 = vadd.f32 %v16242_v43, %v5650_v24  ;;  %v7717_v43 = vsel %vm18637_vm2, 0, %v7684_v18  ;;  %v18638_v60 = vld [vmem:[#allocation86_spill] sm:$0xff]  ;;  %v6813_v24 = vld [vmem:[#allocation3 + $0x74] sm:$0xf]  ;;  %v8456_v40 = vshrl.u32 %v8367_v50, 16 }
 0x364   : > { %v7069_v20 = vrot.slane %v7067_v6, 3  ;;  %v7072_v7 = vrot.slane %v7070_v15, 4  ;;  %8634 = vmatmul.bf16.gmra.mxu0 %v8454_v12  ;;  %vm18639_vm13 = vnez %v18638_v60  ;;  %v7899_v6 = vor.u32 %v7897_v46, %v16266_v14  ;;  %v12667_v14 = vld [vmem:[#allocation10 + $0x100] sm:$0xff]  ;;  %v8230_v46 = vld [vmem:[#allocation3 + $0x5c] sm:$0xf] }
 0x365   : > { %12913 = vst [vmem:[#allocation3 + $0x78] sm:$0xff] %v12872_v9   ;;  %v7718_v0 = vsel %vm18639_vm13, 0, %v7685_v39  ;;  %v8459_v54 = vshll.u32 %v8367_v50, 16  ;;  %v6573_v15 = vadd.f32 %v16253_v21, %v6027_v10  ;;  %v7799_v9 = vunpack.c.l.b16 %v7717_v43  ;;  %v8231_v39 = vld [vmem:[#allocation3 + $0x60] sm:$0xf]  ;;  %8975 = vmatpush.bf16.msrb.mxu1 %v12667_v14 }
 0x366   : > { %v16311_v28 = vpop.f32.mrf.mxu1  ;;  %v16313_v22 = vor.u32 %v7072_v7, %v7069_v20  ;;  %v16315_v33 = vpop.f32.mrf.mxu3  ;;  %v7904_v18 = vsel %vm18640_vm3, %v7899_v6, %v16318_v29  ;;  %v7800_v20 = vunpack.c.l.b16 %v7718_v0  ;;  %v8458_v21 = vrot.slane %v8456_v40, 3  ;;  %v18643_v14 = vld [vmem:[#allocation87_spill] sm:$0xff] }
 0x367   : > { %v8461_v10 = vrot.slane %v8459_v54, 4  ;;  %vm18642_vm3 = vnez %v18494_v61  ;;  %v8264_v0 = vsel %vm18594_vm12, 0, %v8231_v39  ;;  %vm18644_vm13 = vsmask.f32 4352  ;;  %v9699_v61 = vld [vmem:[#allocation3 + $0x14] sm:$0x8] }
 0x368   : > { %v5582_v27 = vpop.f32.mrf.mxu2  ;;  %v7074_v7 = vsel %vm18633_vm8, %v16261_v11, %v16313_v22  ;;  %vm18641_vm8 = vnez %v18273_v30  ;;  %v16348_v40 = vpack.c.b16 %v7800_v20, %v7799_v9  ;;  %vm18650_vm12 = vsmask.f32 7424 }
 0x369   : > { %v5651_v42 = vadd.f32 %v5582_v27, %v5085_v31  ;;  %7234 = vmatmul.bf16.gmra.mxu1 %v7074_v7  ;;  %v6846_v11 = vsel %vm18641_vm8, 0, %v6813_v24  ;;  %v6757_v31 = vadd.f32 %v16225_v48, %v6573_v15 }
 0x36a   : > { %v16334_v16 = vpop.f32.mrf.mxu0  ;;  %v6928_v7 = vunpack.c.l.b16 %v6846_v11  ;;  %v7909_v60 = vshll.u32 %v16348_v40, 16 }
 0x36b   : > { %v6028_v12 = vadd.f32 %v16263_v23, %v5651_v42  ;;  %8073 = vmatmul.bf16.gmra.mxu3 %v7904_v18  ;;  %v8346_v18 = vunpack.c.l.b16 %v8264_v0 }
 0x36c   : > { %v6814_v50 = vld [vmem:[#allocation3 + $0x78] sm:$0xf] }
 0x36d   : > { %v6574_v43 = vadd.f32 %v16282_v37, %v6028_v12  ;;  %7522 = vmatmul.bf16.gmra.mxu2 %v12618_v34  ;;  %v6847_v23 = vsel %vm18642_vm3, 0, %v6814_v50  ;;  %v8263_v37 = vsel %vm18592_vm6, 0, %v8230_v46  ;;  %v6765_v12 = vmax.f32 %v6757_v31, 0.0 }
 0x36e   : > { %v16344_v27 = vpop.f32.mrf.mxu1  ;;  %v6929_v24 = vunpack.c.l.b16 %v6847_v23  ;;  %v16346_v6 = vpop.f32.mrf.mxu3  ;;  %v16354_v50 = vor.u32 %v8461_v10, %v8458_v21  ;;  %v8345_v9 = vunpack.c.l.b16 %v8263_v37  ;;  %v16370_v37 = vrot.slane %v7909_v60, 1 }
 0x36f   : > { %v6758_v54 = vadd.f32 %v16225_v48, %v6574_v43 }
 0x370   : > { %v5585_v15 = vpop.f32.mrf.mxu2  ;;  %v6947_v42 = vpack.c.b16 %v6929_v24, %v6928_v7  ;;  %v8368_v46 = vpack.c.b16 %v8346_v18, %v8345_v9  ;;  %v7687_v7 = vld [vmem:[#allocation3 + $0x64] sm:$0xf]  ;;  %v8463_v21 = vsel %vm18644_vm13, %v16302_v1, %v16354_v50  ;;  %v18646_v18 = vld [vmem:[#allocation89_spill] sm:$0xff] }
 0x371   : > { %v6766_v34 = vmax.f32 %v6758_v54, 0.0  ;;  %v5652_v39 = vadd.f32 %v5585_v15, %v18643_v14  ;;  %v7905_v54 = vshrl.u32 %v16296_v62, 16  ;;  %v18645_v15 = vld [vmem:[#allocation88_spill] sm:$0xff]  ;;  %vm18647_vm2 = vnez %v18646_v18  ;;  %v6815_v14 = vld [vmem:[#allocation3 + $0x7c] sm:$0xf] }
 0x372   : > { %v7076_v11 = vshrl.u32 %v6947_v42, 16  ;;  %v7079_v23 = vshll.u32 %v6947_v42, 16  ;;  %v16357_v26 = vpop.f32.mrf.mxu0  ;;  %v5087_v42 = vadd.f32 %v16079_v44, %v18645_v15  ;;  %v8465_v62 = vshrl.u32 %v8368_v46, 16 }
 0x373   : > { %v12877_v20 = vpack.c.bf16 %v6766_v34, %v6765_v12  ;;  %v6029_v31 = vadd.f32 %v16294_v8, %v5652_v39  ;;  %v7719_v8 = vsel %vm18647_vm2, 0, %v7686_v57  ;;  %v18648_v12 = vld [vmem:[#allocation90_spill] sm:$0xff]  ;;  %v7907_v39 = vor.u32 %v7905_v54, %v16318_v29 }
 0x374   : > { %v7078_v43 = vrot.slane %v7076_v11, 3  ;;  %v7081_v4 = vrot.slane %v7079_v23, 4  ;;  %8639 = vmatmul.bf16.gmra.mxu0 %v8463_v21  ;;  %vm18649_vm6 = vnez %v18648_v12  ;;  %v8468_v60 = vshll.u32 %v8368_v46, 16 }
 0x375   : > { %12914 = vst [vmem:[#allocation3 + $0x80] sm:$0xff] %v12877_v20   ;;  %v7720_v1 = vsel %vm18649_vm6, 0, %v7687_v7  ;;  %v6575_v11 = vadd.f32 %v16305_v52, %v6029_v31  ;;  %v7912_v44 = vsel %vm18650_vm12, %v7907_v39, %v16370_v37  ;;  %v7801_v57 = vunpack.c.l.b16 %v7719_v8  ;;  %v8233_v20 = vld [vmem:[#allocation3 + $0x68] sm:$0xf]  ;;  %v12682_v8 = vld [vmem:[#allocation10 + $0x178] sm:$0xff] }
 0x376   : > { %v16363_v10 = vpop.f32.mrf.mxu1  ;;  %v16365_v0 = vor.u32 %v7081_v4, %v7078_v43  ;;  %v16367_v24 = vpop.f32.mrf.mxu3  ;;  %v7802_v9 = vunpack.c.l.b16 %v7720_v1  ;;  %v12619_v7 = vld [vmem:[#allocation3 + $0x48] sm:$0xff]  ;;  %v8467_v46 = vrot.slane %v8465_v62, 3  ;;  %v8470_v52 = vrot.slane %v8468_v60, 4  ;;  %v12690_v60 = vld [vmem:[#allocation10 + $0x1b8] sm:$0xff]  ;;  %9514 = vmatpush.bf16.msra.mxu2 %v12682_v8 }
 0x377   : > { %v6759_v31 = vadd.f32 %v16225_v48, %v6575_v11  ;;  %vm18652_vm12 = vnez %v18290_v53  ;;  %10080 = vmatpush.bf16.msra.mxu3 %v12690_v60  ;;  %vm18653_vm6 = vsmask.f32 4352  ;;  %v12687_v53 = vld [vmem:[#allocation10 + $0x1a0] sm:$0xff] }
 0x378   : > { %v5587_v34 = vpop.f32.mrf.mxu2  ;;  %v7083_v4 = vsel %vm18644_vm13, %v16313_v22, %v16365_v0  ;;  %vm18651_vm13 = vnez %v18288_v17  ;;  %v16400_v62 = vpack.c.b16 %v7802_v9, %v7801_v57 }
 0x379   : > { %v5653_v23 = vadd.f32 %v5587_v34, %v5087_v42  ;;  %7239 = vmatmul.bf16.gmra.mxu1 %v7083_v4  ;;  %v6848_v22 = vsel %vm18651_vm13, 0, %v6815_v14  ;;  %v8232_v42 = vld [vmem:[#allocation3 + $0x64] sm:$0xf] }
 0x37a   : > { %v16386_v21 = vpop.f32.mrf.mxu0  ;;  %v6930_v34 = vunpack.c.l.b16 %v6848_v22 }
 0x37b   : > { %v6030_v43 = vadd.f32 %v16315_v33, %v5653_v23  ;;  %8078 = vmatmul.bf16.gmra.mxu3 %v7912_v44  ;;  %v8266_v33 = vsel %vm18607_vm15, 0, %v8233_v20  ;;  %v16403_v44 = vor.u32 %v8470_v52, %v8467_v46  ;;  %v8265_v20 = vsel %vm18605_vm9, 0, %v8232_v42 }
 0x37c   : > { %v6816_v29 = vld [vmem:[#allocation3 + $0x80] sm:$0xf]  ;;  %v6817_v39 = vld [vmem:[#allocation3 + $0x84] sm:$0xf]  ;;  %v8347_v42 = vunpack.c.l.b16 %v8265_v20  ;;  %v12714_v20 = vld [vmem:[#allocation10 + $0x1f8] sm:$0xff] }
 0x37d   : > { %v6576_v54 = vadd.f32 %v16334_v16, %v6030_v43  ;;  %7527 = vmatmul.bf16.gmra.mxu2 %v12619_v7  ;;  %v6849_v15 = vsel %vm18652_vm12, 0, %v6816_v29  ;;  %v8348_v43 = vunpack.c.l.b16 %v8266_v33  ;;  %v6767_v7 = vmax.f32 %v6759_v31, 0.0  ;;  %10457 = vmatpush.bf16.msra.mxu0 %v12714_v20 }
 0x37e   : > { %v16396_v1 = vpop.f32.mrf.mxu1  ;;  %v6931_v4 = vunpack.c.l.b16 %v6849_v15  ;;  %v16398_v14 = vpop.f32.mrf.mxu3  ;;  %v6850_v57 = vsel %vm18519_vm1, 0, %v6817_v39  ;;  %vm18658_vm15 = vsmask.f32 7424 }
 0x37f   : > { %v6760_v16 = vadd.f32 %v16225_v48, %v6576_v54  ;;  %v7917_v48 = vshll.u32 %v16400_v62, 16  ;;  %v6932_v31 = vunpack.c.l.b16 %v6850_v57  ;;  %v8369_v39 = vpack.c.b16 %v8348_v43, %v8347_v42 }
 0x380   : > { %v7488_v11 = vpop.f32.mrf.mxu2  ;;  %v6948_v23 = vpack.c.b16 %v6931_v4, %v6930_v34  ;;  %v7688_v34 = vld [vmem:[#allocation3 + $0x68] sm:$0xf]  ;;  %v7689_v4 = vld [vmem:[#allocation3 + $0x6c] sm:$0xf] }
 0x381   : > { %v6768_v22 = vmax.f32 %v6760_v16, 0.0  ;;  %v7600_v29 = vadd.f32 %v7488_v11, %v16098_v5  ;;  %v8472_v5 = vsel %vm18653_vm6, %v16354_v50, %v16403_v44  ;;  %v7913_v11 = vshrl.u32 %v16348_v40, 16 }
 0x382   : > { %v7085_v9 = vshrl.u32 %v6948_v23, 16  ;;  %v7088_v15 = vshll.u32 %v6948_v23, 16  ;;  %v16414_v52 = vpop.f32.mrf.mxu0  ;;  %v7919_v23 = vrot.slane %v7917_v48, 1  ;;  %v6949_v43 = vpack.c.b16 %v6932_v31, %v6932_v31  ;;  %v8235_v31 = vld [vmem:[#allocation3 + $0x70] sm:$0xf] }
 0x383   : > { %v12882_v54 = vpack.c.bf16 %v6768_v22, %v6767_v7  ;;  %v16412_v46 = vadd.f32 %v16346_v6, %v7600_v29  ;;  %v18654_v7 = vld [vmem:[#allocation91_spill] sm:$0xff]  ;;  %v18656_v29 = vld [vmem:[#allocation92_spill] sm:$0xff]  ;;  %v8474_v40 = vshrl.u32 %v8369_v39, 16  ;;  %v8477_v48 = vshll.u32 %v8369_v39, 16 }
 0x384   : > { %v7087_v33 = vrot.slane %v7085_v9, 3  ;;  %v7090_v8 = vrot.slane %v7088_v15, 4  ;;  %8644 = vmatmul.bf16.gmra.mxu0 %v8472_v5  ;;  %vm18655_vm2 = vnez %v18654_v7  ;;  %vm18657_vm9 = vnez %v18656_v29  ;;  %v8234_v39 = vld [vmem:[#allocation3 + $0x6c] sm:$0xf]  ;;  %v7691_v7 = vld [vmem:[#allocation3 + $0x74] sm:$0xf] }
 0x385   : > { %12915 = vst [vmem:[#allocation3 + $0x88] sm:$0xff] %v12882_v54   ;;  %v7721_v22 = vsel %vm18655_vm2, 0, %v7688_v34  ;;  %v7722_v57 = vsel %vm18657_vm9, 0, %v7689_v4  ;;  %v7915_v15 = vor.u32 %v7913_v11, %v16370_v37  ;;  %v12620_v4 = vld [vmem:[#allocation3 + $0x50] sm:$0xff]  ;;  %v7094_v37 = vshrl.u32 %v6949_v43, 16 }
 0x386   : > { %v16419_v60 = vpop.f32.mrf.mxu1  ;;  %v7091_v16 = vor.u32 %v7090_v8, %v7087_v33  ;;  %v16421_v6 = vpop.f32.mrf.mxu3  ;;  %v7803_v33 = vunpack.c.l.b16 %v7721_v22  ;;  %v7804_v8 = vunpack.c.l.b16 %v7722_v57  ;;  %v7097_v11 = vshll.u32 %v6949_v43, 16 }
 0x387   : > { %v7920_v42 = vsel %vm18658_vm15, %v7915_v15, %v7919_v23  ;;  %v8479_v20 = vrot.slane %v8477_v48, 4  ;;  %v7096_v15 = vrot.slane %v7094_v37, 3  ;;  %vm18659_vm15 = vmmov %vm18653_vm6 }
 0x388   : > { %v7490_v9 = vpop.f32.mrf.mxu2  ;;  %v7092_v50 = vsel %vm18653_vm6, %v16365_v0, %v7091_v16  ;;  %v12722_v0 = vld [vmem:[#allocation10 + $0x238] sm:$0xff]  ;;  %v16440_v57 = vpack.c.b16 %v7804_v8, %v7803_v33  ;;  %vm18660_vm6 = vnez %v18266_v2  ;;  %vm18663_vm2 = vmmov %vm18659_vm15 }
 0x389   : > { %v7601_v54 = vadd.f32 %v7490_v9, %v16131_v35  ;;  %7244 = vmatmul.bf16.gmra.mxu1 %v7092_v50  ;;  %v8476_v35 = vrot.slane %v8474_v40, 3 }
 0x38a   : > { %v16436_v5 = vpop.f32.mrf.mxu0  ;;  %11003 = vmatpush.bf16.msra.mxu1 %v12722_v0 }
 0x38b   : > { %v16434_v34 = vadd.f32 %v16367_v24, %v7601_v54  ;;  %8083 = vmatmul.bf16.gmra.mxu3 %v7920_v42  ;;  %v8268_v24 = vsel %vm18619_vm7, 0, %v8235_v31  ;;  %v7099_v54 = vrot.slane %v7097_v11, 4  ;;  %v8267_v42 = vsel %vm18474_vm4, 0, %v8234_v39  ;;  %v7690_v31 = vld [vmem:[#allocation3 + $0x70] sm:$0xf] }
 0x38c   : > { %v8480_v40 = vor.u32 %v8479_v20, %v8476_v35  ;;  %v8350_v48 = vunpack.c.l.b16 %v8268_v24  ;;  %v8349_v8 = vunpack.c.l.b16 %v8267_v42  ;;  %v7921_v35 = vshrl.u32 %v16400_v62, 16  ;;  %v18661_v24 = vld [vmem:[#allocation94_spill] sm:$0xff] }
 0x38d   : > { %7532 = vmatmul.bf16.gmra.mxu2 %v12620_v4  ;;  %v7925_v4 = vshll.u32 %v16440_v57, 16  ;;  %v7100_v29 = vor.u32 %v7099_v54, %v7096_v15  ;;  %vm18662_vm9 = vnez %v18661_v24 }
 0x38e   : > { %v16438_v9 = vpop.f32.mrf.mxu1  ;;  %v8044_v22 = vpop.f32.mrf.mxu3  ;;  %v8481_v37 = vsel %vm18659_vm15, %v16403_v44, %v8480_v40  ;;  %v8370_v11 = vpack.c.b16 %v8350_v48, %v8349_v8  ;;  %v7923_v42 = vor.u32 %v7921_v35, %v7919_v23  ;;  %vm18664_vm15 = vsmask.f32 7424 }
 0x38f   : > { %v7927_v20 = vrot.slane %v7925_v4, 1  ;;  %v7101_v54 = vsel %vm18663_vm2, %v7091_v16, %v7100_v29  ;;  %v8236_v29 = vld [vmem:[#allocation3 + $0x74] sm:$0xf] }
 0x390   : > { %v7493_v50 = vpop.f32.mrf.mxu2  ;;  %v8486_v48 = vshll.u32 %v8370_v11, 16 }
 0x391   : > { %v7602_v43 = vadd.f32 %v7493_v50, %v16150_v56  ;;  %v7724_v50 = vsel %vm18662_vm9, 0, %v7691_v7  ;;  %v7928_v8 = vsel %vm18664_vm15, %v7923_v42, %v7927_v20  ;;  %v8237_v7 = vld [vmem:[#allocation3 + $0x78] sm:$0xf]  ;;  %vm18665_vm15 = vnez %v18282_v19  ;;  %v12622_v19 = vld [vmem:[#allocation3 + $0x60] sm:$0xff] }
 0x392   : > { %v16451_v33 = vpop.f32.mrf.mxu0  ;;  %v7806_v62 = vunpack.c.l.b16 %v7724_v50  ;;  %v8488_v23 = vrot.slane %v8486_v48, 4  ;;  %vm18667_vm9 = vsmask.f32 7424 }
 0x393   : > { %v16449_v0 = vadd.f32 %v16398_v14, %v7602_v43  ;;  %v7723_v14 = vsel %vm18660_vm6, 0, %v7690_v31  ;;  %v8483_v43 = vshrl.u32 %v8370_v11, 16  ;;  %v12621_v31 = vld [vmem:[#allocation3 + $0x58] sm:$0xff]  ;;  %vm18707_vm6 = vsmask.f32 7424 }
 0x394   : > { %8649 = vmatmul.bf16.gmra.mxu0 %v8481_v37  ;;  %v7805_v37 = vunpack.c.l.b16 %v7723_v14  ;;  %v8270_v14 = vsel %vm18631_vm14, 0, %v8237_v7  ;;  %v7693_v7 = vld [vmem:[#allocation3 + $0x7c] sm:$0xf] }
 0x395   : > { %v8485_v16 = vrot.slane %v8483_v43, 3  ;;  %v8352_v43 = vunpack.c.l.b16 %v8270_v14  ;;  %v12651_v14 = vld [vmem:[#allocation3 + $0x10] sm:$0xff] }
 0x396   : > { %v16455_v39 = vpop.f32.mrf.mxu1  ;;  %v16457_v56 = vpop.f32.mrf.mxu3 }
 0x398   : > { %v7495_v15 = vpop.f32.mrf.mxu2 }
 0x399   : > { %v7603_v44 = vadd.f32 %v7495_v15, %v16183_v59  ;;  %7249 = vmatmul.bf16.gmra.mxu1 %v7101_v54  ;;  %v12681_v59 = vld [vmem:[#allocation10 + $0x170] sm:$0xff]  ;;  %v16474_v15 = vpack.c.b16 %v7806_v62, %v7805_v37  ;;  %v8269_v54 = vsel %vm18485_vm10, 0, %v8236_v29  ;;  %v16489_v29 = vadd.f32 %v16357_v26, %v16412_v46 }
 0x39a   : > { %v16470_v2 = vpop.f32.mrf.mxu0  ;;  %9515 = vmatpush.bf16.msra.mxu2 %v12681_v59  ;;  %v8351_v62 = vunpack.c.l.b16 %v8269_v54 }
 0x39b   : > { %v16468_v4 = vadd.f32 %v16421_v6, %v7603_v44  ;;  %8088 = vmatmul.bf16.gmra.mxu3 %v7928_v8  ;;  %v12689_v6 = vld [vmem:[#allocation10 + $0x1b0] sm:$0xff]  ;;  %v8489_v44 = vor.u32 %v8488_v23, %v8485_v16  ;;  %v7933_v48 = vshll.u32 %v16474_v15, 16 }
 0x39c   : > { %10081 = vmatpush.bf16.msra.mxu3 %v12689_v6  ;;  %v8371_v24 = vpack.c.b16 %v8352_v43, %v8351_v62  ;;  %v12713_v23 = vld [vmem:[#allocation10 + $0x1f0] sm:$0xff] }
 0x39d   : > { %7537 = vmatmul.bf16.gmra.mxu2 %v12621_v31  ;;  %v7692_v31 = vld [vmem:[#allocation3 + $0x78] sm:$0xf]  ;;  %v8490_v59 = vsel %vm18663_vm2, %v8480_v40, %v8489_v44  ;;  %v7935_v16 = vrot.slane %v7933_v48, 1  ;;  %vm18666_vm2 = vnez %v18286_v63  ;;  %10458 = vmatpush.bf16.msra.mxu0 %v12713_v23  ;;  %v8239_v63 = vld [vmem:[#allocation3 + $0x80] sm:$0xf] }
 0x39e   : > { %v16472_v35 = vpop.f32.mrf.mxu1  ;;  %v8049_v11 = vpop.f32.mrf.mxu3  ;;  %v7726_v40 = vsel %vm18666_vm2, 0, %v7693_v7  ;;  %v8492_v46 = vshrl.u32 %v8371_v24, 16  ;;  %v8495_v43 = vshll.u32 %v8371_v24, 16  ;;  %v12721_v7 = vld [vmem:[#allocation10 + $0x230] sm:$0xff]  ;;  %v16509_v24 = vadd.f32 %v16386_v21, %v16434_v34 }
 0x39f   : > { %v7808_v48 = vunpack.c.l.b16 %v7726_v40  ;;  %11004 = vmatpush.bf16.msra.mxu1 %v12721_v7  ;;  %v16528_v7 = vadd.f32 %v16414_v52, %v16449_v0  ;;  %vm18669_vm2 = vnez %v18300_v36 }
 0x3a0   : > { %v7498_v50 = vpop.f32.mrf.mxu2 }
 0x3a1   : > { %v7604_v42 = vadd.f32 %v7498_v50, %v16202_v25  ;;  %v7725_v50 = vsel %vm18665_vm15, 0, %v7692_v31  ;;  %vm18670_vm15 = vnez %v18304_v55 }
 0x3a2   : > { %v16484_v37 = vpop.f32.mrf.mxu0 }
 0x3a3   : > { %v16482_v8 = vadd.f32 %v8044_v22, %v7604_v42  ;;  %v7929_v22 = vshrl.u32 %v16440_v57, 16  ;;  %v7807_v57 = vunpack.c.l.b16 %v7725_v50  ;;  %v8272_v50 = vsel %vm18642_vm3, 0, %v8239_v63 }
 0x3a4   : > { %8654 = vmatmul.bf16.gmra.mxu0 %v8490_v59 }
 0x3a5   : > { %v7931_v42 = vor.u32 %v7929_v22, %v7927_v20  ;;  %v8494_v20 = vrot.slane %v8492_v46, 3  ;;  %v8497_v22 = vrot.slane %v8495_v43, 4 }
 0x3a6   : > { %v16491_v6 = vpop.f32.mrf.mxu1  ;;  %v16493_v25 = vpop.f32.mrf.mxu3 }
 0x3a7   : > { %v7936_v62 = vsel %vm18667_vm9, %v7931_v42, %v7935_v16  ;;  %v8498_v42 = vor.u32 %v8497_v22, %v8494_v20  ;;  %vm18668_vm9 = vsmask.f32 4352  ;;  %v12652_v22 = vld [vmem:[#allocation3 + $0x18] sm:$0xff] }
 0x3a8   : > { %v7500_v54 = vpop.f32.mrf.mxu2 }
 0x3a9   : > { %v7605_v26 = vadd.f32 %v7500_v54, %v16240_v3  ;;  %8976 = vmatmul.bf16.vlgmr.msrb.gmra.mxu1 %v12651_v14  ;;  %v8238_v3 = vld [vmem:[#allocation3 + $0x7c] sm:$0xf] }
 0x3aa   : > { %v16505_v31 = vpop.f32.mrf.mxu0 }
 0x3ab   : > { %v16503_v59 = vadd.f32 %v16457_v56, %v7605_v26  ;;  %8093 = vmatmul.bf16.gmra.mxu3 %v7936_v62  ;;  %v16513_v56 = vpack.c.b16 %v7808_v48, %v7807_v57  ;;  %v8354_v26 = vunpack.c.l.b16 %v8272_v50  ;;  %v7694_v62 = vld [vmem:[#allocation3 + $0x80] sm:$0xf]  ;;  %v7695_v57 = vld [vmem:[#allocation3 + $0x84] sm:$0xf]  ;;  %v8499_v48 = vsel %vm18668_vm9, %v8489_v44, %v8498_v42 }
 0x3ac   : > { %v7727_v50 = vsel %vm18669_vm2, 0, %v7694_v62  ;;  %v7728_v44 = vsel %vm18670_vm15, 0, %v7695_v57  ;;  %vm18671_vm9 = vsmask.f32 7424  ;;  %v8241_v62 = vld [vmem:[#allocation3 + $0x88] sm:$0xf] }
 0x3ad   : > { %7542 = vmatmul.bf16.gmra.mxu2 %v12622_v19  ;;  %v8271_v19 = vsel %vm18641_vm8, 0, %v8238_v3  ;;  %v7941_v46 = vshll.u32 %v16513_v56, 16  ;;  %vm18680_vm2 = vsmask.f32 4352  ;;  %vm18718_vm8 = vsmask.f32 4352 }
 0x3ae   : > { %v16511_v23 = vpop.f32.mrf.mxu1  ;;  %v8054_v14 = vpop.f32.mrf.mxu3  ;;  %v8353_v43 = vunpack.c.l.b16 %v8271_v19 }
 0x3af   : > { %v7943_v20 = vrot.slane %v7941_v46, 1  ;;  %v12623_v46 = vld [vmem:[#allocation3 + $0x68] sm:$0xff] }
 0x3b0   : > { %v7503_v40 = vpop.f32.mrf.mxu2  ;;  %v8372_v63 = vpack.c.b16 %v8354_v26, %v8353_v43  ;;  %v7809_v43 = vunpack.c.l.b16 %v7727_v50 }
 0x3b1   : > { %v7606_v54 = vadd.f32 %v7503_v40, %v16259_v45 }
 0x3b2   : > { %v16523_v34 = vpop.f32.mrf.mxu0  ;;  %v8501_v0 = vshrl.u32 %v8372_v63, 16 }
 0x3b3   : > { %v16521_v21 = vadd.f32 %v8049_v11, %v7606_v54  ;;  %v7937_v11 = vshrl.u32 %v16474_v15, 16  ;;  %v8504_v54 = vshll.u32 %v8372_v63, 16  ;;  %v16548_v63 = vadd.f32 %v16436_v5, %v16468_v4 }
 0x3b4   : > { %8659 = vmatmul.bf16.gmra.mxu0 %v8499_v48  ;;  %v7810_v48 = vunpack.c.l.b16 %v7728_v44  ;;  %v8503_v57 = vrot.slane %v8501_v0, 3  ;;  %v8274_v44 = vsel %vm18652_vm12, 0, %v8241_v62 }
 0x3b5   : > { %v7939_v19 = vor.u32 %v7937_v11, %v7935_v16  ;;  %v8506_v16 = vrot.slane %v8504_v54, 4  ;;  %v8240_v11 = vld [vmem:[#allocation3 + $0x84] sm:$0xf]  ;;  %v8356_v4 = vunpack.c.l.b16 %v8274_v44  ;;  %v12712_v44 = vld [vmem:[#allocation10 + $0x1e8] sm:$0xff] }
 0x3b6   : > { %v16530_v3 = vpop.f32.mrf.mxu1  ;;  %v16532_v45 = vpop.f32.mrf.mxu3  ;;  %10459 = vmatpush.bf16.msra.mxu0 %v12712_v44 }
 0x3b7   : > { %v7944_v26 = vsel %vm18671_vm9, %v7939_v19, %v7943_v20  ;;  %v16561_v5 = vor.u32 %v8506_v16, %v8503_v57  ;;  %vm18672_vm9 = vsmask.f32 4352 }
 0x3b8   : > { %v7505_v40 = vpop.f32.mrf.mxu2 }
 0x3b9   : > { %v7607_v52 = vadd.f32 %v7505_v40, %v16292_v58  ;;  %8981 = vmatmul.bf16.gmra.mxu1 %v12652_v22  ;;  %v12680_v58 = vld [vmem:[#allocation10 + $0x168] sm:$0xff]  ;;  %v8508_v62 = vsel %vm18672_vm9, %v8498_v42, %v16561_v5  ;;  %vm18675_vm9 = vsmask.f32 7424 }
 0x3ba   : > { %v16544_v36 = vpop.f32.mrf.mxu0  ;;  %v12688_v40 = vld [vmem:[#allocation10 + $0x1a8] sm:$0xff]  ;;  %9516 = vmatpush.bf16.msra.mxu2 %v12680_v58 }
 0x3bb   : > { %v16542_v15 = vadd.f32 %v16493_v25, %v7607_v52  ;;  %8098 = vmatmul.bf16.gmra.mxu3 %v7944_v26  ;;  %v16554_v25 = vpack.c.b16 %v7810_v48, %v7809_v43  ;;  %v8273_v52 = vsel %vm18651_vm13, 0, %v8240_v11  ;;  %v16572_v11 = vadd.f32 %v16451_v33, %v16482_v8 }
 0x3bc   : > { %10082 = vmatpush.bf16.msra.mxu3 %v12688_v40  ;;  %v8355_v48 = vunpack.c.l.b16 %v8273_v52  ;;  %v12653_v40 = vld [vmem:[#allocation3 + $0x20] sm:$0xff]  ;;  %vm18706_vm13 = vsmask.f32 4352 }
 0x3bd   : > { %7547 = vmatmul.bf16.gmra.mxu2 %v12623_v46  ;;  %v7949_v54 = vshll.u32 %v16554_v25, 16  ;;  %v7696_v46 = vld [vmem:[#allocation3 + $0x88] sm:$0x1] }
 0x3be   : > { %v16550_v22 = vpop.f32.mrf.mxu1  ;;  %v16552_v50 = vpop.f32.mrf.mxu3  ;;  %v8373_v58 = vpack.c.b16 %v8356_v4, %v8355_v48  ;;  %v12624_v48 = vld [vmem:[#allocation3 + $0x70] sm:$0xff] }
 0x3bf   : > { %v16579_v16 = vrot.slane %v7949_v54, 1  ;;  %v8242_v54 = vld [vmem:[#allocation3 + $0x8c] sm:$0xf] }
 0x3c0   : > { %v7508_v19 = vpop.f32.mrf.mxu2  ;;  %v8510_v8 = vshrl.u32 %v8373_v58, 16  ;;  %v8513_v4 = vshll.u32 %v8373_v58, 16  ;;  %v16593_v58 = vadd.f32 %v16470_v2, %v16503_v59  ;;  %10083 = vmatpush.bf16.msra.mxu3 %v12687_v53  ;;  %v9701_v53 = vld [vmem:[#allocation3 + $0x1c] sm:$0xf] }
 0x3c1   : > { %v7608_v0 = vadd.f32 %v7508_v19, %v16311_v28  ;;  %v18673_v19 = vld [vmem:[#allocation102_spill] sm:$0xff] }
 0x3c2   : > { %v16566_v43 = vpop.f32.mrf.mxu0  ;;  %vm18674_vm15 = vnez %v18673_v19  ;;  %v12720_v19 = vld [vmem:[#allocation10 + $0x228] sm:$0xff]  ;;  %v8515_v44 = vrot.slane %v8513_v4, 4 }
 0x3c3   : > { %v16564_v26 = vadd.f32 %v8054_v14, %v7608_v0  ;;  %v7945_v14 = vshrl.u32 %v16513_v56, 16  ;;  %v7729_v52 = vsel %vm18674_vm15, 0, %v7696_v46  ;;  %v12679_v46 = vld [vmem:[#allocation10 + $0x160] sm:$0xff]  ;;  %11005 = vmatpush.bf16.msra.mxu1 %v12720_v19 }
 0x3c4   : > { %8664 = vmatmul.bf16.gmra.mxu0 %v8508_v62  ;;  %v7811_v56 = vunpack.c.l.b16 %v7729_v52  ;;  %9517 = vmatpush.bf16.msra.mxu2 %v12679_v46  ;;  %v9702_v19 = vld [vmem:[#allocation3 + $0x20] sm:$0xf]  ;;  %v12685_v46 = vld [vmem:[#allocation10 + $0x190] sm:$0xff] }
 0x3c5   : > { %v7947_v0 = vor.u32 %v7945_v14, %v7943_v20  ;;  %v12711_v20 = vld [vmem:[#allocation10 + $0x1e0] sm:$0xff] }
 0x3c6   : > { %v16574_v28 = vpop.f32.mrf.mxu1  ;;  %v16576_v57 = vpop.f32.mrf.mxu3  ;;  %10460 = vmatpush.bf16.msra.mxu0 %v12711_v20  ;;  %v12709_v20 = vld [vmem:[#allocation10 + $0x1d0] sm:$0xff] }
 0x3c7   : > { %v7952_v62 = vsel %vm18675_vm9, %v7947_v0, %v16579_v16  ;;  %v12678_v0 = vld [vmem:[#allocation10 + $0x158] sm:$0xff]  ;;  %vm18677_vm9 = vnez %v18676_v32 }
 0x3c8   : > { %v7510_v42 = vpop.f32.mrf.mxu2  ;;  %9518 = vmatpush.bf16.msra.mxu2 %v12678_v0  ;;  %v9735_v30 = vsel %vm18677_vm9, 0, %v9702_v19  ;;  %v16618_v0 = vadd.f32 %v16484_v37, %v16521_v21  ;;  %v12676_v19 = vld [vmem:[#allocation10 + $0x148] sm:$0xff] }
 0x3c9   : > { %v7609_v33 = vadd.f32 %v7510_v42, %v16344_v27  ;;  %8986 = vmatmul.bf16.gmra.mxu1 %v12653_v40  ;;  %v8512_v27 = vrot.slane %v8510_v8, 3  ;;  %v8275_v42 = vsel %vm18519_vm1, 0, %v8242_v54  ;;  %v12710_v8 = vld [vmem:[#allocation10 + $0x1d8] sm:$0xff]  ;;  %v12677_v54 = vld [vmem:[#allocation10 + $0x150] sm:$0xff] }
 0x3ca   : > { %v16589_v14 = vpop.f32.mrf.mxu0  ;;  %v8357_v59 = vunpack.c.l.b16 %v8275_v42  ;;  %10461 = vmatpush.bf16.msra.mxu0 %v12710_v8  ;;  %v18681_v42 = vld [vmem:[#allocation16_spill] sm:$0xff]  ;;  %v7953_v8 = vshrl.u32 %v16554_v25, 16 }
 0x3cb   : > { %v16587_v55 = vadd.f32 %v16532_v45, %v7609_v33  ;;  %8103 = vmatmul.bf16.gmra.mxu3 %v7952_v62  ;;  %v7828_v45 = vpack.c.b16 %v7811_v56, %v7811_v56  ;;  %v12686_v33 = vld [vmem:[#allocation10 + $0x198] sm:$0xff]  ;;  %v16602_v2 = vor.u32 %v8515_v44, %v8512_v27  ;;  %vm18682_vm1 = vnez %v18681_v42 }
 0x3cc   : > { %v9700_v62 = vld [vmem:[#allocation3 + $0x18] sm:$0xf]  ;;  %10084 = vmatpush.bf16.msra.mxu3 %v12686_v33  ;;  %9519 = vmatpush.bf16.msra.mxu2 %v12677_v54 }
 0x3cd   : > { %7552 = vmatmul.bf16.gmra.mxu2 %v12624_v48  ;;  %v7957_v17 = vshll.u32 %v7828_v45, 16  ;;  %v8517_v44 = vsel %vm18680_vm2, %v16561_v5, %v16602_v2  ;;  %v8374_v45 = vpack.c.b16 %v8357_v59, %v8357_v59  ;;  %v12654_v5 = vld [vmem:[#allocation3 + $0x28] sm:$0xff] }
 0x3ce   : > { %v16595_v40 = vpop.f32.mrf.mxu1  ;;  %v16597_v52 = vpop.f32.mrf.mxu3  ;;  %10462 = vmatpush.bf16.msra.mxu0 %v12709_v20 }
 0x3cf   : > { %v8519_v25 = vshrl.u32 %v8374_v45, 16 }
 0x3d0   : > { %v7513_v4 = vpop.f32.mrf.mxu2  ;;  %10085 = vmatpush.bf16.msra.mxu3 %v12685_v46  ;;  %9520 = vmatpush.bf16.msra.mxu2 %v12676_v19 }
 0x3d1   : > { %v7610_v48 = vadd.f32 %v7513_v4, %v16363_v10  ;;  %v18678_v10 = vld [vmem:[#allocation17_spill] sm:$0xff]  ;;  %v7959_v4 = vrot.slane %v7957_v17, 1 }
 0x3d2   : > { %vm18679_vm15 = vnez %v18678_v10  ;;  %v16625_v59 = vpop.f32.mrf.mxu0  ;;  %v7955_v10 = vor.u32 %v7953_v8, %v16579_v16  ;;  %v12675_v16 = vld [vmem:[#allocation10 + $0x140] sm:$0xff] }
 0x3d3   : > { %v16605_v56 = vadd.f32 %v16552_v50, %v7610_v48  ;;  %v9733_v27 = vsel %vm18679_vm15, 0, %v9700_v62  ;;  %v9734_v50 = vsel %vm18682_vm1, 0, %v9701_v53  ;;  %v9817_v48 = vunpack.c.l.b16 %v9735_v30  ;;  %v12708_v62 = vld [vmem:[#allocation10 + $0x1c8] sm:$0xff]  ;;  %v18683_v53 = vld [vmem:[#allocation15_spill] sm:$0xff] }
 0x3d4   : > { %8669 = vmatmul.bf16.gmra.mxu0 %v8517_v44  ;;  %vm18684_vm1 = vnez %v18683_v53  ;;  %v12684_v44 = vld [vmem:[#allocation10 + $0x188] sm:$0xff]  ;;  %v9815_v42 = vunpack.c.l.b16 %v9733_v27  ;;  %v9816_v51 = vunpack.c.l.b16 %v9734_v50  ;;  %v8522_v30 = vshll.u32 %v8374_v45, 16  ;;  %v12707_v8 = vld [vmem:[#allocation10 + $0x1c0] sm:$0xff]  ;;  %9521 = vmatpush.bf16.msra.mxu2 %v12675_v16 }
 0x3d5   : > { %v9732_v37 = vsel %vm18684_vm1, 0, %v9699_v61  ;;  %vm18685_vm15 = vsmask.f32 7424  ;;  %v12625_v61 = vld [vmem:[#allocation3 + $0x78] sm:$0xff]  ;;  %10463 = vmatpush.bf16.msra.mxu0 %v12708_v62  ;;  %10086 = vmatpush.bf16.msra.mxu3 %v12684_v44  ;;  %v12683_v27 = vld [vmem:[#allocation10 + $0x180] sm:$0xff]  ;;  %v16637_v45 = vadd.f32 %v16505_v31, %v16542_v15 }
 0x3d6   : > { %v16620_v33 = vpop.f32.mrf.mxu1  ;;  %v16622_v32 = vpop.f32.mrf.mxu3  ;;  %v7960_v54 = vsel %vm18685_vm15, %v7955_v10, %v7959_v4  ;;  %v9814_v46 = vunpack.c.l.b16 %v9732_v37  ;;  %v9848_v20 = vpack.c.b16 %v9817_v48, %v9816_v51  ;;  %v9704_v37 = vld [vmem:[#allocation3 + $0x28] sm:$0xf] }
 0x3d8   : > { %v7515_v21 = vpop.f32.mrf.mxu2  ;;  %v9847_v50 = vpack.c.b16 %v9815_v42, %v9814_v46  ;;  %v9876_v19 = vshll.u32 %v9848_v20, 16  ;;  %v9703_v42 = vld [vmem:[#allocation3 + $0x24] sm:$0xf]  ;;  %v9154_v46 = vld [vmem:[#allocation3 + $0x14] sm:$0xf] }
 0x3d9   : > { %v7611_v17 = vadd.f32 %v7515_v21, %v16396_v1  ;;  %8991 = vmatmul.bf16.gmra.mxu1 %v12654_v5  ;;  %v8521_v1 = vrot.slane %v8519_v25, 3  ;;  %v8524_v5 = vrot.slane %v8522_v30, 4  ;;  %10464 = vmatpush.bf16.msra.mxu0 %v12707_v8  ;;  %v9737_v30 = vsel %vm18343_vm0, 0, %v9704_v37 }
 0x3da   : > { %10087 = vmatpush.bf16.msra.mxu3 %v12683_v27  ;;  %v9865_v62 = vshrl.u32 %v9847_v50, 16  ;;  %v9868_v53 = vshll.u32 %v9847_v50, 16  ;;  %v16644_v10 = vpop.f32.mrf.mxu0  ;;  %v9878_v15 = vrot.slane %v9876_v19, 4  ;;  %v16657_v27 = vadd.f32 %v16523_v34, %v16564_v26 }
 0x3db   : > { %v16633_v13 = vadd.f32 %v16576_v57, %v7611_v17  ;;  %8108 = vmatmul.bf16.gmra.mxu3 %v7960_v54  ;;  %v9873_v57 = vshrl.u32 %v9848_v20, 16  ;;  %v8525_v44 = vor.u32 %v8524_v5, %v8521_v1  ;;  %v9153_v54 = vld [vmem:[#allocation3 + $0x10] sm:$0xf]  ;;  %v9155_v1 = vld [vmem:[#allocation3 + $0x18] sm:$0xf]  ;;  %v9819_v19 = vunpack.c.l.b16 %v9737_v30 }
 0x3dc   : > { %v9867_v20 = vrot.slane %v9865_v62, 3  ;;  %v9156_v5 = vld [vmem:[#allocation3 + $0x1c] sm:$0xf]  ;;  %v18689_v62 = vld [vmem:[#allocation48_spill] sm:$0xff] }
 0x3dd   : > { %7557 = vmatmul.bf16.gmra.mxu2 %v12625_v61  ;;  %v9875_v31 = vrot.slane %v9873_v57, 3  ;;  %v9870_v61 = vrot.slane %v9868_v53, 4  ;;  %v8526_v16 = vsel %vm18680_vm2, %v16602_v2, %v8525_v44  ;;  %vm18690_vm0 = vnez %v18689_v62  ;;  %v18691_v53 = vld [vmem:[#allocation49_spill] sm:$0xff] }
 0x3de   : > { %v16639_v4 = vpop.f32.mrf.mxu1  ;;  %v16641_v51 = vpop.f32.mrf.mxu3  ;;  %v9186_v2 = vsel %vm18690_vm0, 0, %v9153_v54  ;;  %vm18692_vm1 = vnez %v18691_v53 }
 0x3df   : > { %v16663_v57 = vor.u32 %v9878_v15, %v9875_v31  ;;  %v9187_v37 = vsel %vm18692_vm1, 0, %v9154_v46  ;;  %v9871_v34 = vor.u32 %v9870_v61, %v9867_v20  ;;  %v9268_v15 = vunpack.c.l.b16 %v9186_v2  ;;  %v12626_v61 = vld [vmem:[#allocation3 + $0x80] sm:$0xff] }
 0x3e0   : > { %v7518_v48 = vpop.f32.mrf.mxu2  ;;  %v9269_v30 = vunpack.c.l.b16 %v9187_v37 }
 0x3e1   : > { %v7612_v21 = vadd.f32 %v7518_v48, %v16419_v60  ;;  %v18687_v60 = vld [vmem:[#allocation23_spill] sm:$0xff]  ;;  %v12655_v48 = vld [vmem:[#allocation3 + $0x30] sm:$0xff] }
 0x3e2   : > { %vm18688_vm9 = vnez %v18687_v60  ;;  %v16679_v20 = vpop.f32.mrf.mxu0  ;;  %v9301_v2 = vpack.c.b16 %v9269_v30, %v9268_v15  ;;  %v12691_v30 = vld [vmem:[#allocation3 + $0x18] sm:$0xff] }
 0x3e3   : > { %v16647_v17 = vadd.f32 %v16597_v52, %v7612_v21  ;;  %v9736_v8 = vsel %vm18688_vm9, 0, %v9703_v42  ;;  %v18693_v42 = vld [vmem:[#allocation50_spill] sm:$0xff]  ;;  %vm18697_vm9 = vsmask.f32 4352 }
 0x3e4   : > { %8674 = vmatmul.bf16.gmra.mxu0 %v8526_v16  ;;  %v9818_v26 = vunpack.c.l.b16 %v9736_v8  ;;  %vm18694_vm15 = vnez %v18693_v42  ;;  %v18695_v16 = vld [vmem:[#allocation51_spill] sm:$0xff]  ;;  %v9880_v54 = vsel %vm18697_vm9, %v9871_v34, %v16663_v57  ;;  %v9319_v53 = vshrl.u32 %v9301_v2, 16 }
 0x3e5   : > { %v9188_v25 = vsel %vm18694_vm15, 0, %v9155_v1  ;;  %vm18696_vm2 = vnez %v18695_v16  ;;  %v16683_v1 = vadd.f32 %v16544_v36, %v16587_v55  ;;  %v18698_v36 = vld [vmem:[#allocation28_spill] sm:$0xff]  ;;  %v12656_v16 = vld [vmem:[#allocation3 + $0x38] sm:$0xff] }
 0x3e6   : > { %v16659_v50 = vpop.f32.mrf.mxu1  ;;  %v16661_v52 = vpop.f32.mrf.mxu3  ;;  %v9189_v31 = vsel %vm18696_vm2, 0, %v9156_v5  ;;  %v9849_v60 = vpack.c.b16 %v9819_v19, %v9818_v26  ;;  %v9270_v8 = vunpack.c.l.b16 %v9188_v25  ;;  %v9706_v26 = vld [vmem:[#allocation3 + $0x30] sm:$0xf]  ;;  %v9321_v25 = vshll.u32 %v9301_v2, 16 }
 0x3e7   : > { %vm18699_vm9 = vnez %v18698_v36 }
 0x3e8   : > { %v7520_v21 = vpop.f32.mrf.mxu2  ;;  %v9882_v37 = vshrl.u32 %v9849_v60, 16  ;;  %v9739_v55 = vsel %vm18699_vm9, 0, %v9706_v26 }
 0x3e9   : > { %v7613_v44 = vadd.f32 %v7520_v21, %v16438_v9  ;;  %8996 = vmatmul.bf16.gmra.mxu1 %v12655_v48  ;;  %v12719_v9 = vld [vmem:[#allocation10 + $0x220] sm:$0xff]  ;;  %v9271_v48 = vunpack.c.l.b16 %v9189_v31  ;;  %v9821_v36 = vunpack.c.l.b16 %v9739_v55 }
 0x3ea   : > { %11006 = vmatpush.bf16.msra.mxu1 %v12719_v9  ;;  %v9884_v31 = vrot.slane %v9882_v37, 3 }
 0x3eb   : > { %v16677_v46 = vadd.f32 %v16622_v32, %v7613_v44  ;;  %10088 = vmatmul.bf16.vlgmr.msra.gmra.mxu3 %v9880_v54  ;;  %v9885_v32 = vshll.u32 %v9849_v60, 16  ;;  %v16687_v34 = vpack.c.b16 %v9271_v48, %v9270_v8  ;;  %v16696_v60 = vpop.f32.mrf.mxu0  ;;  %v18700_v8 = vld [vmem:[#allocation27_spill] sm:$0xff] }
 0x3ec   : > { %vm18701_vm12 = vnez %v18700_v8  ;;  %v18702_v8 = vld [vmem:[#allocation52_spill] sm:$0xff] }
 0x3ed   : > { %7562 = vmatmul.bf16.gmra.mxu2 %v12626_v61  ;;  %v9887_v54 = vrot.slane %v9885_v32, 4  ;;  %v9705_v61 = vld [vmem:[#allocation3 + $0x2c] sm:$0xf]  ;;  %v9326_v15 = vshll.u32 %v16687_v34, 16  ;;  %v9323_v32 = vrot.slane %v9321_v25, 1 }
 0x3ee   : > { %v16685_v5 = vpop.f32.mrf.mxu1  ;;  %v8074_v19 = vpop.f32.mrf.mxu3  ;;  %v9738_v48 = vsel %vm18701_vm12, 0, %v9705_v61  ;;  %vm18703_vm12 = vnez %v18702_v8 }
 0x3ef   : > { %v9888_v26 = vor.u32 %v9887_v54, %v9884_v31  ;;  %v9328_v62 = vrot.slane %v9326_v15, 1  ;;  %v9820_v12 = vunpack.c.l.b16 %v9738_v48 }
 0x3f0   : > { %v7523_v21 = vpop.f32.mrf.mxu2 }
 0x3f1   : > { %v7614_v44 = vadd.f32 %v7523_v21, %v16455_v39  ;;  %v16702_v39 = vadd.f32 %v16566_v43, %v16605_v56  ;;  %v9157_v21 = vld [vmem:[#allocation3 + $0x20] sm:$0xf]  ;;  %v18704_v56 = vld [vmem:[#allocation53_spill] sm:$0xff]  ;;  %v9889_v18 = vsel %vm18706_vm13, %v16663_v57, %v9888_v26  ;;  %v9850_v31 = vpack.c.b16 %v9821_v36, %v9820_v12 }
 0x3f2   : > { %v9190_v43 = vsel %vm18703_vm12, 0, %v9157_v21  ;;  %vm18705_vm9 = vnez %v18704_v56  ;;  %v9707_v36 = vld [vmem:[#allocation3 + $0x34] sm:$0xf]  ;;  %v18716_v56 = vld [vmem:[#allocation56_spill] sm:$0xff] }
 0x3f3   : > { %v16691_v9 = vadd.f32 %v16641_v51, %v7614_v44  ;;  %v9158_v44 = vld [vmem:[#allocation3 + $0x24] sm:$0xf]  ;;  %v9272_v55 = vunpack.c.l.b16 %v9190_v43  ;;  %v9891_v15 = vshrl.u32 %v9850_v31, 16  ;;  %v9894_v48 = vshll.u32 %v9850_v31, 16  ;;  %v16723_v57 = vpop.f32.mrf.mxu0 }
 0x3f4   : > { %10465 = vmatmul.bf16.vlgmr.msra.gmra.mxu0 %v12691_v30  ;;  %v9191_v25 = vsel %vm18705_vm9, 0, %v9158_v44  ;;  %v9324_v30 = vor.u32 %v9323_v32, %v9319_v53  ;;  %vm18719_vm9 = vsmask.f32 7424 }
 0x3f5   : > { %v9893_v21 = vrot.slane %v9891_v15, 3  ;;  %v9896_v44 = vrot.slane %v9894_v48, 4 }
 0x3f6   : > { %v16704_v37 = vpop.f32.mrf.mxu1  ;;  %v8076_v51 = vpop.f32.mrf.mxu3  ;;  %v9329_v2 = vsel %vm18707_vm6, %v9324_v30, %v9328_v62  ;;  %v18710_v30 = vld [vmem:[#allocation30_spill] sm:$0xff] }
 0x3f7   : > { %vm18711_vm6 = vnez %v18710_v30  ;;  %v9897_v15 = vor.u32 %v9896_v44, %v9893_v21 }
 0x3f8   : > { %v7525_v42 = vpop.f32.mrf.mxu2  ;;  %v9740_v31 = vsel %vm18711_vm6, 0, %v9707_v36  ;;  %vm18717_vm6 = vnez %v18716_v56 }
 0x3f9   : > { %v7615_v61 = vadd.f32 %v7525_v42, %v16472_v35  ;;  %9001 = vmatmul.bf16.gmra.mxu1 %v12656_v16  ;;  %v9273_v35 = vunpack.c.l.b16 %v9191_v25  ;;  %v16719_v42 = vadd.f32 %v16589_v14, %v16633_v13  ;;  %v18708_v13 = vld [vmem:[#allocation32_spill] sm:$0xff]  ;;  %v12692_v25 = vld [vmem:[#allocation3 + $0x20] sm:$0xff]  ;;  %v9822_v30 = vunpack.c.l.b16 %v9740_v31 }
 0x3fa   : > { %vm18709_vm13 = vnez %v18708_v13  ;;  %v9898_v21 = vsel %vm18718_vm8, %v9888_v26, %v9897_v15 }
 0x3fb   : > { %v16714_v54 = vadd.f32 %v16661_v52, %v7615_v61  ;;  %10093 = vmatmul.bf16.gmra.mxu3 %v9889_v18  ;;  %v16725_v52 = vpack.c.b16 %v9273_v35, %v9272_v55  ;;  %v9708_v18 = vld [vmem:[#allocation3 + $0x38] sm:$0xf]  ;;  %v9160_v35 = vld [vmem:[#allocation3 + $0x2c] sm:$0xf]  ;;  %v16744_v36 = vpop.f32.mrf.mxu0 }
 0x3fc   : > { %v9741_v14 = vsel %vm18709_vm13, 0, %v9708_v18  ;;  %18713 = vst [vmem:[#allocation93_spill] sm:$0xff] %v16744_v36  ;;  %v9193_v8 = vsel %vm18717_vm6, 0, %v9160_v35  ;;  %vm18730_vm6 = vsmask.f32 4352 }
 0x3fd   : > { %9522 = vmatmul.bf16.vlgmr.msra.gmra.mxu2 %v9329_v2  ;;  %v9334_v43 = vshll.u32 %v16725_v52, 16  ;;  %v16737_v2 = vadd.f32 %v16625_v59, %v16647_v17  ;;  %v9823_v48 = vunpack.c.l.b16 %v9741_v14  ;;  %v18714_v17 = vld [vmem:[#allocation55_spill] sm:$0xff]  ;;  %v9275_v36 = vunpack.c.l.b16 %v9193_v8  ;;  %v9709_v8 = vld [vmem:[#allocation3 + $0x3c] sm:$0xf] }
 0x3fe   : > { %v16721_v16 = vpop.f32.mrf.mxu1  ;;  %v8079_v53 = vpop.f32.mrf.mxu3  ;;  %vm18715_vm13 = vnez %v18714_v17 }
 0x3ff   : > { %18712 = vst [vmem:[#allocation29_spill] sm:$0xff] %v16737_v2  ;;  %v9336_v13 = vrot.slane %v9334_v43, 1  ;;  %v9851_v44 = vpack.c.b16 %v9823_v48, %v9822_v30 }
 0x400   : > { %v7528_v12 = vpop.f32.mrf.mxu2 }
 0x401   : > { %v7616_v32 = vadd.f32 %v7528_v12, %v16491_v6  ;;  %v12657_v12 = vld [vmem:[#allocation3 + $0x40] sm:$0xff]  ;;  %v9900_v35 = vshrl.u32 %v9851_v44, 16  ;;  %v9903_v26 = vshll.u32 %v9851_v44, 16 }
 0x402   : > { %v18724_v44 = vld [vmem:[#allocation35_spill] sm:$0xff] }
 0x403   : > { %v16728_v61 = vadd.f32 %v8074_v19, %v7616_v32  ;;  %v9159_v19 = vld [vmem:[#allocation3 + $0x28] sm:$0xf]  ;;  %v9330_v32 = vshrl.u32 %v16687_v34, 16  ;;  %v12718_v34 = vld [vmem:[#allocation10 + $0x218] sm:$0xff]  ;;  %v16764_v30 = vpop.f32.mrf.mxu0 }
 0x404   : > { %10470 = vmatmul.bf16.gmra.mxu0 %v12692_v25  ;;  %v9192_v25 = vsel %vm18715_vm13, 0, %v9159_v19  ;;  %11007 = vmatpush.bf16.msra.mxu1 %v12718_v34  ;;  %18720 = vst [vmem:[#allocation95_spill] sm:$0xff] %v16764_v30  ;;  %v16775_v34 = vadd.f32 %v16679_v20, %v16691_v9  ;;  %v18726_v20 = vld [vmem:[#allocation58_spill] sm:$0xff]  ;;  %v18728_v30 = vld [vmem:[#allocation61_spill] sm:$0xff]  ;;  %vm18731_vm13 = vsmask.f32 7424 }
 0x405   : > { %v9332_v2 = vor.u32 %v9330_v32, %v9328_v62  ;;  %v9274_v31 = vunpack.c.l.b16 %v9192_v25  ;;  %v9905_v32 = vrot.slane %v9903_v26, 4 }
 0x406   : > { %v16739_v55 = vpop.f32.mrf.mxu1  ;;  %v16741_v6 = vpop.f32.mrf.mxu3 }
 0x407   : > { %v9337_v43 = vsel %vm18719_vm9, %v9332_v2, %v9336_v13  ;;  %v9902_v2 = vrot.slane %v9900_v35, 3  ;;  %vm18725_vm9 = vnez %v18724_v44 }
 0x408   : > { %v7530_v18 = vpop.f32.mrf.mxu2 }
 0x409   : > { %v7617_v59 = vadd.f32 %v7530_v18, %v16511_v23  ;;  %9006 = vmatmul.bf16.gmra.mxu1 %v12657_v12  ;;  %v16757_v23 = vadd.f32 %v16644_v10, %v16677_v46  ;;  %v9710_v12 = vld [vmem:[#allocation3 + $0x40] sm:$0xf]  ;;  %v18722_v10 = vld [vmem:[#allocation36_spill] sm:$0xff]  ;;  %v9906_v35 = vor.u32 %v9905_v32, %v9902_v2 }
 0x40a   : > { %vm18723_vm8 = vnez %v18722_v10 }
 0x40b   : > { %v16752_v14 = vadd.f32 %v8076_v51, %v7617_v59  ;;  %10098 = vmatmul.bf16.gmra.mxu3 %v9898_v21  ;;  %v16761_v51 = vpack.c.b16 %v9275_v36, %v9274_v31  ;;  %v9743_v46 = vsel %vm18723_vm8, 0, %v9710_v12  ;;  %v12693_v21 = vld [vmem:[#allocation3 + $0x28] sm:$0xff]  ;;  %v9742_v36 = vsel %vm18725_vm9, 0, %v9709_v8  ;;  %v9162_v31 = vld [vmem:[#allocation3 + $0x34] sm:$0xf] }
 0x40c   : > { %v9825_v26 = vunpack.c.l.b16 %v9743_v46  ;;  %v9824_v44 = vunpack.c.l.b16 %v9742_v36  ;;  %vm18727_vm8 = vnez %v18726_v20  ;;  %vm18729_vm9 = vnez %v18728_v30 }
 0x40d   : > { %9527 = vmatmul.bf16.gmra.mxu2 %v9337_v43  ;;  %v9342_v25 = vshll.u32 %v16761_v51, 16  ;;  %v9907_v56 = vsel %vm18730_vm6, %v9897_v15, %v9906_v35  ;;  %v16798_v15 = vadd.f32 %v16696_v60, %v16714_v54 }
 0x40e   : > { %v16759_v19 = vpop.f32.mrf.mxu1  ;;  %v8084_v62 = vpop.f32.mrf.mxu3  ;;  %v9852_v2 = vpack.c.b16 %v9825_v26, %v9824_v44 }
 0x40f   : > { %v9344_v10 = vrot.slane %v9342_v25, 1 }
 0x410   : > { %v7533_v48 = vpop.f32.mrf.mxu2 }
 0x411   : > { %v7618_v18 = vadd.f32 %v7533_v48, %v16530_v3  ;;  %v12658_v48 = vld [vmem:[#allocation3 + $0x48] sm:$0xff] }
 0x413   : > { %v16766_v59 = vadd.f32 %v8079_v53, %v7618_v18  ;;  %v9161_v53 = vld [vmem:[#allocation3 + $0x30] sm:$0xf]  ;;  %v9338_v18 = vshrl.u32 %v16725_v52, 16 }
 0x414   : > { %10475 = vmatmul.bf16.gmra.mxu0 %v12693_v21  ;;  %v9194_v9 = vsel %vm18727_vm8, 0, %v9161_v53  ;;  %v9195_v21 = vsel %vm18729_vm9, 0, %v9162_v31  ;;  %v9912_v31 = vshll.u32 %v9852_v2, 16  ;;  %vm18740_vm9 = vsmask.f32 4352 }
 0x415   : > { %18721 = vst [vmem:[#allocation98_spill] sm:$0xff] %v16766_v59  ;;  %v9340_v59 = vor.u32 %v9338_v18, %v9336_v13  ;;  %v9276_v46 = vunpack.c.l.b16 %v9194_v9  ;;  %v9277_v25 = vunpack.c.l.b16 %v9195_v21  ;;  %v9711_v18 = vld [vmem:[#allocation3 + $0x44] sm:$0xf]  ;;  %vm18741_vm8 = vsmask.f32 7424 }
 0x416   : > { %v16777_v3 = vpop.f32.mrf.mxu1  ;;  %v16779_v43 = vpop.f32.mrf.mxu3 }
 0x417   : > { %v9345_v52 = vsel %vm18731_vm13, %v9340_v59, %v9344_v10 }
 0x418   : > { %v7535_v12 = vpop.f32.mrf.mxu2 }
 0x419   : > { %v7619_v8 = vadd.f32 %v7535_v12, %v16550_v22  ;;  %9011 = vmatmul.bf16.gmra.mxu1 %v12658_v48  ;;  %v16792_v22 = vpop.f32.mrf.mxu0  ;;  %v9909_v48 = vshrl.u32 %v9852_v2, 16  ;;  %v9914_v12 = vrot.slane %v9912_v31, 4  ;;  %v12694_v2 = vld [vmem:[#allocation3 + $0x30] sm:$0xff] }
 0x41b   : > { %v16789_v32 = vadd.f32 %v16741_v6, %v7619_v8  ;;  %10103 = vmatmul.bf16.gmra.mxu3 %v9907_v56  ;;  %v16800_v6 = vpack.c.b16 %v9277_v25, %v9276_v46  ;;  %v9712_v56 = vld [vmem:[#allocation3 + $0x48] sm:$0xf]  ;;  %v9911_v26 = vrot.slane %v9909_v48, 3  ;;  %v9163_v25 = vld [vmem:[#allocation3 + $0x38] sm:$0xf] }
 0x41c   : > { %v18732_v8 = vld [vmem:[#allocation40_spill] sm:$0xff] }
 0x41d   : > { %9532 = vmatmul.bf16.gmra.mxu2 %v9345_v52  ;;  %vm18733_vm13 = vnez %v18732_v8  ;;  %v9350_v21 = vshll.u32 %v16800_v6, 16  ;;  %v18734_v52 = vld [vmem:[#allocation39_spill] sm:$0xff]  ;;  %v9915_v48 = vor.u32 %v9914_v12, %v9911_v26 }
 0x41e   : > { %v16794_v36 = vpop.f32.mrf.mxu1  ;;  %v8089_v53 = vpop.f32.mrf.mxu3  ;;  %v9745_v9 = vsel %vm18733_vm13, 0, %v9712_v56  ;;  %vm18735_vm6 = vnez %v18734_v52  ;;  %v18736_v26 = vld [vmem:[#allocation63_spill] sm:$0xff] }
 0x41f   : > { %v9744_v60 = vsel %vm18735_vm6, 0, %v9711_v18  ;;  %v9827_v31 = vunpack.c.l.b16 %v9745_v9  ;;  %v9346_v18 = vshrl.u32 %v16761_v51, 16  ;;  %vm18737_vm13 = vnez %v18736_v26  ;;  %v18738_v9 = vld [vmem:[#allocation64_spill] sm:$0xff]  ;;  %v12717_v51 = vld [vmem:[#allocation10 + $0x210] sm:$0xff] }
 0x420   : > { %v7538_v13 = vpop.f32.mrf.mxu2  ;;  %v9826_v52 = vunpack.c.l.b16 %v9744_v60  ;;  %v9196_v12 = vsel %vm18737_vm13, 0, %v9163_v25  ;;  %vm18739_vm6 = vnez %v18738_v9  ;;  %v9916_v20 = vsel %vm18740_vm9, %v9906_v35, %v9915_v48  ;;  %11008 = vmatpush.bf16.msra.mxu1 %v12717_v51  ;;  %v18745_v51 = vld [vmem:[#allocation44_spill] sm:$0xff] }
 0x421   : > { %v7620_v59 = vadd.f32 %v7538_v13, %v16574_v28  ;;  %v9164_v28 = vld [vmem:[#allocation3 + $0x3c] sm:$0xf]  ;;  %v16816_v13 = vpop.f32.mrf.mxu0  ;;  %v9278_v60 = vunpack.c.l.b16 %v9196_v12  ;;  %v18749_v26 = vld [vmem:[#allocation68_spill] sm:$0xff] }
 0x422   : > { %vm18750_vm9 = vnez %v18749_v26 }
 0x423   : > { %v16803_v44 = vadd.f32 %v8084_v62, %v7620_v59  ;;  %v16814_v62 = vadd.f32 %v16723_v57, %v16728_v61  ;;  %v12659_v59 = vld [vmem:[#allocation3 + $0x50] sm:$0xff]  ;;  %v9197_v57 = vsel %vm18739_vm6, 0, %v9164_v28  ;;  %v9348_v61 = vor.u32 %v9346_v18, %v9344_v10 }
 0x424   : > { %10480 = vmatmul.bf16.gmra.mxu0 %v12694_v2  ;;  %v9352_v2 = vrot.slane %v9350_v21, 1  ;;  %vm18752_vm6 = vsmask.f32 7424 }
 0x426   : > { %v8977_v54 = vpop.f32.mrf.mxu1  ;;  %v16810_v46 = vpop.f32.mrf.mxu3  ;;  %v9353_v21 = vsel %vm18741_vm8, %v9348_v61, %v9352_v2  ;;  %vm18746_vm8 = vnez %v18745_v51 }
 0x427   : > { %v16819_v56 = vadd.f32 %v8977_v54, %v16489_v29  ;;  %v9853_v29 = vpack.c.b16 %v9827_v31, %v9826_v52  ;;  %v9713_v52 = vld [vmem:[#allocation3 + $0x4c] sm:$0xf] }
 0x428   : > { %v7540_v8 = vpop.f32.mrf.mxu2 }
 0x429   : > { %v7621_v30 = vadd.f32 %v7540_v8, %v16595_v40  ;;  %9016 = vmatmul.bf16.gmra.mxu1 %v12659_v59  ;;  %v9279_v40 = vunpack.c.l.b16 %v9197_v57  ;;  %v9918_v8 = vshrl.u32 %v9853_v29, 16  ;;  %v9921_v9 = vshll.u32 %v9853_v29, 16 }
 0x42b   : > { %v16829_v54 = vadd.f32 %v16779_v43, %v7621_v30  ;;  %10108 = vmatmul.bf16.gmra.mxu3 %v9916_v20  ;;  %v16835_v28 = vpack.c.b16 %v9279_v40, %v9278_v60  ;;  %v9714_v30 = vld [vmem:[#allocation3 + $0x50] sm:$0xf]  ;;  %v16837_v43 = vpop.f32.mrf.mxu0  ;;  %v9920_v31 = vrot.slane %v9918_v8, 3  ;;  %v9923_v18 = vrot.slane %v9921_v9, 4 }
 0x42c   : > { %18742 = vst [vmem:[#allocation103_spill] sm:$0xff] %v16837_v43  ;;  %v9747_v61 = vsel %vm18557_vm11, 0, %v9714_v30  ;;  %v9354_v30 = vshrl.u32 %v16800_v6, 16 }
 0x42d   : > { %9537 = vmatmul.bf16.gmra.mxu2 %v9353_v21  ;;  %v9358_v29 = vshll.u32 %v16835_v28, 16  ;;  %v9746_v21 = vsel %vm18746_vm8, 0, %v9713_v52  ;;  %v9924_v8 = vor.u32 %v9923_v18, %v9920_v31  ;;  %v9829_v9 = vunpack.c.l.b16 %v9747_v61  ;;  %v18747_v52 = vld [vmem:[#allocation67_spill] sm:$0xff] }
 0x42e   : > { %v8979_v59 = vpop.f32.mrf.mxu1  ;;  %v8094_v25 = vpop.f32.mrf.mxu3  ;;  %vm18748_vm11 = vnez %v18747_v52  ;;  %v9356_v31 = vor.u32 %v9354_v30, %v9352_v2  ;;  %vm18751_vm8 = vsmask.f32 4352 }
 0x42f   : > { %v16833_v10 = vadd.f32 %v8979_v59, %v16509_v24  ;;  %v12695_v24 = vld [vmem:[#allocation3 + $0x38] sm:$0xff]  ;;  %v9165_v59 = vld [vmem:[#allocation3 + $0x40] sm:$0xf]  ;;  %v9360_v57 = vrot.slane %v9358_v29, 1  ;;  %v9925_v18 = vsel %vm18751_vm8, %v9915_v48, %v9924_v8 }
 0x430   : > { %v7543_v35 = vpop.f32.mrf.mxu2 }
 0x431   : > { %v7622_v20 = vadd.f32 %v7543_v35, %v16620_v33  ;;  %v9166_v33 = vld [vmem:[#allocation3 + $0x44] sm:$0xf]  ;;  %v12660_v35 = vld [vmem:[#allocation3 + $0x58] sm:$0xff]  ;;  %v9361_v6 = vsel %vm18752_vm6, %v9356_v31, %v9360_v57 }
 0x432   : > { %v9199_v43 = vsel %vm18750_vm9, 0, %v9166_v33  ;;  %v9716_v33 = vld [vmem:[#allocation3 + $0x58] sm:$0xf]  ;;  %vm18763_vm9 = vsmask.f32 4352 }
 0x433   : > { %v16840_v12 = vadd.f32 %v8089_v53, %v7622_v20  ;;  %v16859_v61 = vpop.f32.mrf.mxu0  ;;  %v9281_v29 = vunpack.c.l.b16 %v9199_v43  ;;  %v18754_v43 = vld [vmem:[#allocation20_spill] sm:$0xff] }
 0x434   : > { %10485 = vmatmul.bf16.gmra.mxu0 %v12695_v24  ;;  %v9198_v24 = vsel %vm18748_vm11, 0, %v9165_v59  ;;  %vm18755_vm6 = vnez %v18754_v43  ;;  %v9362_v43 = vshrl.u32 %v16835_v28, 16  ;;  %v12716_v28 = vld [vmem:[#allocation10 + $0x208] sm:$0xff]  ;;  %vm18764_vm11 = vsmask.f32 7424 }
 0x435   : > { %18743 = vst [vmem:[#allocation75_spill] sm:$0xff] %v16840_v12  ;;  %v9828_v12 = vunpack.c.l.b16 %v9746_v21  ;;  %11009 = vmatpush.bf16.msra.mxu1 %v12716_v28  ;;  %v18767_v28 = vld [vmem:[#allocation21_spill] sm:$0xff] }
 0x436   : > { %v8982_v60 = vpop.f32.mrf.mxu1  ;;  %v16847_v40 = vpop.f32.mrf.mxu3 }
 0x437   : > { %v16850_v53 = vadd.f32 %v8982_v60, %v16528_v7  ;;  %v9854_v7 = vpack.c.b16 %v9829_v9, %v9828_v12 }
 0x438   : > { %v7545_v20 = vpop.f32.mrf.mxu2 }
 0x439   : > { %v7623_v51 = vadd.f32 %v7545_v20, %v16639_v4  ;;  %9021 = vmatmul.bf16.gmra.mxu1 %v12660_v35  ;;  %v9280_v4 = vunpack.c.l.b16 %v9198_v24  ;;  %v9927_v35 = vshrl.u32 %v9854_v7, 16  ;;  %v9930_v20 = vshll.u32 %v9854_v7, 16  ;;  %v12696_v7 = vld [vmem:[#allocation3 + $0x40] sm:$0xff] }
 0x43a   : > { %v9749_v24 = vsel %vm18755_vm6, 0, %v9716_v33  ;;  %v12661_v33 = vld [vmem:[#allocation3 + $0x60] sm:$0xff] }
 0x43b   : > { %v16862_v60 = vadd.f32 %v16810_v46, %v7623_v51  ;;  %10113 = vmatmul.bf16.gmra.mxu3 %v9925_v18  ;;  %v16868_v12 = vpack.c.b16 %v9281_v29, %v9280_v4  ;;  %v9929_v9 = vrot.slane %v9927_v35, 3  ;;  %v9932_v30 = vrot.slane %v9930_v20, 4  ;;  %v9715_v51 = vld [vmem:[#allocation3 + $0x54] sm:$0xf]  ;;  %v9168_v35 = vld [vmem:[#allocation3 + $0x4c] sm:$0xf] }
 0x43d   : > { %9542 = vmatmul.bf16.gmra.mxu2 %v9361_v6  ;;  %v9366_v18 = vshll.u32 %v16868_v12, 16  ;;  %v16876_v6 = vpop.f32.mrf.mxu0  ;;  %v9933_v20 = vor.u32 %v9932_v30, %v9929_v9  ;;  %v9364_v9 = vor.u32 %v9362_v43, %v9360_v57 }
 0x43e   : > { %v8984_v21 = vpop.f32.mrf.mxu1  ;;  %v8099_v59 = vpop.f32.mrf.mxu3  ;;  %18756 = vst [vmem:[#allocation105_spill] sm:$0xff] %v16876_v6 }
 0x43f   : > { %v16866_v2 = vadd.f32 %v8984_v21, %v16548_v63  ;;  %v18757_v63 = vld [vmem:[#allocation19_spill] sm:$0xff]  ;;  %v9368_v26 = vrot.slane %v9366_v18, 1  ;;  %v9934_v30 = vsel %vm18763_vm9, %v9924_v8, %v9933_v20 }
 0x440   : > { %v7548_v48 = vpop.f32.mrf.mxu2  ;;  %vm18758_vm8 = vnez %v18757_v63 }
 0x441   : > { %v7624_v46 = vadd.f32 %v7548_v48, %v16659_v50  ;;  %v9748_v4 = vsel %vm18758_vm8, 0, %v9715_v51  ;;  %v9167_v50 = vld [vmem:[#allocation3 + $0x48] sm:$0xf]  ;;  %v18759_v51 = vld [vmem:[#allocation71_spill] sm:$0xff]  ;;  %v9369_v18 = vsel %vm18764_vm11, %v9364_v9, %v9368_v26  ;;  %vm18768_vm11 = vnez %v18767_v28 }
 0x442   : > { %v9830_v52 = vunpack.c.l.b16 %v9748_v4  ;;  %vm18760_vm6 = vnez %v18759_v51  ;;  %v18771_v51 = vld [vmem:[#allocation77_spill] sm:$0xff] }
 0x443   : > { %v16871_v31 = vadd.f32 %v8094_v25, %v7624_v46  ;;  %v9831_v25 = vunpack.c.l.b16 %v9749_v24  ;;  %vm18772_vm9 = vnez %v18771_v51 }
 0x444   : > { %10490 = vmatmul.bf16.gmra.mxu0 %v12696_v7  ;;  %v9200_v7 = vsel %vm18760_vm6, 0, %v9167_v50 }
 0x445   : > { %18753 = vst [vmem:[#allocation101_spill] sm:$0xff] %v16871_v31  ;;  %v18761_v31 = vld [vmem:[#allocation72_spill] sm:$0xff]  ;;  %v9282_v4 = vunpack.c.l.b16 %v9200_v7  ;;  %v16899_v8 = vpop.f32.mrf.mxu0 }
 0x446   : > { %v8987_v29 = vpop.f32.mrf.mxu1  ;;  %v16880_v21 = vpop.f32.mrf.mxu3  ;;  %vm18762_vm8 = vnez %v18761_v31 }
 0x447   : > { %v16883_v48 = vadd.f32 %v8987_v29, %v16572_v11  ;;  %v9201_v6 = vsel %vm18762_vm8, 0, %v9168_v35  ;;  %v9855_v11 = vpack.c.b16 %v9831_v25, %v9830_v52  ;;  %v9718_v35 = vld [vmem:[#allocation3 + $0x60] sm:$0xf]  ;;  %vm18774_vm8 = vsmask.f32 7424 }
 0x448   : > { %v7550_v46 = vpop.f32.mrf.mxu2 }
 0x449   : > { %v7625_v63 = vadd.f32 %v7550_v46, %v16685_v5  ;;  %9026 = vmatmul.bf16.gmra.mxu1 %v12661_v33  ;;  %v9283_v5 = vunpack.c.l.b16 %v9201_v6  ;;  %v9936_v33 = vshrl.u32 %v9855_v11, 16  ;;  %v9939_v46 = vshll.u32 %v9855_v11, 16  ;;  %v9717_v6 = vld [vmem:[#allocation3 + $0x5c] sm:$0xf] }
 0x44b   : > { %v16893_v24 = vadd.f32 %v16847_v40, %v7625_v63  ;;  %10118 = vmatmul.bf16.gmra.mxu3 %v9934_v30  ;;  %v16901_v40 = vpack.c.b16 %v9283_v5, %v9282_v4  ;;  %v9938_v43 = vrot.slane %v9936_v33, 3  ;;  %v9941_v63 = vrot.slane %v9939_v46, 4  ;;  %v9169_v5 = vld [vmem:[#allocation3 + $0x50] sm:$0xf] }
 0x44c   : > { %v9751_v30 = vsel %vm18582_vm5, 0, %v9718_v35  ;;  %v9370_v35 = vshrl.u32 %v16868_v12, 16 }
 0x44d   : > { %9547 = vmatmul.bf16.gmra.mxu2 %v9369_v18  ;;  %v9374_v11 = vshll.u32 %v16901_v40, 16  ;;  %v9750_v18 = vsel %vm18768_vm11, 0, %v9717_v6  ;;  %v9942_v33 = vor.u32 %v9941_v63, %v9938_v43  ;;  %v9833_v46 = vunpack.c.l.b16 %v9751_v30  ;;  %v18769_v6 = vld [vmem:[#allocation76_spill] sm:$0xff]  ;;  %v16922_v43 = vpop.f32.mrf.mxu0 }
 0x44e   : > { %v8989_v29 = vpop.f32.mrf.mxu1  ;;  %v8104_v50 = vpop.f32.mrf.mxu3  ;;  %v9832_v31 = vunpack.c.l.b16 %v9750_v18  ;;  %vm18770_vm5 = vnez %v18769_v6  ;;  %v9372_v63 = vor.u32 %v9370_v35, %v9368_v26  ;;  %vm18773_vm11 = vsmask.f32 4352 }
 0x44f   : > { %v16897_v57 = vadd.f32 %v8989_v29, %v16593_v58  ;;  %v12697_v58 = vld [vmem:[#allocation3 + $0x48] sm:$0xff]  ;;  %v9376_v9 = vrot.slane %v9374_v11, 1 }
 0x450   : > { %v7553_v52 = vpop.f32.mrf.mxu2  ;;  %v9856_v30 = vpack.c.b16 %v9833_v46, %v9832_v31  ;;  %v9720_v31 = vld [vmem:[#allocation3 + $0x68] sm:$0xf] }
 0x451   : > { %v7626_v25 = vadd.f32 %v7553_v52, %v16704_v37  ;;  %v9170_v37 = vld [vmem:[#allocation3 + $0x54] sm:$0xf]  ;;  %v12662_v52 = vld [vmem:[#allocation3 + $0x68] sm:$0xff]  ;;  %v9377_v12 = vsel %vm18774_vm8, %v9372_v63, %v9376_v9 }
 0x453   : > { %v16904_v7 = vadd.f32 %v8099_v59, %v7626_v25 }
 0x454   : > { %10495 = vmatmul.bf16.gmra.mxu0 %v12697_v58  ;;  %v9202_v58 = vsel %vm18770_vm5, 0, %v9169_v5  ;;  %v9945_v5 = vshrl.u32 %v9856_v30, 16  ;;  %vm18786_vm5 = vsmask.f32 7424 }
 0x455   : > { %18765 = vst [vmem:[#allocation107_spill] sm:$0xff] %v16904_v7  ;;  %v9203_v7 = vsel %vm18772_vm9, 0, %v9170_v37  ;;  %vm18785_vm9 = vsmask.f32 4352 }
 0x456   : > { %v8992_v29 = vpop.f32.mrf.mxu1  ;;  %v16911_v4 = vpop.f32.mrf.mxu3  ;;  %v9285_v11 = vunpack.c.l.b16 %v9203_v7  ;;  %v9947_v46 = vrot.slane %v9945_v5, 3  ;;  %v18776_v7 = vld [vmem:[#allocation26_spill] sm:$0xff] }
 0x457   : > { %v16914_v59 = vadd.f32 %v8992_v29, %v16618_v0  ;;  %v9943_v0 = vsel %vm18773_vm11, %v9933_v20, %v9942_v33  ;;  %vm18777_vm8 = vnez %v18776_v7 }
 0x458   : > { %v7555_v25 = vpop.f32.mrf.mxu2 }
 0x459   : > { %v7627_v28 = vadd.f32 %v7555_v25, %v16721_v16  ;;  %9031 = vmatmul.bf16.gmra.mxu1 %v12662_v52  ;;  %v9284_v16 = vunpack.c.l.b16 %v9202_v58  ;;  %v9948_v52 = vshll.u32 %v9856_v30, 16  ;;  %v9753_v58 = vsel %vm18777_vm8, 0, %v9720_v31  ;;  %v12698_v30 = vld [vmem:[#allocation3 + $0x50] sm:$0xff] }
 0x45a   : > { %v9378_v31 = vshrl.u32 %v16901_v40, 16  ;;  %v12715_v40 = vld [vmem:[#allocation10 + $0x200] sm:$0xff] }
 0x45b   : > { %v16926_v29 = vadd.f32 %v16880_v21, %v7627_v28  ;;  %10123 = vmatmul.bf16.gmra.mxu3 %v9943_v0  ;;  %v16932_v26 = vpack.c.b16 %v9285_v11, %v9284_v16  ;;  %v9950_v35 = vrot.slane %v9948_v52, 4  ;;  %v9719_v28 = vld [vmem:[#allocation3 + $0x64] sm:$0xf]  ;;  %v16939_v0 = vpop.f32.mrf.mxu0  ;;  %v9835_v52 = vunpack.c.l.b16 %v9753_v58  ;;  %11010 = vmatpush.bf16.msra.mxu1 %v12715_v40 }
 0x45d   : > { %9552 = vmatmul.bf16.gmra.mxu2 %v9377_v12  ;;  %v18778_v12 = vld [vmem:[#allocation24_spill] sm:$0xff]  ;;  %v9951_v5 = vor.u32 %v9950_v35, %v9947_v46  ;;  %v9380_v46 = vor.u32 %v9378_v31, %v9376_v9 }
 0x45e   : > { %v8994_v18 = vpop.f32.mrf.mxu1  ;;  %v8109_v20 = vpop.f32.mrf.mxu3  ;;  %vm18779_vm11 = vnez %v18778_v12  ;;  %v18781_v12 = vld [vmem:[#allocation80_spill] sm:$0xff] }
 0x45f   : > { %v16930_v37 = vadd.f32 %v8994_v18, %v16637_v45  ;;  %v9382_v45 = vshll.u32 %v16932_v26, 16  ;;  %v9752_v16 = vsel %vm18779_vm11, 0, %v9719_v28  ;;  %v9171_v18 = vld [vmem:[#allocation3 + $0x58] sm:$0xf]  ;;  %vm18782_vm8 = vnez %v18781_v12 }
 0x460   : > { %v7558_v25 = vpop.f32.mrf.mxu2  ;;  %v9834_v51 = vunpack.c.l.b16 %v9752_v16  ;;  %v9204_v28 = vsel %vm18782_vm8, 0, %v9171_v18  ;;  %vm18796_vm8 = vsmask.f32 7424 }
 0x461   : > { %v7628_v21 = vadd.f32 %v7558_v25, %v16739_v55  ;;  %v9172_v55 = vld [vmem:[#allocation3 + $0x5c] sm:$0xf]  ;;  %v12663_v25 = vld [vmem:[#allocation3 + $0x70] sm:$0xff]  ;;  %v9384_v7 = vrot.slane %v9382_v45, 1 }
 0x462   : > { %v9857_v58 = vpack.c.b16 %v9835_v52, %v9834_v51 }
 0x463   : > { %v16935_v63 = vadd.f32 %v8104_v50, %v7628_v21  ;;  %v9385_v45 = vsel %vm18786_vm5, %v9380_v46, %v9384_v7  ;;  %v16958_v18 = vpop.f32.mrf.mxu0  ;;  %vm18788_vm5 = vnez %v18606_v41 }
 0x464   : > { %10500 = vmatmul.bf16.gmra.mxu0 %v12698_v30  ;;  %v18783_v30 = vld [vmem:[#allocation81_spill] sm:$0xff]  ;;  %v9957_v9 = vshll.u32 %v9857_v58, 16 }
 0x465   : > { %18775 = vst [vmem:[#allocation104_spill] sm:$0xff] %v16935_v63  ;;  %vm18784_vm11 = vnez %v18783_v30 }
 0x466   : > { %v8997_v11 = vpop.f32.mrf.mxu1  ;;  %v9205_v63 = vsel %vm18784_vm11, 0, %v9172_v55  ;;  %v8111_v35 = vpop.f32.mrf.mxu3  ;;  %v9954_v55 = vshrl.u32 %v9857_v58, 16  ;;  %v9959_v31 = vrot.slane %v9957_v9, 4  ;;  %v12699_v58 = vld [vmem:[#allocation3 + $0x58] sm:$0xff]  ;;  %vm18795_vm11 = vsmask.f32 4352 }
 0x467   : > { %v16945_v50 = vadd.f32 %v8997_v11, %v16657_v27  ;;  %v9952_v27 = vsel %vm18785_vm9, %v9942_v33, %v9951_v5  ;;  %v9287_v16 = vunpack.c.l.b16 %v9205_v63  ;;  %vm18789_vm9 = vnez %v18468_v47 }
 0x468   : > { %v7560_v21 = vpop.f32.mrf.mxu2  ;;  %v9956_v52 = vrot.slane %v9954_v55, 3 }
 0x469   : > { %18780 = vst [vmem:[#allocation108_spill] sm:$0xff] %v16945_v50  ;;  %v7629_v6 = vadd.f32 %v7560_v21, %v16759_v19  ;;  %9036 = vmatmul.bf16.gmra.mxu1 %v12663_v25  ;;  %v9286_v19 = vunpack.c.l.b16 %v9204_v28  ;;  %v9721_v28 = vld [vmem:[#allocation3 + $0x6c] sm:$0xf] }
 0x46b   : > { %v16955_v11 = vadd.f32 %v16911_v4, %v7629_v6  ;;  %10128 = vmatmul.bf16.gmra.mxu3 %v9952_v27  ;;  %v16963_v33 = vpack.c.b16 %v9287_v16, %v9286_v19  ;;  %v9722_v4 = vld [vmem:[#allocation3 + $0x70] sm:$0xf]  ;;  %v9173_v19 = vld [vmem:[#allocation3 + $0x60] sm:$0xf]  ;;  %v9174_v16 = vld [vmem:[#allocation3 + $0x64] sm:$0xf]  ;;  %v16976_v9 = vpop.f32.mrf.mxu0 }
 0x46c   : > { %v9755_v46 = vsel %vm18788_vm5, 0, %v9722_v4 }
 0x46d   : > { %9557 = vmatmul.bf16.gmra.mxu2 %v9385_v45  ;;  %v9390_v27 = vshll.u32 %v16963_v33, 16  ;;  %v9394_v49 = vshrl.u32 %v16963_v33, 16 }
 0x46e   : > { %v8999_v25 = vpop.f32.mrf.mxu1  ;;  %v10089_v40 = vpop.f32.mrf.mxu3 }
 0x46f   : > { %v16961_v21 = vadd.f32 %v8999_v25, %v16683_v1  ;;  %v9754_v1 = vsel %vm18789_vm9, 0, %v9721_v28  ;;  %v9837_v25 = vunpack.c.l.b16 %v9755_v46  ;;  %v9392_v4 = vrot.slane %v9390_v27, 1  ;;  %v18791_v28 = vld [vmem:[#allocation85_spill] sm:$0xff] }
 0x470   : > { %v7563_v51 = vpop.f32.mrf.mxu2  ;;  %vm18792_vm5 = vnez %v18791_v28 }
 0x471   : > { %18787 = vst [vmem:[#allocation84_spill] sm:$0xff] %v16961_v21  ;;  %v7630_v6 = vadd.f32 %v7563_v51, %v16777_v3  ;;  %v9960_v3 = vor.u32 %v9959_v31, %v9956_v52  ;;  %v9386_v51 = vshrl.u32 %v16932_v26, 16  ;;  %v18793_v21 = vld [vmem:[#allocation86_spill] sm:$0xff] }
 0x472   : > { %vm18794_vm9 = vnez %v18793_v21 }
 0x473   : > { %v16966_v63 = vadd.f32 %v8109_v20, %v7630_v6  ;;  %v12664_v20 = vld [vmem:[#allocation3 + $0x78] sm:$0xff]  ;;  %v9836_v6 = vunpack.c.l.b16 %v9754_v1  ;;  %v9207_v52 = vsel %vm18794_vm9, 0, %v9174_v16  ;;  %v9388_v31 = vor.u32 %v9386_v51, %v9384_v7 }
 0x474   : > { %10505 = vmatmul.bf16.gmra.mxu0 %v12699_v58  ;;  %v9206_v58 = vsel %vm18792_vm5, 0, %v9173_v19  ;;  %v9289_v1 = vunpack.c.l.b16 %v9207_v52 }
 0x475   : > { %v9858_v46 = vpack.c.b16 %v9837_v25, %v9836_v6  ;;  %v9393_v26 = vsel %vm18796_vm8, %v9388_v31, %v9392_v4  ;;  %v9288_v27 = vunpack.c.l.b16 %v9206_v58  ;;  %v16994_v25 = vpop.f32.mrf.mxu0  ;;  %vm18804_vm8 = vmmov %vm18795_vm11 }
 0x476   : > { %v9002_v45 = vpop.f32.mrf.mxu1 }
 0x477   : > { %v16974_v55 = vadd.f32 %v9002_v45, %v16702_v39  ;;  %v9961_v39 = vsel %vm18795_vm11, %v9951_v5, %v9960_v3  ;;  %v16991_v7 = vpack.c.b16 %v9289_v1, %v9288_v27  ;;  %v9724_v5 = vld [vmem:[#allocation3 + $0x78] sm:$0xf]  ;;  %vm18806_vm11 = vsmask.f32 7424 }
 0x478   : > { %v7565_v41 = vpop.f32.mrf.mxu2  ;;  %v9757_v52 = vsel %vm18619_vm7, 0, %v9724_v5 }
 0x479   : > { %18790 = vst [vmem:[#allocation106_spill] sm:$0xff] %v16974_v55  ;;  %v7631_v47 = vadd.f32 %v7565_v41, %v16794_v36  ;;  %9041 = vmatmul.bf16.gmra.mxu1 %v12664_v20  ;;  %v10091_v20 = vpop.f32.mrf.mxu3  ;;  %v9963_v41 = vshrl.u32 %v9858_v46, 16  ;;  %v9966_v55 = vshll.u32 %v9858_v46, 16  ;;  %v9398_v31 = vshll.u32 %v16991_v7, 16 }
 0x47a   : > { %v9839_v1 = vunpack.c.l.b16 %v9757_v52  ;;  %v9396_v52 = vor.u32 %v9394_v49, %v9392_v4  ;;  %v9726_v49 = vld [vmem:[#allocation3 + $0x80] sm:$0xf] }
 0x47b   : > { %v16985_v45 = vadd.f32 %v8111_v35, %v7631_v47  ;;  %10133 = vmatmul.bf16.gmra.mxu3 %v9961_v39  ;;  %v9965_v51 = vrot.slane %v9963_v41, 3  ;;  %v9968_v6 = vrot.slane %v9966_v55, 4  ;;  %v9723_v47 = vld [vmem:[#allocation3 + $0x74] sm:$0xf] }
 0x47c   : > { %v9756_v39 = vsel %vm18474_vm4, 0, %v9723_v47  ;;  %v18798_v55 = vld [vmem:[#allocation29_spill] sm:$0xff] }
 0x47d   : > { %9562 = vmatmul.bf16.gmra.mxu2 %v9393_v26  ;;  %v9175_v26 = vld [vmem:[#allocation3 + $0x68] sm:$0xf]  ;;  %v17003_v27 = vor.u32 %v9968_v6, %v9965_v51  ;;  %v18800_v47 = vld [vmem:[#allocation89_spill] sm:$0xff]  ;;  %v18802_v51 = vld [vmem:[#allocation90_spill] sm:$0xff]  ;;  %v17020_v33 = vpop.f32.mrf.mxu0 }
 0x47e   : > { %v9004_v36 = vpop.f32.mrf.mxu1  ;;  %vm18801_vm4 = vnez %v18800_v47  ;;  %vm18803_vm7 = vnez %v18802_v51 }
 0x47f   : > { %v16989_v19 = vadd.f32 %v9004_v36, %v16719_v42  ;;  %v12700_v42 = vld [vmem:[#allocation3 + $0x60] sm:$0xff] }
 0x480   : > { %v9523_v16 = vpop.f32.mrf.mxu2 }
 0x481   : > { %18797 = vst [vmem:[#allocation54_spill] sm:$0xff] %v16989_v19  ;;  %v9635_v35 = vadd.f32 %v9523_v16, %v16819_v56  ;;  %v9176_v56 = vld [vmem:[#allocation3 + $0x6c] sm:$0xf]  ;;  %v17009_v16 = vrot.slane %v9398_v31, 1  ;;  %v10094_v5 = vpop.f32.mrf.mxu3 }
 0x482   : > { %v9209_v6 = vsel %vm18803_vm7, 0, %v9176_v56 }
 0x483   : > { %v16996_v58 = vadd.f32 %v10089_v40, %v9635_v35  ;;  %v12665_v40 = vld [vmem:[#allocation3 + $0x80] sm:$0xff]  ;;  %v9838_v35 = vunpack.c.l.b16 %v9756_v39  ;;  %v9291_v39 = vunpack.c.l.b16 %v9209_v6 }
 0x484   : > { %10510 = vmatmul.bf16.gmra.mxu0 %v12700_v42  ;;  %v9208_v42 = vsel %vm18801_vm4, 0, %v9175_v26 }
 0x485   : > { %v9290_v31 = vunpack.c.l.b16 %v9208_v42 }
 0x486   : > { %v9007_v46 = vpop.f32.mrf.mxu1 }
 0x487   : > { %v17006_v36 = vadd.f32 %v9007_v46, %v18798_v55  ;;  %v9970_v46 = vsel %vm18804_vm8, %v9960_v3, %v17003_v27  ;;  %v9859_v55 = vpack.c.b16 %v9839_v1, %v9838_v35  ;;  %v17027_v3 = vpack.c.b16 %v9291_v39, %v9290_v31  ;;  %v10643_v1 = vld [vmem:[#allocation3 + $0x1c] sm:$0xf]  ;;  %v9177_v39 = vld [vmem:[#allocation3 + $0x70] sm:$0xf] }
 0x488   : > { %v9525_v41 = vpop.f32.mrf.mxu2  ;;  %v10676_v31 = vsel %vm18692_vm1, 0, %v10643_v1  ;;  %vm18821_vm1 = vmmov %vm18806_vm11 }
 0x489   : > { %18799 = vst [vmem:[#allocation57_spill] sm:$0xff] %v17006_v36  ;;  %v9636_v38 = vadd.f32 %v9525_v41, %v16833_v10  ;;  %9046 = vmatmul.bf16.gmra.mxu1 %v12665_v40  ;;  %v9401_v10 = vsel %vm18806_vm11, %v9396_v52, %v17009_v16  ;;  %v9972_v40 = vshrl.u32 %v9859_v55, 16  ;;  %v9975_v41 = vshll.u32 %v9859_v55, 16  ;;  %v10645_v52 = vld [vmem:[#allocation3 + $0x24] sm:$0xf]  ;;  %v17045_v55 = vpop.f32.mrf.mxu0 }
 0x48a   : > { %v9406_v50 = vshll.u32 %v17027_v3, 16 }
 0x48b   : > { %v17018_v36 = vadd.f32 %v10091_v20, %v9636_v38  ;;  %10138 = vmatmul.bf16.gmra.mxu3 %v9970_v46  ;;  %v10642_v20 = vld [vmem:[#allocation3 + $0x18] sm:$0xf]  ;;  %v10644_v38 = vld [vmem:[#allocation3 + $0x20] sm:$0xf]  ;;  %v10096_v46 = vpop.f32.mrf.mxu3  ;;  %v9974_v42 = vrot.slane %v9972_v40, 3  ;;  %v9977_v6 = vrot.slane %v9975_v41, 4 }
 0x48c   : > { %v10677_v51 = vsel %vm18694_vm15, 0, %v10644_v38  ;;  %v10678_v41 = vsel %vm18696_vm2, 0, %v10645_v52  ;;  %v12666_v38 = vld [vmem:[#allocation3 + $0x88] sm:$0xff]  ;;  %v9402_v52 = vshrl.u32 %v16991_v7, 16 }
 0x48d   : > { %18805 = vst [vmem:[#allocation109_spill] sm:$0xff] %v17018_v36  ;;  %9567 = vmatmul.bf16.gmra.mxu2 %v9401_v10  ;;  %v9725_v10 = vld [vmem:[#allocation3 + $0x7c] sm:$0xf]  ;;  %v17047_v47 = vor.u32 %v9977_v6, %v9974_v42  ;;  %v10760_v36 = vunpack.c.l.b16 %v10678_v41  ;;  %v18818_v6 = vld [vmem:[#allocation92_spill] sm:$0xff] }
 0x48e   : > { %v9009_v26 = vpop.f32.mrf.mxu1 }
 0x48f   : > { %v17025_v4 = vadd.f32 %v9009_v26, %v16757_v23  ;;  %v10675_v23 = vsel %vm18690_vm0, 0, %v10642_v20  ;;  %v10758_v26 = vunpack.c.l.b16 %v10676_v31  ;;  %v18816_v31 = vld [vmem:[#allocation91_spill] sm:$0xff]  ;;  %vm18820_vm0 = vmmov %vm18804_vm8 }
 0x490   : > { %v9528_v56 = vpop.f32.mrf.mxu2  ;;  %v10757_v1 = vunpack.c.l.b16 %v10675_v23  ;;  %vm18835_vm11 = vmmov %vm18820_vm0 }
 0x491   : > { %18807 = vst [vmem:[#allocation59_spill] sm:$0xff] %v17025_v4  ;;  %v9637_v35 = vadd.f32 %v9528_v56, %v16850_v53  ;;  %v9759_v4 = vsel %vm18631_vm14, 0, %v9726_v49  ;;  %v12701_v53 = vld [vmem:[#allocation3 + $0x68] sm:$0xff]  ;;  %v9178_v49 = vld [vmem:[#allocation3 + $0x74] sm:$0xf]  ;;  %vm18819_vm14 = vnez %v18818_v6 }
 0x493   : > { %v17030_v19 = vadd.f32 %v10094_v5, %v9637_v35  ;;  %v9758_v35 = vsel %vm18485_vm10, 0, %v9725_v10  ;;  %v17053_v5 = vrot.slane %v9406_v50, 1  ;;  %v10759_v10 = vunpack.c.l.b16 %v10677_v51  ;;  %v10099_v41 = vpop.f32.mrf.mxu3 }
 0x494   : > { %10515 = vmatmul.bf16.gmra.mxu0 %v12701_v53  ;;  %v9840_v21 = vunpack.c.l.b16 %v9758_v35  ;;  %vm18817_vm10 = vnez %v18816_v31  ;;  %v10790_v53 = vpack.c.b16 %v10758_v26, %v10757_v1  ;;  %v9979_v50 = vsel %vm18820_vm0, %v17003_v27, %v17047_v47  ;;  %vm18836_vm0 = vmmov %vm18821_vm1 }
 0x495   : > { %18808 = vst [vmem:[#allocation111_spill] sm:$0xff] %v17030_v19  ;;  %v9841_v19 = vunpack.c.l.b16 %v9759_v4  ;;  %v9210_v42 = vsel %vm18817_vm10, 0, %v9177_v39  ;;  %v9211_v4 = vsel %vm18819_vm14, 0, %v9178_v49  ;;  %v17068_v35 = vpack.c.b16 %v10760_v36, %v10759_v10  ;;  %v9728_v36 = vld [vmem:[#allocation3 + $0x88] sm:$0xf] }
 0x496   : > { %v9012_v20 = vpop.f32.mrf.mxu1  ;;  %v9293_v39 = vunpack.c.l.b16 %v9211_v4  ;;  %v10647_v10 = vld [vmem:[#allocation3 + $0x2c] sm:$0xf] }
 0x497   : > { %v17050_v56 = vadd.f32 %v9012_v20, %v16775_v34  ;;  %v9404_v34 = vor.u32 %v9402_v52, %v17009_v16  ;;  %v9860_v7 = vpack.c.b16 %v9841_v19, %v9840_v21  ;;  %v9292_v20 = vunpack.c.l.b16 %v9210_v42  ;;  %v17073_v21 = vpop.f32.mrf.mxu0  ;;  %v10646_v52 = vld [vmem:[#allocation3 + $0x28] sm:$0xf] }
 0x498   : > { %v9530_v40 = vpop.f32.mrf.mxu2  ;;  %v10810_v16 = vshll.u32 %v10790_v53, 16  ;;  %v10815_v27 = vshll.u32 %v17068_v35, 16 }
 0x499   : > { %18815 = vst [vmem:[#allocation110_spill] sm:$0xff] %v17050_v56  ;;  %v9638_v23 = vadd.f32 %v9530_v40, %v16866_v2  ;;  %9051 = vmatmul.bf16.gmra.mxu1 %v12666_v38  ;;  %v9409_v2 = vsel %vm18821_vm1, %v9404_v34, %v17053_v5  ;;  %v9981_v1 = vshrl.u32 %v9860_v7, 16  ;;  %v9984_v26 = vshll.u32 %v9860_v7, 16  ;;  %v9727_v34 = vld [vmem:[#allocation3 + $0x84] sm:$0xf]  ;;  %v12702_v56 = vld [vmem:[#allocation3 + $0x70] sm:$0xff] }
 0x49a   : > { %v10679_v7 = vsel %vm18703_vm12, 0, %v10646_v52  ;;  %v9179_v52 = vld [vmem:[#allocation3 + $0x78] sm:$0xf] }
 0x49b   : > { %v17064_v51 = vadd.f32 %v10096_v46, %v9638_v23  ;;  %10143 = vmatmul.bf16.gmra.mxu3 %v9979_v50  ;;  %v17076_v46 = vpack.c.b16 %v9293_v39, %v9292_v20  ;;  %v10812_v23 = vrot.slane %v10810_v16, 1  ;;  %v9983_v42 = vrot.slane %v9981_v1, 3  ;;  %v18827_v1 = vld [vmem:[#allocation41_spill] sm:$0xff] }
 0x49c   : > { %v9986_v4 = vrot.slane %v9984_v26, 4  ;;  %v17085_v20 = vrot.slane %v10815_v27, 1  ;;  %vm18828_vm2 = vnez %v18827_v1 }
 0x49d   : > { %9572 = vmatmul.bf16.gmra.mxu2 %v9409_v2  ;;  %v9414_v39 = vshll.u32 %v17076_v46, 16  ;;  %v9760_v26 = vsel %vm18828_vm2, 0, %v9727_v34  ;;  %v9410_v34 = vshrl.u32 %v17027_v3, 16  ;;  %vm18843_vm2 = vnez %v18714_v17 }
 0x49e   : > { %v9014_v49 = vpop.f32.mrf.mxu1  ;;  %v17092_v2 = vor.u32 %v9986_v4, %v9983_v42  ;;  %v18833_v4 = vld [vmem:[#allocation94_spill] sm:$0xff] }
 0x49f   : > { %v17071_v38 = vadd.f32 %v9014_v49, %v16798_v15  ;;  %v9761_v49 = vsel %vm18642_vm3, 0, %v9728_v36  ;;  %v9180_v15 = vld [vmem:[#allocation3 + $0x7c] sm:$0xf]  ;;  %v10761_v36 = vunpack.c.l.b16 %v10679_v7  ;;  %vm18830_vm3 = vmmov %vm18821_vm1  ;;  %vm18834_vm8 = vnez %v18833_v4  ;;  %v17107_v7 = vpop.f32.mrf.mxu0 }
 0x4a0   : > { %v9533_v19 = vpop.f32.mrf.mxu2  ;;  %v9988_v3 = vsel %vm18835_vm11, %v17047_v47, %v17092_v2  ;;  %vm18848_vm11 = vmmov %vm18836_vm0 }
 0x4a1   : > { %18822 = vst [vmem:[#allocation65_spill] sm:$0xff] %v17071_v38  ;;  %v9639_v40 = vadd.f32 %v9533_v19, %v16883_v48  ;;  %v10808_v38 = vshrl.u32 %v10790_v53, 16  ;;  %v18825_v48 = vld [vmem:[#allocation53_spill] sm:$0xff]  ;;  %v10101_v19 = vpop.f32.mrf.mxu3  ;;  %v9843_v53 = vunpack.c.l.b16 %v9761_v49  ;;  %v9412_v49 = vor.u32 %v9410_v34, %v17053_v5 }
 0x4a2   : > { %vm18826_vm15 = vnez %v18825_v48  ;;  %v17100_v48 = vrot.slane %v9414_v39, 1 }
 0x4a3   : > { %v17079_v50 = vadd.f32 %v10099_v41, %v9639_v40  ;;  %v10680_v16 = vsel %vm18826_vm15, 0, %v10647_v10  ;;  %v10813_v40 = vor.u32 %v10812_v23, %v10808_v38  ;;  %v9842_v38 = vunpack.c.l.b16 %v9760_v26  ;;  %v18831_v23 = vld [vmem:[#allocation60_spill] sm:$0xff] }
 0x4a4   : > { %10520 = vmatmul.bf16.gmra.mxu0 %v12702_v56  ;;  %v10762_v6 = vunpack.c.l.b16 %v10680_v16  ;;  %vm18832_vm12 = vnez %v18831_v23 }
 0x4a5   : > { %v10818_v10 = vsel %vm18830_vm3, %v10813_v40, %v17085_v20  ;;  %v9212_v42 = vsel %vm18832_vm12, 0, %v9179_v52  ;;  %v9861_v39 = vpack.c.b16 %v9843_v53, %v9842_v38  ;;  %v9729_v38 = vld [vmem:[#allocation3 + $0x8c] sm:$0xf] }
 0x4a6   : > { %v9017_v41 = vpop.f32.mrf.mxu1  ;;  %v9294_v1 = vunpack.c.l.b16 %v9212_v42  ;;  %v10649_v42 = vld [vmem:[#allocation3 + $0x34] sm:$0xf] }
 0x4a7   : > { %v17095_v27 = vadd.f32 %v9017_v41, %v16814_v62  ;;  %v9213_v62 = vsel %vm18834_vm8, 0, %v9180_v15  ;;  %v18837_v41 = vld [vmem:[#allocation93_spill] sm:$0xff]  ;;  %v9990_v52 = vshrl.u32 %v9861_v39, 16  ;;  %v9993_v15 = vshll.u32 %v9861_v39, 16  ;;  %v18839_v39 = vld [vmem:[#allocation46_spill] sm:$0xff] }
 0x4a8   : > { %v9535_v31 = vpop.f32.mrf.mxu2  ;;  %v9295_v26 = vunpack.c.l.b16 %v9213_v62  ;;  %v8729_v40 = vadd.f32 %v18837_v41, %v16752_v14  ;;  %vm18840_vm1 = vnez %v18839_v39  ;;  %v18841_v41 = vld [vmem:[#allocation47_spill] sm:$0xff] }
 0x4a9   : > { %18829 = vst [vmem:[#allocation66_spill] sm:$0xff] %v17095_v27  ;;  %v9640_v56 = vadd.f32 %v9535_v31, %v16897_v57  ;;  %11011 = vmatmul.bf16.vlgmr.msra.gmra.mxu1 %v10818_v10  ;;  %v9417_v57 = vsel %vm18836_vm0, %v9412_v49, %v17100_v48  ;;  %v17117_v31 = vpack.c.b16 %v10762_v6, %v10761_v36  ;;  %v9730_v6 = vld [vmem:[#allocation3 + $0x90] sm:$0xf]  ;;  %v9992_v62 = vrot.slane %v9990_v52, 3 }
 0x4aa   : > { %v17124_v34 = vpack.c.b16 %v9295_v26, %v9294_v1  ;;  %v9995_v49 = vrot.slane %v9993_v15, 4  ;;  %vm18842_vm15 = vnez %v18841_v41  ;;  %v17134_v1 = vpop.f32.mrf.mxu0  ;;  %v18844_v15 = vld [vmem:[#allocation56_spill] sm:$0xff]  ;;  %v9182_v41 = vld [vmem:[#allocation3 + $0x84] sm:$0xf] }
 0x4ab   : > { %v17113_v16 = vadd.f32 %v10101_v19, %v9640_v56  ;;  %10148 = vmatmul.bf16.gmra.mxu3 %v9988_v3  ;;  %v10104_v19 = vpop.f32.mrf.mxu3  ;;  %v10823_v53 = vshll.u32 %v17117_v31, 16  ;;  %v10648_v56 = vld [vmem:[#allocation3 + $0x30] sm:$0xf]  ;;  %v10819_v3 = vshrl.u32 %v17068_v35, 16  ;;  %vm18845_vm3 = vnez %v18844_v15  ;;  %v18847_v35 = vld [vmem:[#allocation95_spill] sm:$0xff] }
 0x4ac   : > { %v10681_v52 = vsel %vm18843_vm2, 0, %v10648_v56  ;;  %v9418_v15 = vshrl.u32 %v17076_v46, 16  ;;  %vm18854_vm2 = vmmov %vm18848_vm11 }
 0x4ad   : > { %9577 = vmatmul.bf16.gmra.mxu2 %v9417_v57  ;;  %v9762_v57 = vsel %vm18840_vm1, 0, %v9729_v38  ;;  %v10825_v26 = vrot.slane %v10823_v53, 1  ;;  %v10821_v38 = vor.u32 %v10819_v3, %v17085_v20  ;;  %v10763_v17 = vunpack.c.l.b16 %v10681_v52  ;;  %v18849_v20 = vld [vmem:[#allocation96_spill] sm:$0xff] }
 0x4ae   : > { %v9019_v5 = vpop.f32.mrf.mxu1  ;;  %v9844_v53 = vunpack.c.l.b16 %v9762_v57  ;;  %vm18850_vm0 = vnez %v18849_v20 }
 0x4af   : > { %v17121_v10 = vadd.f32 %v9019_v5, %v8729_v40  ;;  %v9763_v40 = vsel %vm18842_vm15, 0, %v9730_v6  ;;  %v9422_v5 = vshll.u32 %v17124_v34, 16  ;;  %v9181_v6 = vld [vmem:[#allocation3 + $0x80] sm:$0xf]  ;;  %vm18853_vm15 = vsmask.f32 4352 }
 0x4b0   : > { %v9538_v47 = vpop.f32.mrf.mxu2  ;;  %v9845_v27 = vunpack.c.l.b16 %v9763_v40  ;;  %v9214_v3 = vsel %vm18850_vm0, 0, %v9181_v6  ;;  %v9420_v40 = vor.u32 %v9418_v15, %v17100_v48 }
 0x4b1   : > { %18838 = vst [vmem:[#allocation62_spill] sm:$0xff] %v17121_v10  ;;  %v9641_v36 = vadd.f32 %v9538_v47, %v16914_v59  ;;  %v12703_v59 = vld [vmem:[#allocation3 + $0x78] sm:$0xff]  ;;  %v10682_v47 = vsel %vm18845_vm3, 0, %v10649_v42  ;;  %v17144_v10 = vor.u32 %v9995_v49, %v9992_v62  ;;  %v10826_v42 = vsel %vm18848_vm11, %v10821_v38, %v10825_v26  ;;  %v18851_v62 = vld [vmem:[#allocation97_spill] sm:$0xff] }
 0x4b2   : > { %v10764_v56 = vunpack.c.l.b16 %v10682_v47  ;;  %vm18852_vm1 = vnez %v18851_v62  ;;  %v9862_v52 = vpack.c.b16 %v9845_v27, %v9844_v53  ;;  %v9731_v53 = vld [vmem:[#allocation3 + $0x94] sm:$0xf] }
 0x4b3   : > { %v17127_v14 = vadd.f32 %v10104_v19, %v9641_v36  ;;  %v18846_v19 = vld [vmem:[#allocation98_spill] sm:$0xff]  ;;  %v9215_v49 = vsel %vm18852_vm1, 0, %v9182_v41  ;;  %v10106_v57 = vpop.f32.mrf.mxu3 }
 0x4b4   : > { %v8730_v36 = vadd.f32 %v18847_v35, %v18846_v19  ;;  %10525 = vmatmul.bf16.gmra.mxu0 %v12703_v59  ;;  %v9424_v19 = vrot.slane %v9422_v5, 1  ;;  %v9997_v59 = vsel %vm18853_vm15, %v17092_v2, %v17144_v10  ;;  %v17161_v46 = vpack.c.b16 %v10764_v56, %v10763_v17  ;;  %v10650_v17 = vld [vmem:[#allocation3 + $0x38] sm:$0xf]  ;;  %v10651_v56 = vld [vmem:[#allocation3 + $0x3c] sm:$0xf] }
 0x4b5   : > { %v9297_v5 = vunpack.c.l.b16 %v9215_v49  ;;  %v9999_v38 = vshrl.u32 %v9862_v52, 16  ;;  %v10002_v6 = vshll.u32 %v9862_v52, 16  ;;  %v18858_v52 = vld [vmem:[#allocation58_spill] sm:$0xff] }
 0x4b6   : > { %v9022_v39 = vpop.f32.mrf.mxu1  ;;  %v10831_v27 = vshll.u32 %v17161_v46, 16  ;;  %vm18859_vm11 = vnez %v18858_v52 }
 0x4b7   : > { %v17146_v4 = vadd.f32 %v9022_v39, %v8730_v36  ;;  %v8731_v36 = vadd.f32 %v16792_v22, %v16789_v32  ;;  %v17166_v39 = vpop.f32.mrf.mxu0  ;;  %v10004_v15 = vrot.slane %v10002_v6, 4  ;;  %v18856_v32 = vld [vmem:[#allocation43_spill] sm:$0xff] }
 0x4b8   : > { %v9540_v23 = vpop.f32.mrf.mxu2  ;;  %vm18857_vm3 = vnez %v18856_v32 }
 0x4b9   : > { %v9642_v35 = vadd.f32 %v9540_v23, %v16930_v37  ;;  %11016 = vmatmul.bf16.gmra.mxu1 %v10826_v42  ;;  %v9425_v37 = vsel %vm18854_vm2, %v9420_v40, %v9424_v19  ;;  %v9296_v23 = vunpack.c.l.b16 %v9214_v3  ;;  %v10001_v42 = vrot.slane %v9999_v38, 3 }
 0x4ba   : > { %v10833_v3 = vrot.slane %v10831_v27, 1  ;;  %v9764_v22 = vsel %vm18857_vm3, 0, %v9731_v53  ;;  %v8732_v40 = vadd.f32 %v16816_v13, %v16803_v44  ;;  %v9426_v44 = vshrl.u32 %v17124_v34, 16 }
 0x4bb   : > { %v17159_v47 = vadd.f32 %v10106_v57, %v9642_v35  ;;  %10153 = vmatmul.bf16.gmra.mxu3 %v9997_v59  ;;  %v17171_v41 = vpack.c.b16 %v9297_v5, %v9296_v23  ;;  %v10827_v35 = vshrl.u32 %v17117_v31, 16  ;;  %v12704_v57 = vld [vmem:[#allocation3 + $0x80] sm:$0xff]  ;;  %v18860_v23 = vld [vmem:[#allocation61_spill] sm:$0xff]  ;;  %v9183_v31 = vld [vmem:[#allocation3 + $0x88] sm:$0xf]  ;;  %v10005_v38 = vor.u32 %v10004_v15, %v10001_v42 }
 0x4bc   : > { %vm18861_vm15 = vnez %v18860_v23  ;;  %v9846_v6 = vunpack.c.l.b16 %v9764_v22  ;;  %v9428_v42 = vor.u32 %v9426_v44, %v9424_v19  ;;  %v10652_v44 = vld [vmem:[#allocation3 + $0x40] sm:$0xf] }
 0x4bd   : > { %9582 = vmatmul.bf16.gmra.mxu2 %v9425_v37  ;;  %v9430_v49 = vshll.u32 %v17171_v41, 16  ;;  %v10829_v59 = vor.u32 %v10827_v35, %v10825_v26  ;;  %v10683_v37 = vsel %vm18859_vm11, 0, %v10650_v17  ;;  %v10684_v5 = vsel %vm18861_vm15, 0, %v10651_v56  ;;  %v18863_v35 = vld [vmem:[#allocation99_spill] sm:$0xff] }
 0x4be   : > { %v9024_v48 = vpop.f32.mrf.mxu1  ;;  %v10765_v26 = vunpack.c.l.b16 %v10683_v37  ;;  %v10766_v17 = vunpack.c.l.b16 %v10684_v5  ;;  %vm18864_vm3 = vnez %v18863_v35  ;;  %vm18867_vm15 = vsmask.f32 4352  ;;  %v18868_v37 = vld [vmem:[#allocation103_spill] sm:$0xff] }
 0x4bf   : > { %v17168_v2 = vadd.f32 %v9024_v48, %v8731_v36  ;;  %v9184_v48 = vld [vmem:[#allocation3 + $0x8c] sm:$0xf]  ;;  %v10834_v53 = vsel %vm18854_vm2, %v10829_v59, %v10833_v3  ;;  %v17186_v32 = vpop.f32.mrf.mxu0  ;;  %v9432_v13 = vrot.slane %v9430_v49, 1  ;;  %v9216_v56 = vsel %vm18864_vm3, 0, %v9183_v31 }
 0x4c0   : > { %v10006_v15 = vsel %vm18867_vm15, %v17144_v10, %v10005_v38  ;;  %v9863_v22 = vpack.c.b16 %v9846_v6, %v9846_v6  ;;  %v10794_v59 = vpack.c.b16 %v10766_v17, %v10765_v26  ;;  %v9298_v34 = vunpack.c.l.b16 %v9216_v56  ;;  %v10653_v10 = vld [vmem:[#allocation3 + $0x44] sm:$0xf] }
 0x4c1   : > { %18855 = vst [vmem:[#allocation69_spill] sm:$0xff] %v17168_v2  ;;  %v8733_v23 = vadd.f32 %v18868_v37, %v16829_v54  ;;  %v10835_v26 = vshrl.u32 %v17161_v46, 16  ;;  %v10685_v54 = vsel %vm18737_vm13, 0, %v10652_v44  ;;  %v18871_v37 = vld [vmem:[#allocation64_spill] sm:$0xff] }
 0x4c2   : > { %v10011_v31 = vshll.u32 %v9863_v22, 16  ;;  %v10839_v19 = vshll.u32 %v10794_v59, 16  ;;  %vm18872_vm15 = vnez %v18871_v37  ;;  %v10767_v46 = vunpack.c.l.b16 %v10685_v54  ;;  %v18874_v37 = vld [vmem:[#allocation102_spill] sm:$0xff] }
 0x4c3   : > { %vm18875_vm13 = vnez %v18874_v37 }
 0x4c4   : > { %10530 = vmatmul.bf16.gmra.mxu0 %v12704_v57  ;;  %v18865_v57 = vld [vmem:[#allocation100_spill] sm:$0xff]  ;;  %v10841_v17 = vrot.slane %v10839_v19, 1 }
 0x4c5   : > { %vm18866_vm11 = vnez %v18865_v57 }
 0x4c6   : > { %v9027_v36 = vpop.f32.mrf.mxu1  ;;  %v9217_v52 = vsel %vm18866_vm11, 0, %v9184_v48  ;;  %vm18877_vm11 = vmmov %vm18854_vm2 }
 0x4c7   : > { %v17183_v27 = vadd.f32 %v9027_v36, %v8732_v40  ;;  %v9433_v40 = vsel %vm18854_vm2, %v9428_v42, %v9432_v13  ;;  %v9299_v49 = vunpack.c.l.b16 %v9217_v52  ;;  %v10008_v36 = vshrl.u32 %v9863_v22, 16  ;;  %v17200_v6 = vpop.f32.mrf.mxu0  ;;  %v12705_v52 = vld [vmem:[#allocation3 + $0x88] sm:$0xff] }
 0x4c8   : > { %v10013_v42 = vrot.slane %v10011_v31, 4  ;;  %v10686_v22 = vsel %vm18872_vm15, 0, %v10653_v10  ;;  %vm18876_vm15 = vsmask.f32 4352 }
 0x4c9   : > { %18862 = vst [vmem:[#allocation70_spill] sm:$0xff] %v17183_v27  ;;  %11021 = vmatmul.bf16.gmra.mxu1 %v10834_v53  ;;  %v9316_v48 = vpack.c.b16 %v9299_v49, %v9298_v34  ;;  %v10768_v19 = vunpack.c.l.b16 %v10686_v22 }
 0x4cb   : > { %10158 = vmatmul.bf16.gmra.mxu3 %v10006_v15  ;;  %v10010_v15 = vrot.slane %v10008_v36, 3  ;;  %v9438_v56 = vshll.u32 %v9316_v48, 16 }
 0x4cd   : > { %9587 = vmatmul.bf16.gmra.mxu2 %v9433_v40  ;;  %v10014_v36 = vor.u32 %v10013_v42, %v10010_v15  ;;  %v9434_v40 = vshrl.u32 %v17171_v41, 16  ;;  %v9440_v44 = vrot.slane %v9438_v56, 1 }
 0x4ce   : > { %v9029_v5 = vpop.f32.mrf.mxu1 }
 0x4cf   : > { %v17198_v53 = vadd.f32 %v9029_v5, %v8733_v23  ;;  %v18873_v23 = vld [vmem:[#allocation75_spill] sm:$0xff]  ;;  %v10837_v5 = vor.u32 %v10835_v26, %v10833_v3  ;;  %v9436_v2 = vor.u32 %v9434_v40, %v9432_v13  ;;  %v10795_v3 = vpack.c.b16 %v10768_v19, %v10767_v46  ;;  %v17216_v26 = vpop.f32.mrf.mxu0  ;;  %v10654_v13 = vld [vmem:[#allocation3 + $0x48] sm:$0xf] }
 0x4d0   : > { %v8734_v34 = vadd.f32 %v16859_v61, %v18873_v23  ;;  %v10015_v61 = vsel %vm18876_vm15, %v10005_v38, %v10014_v36  ;;  %v10655_v23 = vld [vmem:[#allocation3 + $0x4c] sm:$0xf]  ;;  %v10843_v38 = vshrl.u32 %v10794_v59, 16  ;;  %v18880_v46 = vld [vmem:[#allocation67_spill] sm:$0xff]  ;;  %vm18884_vm15 = vsmask.f32 7424 }
 0x4d1   : > { %18869 = vst [vmem:[#allocation112_spill] sm:$0xff] %v17198_v53  ;;  %v9185_v53 = vld [vmem:[#allocation3 + $0x90] sm:$0x1]  ;;  %v10842_v27 = vsel %vm18854_vm2, %v10837_v5, %v10841_v17  ;;  %v9441_v15 = vsel %vm18877_vm11, %v9436_v2, %v9440_v44  ;;  %vm18881_vm11 = vnez %v18880_v46  ;;  %v18882_v40 = vld [vmem:[#allocation68_spill] sm:$0xff] }
 0x4d2   : > { %v9218_v10 = vsel %vm18875_vm13, 0, %v9185_v53  ;;  %v12706_v53 = vld [vmem:[#allocation3 + $0x90] sm:$0xff]  ;;  %v10845_v2 = vor.u32 %v10843_v38, %v10841_v17  ;;  %v10687_v19 = vsel %vm18881_vm11, 0, %v10654_v13  ;;  %vm18883_vm2 = vnez %v18882_v40  ;;  %vm18885_vm13 = vmmov %vm18884_vm15 }
 0x4d3   : > { %v9300_v42 = vunpack.c.l.b16 %v9218_v10  ;;  %v18879_v5 = vld [vmem:[#allocation101_spill] sm:$0xff]  ;;  %vm18890_vm11 = vmmov %vm18884_vm15 }
 0x4d4   : > { %10535 = vmatmul.bf16.gmra.mxu0 %v12705_v52  ;;  %v18878_v52 = vld [vmem:[#allocation105_spill] sm:$0xff]  ;;  %v8736_v36 = vadd.f32 %v16899_v8, %v18879_v5  ;;  %v10851_v5 = vshrl.u32 %v10795_v3, 16 }
 0x4d5   : > { %v8735_v54 = vadd.f32 %v18878_v52, %v16862_v60  ;;  %v9317_v22 = vpack.c.b16 %v9300_v42, %v9300_v42  ;;  %v10688_v60 = vsel %vm18883_vm2, 0, %v10655_v23  ;;  %v10657_v38 = vld [vmem:[#allocation3 + $0x54] sm:$0xf] }
 0x4d6   : > { %v9032_v49 = vpop.f32.mrf.mxu1  ;;  %v10770_v8 = vunpack.c.l.b16 %v10688_v60 }
 0x4d7   : > { %v17209_v31 = vadd.f32 %v9032_v49, %v8734_v34  ;;  %v9446_v49 = vshll.u32 %v9317_v22, 16  ;;  %v17229_v10 = vpop.f32.mrf.mxu0  ;;  %v8737_v22 = vadd.f32 %v16922_v43, %v16893_v24 }
 0x4d9   : > { %11026 = vmatmul.bf16.gmra.mxu1 %v10842_v27  ;;  %v10847_v27 = vshll.u32 %v10795_v3, 16 }
 0x4db   : > { %10163 = vmatmul.bf16.gmra.mxu3 %v10015_v61  ;;  %v10849_v34 = vrot.slane %v10847_v27, 1 }
 0x4dd   : > { %9592 = vmatmul.bf16.gmra.mxu2 %v9441_v15  ;;  %v9442_v15 = vshrl.u32 %v9316_v48, 16  ;;  %v10850_v59 = vsel %vm18884_vm15, %v10845_v2, %v10849_v34  ;;  %vm18896_vm15 = vmmov %vm18890_vm11 }
 0x4de   : > { %v9034_v41 = vpop.f32.mrf.mxu1 }
 0x4df   : > { %v17221_v56 = vadd.f32 %v9034_v41, %v8735_v54  ;;  %v9444_v52 = vor.u32 %v9442_v15, %v9440_v44  ;;  %v9448_v54 = vrot.slane %v9446_v49, 1  ;;  %v10769_v41 = vunpack.c.l.b16 %v10687_v19  ;;  %v18886_v44 = vld [vmem:[#allocation107_spill] sm:$0xff]  ;;  %v18888_v19 = vld [vmem:[#allocation72_spill] sm:$0xff] }
 0x4e0   : > { %v8738_v49 = vadd.f32 %v16939_v0, %v18886_v44 }
 0x4e1   : > { %v9449_v17 = vsel %vm18885_vm13, %v9444_v52, %v9448_v54  ;;  %v10796_v27 = vpack.c.b16 %v10770_v8, %v10769_v41  ;;  %vm18889_vm13 = vnez %v18888_v19  ;;  %v8739_v52 = vadd.f32 %v16958_v18, %v16926_v29  ;;  %v10658_v8 = vld [vmem:[#allocation3 + $0x58] sm:$0xf] }
 0x4e2   : > { %v10690_v40 = vsel %vm18889_vm13, 0, %v10657_v38  ;;  %vm18897_vm13 = vnez %v18781_v12 }
 0x4e3   : > { %v10855_v48 = vshll.u32 %v10796_v27, 16 }
 0x4e4   : > { %10540 = vmatmul.bf16.gmra.mxu0 %v12706_v53  ;;  %v10656_v53 = vld [vmem:[#allocation3 + $0x50] sm:$0xf] }
 0x4e5   : > { %v10689_v46 = vsel %vm18760_vm6, 0, %v10656_v53  ;;  %v18892_v53 = vld [vmem:[#allocation76_spill] sm:$0xff] }
 0x4e6   : > { %v9037_v61 = vpop.f32.mrf.mxu1  ;;  %v10771_v15 = vunpack.c.l.b16 %v10689_v46  ;;  %vm18893_vm6 = vnez %v18892_v53  ;;  %v10663_v53 = vld [vmem:[#allocation3 + $0x6c] sm:$0xf] }
 0x4e7   : > { %v17231_v42 = vadd.f32 %v9037_v61, %v8736_v36  ;;  %v10857_v36 = vrot.slane %v10855_v48, 1  ;;  %v10853_v61 = vor.u32 %v10851_v5, %v10849_v34  ;;  %v18891_v34 = vld [vmem:[#allocation104_spill] sm:$0xff]  ;;  %v10691_v38 = vsel %vm18893_vm6, 0, %v10658_v8  ;;  %v18894_v5 = vld [vmem:[#allocation77_spill] sm:$0xff]  ;;  %vm18899_vm6 = vmmov %vm18896_vm15 }
 0x4e8   : > { %v8740_v48 = vadd.f32 %v16976_v9, %v18891_v34  ;;  %vm18895_vm2 = vnez %v18894_v5  ;;  %v10773_v46 = vunpack.c.l.b16 %v10691_v38  ;;  %v10578_v5 = vadd.f32 %v17073_v21, %v16996_v58 }
 0x4e9   : > { %11031 = vmatmul.bf16.gmra.mxu1 %v10850_v59  ;;  %v10858_v43 = vsel %vm18890_vm11, %v10853_v61, %v10857_v36  ;;  %v10772_v59 = vunpack.c.l.b16 %v10690_v40  ;;  %v8741_v40 = vadd.f32 %v16994_v25, %v16955_v11  ;;  %vm18898_vm11 = vnez %v18783_v30  ;;  %v10662_v30 = vld [vmem:[#allocation3 + $0x68] sm:$0xf] }
 0x4eb   : > { %v10797_v3 = vpack.c.b16 %v10772_v59, %v10771_v15  ;;  %v10661_v15 = vld [vmem:[#allocation3 + $0x64] sm:$0xf] }
 0x4ed   : > { %9597 = vmatmul.bf16.gmra.mxu2 %v9449_v17  ;;  %v10863_v41 = vshll.u32 %v10797_v3, 16  ;;  %v10659_v17 = vld [vmem:[#allocation3 + $0x5c] sm:$0xf]  ;;  %v10867_v59 = vshrl.u32 %v10797_v3, 16 }
 0x4ee   : > { %v9039_v13 = vpop.f32.mrf.mxu1  ;;  %v10692_v44 = vsel %vm18895_vm2, 0, %v10659_v17  ;;  %vm18901_vm2 = vmmov %vm18899_vm6 }
 0x4ef   : > { %v17237_v23 = vadd.f32 %v9039_v13, %v8737_v22  ;;  %v10859_v22 = vshrl.u32 %v10796_v27, 16  ;;  %v10865_v13 = vrot.slane %v10863_v41, 1  ;;  %v10774_v19 = vunpack.c.l.b16 %v10692_v44  ;;  %v17283_v44 = vld [vmem:[%s17589_s4] ss:$0 sm:$0xff] }
 0x4f0   : > { %v10694_v41 = vsel %vm18898_vm11, 0, %v10661_v15  ;;  %v18902_v15 = vld [vmem:[#allocation109_spill] sm:$0xff] }
 0x4f1   : > { %v10861_v2 = vor.u32 %v10859_v22, %v10857_v36  ;;  %v10798_v27 = vpack.c.b16 %v10774_v19, %v10773_v46  ;;  %v8742_v36 = vadd.f32 %v17020_v33, %v16966_v63  ;;  %v10869_v17 = vor.u32 %v10867_v59, %v10865_v13  ;;  %v11208_v19 = vld [vmem:[%s13319_s16] sm:$0xff] }
 0x4f2   : > { %v10776_v34 = vunpack.c.l.b16 %v10694_v41  ;;  %v8743_v63 = vadd.f32 %v17045_v55, %v16985_v45  ;;  %v10696_v55 = vsel %vm18794_vm9, 0, %v10663_v53  ;;  %v10579_v59 = vadd.f32 %v17107_v7, %v18902_v15  ;;  %vm18909_vm9 = vmmov %vm18901_vm2 }
 0x4f3   : > { %v10866_v18 = vsel %vm18896_vm15, %v10861_v2, %v10865_v13  ;;  %v10871_v61 = vshll.u32 %v10798_v27, 16  ;;  %v10875_v38 = vshrl.u32 %v10798_v27, 16  ;;  %v10778_v21 = vunpack.c.l.b16 %v10696_v55 }
 0x4f6   : > { %v9042_v60 = vpop.f32.mrf.mxu1 }
 0x4f7   : > { %v17245_v24 = vadd.f32 %v9042_v60, %v8738_v49 }
 0x4f9   : > { %11036 = vmatmul.bf16.gmra.mxu1 %v10858_v43  ;;  %v10660_v43 = vld [vmem:[#allocation3 + $0x60] sm:$0xf] }
 0x4fe   : > { %v9044_v0 = vpop.f32.mrf.mxu1 }
 0x4ff   : > { %v17250_v54 = vadd.f32 %v9044_v0, %v8739_v52  ;;  %v10873_v52 = vrot.slane %v10871_v61, 1  ;;  %v10693_v0 = vsel %vm18897_vm13, 0, %v10660_v43  ;;  %v17292_v61 = vpop.f32.mrf.mxu2 }
 0x500   : > { %v10775_v22 = vunpack.c.l.b16 %v10693_v0  ;;  %v11209_v0 = vld [vmem:[%s13319_s16 + $0x8] sm:$0xff] }
 0x501   : > { %v10874_v25 = vsel %vm18899_vm6, %v10869_v17, %v10873_v52  ;;  %v17303_v17 = vpop.f32.mrf.mxu3 }
 0x502   : > { %v10799_v3 = vpack.c.b16 %v10776_v34, %v10775_v22  ;;  %v10665_v22 = vld [vmem:[#allocation3 + $0x74] sm:$0xf] }
 0x503   : > { %v10698_v45 = vsel %vm18803_vm7, 0, %v10665_v22  ;;  %v10667_v22 = vld [vmem:[#allocation3 + $0x7c] sm:$0xf]  ;;  %vm18915_vm7 = vmmov %vm18901_vm2 }
 0x506   : > { %v9047_v49 = vpop.f32.mrf.mxu1 }
 0x507   : > { %v17258_v29 = vadd.f32 %v9047_v49, %v8740_v48  ;;  %v10879_v48 = vshll.u32 %v10799_v3, 16  ;;  %v10695_v49 = vsel %vm18792_vm5, 0, %v10662_v30  ;;  %v18903_v30 = vld [vmem:[#allocation111_spill] sm:$0xff]  ;;  %v17313_v55 = vpop.f32.mrf.mxu2  ;;  %vm18906_vm5 = vmmov %vm18901_vm2 }
 0x508   : > { %v10777_v58 = vunpack.c.l.b16 %v10695_v49  ;;  %v10580_v53 = vadd.f32 %v17134_v1, %v18903_v30 }
 0x509   : > { %11041 = vmatmul.bf16.gmra.mxu1 %v10866_v18  ;;  %v10881_v13 = vrot.slane %v10879_v48, 1  ;;  %v10877_v18 = vor.u32 %v10875_v38, %v10873_v52 }
 0x50a   : > { %v10800_v28 = vpack.c.b16 %v10778_v21, %v10777_v58  ;;  %v10780_v58 = vunpack.c.l.b16 %v10698_v45 }
 0x50b   : > { %v10882_v27 = vsel %vm18901_vm2, %v10877_v18, %v10881_v13 }
 0x50c   : > { %v10887_v41 = vshll.u32 %v10800_v28, 16 }
 0x50e   : > { %v9049_v9 = vpop.f32.mrf.mxu1  ;;  %v10889_v7 = vrot.slane %v10887_v41, 1 }
 0x50f   : > { %v17263_v60 = vadd.f32 %v9049_v9, %v8741_v40 }
 0x516   : > { %v9052_v8 = vpop.f32.mrf.mxu1 }
 0x517   : > { %v17271_v11 = vadd.f32 %v9052_v8, %v8742_v36 }
 0x519   : > { %11046 = vmatmul.bf16.gmra.mxu1 %v10874_v25  ;;  %v10664_v25 = vld [vmem:[#allocation3 + $0x70] sm:$0xf] }
 0x51e   : > { %v9054_v33 = vpop.f32.mrf.mxu1 }
 0x51f   : > { %v17276_v12 = vadd.f32 %v9054_v33, %v8743_v63  ;;  %v10883_v63 = vshrl.u32 %v10799_v3, 16  ;;  %v17305_v33 = vpop.f32.mrf.mxu0 }
 0x521   : > { %v10885_v18 = vor.u32 %v10883_v63, %v10881_v13  ;;  %v10581_v13 = vadd.f32 %v17166_v39, %v17064_v51  ;;  %v10891_v63 = vshrl.u32 %v10800_v28, 16  ;;  %v10582_v51 = vadd.f32 %v17186_v32, %v17079_v50 }
 0x526   : > { %v11012_v2 = vpop.f32.mrf.mxu1 }
 0x527   : > { %v11124_v46 = vadd.f32 %v11012_v2, %v10578_v5  ;;  %v10697_v5 = vsel %vm18801_vm4, 0, %v10664_v25  ;;  %v10666_v25 = vld [vmem:[#allocation3 + $0x78] sm:$0xf]  ;;  %vm18912_vm4 = vmmov %vm18901_vm2 }
 0x529   : > { %v11200_v40 = vadd.f32 %v17283_v44, %v11124_v46  ;;  %11051 = vmatmul.bf16.gmra.mxu1 %v10882_v27  ;;  %v11210_v46 = vld [vmem:[%s13319_s16 + $0x10] sm:$0xff]  ;;  %v10779_v27 = vunpack.c.l.b16 %v10697_v5  ;;  %v10700_v5 = vsel %vm18819_vm14, 0, %v10667_v22  ;;  %vm18919_vm14 = vmmov %vm18901_vm2 }
 0x52b   : > { %v11216_v9 = vadd.f32 %v11208_v19, %v11200_v40  ;;  %v10890_v19 = vsel %vm18906_vm5, %v10885_v18, %v10889_v7  ;;  %v17319_v40 = vpop.f32.mrf.mxu3 }
 0x52d   : > { %v11224_v43 = vmax.f32 %v11216_v9, 0.0  ;;  %v10801_v9 = vpack.c.b16 %v10780_v58, %v10779_v27 }
 0x52e   : > { %v11014_v36 = vpop.f32.mrf.mxu1 }
 0x52f   : > { %11232 = vst [vmem:[%s17298_s26] sm:$0xff] %v11224_v43  ;;  %v11125_v52 = vadd.f32 %v11014_v36, %v10579_v59  ;;  %v17323_v59 = vpop.f32.mrf.mxu0  ;;  %v10895_v41 = vshll.u32 %v10801_v9, 16 }
 0x531   : > { %v11201_v8 = vadd.f32 %v17283_v44, %v11125_v52  ;;  %v17326_v52 = vpop.f32.mrf.mxu2 }
 0x533   : > { %v11217_v34 = vadd.f32 %v11209_v0, %v11201_v8  ;;  %v11211_v0 = vld [vmem:[%s13319_s16 + $0x18] sm:$0xff]  ;;  %v17336_v49 = vpop.f32.mrf.mxu3 }
 0x535   : > { %v11225_v48 = vmax.f32 %v11217_v34, 0.0 }
 0x536   : > { %v11017_v2 = vpop.f32.mrf.mxu1 }
 0x537   : > { %11233 = vst [vmem:[%s17298_s26 + $0x8] sm:$0xff] %v11225_v48  ;;  %v11126_v3 = vadd.f32 %v11017_v2, %v10580_v53  ;;  %v10897_v48 = vrot.slane %v10895_v41, 1  ;;  %v10699_v53 = vsel %vm18817_vm10, 0, %v10666_v25  ;;  %v10893_v2 = vor.u32 %v10891_v63, %v10889_v7  ;;  %v17341_v50 = vpop.f32.mrf.mxu0  ;;  %v10669_v25 = vld [vmem:[#allocation3 + $0x84] sm:$0xf] }
 0x538   : > { %v10583_v7 = vadd.f32 %v17200_v6, %v17113_v16  ;;  %vm18918_vm10 = vnez %v18865_v57 }
 0x539   : > { %v11202_v1 = vadd.f32 %v17283_v44, %v11126_v3  ;;  %11056 = vmatmul.bf16.gmra.mxu1 %v10890_v19  ;;  %v11212_v3 = vld [vmem:[%s13319_s16 + $0x20] sm:$0xff]  ;;  %v10898_v28 = vsel %vm18909_vm9, %v10893_v2, %v10897_v48  ;;  %v10782_v19 = vunpack.c.l.b16 %v10700_v5  ;;  %v17344_v27 = vpop.f32.mrf.mxu2  ;;  %v10702_v5 = vsel %vm18834_vm8, 0, %v10669_v25  ;;  %vm18923_vm8 = vmmov %vm18901_vm2 }
 0x53b   : > { %v11218_v21 = vadd.f32 %v11210_v46, %v11202_v1  ;;  %v10781_v46 = vunpack.c.l.b16 %v10699_v53 }
 0x53d   : > { %v11226_v43 = vmax.f32 %v11218_v21, 0.0  ;;  %v10802_v1 = vpack.c.b16 %v10782_v19, %v10781_v46  ;;  %v10784_v46 = vunpack.c.l.b16 %v10702_v5 }
 0x53e   : > { %v11019_v15 = vpop.f32.mrf.mxu1 }
 0x53f   : > { %11234 = vst [vmem:[%s17298_s26 + $0x10] sm:$0xff] %v11226_v43  ;;  %v11127_v36 = vadd.f32 %v11019_v15, %v10581_v13  ;;  %v17349_v15 = vpop.f32.mrf.mxu3  ;;  %v17353_v22 = vpop.f32.mrf.mxu0 }
 0x541   : > { %v11203_v8 = vadd.f32 %v17283_v44, %v11127_v36  ;;  %v11213_v36 = vld [vmem:[%s13319_s16 + $0x28] sm:$0xff]  ;;  %v17355_v63 = vpop.f32.mrf.mxu2 }
 0x543   : > { %v11219_v34 = vadd.f32 %v11211_v0, %v11203_v8  ;;  %v10903_v0 = vshll.u32 %v10802_v1, 16  ;;  %v10668_v8 = vld [vmem:[#allocation3 + $0x80] sm:$0xf] }
 0x544   : > { %v10701_v53 = vsel %vm18832_vm12, 0, %v10668_v8  ;;  %vm18921_vm12 = vnez %v18874_v37 }
 0x545   : > { %v11227_v30 = vmax.f32 %v11219_v34, 0.0  ;;  %v10905_v16 = vrot.slane %v10903_v0, 1 }
 0x546   : > { %v11022_v45 = vpop.f32.mrf.mxu1 }
 0x547   : > { %11235 = vst [vmem:[%s17298_s26 + $0x18] sm:$0xff] %v11227_v30  ;;  %v11128_v18 = vadd.f32 %v11022_v45, %v10582_v51  ;;  %v10899_v30 = vshrl.u32 %v10801_v9, 16  ;;  %v10584_v51 = vadd.f32 %v17216_v26, %v17127_v14  ;;  %v10783_v9 = vunpack.c.l.b16 %v10701_v53  ;;  %v17367_v14 = vpop.f32.mrf.mxu3  ;;  %v18914_v53 = vld [vmem:[#allocation84_spill] sm:$0xff] }
 0x548   : > { %v9644_v38 = vadd.f32 %v17313_v55, %v18914_v53  ;;  %v11260_v55 = vld [vmem:[%s13319_s16 + $0x40] sm:$0xff]  ;;  %v18917_v53 = vld [vmem:[#allocation54_spill] sm:$0xff] }
 0x549   : > { %v11204_v32 = vadd.f32 %v17283_v44, %v11128_v18  ;;  %11061 = vmatmul.bf16.gmra.mxu1 %v10898_v28  ;;  %v10901_v2 = vor.u32 %v10899_v30, %v10897_v48  ;;  %v10671_v30 = vld [vmem:[#allocation3 + $0x8c] sm:$0xf] }
 0x54b   : > { %v11220_v58 = vadd.f32 %v11212_v3, %v11204_v32  ;;  %v11214_v3 = vld [vmem:[%s13319_s16 + $0x30] sm:$0xff]  ;;  %v10906_v28 = vsel %vm18912_vm4, %v10901_v2, %v10905_v16  ;;  %v17369_v32 = vpack.c.b16 %v10784_v46, %v10783_v9  ;;  %v10210_v46 = vadd.f32 %v17319_v40, %v9644_v38 }
 0x54d   : > { %v11228_v21 = vmax.f32 %v11220_v58, 0.0  ;;  %v18913_v58 = vld [vmem:[#allocation108_spill] sm:$0xff]  ;;  %v10911_v8 = vshll.u32 %v17369_v32, 16 }
 0x54e   : > { %v11024_v43 = vpop.f32.mrf.mxu1  ;;  %v9643_v48 = vadd.f32 %v17292_v61, %v18913_v58  ;;  %v10670_v61 = vld [vmem:[#allocation3 + $0x88] sm:$0xf] }
 0x54f   : > { %11236 = vst [vmem:[%s17298_s26 + $0x20] sm:$0xff] %v11228_v21  ;;  %v11129_v13 = vadd.f32 %v11024_v43, %v10583_v7  ;;  %v17373_v21 = vpop.f32.mrf.mxu0  ;;  %v10585_v43 = vadd.f32 %v17229_v10, %v17159_v47  ;;  %v10907_v47 = vshrl.u32 %v10802_v1, 16  ;;  %v10913_v10 = vrot.slane %v10911_v8, 1 }
 0x550   : > { %v10209_v25 = vadd.f32 %v17303_v17, %v9643_v48  ;;  %v10703_v39 = vsel %vm18850_vm0, 0, %v10670_v61  ;;  %v10672_v61 = vld [vmem:[#allocation3 + $0x90] sm:$0xf]  ;;  %vm18926_vm0 = vmmov %vm18901_vm2 }
 0x551   : > { %v11205_v41 = vadd.f32 %v17283_v44, %v11129_v13  ;;  %v17377_v13 = vpop.f32.mrf.mxu2  ;;  %v10909_v1 = vor.u32 %v10907_v47, %v10905_v16 }
 0x552   : > { %v10586_v17 = vadd.f32 %v17305_v33, %v10209_v25 }
 0x553   : > { %v11221_v34 = vadd.f32 %v11213_v36, %v11205_v41  ;;  %v11215_v41 = vld [vmem:[%s13319_s16 + $0x38] sm:$0xff]  ;;  %v10914_v33 = vsel %vm18915_vm7, %v10909_v1, %v10913_v10 }
 0x555   : > { %v11229_v6 = vmax.f32 %v11221_v34, 0.0 }
 0x556   : > { %v11027_v45 = vpop.f32.mrf.mxu1 }
 0x557   : > { %11237 = vst [vmem:[%s17298_s26 + $0x28] sm:$0xff] %v11229_v6  ;;  %v11130_v18 = vadd.f32 %v11027_v45, %v10584_v51  ;;  %v17384_v51 = vpop.f32.mrf.mxu3  ;;  %v10704_v45 = vsel %vm18852_vm1, 0, %v10671_v30  ;;  %v10673_v30 = vld [vmem:[#allocation3 + $0x94] sm:$0xf] }
 0x558   : > { %v10786_v9 = vunpack.c.l.b16 %v10704_v45 }
 0x559   : > { %v11206_v19 = vadd.f32 %v17283_v44, %v11130_v18  ;;  %11066 = vmatmul.bf16.gmra.mxu1 %v10906_v28  ;;  %v17398_v18 = vpop.f32.mrf.mxu0  ;;  %v10785_v28 = vunpack.c.l.b16 %v10703_v39  ;;  %v10705_v39 = vsel %vm18864_vm3, 0, %v10672_v61 }
 0x55b   : > { %v11222_v26 = vadd.f32 %v11214_v3, %v11206_v19  ;;  %v17401_v3 = vpop.f32.mrf.mxu2  ;;  %v10804_v16 = vpack.c.b16 %v10786_v9, %v10785_v28 }
 0x55d   : > { %v11230_v7 = vmax.f32 %v11222_v26, 0.0  ;;  %v18916_v26 = vld [vmem:[#allocation106_spill] sm:$0xff]  ;;  %v10919_v8 = vshll.u32 %v10804_v16, 16 }
 0x55e   : > { %v11029_v36 = vpop.f32.mrf.mxu1  ;;  %v9645_v58 = vadd.f32 %v17326_v52, %v18916_v26 }
 0x55f   : > { %11238 = vst [vmem:[%s17298_s26 + $0x30] sm:$0xff] %v11230_v7  ;;  %v11131_v0 = vadd.f32 %v11029_v36, %v10585_v43  ;;  %v10587_v7 = vadd.f32 %v17323_v59, %v10210_v46  ;;  %v17410_v43 = vpop.f32.mrf.mxu3  ;;  %v10921_v47 = vrot.slane %v10919_v8, 1  ;;  %v18920_v46 = vld [vmem:[#allocation57_spill] sm:$0xff] }
 0x560   : > { %v10211_v40 = vadd.f32 %v17336_v49, %v9645_v58  ;;  %v9646_v49 = vadd.f32 %v17344_v27, %v18917_v53 }
 0x561   : > { %v11207_v34 = vadd.f32 %v17283_v44, %v11131_v0  ;;  %v17394_v44 = vld [vmem:[%s17589_s4] ss:$0 sm:$0xff]  ;;  %v17415_v25 = vpop.f32.mrf.mxu0 }
 0x562   : > { %v10212_v27 = vadd.f32 %v17349_v15, %v9646_v49 }
 0x563   : > { %v11223_v6 = vadd.f32 %v11215_v41, %v11207_v34  ;;  %v11261_v41 = vld [vmem:[%s13319_s16 + $0x48] sm:$0xff]  ;;  %v17418_v52 = vpop.f32.mrf.mxu2 }
 0x564   : > { %v10589_v26 = vadd.f32 %v17353_v22, %v10212_v27 }
 0x565   : > { %v11231_v5 = vmax.f32 %v11223_v6, 0.0  ;;  %v10915_v6 = vshrl.u32 %v17369_v32, 16  ;;  %v11262_v32 = vld [vmem:[%s13319_s16 + $0x50] sm:$0xff] }
 0x566   : > { %v11032_v2 = vpop.f32.mrf.mxu1 }
 0x567   : > { %11239 = vst [vmem:[%s17298_s26 + $0x38] sm:$0xff] %v11231_v5  ;;  %v11132_v20 = vadd.f32 %v11032_v2, %v10586_v17  ;;  %v10588_v5 = vadd.f32 %v17341_v50, %v10211_v40  ;;  %v10706_v17 = vsel %vm18918_vm10, 0, %v10673_v30  ;;  %v10917_v2 = vor.u32 %v10915_v6, %v10913_v10  ;;  %v18922_v30 = vld [vmem:[#allocation59_spill] sm:$0xff] }
 0x568   : > { %v10923_v40 = vshrl.u32 %v10804_v16, 16  ;;  %v11264_v16 = vld [vmem:[%s13319_s16 + $0x60] sm:$0xff] }
 0x569   : > { %v11252_v62 = vadd.f32 %v17394_v44, %v11132_v20  ;;  %11071 = vmatmul.bf16.gmra.mxu1 %v10914_v33  ;;  %v17429_v20 = vpop.f32.mrf.mxu3  ;;  %v10922_v35 = vsel %vm18919_vm14, %v10917_v2, %v10921_v47  ;;  %v10788_v33 = vunpack.c.l.b16 %v10706_v17  ;;  %v17435_v57 = vpop.f32.mrf.mxu0 }
 0x56a   : > { %v10925_v61 = vor.u32 %v10923_v40, %v10921_v47 }
 0x56b   : > { %v11268_v19 = vadd.f32 %v11260_v55, %v11252_v62  ;;  %v10787_v55 = vunpack.c.l.b16 %v10705_v39  ;;  %v17437_v10 = vpop.f32.mrf.mxu2  ;;  %v9647_v62 = vadd.f32 %v17355_v63, %v18920_v46  ;;  %v11265_v46 = vld [vmem:[%s13319_s16 + $0x68] sm:$0xff] }
 0x56d   : > { %v11276_v48 = vmax.f32 %v11268_v19, 0.0  ;;  %v10805_v9 = vpack.c.b16 %v10788_v33, %v10787_v55 }
 0x56e   : > { %v11034_v36 = vpop.f32.mrf.mxu1 }
 0x56f   : > { %11284 = vst [vmem:[%s17298_s26 + $0x40] sm:$0xff] %v11276_v48  ;;  %v11133_v0 = vadd.f32 %v11034_v36, %v10587_v7  ;;  %v11263_v7 = vld [vmem:[%s13319_s16 + $0x58] sm:$0xff]  ;;  %v10927_v15 = vshll.u32 %v10805_v9, 16  ;;  %v10931_v33 = vshrl.u32 %v10805_v9, 16 }
 0x570   : > { %v10674_v36 = vld [vmem:[#allocation3 + $0x98] sm:$0x1] }
 0x571   : > { %v11253_v34 = vadd.f32 %v17394_v44, %v11133_v0  ;;  %v10213_v0 = vadd.f32 %v17367_v14, %v9647_v62  ;;  %v10129_v8 = vpop.f32.mrf.mxu3  ;;  %v10707_v63 = vsel %vm18921_vm12, 0, %v10674_v36  ;;  %v10929_v22 = vrot.slane %v10927_v15, 1  ;;  %v10506_v6 = vpop.f32.mrf.mxu0 }
 0x573   : > { %v11269_v59 = vadd.f32 %v11261_v41, %v11253_v34  ;;  %v10590_v53 = vadd.f32 %v17373_v21, %v10213_v0  ;;  %v9565_v49 = vpop.f32.mrf.mxu2  ;;  %v10930_v17 = vsel %vm18923_vm8, %v10925_v61, %v10929_v22 }
 0x575   : > { %v11277_v38 = vmax.f32 %v11269_v59, 0.0  ;;  %v9648_v59 = vadd.f32 %v17377_v13, %v18922_v30 }
 0x576   : > { %v11037_v45 = vpop.f32.mrf.mxu1 }
 0x577   : > { %11285 = vst [vmem:[%s17298_s26 + $0x48] sm:$0xff] %v11277_v38  ;;  %v11134_v1 = vadd.f32 %v11037_v45, %v10588_v5  ;;  %v10789_v38 = vunpack.c.l.b16 %v10707_v63  ;;  %v10214_v37 = vadd.f32 %v17384_v51, %v9648_v59 }
 0x579   : > { %v11254_v50 = vadd.f32 %v17394_v44, %v11134_v1  ;;  %11076 = vmatmul.bf16.gmra.mxu1 %v10922_v35  ;;  %v10806_v13 = vpack.c.b16 %v10789_v38, %v10789_v38  ;;  %v10131_v2 = vpop.f32.mrf.mxu3  ;;  %v18924_v1 = vld [vmem:[#allocation110_spill] sm:$0xff]  ;;  %v10591_v35 = vadd.f32 %v17398_v18, %v10214_v37 }
 0x57a   : > { %v9649_v21 = vadd.f32 %v17401_v3, %v18924_v1  ;;  %v11267_v38 = vld [vmem:[%s13319_s16 + $0x78] sm:$0xff] }
 0x57b   : > { %v11270_v28 = vadd.f32 %v11262_v32, %v11254_v50  ;;  %v10935_v27 = vshll.u32 %v10806_v13, 16  ;;  %v10508_v50 = vpop.f32.mrf.mxu0 }
 0x57c   : > { %v10215_v62 = vadd.f32 %v17410_v43, %v9649_v21  ;;  %v11266_v43 = vld [vmem:[%s13319_s16 + $0x70] sm:$0xff] }
 0x57d   : > { %v11278_v19 = vmax.f32 %v11270_v28, 0.0  ;;  %v9568_v28 = vpop.f32.mrf.mxu2 }
 0x57e   : > { %v11039_v58 = vpop.f32.mrf.mxu1  ;;  %v10592_v9 = vadd.f32 %v17415_v25, %v10215_v62 }
 0x57f   : > { %11286 = vst [vmem:[%s17298_s26 + $0x50] sm:$0xff] %v11278_v19  ;;  %v11135_v48 = vadd.f32 %v11039_v58, %v10589_v26  ;;  %v10933_v26 = vor.u32 %v10931_v33, %v10929_v22  ;;  %v10937_v58 = vrot.slane %v10935_v27, 1  ;;  %v18927_v22 = vld [vmem:[#allocation66_spill] sm:$0xff] }
 0x580   : > { %v9651_v25 = vadd.f32 %v17437_v10, %v18927_v22 }
 0x581   : > { %v11255_v41 = vadd.f32 %v17394_v44, %v11135_v48  ;;  %v18925_v48 = vld [vmem:[#allocation65_spill] sm:$0xff]  ;;  %v10134_v15 = vpop.f32.mrf.mxu3  ;;  %v10938_v0 = vsel %vm18926_vm0, %v10933_v26, %v10937_v58 }
 0x582   : > { %v9650_v18 = vadd.f32 %v17418_v52, %v18925_v48  ;;  %v18929_v48 = vld [vmem:[#allocation69_spill] sm:$0xff] }
 0x583   : > { %v11271_v34 = vadd.f32 %v11263_v7, %v11255_v41 }
 0x584   : > { %v10216_v40 = vadd.f32 %v17429_v20, %v9650_v18  ;;  %v10217_v20 = vadd.f32 %v10129_v8, %v9651_v25  ;;  %v11312_v8 = vld [vmem:[%s13319_s16 + $0x80] sm:$0xff] }
 0x585   : > { %v11279_v39 = vmax.f32 %v11271_v34, 0.0  ;;  %v10511_v34 = vpop.f32.mrf.mxu0  ;;  %v9570_v61 = vpop.f32.mrf.mxu2 }
 0x586   : > { %v11042_v14 = vpop.f32.mrf.mxu1  ;;  %v10593_v59 = vadd.f32 %v17435_v57, %v10216_v40  ;;  %v10594_v10 = vadd.f32 %v10506_v6, %v10217_v20  ;;  %v17481_v57 = vld [vmem:[%s17589_s4] ss:$0 sm:$0xff]  ;;  %v9654_v18 = vadd.f32 %v9570_v61, %v18929_v48  ;;  %v18930_v40 = vld [vmem:[#allocation70_spill] sm:$0xff]  ;;  %v18931_v20 = vld [vmem:[#allocation112_spill] sm:$0xff] }
 0x587   : > { %11287 = vst [vmem:[%s17298_s26 + $0x58] sm:$0xff] %v11279_v39  ;;  %v11136_v5 = vadd.f32 %v11042_v14, %v10590_v53 }
 0x589   : > { %v11256_v47 = vadd.f32 %v17394_v44, %v11136_v5  ;;  %11081 = vmatmul.bf16.gmra.mxu1 %v10930_v17  ;;  %v10136_v14 = vpop.f32.mrf.mxu3 }
 0x58b   : > { %v11272_v45 = vadd.f32 %v11264_v16, %v11256_v47  ;;  %v18928_v47 = vld [vmem:[#allocation62_spill] sm:$0xff] }
 0x58c   : > { %v9652_v13 = vadd.f32 %v9565_v49, %v18928_v47  ;;  %v9653_v49 = vadd.f32 %v9568_v28, %v17146_v4 }
 0x58d   : > { %v11280_v32 = vmax.f32 %v11272_v45, 0.0  ;;  %v10513_v16 = vpop.f32.mrf.mxu0  ;;  %v9573_v37 = vpop.f32.mrf.mxu2 }
 0x58e   : > { %v11044_v55 = vpop.f32.mrf.mxu1  ;;  %v10219_v26 = vadd.f32 %v10134_v15, %v9653_v49 }
 0x58f   : > { %11288 = vst [vmem:[%s17298_s26 + $0x60] sm:$0xff] %v11280_v32  ;;  %v11137_v51 = vadd.f32 %v11044_v55, %v10591_v35  ;;  %v10218_v32 = vadd.f32 %v10131_v2, %v9652_v13 }
 0x590   : > { %v10596_v4 = vadd.f32 %v10511_v34, %v10219_v26 }
 0x591   : > { %v11257_v19 = vadd.f32 %v17394_v44, %v11137_v51  ;;  %v10139_v35 = vpop.f32.mrf.mxu3  ;;  %v10595_v27 = vadd.f32 %v10508_v50, %v10218_v32 }
 0x593   : > { %v11273_v3 = vadd.f32 %v11265_v46, %v11257_v19  ;;  %v11313_v19 = vld [vmem:[%s13319_s16 + $0x88] sm:$0xff] }
 0x595   : > { %v11281_v7 = vmax.f32 %v11273_v3, 0.0  ;;  %v10516_v33 = vpop.f32.mrf.mxu0  ;;  %v9575_v51 = vpop.f32.mrf.mxu2 }
 0x596   : > { %v11047_v36 = vpop.f32.mrf.mxu1 }
 0x597   : > { %11289 = vst [vmem:[%s17298_s26 + $0x68] sm:$0xff] %v11281_v7  ;;  %v11138_v41 = vadd.f32 %v11047_v36, %v10592_v9 }
 0x599   : > { %v11258_v63 = vadd.f32 %v17394_v44, %v11138_v41  ;;  %11086 = vmatmul.bf16.gmra.mxu1 %v10938_v0  ;;  %v10141_v3 = vpop.f32.mrf.mxu3  ;;  %v11314_v0 = vld [vmem:[%s13319_s16 + $0x90] sm:$0xff]  ;;  %v10220_v41 = vadd.f32 %v10136_v14, %v9654_v18 }
 0x59a   : > { %v11318_v18 = vld [vmem:[%s13319_s16 + $0xb0] sm:$0xff] }
 0x59b   : > { %v11274_v52 = vadd.f32 %v11266_v43, %v11258_v63  ;;  %v9655_v63 = vadd.f32 %v9573_v37, %v18930_v40  ;;  %v10597_v22 = vadd.f32 %v10513_v16, %v10220_v41  ;;  %v11319_v40 = vld [vmem:[%s13319_s16 + $0xb8] sm:$0xff] }
 0x59d   : > { %v11282_v30 = vmax.f32 %v11274_v52, 0.0  ;;  %v10518_v9 = vpop.f32.mrf.mxu0  ;;  %v9578_v36 = vpop.f32.mrf.mxu2 }
 0x59e   : > { %v11049_v39 = vpop.f32.mrf.mxu1 }
 0x59f   : > { %11290 = vst [vmem:[%s17298_s26 + $0x70] sm:$0xff] %v11282_v30  ;;  %v11139_v53 = vadd.f32 %v11049_v39, %v10593_v59  ;;  %v11315_v30 = vld [vmem:[%s13319_s16 + $0x98] sm:$0xff]  ;;  %v10221_v59 = vadd.f32 %v10139_v35, %v9655_v63 }
 0x5a1   : > { %v11259_v5 = vadd.f32 %v17394_v44, %v11139_v53  ;;  %v10144_v61 = vpop.f32.mrf.mxu3  ;;  %v10598_v37 = vadd.f32 %v10516_v33, %v10221_v59 }
 0x5a3   : > { %v11275_v17 = vadd.f32 %v11267_v38, %v11259_v5  ;;  %v9656_v5 = vadd.f32 %v9575_v51, %v18931_v20 }
 0x5a5   : > { %v11283_v45 = vmax.f32 %v11275_v17, 0.0  ;;  %v10521_v39 = vpop.f32.mrf.mxu0  ;;  %v9580_v38 = vpop.f32.mrf.mxu2 }
 0x5a6   : > { %v11052_v1 = vpop.f32.mrf.mxu1 }
 0x5a7   : > { %11291 = vst [vmem:[%s17298_s26 + $0x78] sm:$0xff] %v11283_v45  ;;  %v11140_v21 = vadd.f32 %v11052_v1, %v10594_v10  ;;  %v11316_v45 = vld [vmem:[%s13319_s16 + $0xa0] sm:$0xff]  ;;  %v10222_v10 = vadd.f32 %v10141_v3, %v9656_v5 }
 0x5a9   : > { %v11304_v44 = vadd.f32 %v17481_v57, %v11140_v21  ;;  %v10146_v13 = vpop.f32.mrf.mxu3 }
 0x5ab   : > { %v11320_v55 = vadd.f32 %v11312_v8, %v11304_v44  ;;  %v9657_v44 = vadd.f32 %v9578_v36, %v17209_v31 }
 0x5ad   : > { %v11328_v6 = vmax.f32 %v11320_v55, 0.0  ;;  %v10523_v21 = vpop.f32.mrf.mxu0  ;;  %v9583_v32 = vpop.f32.mrf.mxu2  ;;  %v10599_v55 = vadd.f32 %v10518_v9, %v10222_v10 }
 0x5ae   : > { %v11054_v46 = vpop.f32.mrf.mxu1 }
 0x5af   : > { %11336 = vst [vmem:[%s17298_s26 + $0x80] sm:$0xff] %v11328_v6  ;;  %v11141_v62 = vadd.f32 %v11054_v46, %v10595_v27  ;;  %v11317_v6 = vld [vmem:[%s13319_s16 + $0xa8] sm:$0xff]  ;;  %v10223_v27 = vadd.f32 %v10144_v61, %v9657_v44 }
 0x5b1   : > { %v11305_v58 = vadd.f32 %v17481_v57, %v11141_v62  ;;  %v10149_v46 = vpop.f32.mrf.mxu3 }
 0x5b3   : > { %v11321_v2 = vadd.f32 %v11313_v19, %v11305_v58  ;;  %v9658_v19 = vadd.f32 %v9580_v38, %v17221_v56 }
 0x5b5   : > { %v11329_v7 = vmax.f32 %v11321_v2, 0.0  ;;  %v10526_v26 = vpop.f32.mrf.mxu0  ;;  %v10600_v2 = vadd.f32 %v10521_v39, %v10223_v27  ;;  %v9585_v31 = vpop.f32.mrf.mxu2 }
 0x5b6   : > { %v11057_v28 = vpop.f32.mrf.mxu1  ;;  %v9660_v61 = vadd.f32 %v9585_v31, %v17237_v23 }
 0x5b7   : > { %11337 = vst [vmem:[%s17298_s26 + $0x88] sm:$0xff] %v11329_v7  ;;  %v11142_v50 = vadd.f32 %v11057_v28, %v10596_v4  ;;  %v10224_v7 = vadd.f32 %v10146_v13, %v9658_v19 }
 0x5b9   : > { %v11306_v43 = vadd.f32 %v17481_v57, %v11142_v50  ;;  %v10151_v9 = vpop.f32.mrf.mxu3  ;;  %v9659_v50 = vadd.f32 %v9583_v32, %v17231_v42  ;;  %v17518_v42 = vld [vmem:[%s17589_s4] ss:$0 sm:$0xff] }
 0x5ba   : > { %v10226_v38 = vadd.f32 %v10151_v9, %v9660_v61 }
 0x5bb   : > { %v11322_v15 = vadd.f32 %v11314_v0, %v11306_v43  ;;  %v10601_v0 = vadd.f32 %v10523_v21, %v10224_v7  ;;  %v10225_v63 = vadd.f32 %v10149_v46, %v9659_v50 }
 0x5bd   : > { %v11330_v52 = vmax.f32 %v11322_v15, 0.0  ;;  %v10528_v41 = vpop.f32.mrf.mxu0  ;;  %v9588_v15 = vpop.f32.mrf.mxu2 }
 0x5be   : > { %v11059_v25 = vpop.f32.mrf.mxu1  ;;  %v9661_v5 = vadd.f32 %v9588_v15, %v17245_v24 }
 0x5bf   : > { %11338 = vst [vmem:[%s17298_s26 + $0x90] sm:$0xff] %v11330_v52  ;;  %v11143_v34 = vadd.f32 %v11059_v25, %v10597_v22 }
 0x5c1   : > { %v11307_v53 = vadd.f32 %v17481_v57, %v11143_v34  ;;  %v10602_v34 = vadd.f32 %v10526_v26, %v10225_v63 }
 0x5c3   : > { %v11323_v14 = vadd.f32 %v11315_v30, %v11307_v53  ;;  %v10154_v30 = vpop.f32.mrf.mxu3  ;;  %v11364_v53 = vld [vmem:[%s13319_s16 + $0xc0] sm:$0xff] }
 0x5c4   : > { %v10227_v10 = vadd.f32 %v10154_v30, %v9661_v5  ;;  %v11369_v30 = vld [vmem:[%s13319_s16 + $0xe8] sm:$0xff] }
 0x5c5   : > { %v11331_v17 = vmax.f32 %v11323_v14, 0.0  ;;  %v10531_v14 = vpop.f32.mrf.mxu0  ;;  %v9590_v20 = vpop.f32.mrf.mxu2 }
 0x5c6   : > { %v11062_v47 = vpop.f32.mrf.mxu1  ;;  %v9662_v44 = vadd.f32 %v9590_v20, %v17250_v54  ;;  %v10604_v24 = vadd.f32 %v10531_v14, %v10227_v10 }
 0x5c7   : > { %11339 = vst [vmem:[%s17298_s26 + $0x98] sm:$0xff] %v11331_v17  ;;  %v11144_v16 = vadd.f32 %v11062_v47, %v10598_v37  ;;  %v10603_v37 = vadd.f32 %v10528_v41, %v10226_v38  ;;  %v11368_v41 = vld [vmem:[%s13319_s16 + $0xe0] sm:$0xff] }
 0x5c9   : > { %v11308_v1 = vadd.f32 %v17481_v57, %v11144_v16 }
 0x5cb   : > { %v11324_v8 = vadd.f32 %v11316_v45, %v11308_v1  ;;  %v10156_v13 = vpop.f32.mrf.mxu3  ;;  %v11365_v45 = vld [vmem:[%s13319_s16 + $0xc8] sm:$0xff] }
 0x5cd   : > { %v11332_v35 = vmax.f32 %v11324_v8, 0.0  ;;  %v10533_v21 = vpop.f32.mrf.mxu0  ;;  %v9593_v32 = vpop.f32.mrf.mxu2 }
 0x5ce   : > { %v11064_v49 = vpop.f32.mrf.mxu1  ;;  %v9663_v19 = vadd.f32 %v9593_v32, %v17258_v29 }
 0x5cf   : > { %11340 = vst [vmem:[%s17298_s26 + $0xa0] sm:$0xff] %v11332_v35  ;;  %v11145_v33 = vadd.f32 %v11064_v49, %v10599_v55 }
 0x5d1   : > { %v11309_v51 = vadd.f32 %v17481_v57, %v11145_v33  ;;  %v11366_v33 = vld [vmem:[%s13319_s16 + $0xd0] sm:$0xff] }
 0x5d3   : > { %v11325_v62 = vadd.f32 %v11317_v6, %v11309_v51  ;;  %v10228_v6 = vadd.f32 %v10156_v13, %v9662_v44  ;;  %v10159_v51 = vpop.f32.mrf.mxu3 }
 0x5d5   : > { %v11333_v58 = vmax.f32 %v11325_v62, 0.0  ;;  %v10536_v62 = vpop.f32.mrf.mxu0  ;;  %v9595_v54 = vpop.f32.mrf.mxu2 }
 0x5d6   : > { %v11067_v3 = vpop.f32.mrf.mxu1 }
 0x5d7   : > { %11341 = vst [vmem:[%s17298_s26 + $0xa8] sm:$0xff] %v11333_v58  ;;  %v11146_v48 = vadd.f32 %v11067_v3, %v10600_v2  ;;  %v10605_v58 = vadd.f32 %v10533_v21, %v10228_v6  ;;  %v11367_v3 = vld [vmem:[%s13319_s16 + $0xd8] sm:$0xff] }
 0x5d8   : > { %v11371_v21 = vld [vmem:[%s13319_s16 + $0xf8] sm:$0xff] }
 0x5d9   : > { %v11310_v4 = vadd.f32 %v17481_v57, %v11146_v48  ;;  %v10229_v48 = vadd.f32 %v10159_v51, %v9663_v19 }
 0x5db   : > { %v11326_v28 = vadd.f32 %v11318_v18, %v11310_v4  ;;  %v10161_v4 = vpop.f32.mrf.mxu3  ;;  %v10606_v50 = vadd.f32 %v10536_v62, %v10229_v48 }
 0x5dd   : > { %v11334_v36 = vmax.f32 %v11326_v28, 0.0  ;;  %v9664_v28 = vadd.f32 %v9595_v54, %v17263_v60 }
 0x5de   : > { %v11069_v56 = vpop.f32.mrf.mxu1 }
 0x5df   : > { %11342 = vst [vmem:[%s17298_s26 + $0xb0] sm:$0xff] %v11334_v36  ;;  %v11147_v43 = vadd.f32 %v11069_v56, %v10601_v0  ;;  %v10538_v0 = vpop.f32.mrf.mxu0  ;;  %v9598_v56 = vpop.f32.mrf.mxu2 }
 0x5e0   : > { %v9665_v63 = vadd.f32 %v9598_v56, %v17271_v11 }
 0x5e1   : > { %v11311_v52 = vadd.f32 %v17481_v57, %v11147_v43  ;;  %v10230_v43 = vadd.f32 %v10161_v4, %v9664_v28 }
 0x5e3   : > { %v11327_v22 = vadd.f32 %v11319_v40, %v11311_v52  ;;  %v10164_v60 = vpop.f32.mrf.mxu3 }
 0x5e5   : > { %v11335_v25 = vmax.f32 %v11327_v22, 0.0  ;;  %v10607_v22 = vadd.f32 %v10538_v0, %v10230_v43 }
 0x5e6   : > { %v11072_v59 = vpop.f32.mrf.mxu1 }
 0x5e7   : > { %11343 = vst [vmem:[%s17298_s26 + $0xb8] sm:$0xff] %v11335_v25  ;;  %v11148_v39 = vadd.f32 %v11072_v59, %v10602_v34  ;;  %v10541_v34 = vpop.f32.mrf.mxu0  ;;  %v10231_v59 = vadd.f32 %v10164_v60, %v9665_v63 }
 0x5e9   : > { %v11356_v57 = vadd.f32 %v17518_v42, %v11148_v39  ;;  %v10608_v14 = vadd.f32 %v10541_v34, %v10231_v59 }
 0x5eb   : > { %v11372_v23 = vadd.f32 %v11364_v53, %v11356_v57  ;;  %v9600_v53 = vpop.f32.mrf.mxu2  ;;  %v10166_v5 = vpop.f32.mrf.mxu3 }
 0x5ec   : > { %v9666_v57 = vadd.f32 %v9600_v53, %v17276_v12 }
 0x5ed   : > { %v11380_v17 = vmax.f32 %v11372_v23, 0.0 }
 0x5ee   : > { %v11074_v47 = vpop.f32.mrf.mxu1 }
 0x5ef   : > { %11388 = vst [vmem:[%s17298_s26 + $0xc0] sm:$0xff] %v11380_v17  ;;  %v11149_v16 = vadd.f32 %v11074_v47, %v10603_v37  ;;  %v11370_v17 = vld [vmem:[%s13319_s16 + $0xf0] sm:$0xff]  ;;  %v10232_v37 = vadd.f32 %v10166_v5, %v9666_v57  ;;  %s13125_s16 = scalar_lea.hbm %s17590_s5, 512 }
 0x5f0   : > { %p13127_p2 = scmp.lt.s32.totalorder %s13125_s16, %s13121_s7 }
 0x5f1   : > { %v11357_v1 = vadd.f32 %v17518_v42, %v11149_v16  ;;  %v10543_v16 = vpop.f32.mrf.mxu0 }
 0x5f2   : > { %p13128_p9 = por %p13127_p2, %p13126_p11 }
 0x5f3   : > { %v11373_v8 = vadd.f32 %v11365_v45, %v11357_v1  ;;  %v10609_v45 = vadd.f32 %v10543_v16, %v10232_v37 }
 0x5f4   : > { %p13129_p10 = pnand %p13128_p9, %p13124_p8 }
 0x5f5   : > { %v11381_v35 = vmax.f32 %v11373_v8, 0.0 }
 0x5f6   : > { %v11077_v55 = vpop.f32.mrf.mxu1 }
 0x5f7   : > { %11389 = vst [vmem:[%s17298_s26 + $0xc8] sm:$0xff] %v11381_v35  ;;  %v11150_v49 = vadd.f32 %v11077_v55, %v10604_v24 }
 0x5f9   : > { %v11358_v27 = vadd.f32 %v17518_v42, %v11150_v49 }
 0x5fb   : > { %v11374_v46 = vadd.f32 %v11366_v33, %v11358_v27 }
 0x5fd   : > { %v11382_v26 = vmax.f32 %v11374_v46, 0.0 }
 0x5fe   : > { %v11079_v2 = vpop.f32.mrf.mxu1 }
 0x5ff   : > { %11390 = vst [vmem:[%s17298_s26 + $0xd0] sm:$0xff] %v11382_v26  ;;  %v11151_v31 = vadd.f32 %v11079_v2, %v10605_v58 }
 0x601   : > { %v11359_v18 = vadd.f32 %v17518_v42, %v11151_v31 }
 0x603   : > { %v11375_v7 = vadd.f32 %v11367_v3, %v11359_v18 }
 0x605   : > { %v11383_v9 = vmax.f32 %v11375_v7, 0.0 }
 0x606   : > { %v11082_v29 = vpop.f32.mrf.mxu1 }
 0x607   : > { %11391 = vst [vmem:[%s17298_s26 + $0xd8] sm:$0xff] %v11383_v9  ;;  %v11152_v36 = vadd.f32 %v11082_v29, %v10606_v50 }
 0x609   : > { %v11360_v15 = vadd.f32 %v17518_v42, %v11152_v36 }
 0x60b   : > { %v11376_v40 = vadd.f32 %v11368_v41, %v11360_v15 }
 0x60d   : > { %v11384_v52 = vmax.f32 %v11376_v40, 0.0 }
 0x60e   : > { %v11084_v61 = vpop.f32.mrf.mxu1 }
 0x60f   : > { %11392 = vst [vmem:[%s17298_s26 + $0xe0] sm:$0xff] %v11384_v52  ;;  %v11153_v25 = vadd.f32 %v11084_v61, %v10607_v22 }
 0x611   : > { %v11361_v39 = vadd.f32 %v17518_v42, %v11153_v25 }
 0x613   : > { %v11377_v38 = vadd.f32 %v11369_v30, %v11361_v39 }
 0x615   : > { %v11385_v11 = vmax.f32 %v11377_v38, 0.0 }
 0x616   : > { %v11087_v20 = vpop.f32.mrf.mxu1 }
 0x617   : > { %11393 = vst [vmem:[%s17298_s26 + $0xe8] sm:$0xff] %v11385_v11  ;;  %v11154_v23 = vadd.f32 %v11087_v20, %v10608_v14 }
 0x619   : > { %v11362_v47 = vadd.f32 %v17518_v42, %v11154_v23 }
 0x61b   : > { %v11378_v13 = vadd.f32 %v11370_v17, %v11362_v47 }
 0x61d   : > { %v11386_v10 = vmax.f32 %v11378_v13, 0.0 }
 0x61e   : > { %v11089_v12 = vpop.f32.mrf.mxu1 }
 0x61f   : > { %11394 = vst [vmem:[%s17298_s26 + $0xf0] sm:$0xff] %v11386_v10  ;;  %v11155_v1 = vadd.f32 %v11089_v12, %v10609_v45 }
 0x621   : > { %v11363_v8 = vadd.f32 %v17518_v42, %v11155_v1 }
 0x623   : > { %v11379_v32 = vadd.f32 %v11371_v21, %v11363_v8 }
 0x625   : > { %v11387_v44 = vmax.f32 %v11379_v32, 0.0 }
 0x627   : > { %11395 = vst [vmem:[%s17298_s26 + $0xf8] sm:$0xff] %v11387_v44 }
 0x628   : > { %13132 = shalt.err (!%p13129_p10)
}
 0x629   : > { %s13185_s8 = smov 128   ;;  %s13186_s26 = smov 8  }
 0x62a   : > { %12942 = dma.vmem_to_hbm [thread:$0]  (%p13283_p3), %s11410_s28, 4096, %s11412_s30, %s11397_s22, %s13185_s8, %s13185_s8, %s13186_s26  }
 0x62b PF: > { %s11426_s9 = sand.u32 1, %s13163_s18   ;;  %p18932_p12 = scmp.ge.s32.totalorder %s13175_s21, 2 }
 0x62c   : > { %s11427_s10 = scalar_lea.sflag [#allocation7], %s11426_s9 }
 0x62d   : > { %p12956_p13 = pnand %p18932_p12, %p13252_p6 }
 0x62f   : > { %p12957_p0 = pneg %p12956_p13 }
 0x631   : > { %13158 = dma.done.wait (%p12957_p0), %s11427_s10, 4096  }
 0x632   : > { %13160 = vsyncadd (%p12957_p0), %s11427_s10, 4294963200  ;;  %p19_p5 = scmp.ge.s32.totalorder %s13273_s14, 4   ;;  %s18933_s18 = smov %s13167_s19 }
 0x633   : > { %s18934_s19 = smov %s13171_s20  ;;  %s18935_s20 = smov %s13289_s23 }
 0x634   : > { %s18936_s21 = smov %s13273_s14  ;;  %21 = sbr.rel (!%p19_p5) target bundleno = 6 (0x6), region = 93 }
 0x639   :  { %11433 = vsyncpa [#allocation6], 1 }
 0x63a   :  { %11435 = vsyncpa [#allocation6 + $0x1], 1 }
 0x63b   :  { %11436 = vsyncpa [#allocation9], 1 }
 0x63c   :  { %11437 = vsyncpa [#allocation7], 1 }
 0x63d   :  { %11439 = vsyncpa [#allocation7 + $0x1], 1 }

</bundles_post_ra>
